<compile_context>
chip_gen: v7x
topology: tpu7x:2x2x1
jax: 0.10.0
libtpu: 0.0.40
codegen_flags: <defaults>
</compile_context>

<pallas_src>
import functools

import jax
import jax.numpy as jnp
from jax.experimental import pallas as pl
from jax.experimental.pallas import tpu as pltpu


LRELU_SLOPE = 0.2
BN_EPS = 1e-5
MAX_TILE_M = 512                    # patch-matrix rows per grid step (multiple of 16)
VMEM_LIMIT = 32 * 1024 * 1024       # full-K conv3 block set ~13 MiB double-buffered


# ---------------------------------------------------------------------------
# Small helpers (padding / tiling plan / layout glue)
# ---------------------------------------------------------------------------
def _round_up(x, m):
    return (x + m - 1) // m * m


def _pad2(a, rows, cols):
    return jnp.pad(a, ((0, rows - a.shape[0]), (0, cols - a.shape[1])))


def _tile_plan(M, K, Cout):
    """M tiling only; the full (padded) K and Cout stay resident per grid step."""
    mp = _round_up(M, 16)
    tile_m = mp if mp <= MAX_TILE_M else MAX_TILE_M
    mp = _round_up(M, tile_m)
    kp = _round_up(K, 128)
    cp = _round_up(Cout, 128)
    return mp, tile_m, kp, cp


def _im2col_nhwc(x, k, stride, pad):
    """x: (N, H, W, C) -> patches (N*Hout*Wout, k*k*C), K ordered (kh, kw, c)."""
    N, H, W, C = x.shape
    Hout = (H + 2 * pad - k) // stride + 1
    Wout = (W + 2 * pad - k) // stride + 1
    if pad == 0 and Hout == 1 and Wout == 1 and k == H and k == W:
        # Valid conv covering the whole spatial extent: im2col is a free reshape.
        return x.reshape(N, H * W * C), Hout, Wout
    xp = jnp.pad(x, ((0, 0), (pad, pad), (pad, pad), (0, 0)))
    cols = []
    for kh in range(k):
        for kw in range(k):
            cols.append(xp[:, kh:kh + stride * Hout:stride,
                           kw:kw + stride * Wout:stride, :])
    p = jnp.stack(cols, axis=3)                       # (N, Hout, Wout, k*k, C)
    return p.reshape(N * Hout * Wout, k * k * C), Hout, Wout


def _w_to_mat(w):
    """PyTorch (Cout, Cin, kh, kw) -> (kh*kw*Cin, Cout) matching im2col K order."""
    Cout, Cin, kh, kw = w.shape
    return jnp.transpose(w, (2, 3, 1, 0)).reshape(kh * kw * Cin, Cout)


# ---------------------------------------------------------------------------
# Pallas kernels
# ---------------------------------------------------------------------------
def _mm_act_kernel(p_ref, w_ref, b_ref, o_ref, *, act):
    """Full-K matmul + bias + activation.  Grid = (M tiles,), weight resident."""
    y = jnp.dot(p_ref[...], w_ref[...],
                preferred_element_type=jnp.float32) + b_ref[...]
    if act == "lrelu":
        y = jnp.where(y >= 0, y, LRELU_SLOPE * y)
    elif act == "sigmoid":
        y = pl.reciprocal(1.0 + jnp.exp(-y), approx=True)
    o_ref[...] = y.astype(o_ref.dtype)


def _mm_bn_lrelu_fused_kernel(p_ref, w_ref, b_ref, g_ref, bt_ref, o_ref, *, m_true):
    """Single-M-tile path: matmul + bias, exact batch stats over the valid rows,
    BatchNorm (training-mode, biased variance) + LeakyReLU -- all in one kernel."""
    y = jnp.dot(p_ref[...], w_ref[...],
                preferred_element_type=jnp.float32) + b_ref[...]
    row = jax.lax.broadcasted_iota(jnp.int32, y.shape, 0)
    yv = jnp.where(row < m_true, y, 0.0)               # mask zero-padded rows
    inv_m = 1.0 / m_true
    mean = jnp.sum(yv, axis=0, keepdims=True) * inv_m
    var = jnp.maximum(
        jnp.sum(yv * yv, axis=0, keepdims=True) * inv_m - mean * mean, 0.0)
    scale = g_ref[...] * jax.lax.rsqrt(var + BN_EPS)
    shift = bt_ref[...] - mean * scale
    z = y * scale + shift
    o_ref[...] = jnp.where(z >= 0, z, LRELU_SLOPE * z).astype(o_ref.dtype)


def _mm_stats_kernel(p_ref, w_ref, b_ref, y_ref, sum_ref, sq_ref, *, m_true, tile_m):
    """BN pass 1 (multi-tile): matmul + bias -> bf16 pre-activation, plus PER-TILE
    partial channel sum / sum-of-squares (M axis fully parallel / megacore-safe)."""
    i = pl.program_id(0)
    y = jnp.dot(p_ref[...], w_ref[...],
                preferred_element_type=jnp.float32) + b_ref[...]
    y_ref[...] = y.astype(y_ref.dtype)
    row = i * tile_m + jax.lax.broadcasted_iota(jnp.int32, y.shape, 0)
    yv = jnp.where(row < m_true, y, 0.0)
    sum_ref[0] = jnp.sum(yv, axis=0, keepdims=True)
    sq_ref[0] = jnp.sum(yv * yv, axis=0, keepdims=True)


def _bn_lrelu_kernel(y_ref, scale_ref, shift_ref, o_ref):
    """BN pass 2 (multi-tile): apply precomputed per-channel scale/shift + LeakyReLU."""
    z = y_ref[...].astype(jnp.float32) * scale_ref[...] + shift_ref[...]
    o_ref[...] = jnp.where(z >= 0, z, LRELU_SLOPE * z).astype(o_ref.dtype)


# ---------------------------------------------------------------------------
# Pallas wrappers
# ---------------------------------------------------------------------------
def _matmul_act(patches, w_mat, bias, *, act, out_dtype):
    M, K = patches.shape
    Cout = w_mat.shape[1]
    Mp, tile_m, Kp, Cp = _tile_plan(M, K, Cout)

    p = _pad2(patches.astype(jnp.bfloat16), Mp, Kp)
    w = _pad2(w_mat.astype(jnp.bfloat16), Kp, Cp)
    b = _pad2(bias.astype(jnp.float32).reshape(1, -1), 1, Cp)

    out = pl.pallas_call(
        functools.partial(_mm_act_kernel, act=act),
        out_shape=jax.ShapeDtypeStruct((Mp, Cp), out_dtype),
        grid_spec=pltpu.PrefetchScalarGridSpec(
            num_scalar_prefetch=0,
            grid=(Mp // tile_m,),
            in_specs=[
                pl.BlockSpec((tile_m, Kp), lambda i: (i, 0)),
                pl.BlockSpec((Kp, Cp), lambda i: (0, 0)),      # weight resident
                pl.BlockSpec((1, Cp), lambda i: (0, 0)),
            ],
            out_specs=pl.BlockSpec((tile_m, Cp), lambda i: (i, 0)),
        ),
        compiler_params=pltpu.CompilerParams(
            dimension_semantics=("parallel",),
            vmem_limit_bytes=VMEM_LIMIT),
    )(p, w, b)
    return out[:M, :Cout]


def _matmul_bn_lrelu(patches, w_mat, bias, gamma, beta, *, out_dtype=jnp.bfloat16):
    M, K = patches.shape
    Cout = w_mat.shape[1]
    Mp, tile_m, Kp, Cp = _tile_plan(M, K, Cout)
    n_tiles = Mp // tile_m

    p = _pad2(patches.astype(jnp.bfloat16), Mp, Kp)
    w = _pad2(w_mat.astype(jnp.bfloat16), Kp, Cp)
    b = _pad2(bias.astype(jnp.float32).reshape(1, -1), 1, Cp)
    g = _pad2(gamma.astype(jnp.float32).reshape(1, -1), 1, Cp)
    bt = _pad2(beta.astype(jnp.float32).reshape(1, -1), 1, Cp)

    if n_tiles == 1:
        # Small / inference batches: one fused kernel, no pre-activation round trip.
        out = pl.pallas_call(
            functools.partial(_mm_bn_lrelu_fused_kernel, m_true=M),
            out_shape=jax.ShapeDtypeStruct((Mp, Cp), out_dtype),
            grid_spec=pltpu.PrefetchScalarGridSpec(
                num_scalar_prefetch=0,
                grid=(1,),
                in_specs=[
                    pl.BlockSpec((tile_m, Kp), lambda i: (0, 0)),
                    pl.BlockSpec((Kp, Cp), lambda i: (0, 0)),
                    pl.BlockSpec((1, Cp), lambda i: (0, 0)),
                    pl.BlockSpec((1, Cp), lambda i: (0, 0)),
                    pl.BlockSpec((1, Cp), lambda i: (0, 0)),
                ],
                out_specs=pl.BlockSpec((tile_m, Cp), lambda i: (0, 0)),
            ),
            compiler_params=pltpu.CompilerParams(
                dimension_semantics=("arbitrary",),
                vmem_limit_bytes=VMEM_LIMIT),
        )(p, w, b, g, bt)
        return out[:M, :Cout]

    # Multi-tile path: pass 1 writes bf16 y + per-tile partial stats (M 'parallel');
    # the tiny (n_tiles, Cp) reduction + scale/shift math runs in XLA; pass 2
    # normalizes + LeakyReLU, tiled over M ('parallel').
    y, psum, psq = pl.pallas_call(
        functools.partial(_mm_stats_kernel, m_true=M, tile_m=tile_m),
        out_shape=(
            jax.ShapeDtypeStruct((Mp, Cp), jnp.bfloat16),
            jax.ShapeDtypeStruct((n_tiles, 1, Cp), jnp.float32),
            jax.ShapeDtypeStruct((n_tiles, 1, Cp), jnp.float32),
        ),
        grid_spec=pltpu.PrefetchScalarGridSpec(
            num_scalar_prefetch=0,
            grid=(n_tiles,),
            in_specs=[
                pl.BlockSpec((tile_m, Kp), lambda i: (i, 0)),
                pl.BlockSpec((Kp, Cp), lambda i: (0, 0)),      # weight resident
                pl.BlockSpec((1, Cp), lambda i: (0, 0)),
            ],
            out_specs=[
                pl.BlockSpec((tile_m, Cp), lambda i: (i, 0)),
                pl.BlockSpec((1, 1, Cp), lambda i: (i, 0, 0)),
                pl.BlockSpec((1, 1, Cp), lambda i: (i, 0, 0)),
            ],
        ),
        compiler_params=pltpu.CompilerParams(
            dimension_semantics=("parallel",),
            vmem_limit_bytes=VMEM_LIMIT),
    )(p, w, b)

    inv_m = 1.0 / M
    mean = jnp.sum(psum[:, 0, :], axis=0, keepdims=True) * inv_m
    var = jnp.maximum(
        jnp.sum(psq[:, 0, :], axis=0, keepdims=True) * inv_m - mean * mean, 0.0)
    scale = g * jax.lax.rsqrt(var + BN_EPS)
    shift = bt - mean * scale

    out = pl.pallas_call(
        _bn_lrelu_kernel,
        out_shape=jax.ShapeDtypeStruct((Mp, Cp), out_dtype),
        grid_spec=pltpu.PrefetchScalarGridSpec(
            num_scalar_prefetch=0,
            grid=(n_tiles,),
            in_specs=[
                pl.BlockSpec((tile_m, Cp), lambda i: (i, 0)),
                pl.BlockSpec((1, Cp), lambda i: (0, 0)),
                pl.BlockSpec((1, Cp), lambda i: (0, 0)),
            ],
            out_specs=pl.BlockSpec((tile_m, Cp), lambda i: (i, 0)),
        ),
        compiler_params=pltpu.CompilerParams(
            dimension_semantics=("parallel",),
            vmem_limit_bytes=VMEM_LIMIT),
    )(y, scale, shift)
    return out[:M, :Cout]


# ---------------------------------------------------------------------------
# Layer wrappers (NHWC activations, bf16 between layers)
# ---------------------------------------------------------------------------
def conv_act(x_nhwc, w, b, *, stride, pad, act, out_dtype):
    N = x_nhwc.shape[0]
    Cout, _, k, _ = w.shape
    patches, Hout, Wout = _im2col_nhwc(x_nhwc, k, stride, pad)
    out = _matmul_act(patches, _w_to_mat(w), b, act=act, out_dtype=out_dtype)
    return out.reshape(N, Hout, Wout, Cout)


def conv_bn_lrelu(x_nhwc, w, b, gamma, beta, *, stride, pad):
    N = x_nhwc.shape[0]
    Cout, _, k, _ = w.shape
    patches, Hout, Wout = _im2col_nhwc(x_nhwc, k, stride, pad)
    out = _matmul_bn_lrelu(patches, _w_to_mat(w), b, gamma, beta,
                           out_dtype=jnp.bfloat16)
    return out.reshape(N, Hout, Wout, Cout)


# ---------------------------------------------------------------------------
# Parameters (normal_init(0, 0.02), zero bias; BN gamma=1, beta=0)
# ---------------------------------------------------------------------------
def init_params(key):
    ks = jax.random.split(key, 5)

    def conv_p(k, cout, cin):
        return (0.02 * jax.random.normal(k, (cout, cin, 4, 4), jnp.float32),
                jnp.zeros((cout,), jnp.float32))

    p = {}
    p["conv1_z_w"], p["conv1_z_b"] = conv_p(ks[0], 64, 1)
    p["conv1_l_w"], p["conv1_l_b"] = conv_p(ks[1], 64, 10)
    p["conv2_w"], p["conv2_b"] = conv_p(ks[2], 256, 128)
    p["bn2_g"], p["bn2_b"] = jnp.ones((256,), jnp.float32), jnp.zeros((256,), jnp.float32)
    p["conv3_w"], p["conv3_b"] = conv_p(ks[3], 512, 256)
    p["bn3_g"], p["bn3_b"] = jnp.ones((512,), jnp.float32), jnp.zeros((512,), jnp.float32)
    p["conv4_w"], p["conv4_b"] = conv_p(ks[4], 1, 512)
    return p


# ---------------------------------------------------------------------------
# Forward pass (mirrors Discriminator.forward, training-mode BatchNorm)
# ---------------------------------------------------------------------------
def discriminator_forward(p, z, y_fill):
    # Convert NCHW inputs to NHWC (channels -> lanes) once at the boundary.
    x = jnp.concatenate([z, y_fill], axis=1)                     # (N, 11, 32, 32)
    x = jnp.transpose(x, (0, 2, 3, 1)).astype(jnp.bfloat16)      # (N, 32, 32, 11)

    # Layer 1: conv1_z and conv1_l fused into one lane-dense block-diagonal matmul.
    # Columns 0..63 == conv1_z(z), 64..127 == conv1_l(y_fill)  (== torch.cat dim=1).
    w1 = jnp.zeros((128, 11, 4, 4), jnp.float32)
    w1 = w1.at[:64, :1].set(p["conv1_z_w"]).at[64:, 1:].set(p["conv1_l_w"])
    b1 = jnp.concatenate([p["conv1_z_b"], p["conv1_l_b"]])
    x = conv_act(x, w1, b1, stride=2, pad=1, act="lrelu",
                 out_dtype=jnp.bfloat16)                         # (N, 16, 16, 128)

    x = conv_bn_lrelu(x, p["conv2_w"], p["conv2_b"], p["bn2_g"], p["bn2_b"],
                      stride=2, pad=1)                           # (N, 8, 8, 256)
    x = conv_bn_lrelu(x, p["conv3_w"], p["conv3_b"], p["bn3_g"], p["bn3_b"],
                      stride=2, pad=1)                           # (N, 4, 4, 512)

    # Layer 4: Cout=1 padded to 128 lanes for lane-dense MXU stores; col 0 sliced out.
    out = conv_act(x, p["conv4_w"], p["conv4_b"], stride=1, pad=0,
                   act="sigmoid", out_dtype=jnp.float32)         # (N, 1, 1, 1)
    return out.reshape(-1)                                       # (N,)


if __name__ == "__main__":
    key = jax.random.PRNGKey(0)
    k_z, k_p = jax.random.split(key, 2)

    N = 2
    # z: image input (N,1,32,32); y_fill: one-hot label planes (N,10,32,32)
    z = jax.random.normal(k_z, (N, 1, 32, 32), jnp.float32)
    labels = jnp.array([3, 7])
    y_fill = jnp.zeros((N, 10, 32, 32), jnp.float32).at[jnp.arange(N), labels].set(1.0)

    params = init_params(k_p)
    fwd = jax.jit(discriminator_forward)
    out = jax.block_until_ready(fwd(params, z, y_fill))
    assert out.shape == (N,)
    assert bool(jnp.all(jnp.isfinite(out)))
    assert bool(jnp.all((out >= 0.0) & (out <= 1.0)))
    print("KERNEL_OK")
</pallas_src>

<mosaic_0001>
module attributes {stable_mosaic.version = 11 : i64} {
  func.func @_mm_act_kernel(%arg0: i32, %arg1: memref<512x256xbf16, #tpu.memory_space<vmem>>, %arg2: memref<256x128xbf16, #tpu.memory_space<vmem>>, %arg3: memref<1x128xf32, #tpu.memory_space<vmem>>, %arg4: memref<512x128xbf16, #tpu.memory_space<vmem>>) attributes {dimension_semantics = [#tpu.dimension_semantics<parallel>], iteration_bounds = array<i64: 1>, scalar_prefetch = 0 : i64, scratch_operands = 0 : i64, tpu.core_type = #tpu.core_type<tc>, window_params = [{transform_indices = @transform_0, window_bounds = array<i64: 512, 256>}, {pipeline_mode = #tpu.pipeline_mode<synchronous>, transform_indices = @transform_1, window_bounds = array<i64: 256, 128>}, {pipeline_mode = #tpu.pipeline_mode<synchronous>, transform_indices = @transform_2, window_bounds = array<i64: 1, 128>}, {transform_indices = @transform_3, window_bounds = array<i64: 512, 128>}]} {
    %c0 = arith.constant 0 : index
    %c0_0 = arith.constant 0 : index
    %0 = vector.load %arg1[%c0, %c0_0] : memref<512x256xbf16, #tpu.memory_space<vmem>>, vector<512x256xbf16>
    %c0_1 = arith.constant 0 : index
    %c0_2 = arith.constant 0 : index
    %1 = vector.load %arg2[%c0_1, %c0_2] : memref<256x128xbf16, #tpu.memory_space<vmem>>, vector<256x128xbf16>
    %cst = arith.constant dense<0.000000e+00> : vector<512x128xf32>
    %2 = tpu.matmul %0, %1, %cst {dimension_numbers = #tpu.dot_dimension_numbers<[1], [0], [0], [1], [0, 0, 1, 1], [], []>} : vector<512x256xbf16>, vector<256x128xbf16>, vector<512x128xf32> -> vector<512x128xf32>
    %c0_3 = arith.constant 0 : index
    %c0_4 = arith.constant 0 : index
    %3 = vector.load %arg3[%c0_3, %c0_4] : memref<1x128xf32, #tpu.memory_space<vmem>>, vector<1x128xf32>
    %4 = vector.broadcast %3 : vector<1x128xf32> to vector<512x128xf32>
    %5 = arith.addf %2, %4 : vector<512x128xf32>
    %cst_5 = arith.constant 0.000000e+00 : f32
    %6 = vector.broadcast %cst_5 : f32 to vector<512x128xf32>
    %7 = arith.cmpf oge, %5, %6 : vector<512x128xf32>
    %cst_6 = arith.constant 2.000000e-01 : f32
    %8 = vector.broadcast %cst_6 : f32 to vector<512x128xf32>
    %9 = arith.mulf %8, %5 : vector<512x128xf32>
    %10 = arith.select %7, %5, %9 : vector<512x128xi1>, vector<512x128xf32>
    %11 = arith.truncf %10 : vector<512x128xf32> to vector<512x128xbf16>
    %c0_7 = arith.constant 0 : index
    %c0_8 = arith.constant 0 : index
    %12 = vector.load %arg4[%c0_7, %c0_8] : memref<512x128xbf16, #tpu.memory_space<vmem>>, vector<512x128xbf16>
    tpu.vector_store %arg4[%c0_7, %c0_8], %11 {strides = array<i32>} : memref<512x128xbf16, #tpu.memory_space<vmem>>, vector<512x128xbf16>,
    return
  }
  func.func @transform_0(%arg0: i32) -> (i32, i32) {
    %c0_i32 = arith.constant 0 : i32
    %c0_i32_0 = arith.constant 0 : i32
    return %arg0, %c0_i32 : i32, i32
  }
  func.func @transform_1(%arg0: i32) -> (i32, i32) {
    %c0_i32 = arith.constant 0 : i32
    %c0_i32_0 = arith.constant 0 : i32
    %c0_i32_1 = arith.constant 0 : i32
    return %c0_i32, %c0_i32_0 : i32, i32
  }
  func.func @transform_2(%arg0: i32) -> (i32, i32) {
    %c0_i32 = arith.constant 0 : i32
    %c0_i32_0 = arith.constant 0 : i32
    %c0_i32_1 = arith.constant 0 : i32
    return %c0_i32, %c0_i32_0 : i32, i32
  }
  func.func @transform_3(%arg0: i32) -> (i32, i32) {
    %c0_i32 = arith.constant 0 : i32
    %c0_i32_0 = arith.constant 0 : i32
    return %arg0, %c0_i32 : i32, i32
  }
}

module attributes {stable_mosaic.version = 11 : i64} {
  func.func @_mm_bn_lrelu_fused_kernel(%arg0: i32, %arg1: memref<128x2048xbf16, #tpu.memory_space<vmem>>, %arg2: memref<2048x256xbf16, #tpu.memory_space<vmem>>, %arg3: memref<1x256xf32, #tpu.memory_space<vmem>>, %arg4: memref<1x256xf32, #tpu.memory_space<vmem>>, %arg5: memref<1x256xf32, #tpu.memory_space<vmem>>, %arg6: memref<128x256xbf16, #tpu.memory_space<vmem>>) attributes {dimension_semantics = [#tpu.dimension_semantics<arbitrary>], iteration_bounds = array<i64: 1>, scalar_prefetch = 0 : i64, scratch_operands = 0 : i64, tpu.core_type = #tpu.core_type<tc>, window_params = [{pipeline_mode = #tpu.pipeline_mode<synchronous>, transform_indices = @transform_0, window_bounds = array<i64: 128, 2048>}, {pipeline_mode = #tpu.pipeline_mode<synchronous>, transform_indices = @transform_1, window_bounds = array<i64: 2048, 256>}, {pipeline_mode = #tpu.pipeline_mode<synchronous>, transform_indices = @transform_2, window_bounds = array<i64: 1, 256>}, {pipeline_mode = #tpu.pipeline_mode<synchronous>, transform_indices = @transform_3, window_bounds = array<i64: 1, 256>}, {pipeline_mode = #tpu.pipeline_mode<synchronous>, transform_indices = @transform_4, window_bounds = array<i64: 1, 256>}, {pipeline_mode = #tpu.pipeline_mode<synchronous>, transform_indices = @transform_5, window_bounds = array<i64: 128, 256>}]} {
    %c0 = arith.constant 0 : index
    %c0_0 = arith.constant 0 : index
    %0 = vector.load %arg1[%c0, %c0_0] : memref<128x2048xbf16, #tpu.memory_space<vmem>>, vector<128x2048xbf16>
    %c0_1 = arith.constant 0 : index
    %c0_2 = arith.constant 0 : index
    %1 = vector.load %arg2[%c0_1, %c0_2] : memref<2048x256xbf16, #tpu.memory_space<vmem>>, vector<2048x256xbf16>
    %cst = arith.constant dense<0.000000e+00> : vector<128x256xf32>
    %2 = tpu.matmul %0, %1, %cst {dimension_numbers = #tpu.dot_dimension_numbers<[1], [0], [0], [1], [0, 0, 1, 1], [], []>} : vector<128x2048xbf16>, vector<2048x256xbf16>, vector<128x256xf32> -> vector<128x256xf32>
    %c0_3 = arith.constant 0 : index
    %c0_4 = arith.constant 0 : index
    %3 = vector.load %arg3[%c0_3, %c0_4] : memref<1x256xf32, #tpu.memory_space<vmem>>, vector<1x256xf32>
    %4 = vector.broadcast %3 : vector<1x256xf32> to vector<128x256xf32>
    %5 = arith.addf %2, %4 : vector<128x256xf32>
    %6 = tpu.iota {dimensions = array<i32: 0>} : vector<128x256xi32>
    %c128_i32 = arith.constant 128 : i32
    %7 = vector.broadcast %c128_i32 : i32 to vector<128x256xi32>
    %8 = arith.cmpi slt, %6, %7 : vector<128x256xi32>
    %cst_5 = arith.constant 0.000000e+00 : f32
    %9 = vector.broadcast %cst_5 : f32 to vector<128x256xf32>
    %10 = arith.select %8, %5, %9 : vector<128x256xi1>, vector<128x256xf32>
    %cst_6 = arith.constant dense<0.000000e+00> : vector<256xf32>
    %11 = vector.multi_reduction <add>, %10, %cst_6 [0] : vector<128x256xf32> to vector<256xf32>
    %12 = vector.shape_cast %11 : vector<256xf32> to vector<1x256xf32>
    %cst_7 = arith.constant 7.812500e-03 : f32
    %13 = vector.broadcast %cst_7 : f32 to vector<1x256xf32>
    %14 = arith.mulf %12, %13 : vector<1x256xf32>
    %15 = arith.mulf %10, %10 : vector<128x256xf32>
    %cst_8 = arith.constant dense<0.000000e+00> : vector<256xf32>
    %16 = vector.multi_reduction <add>, %15, %cst_8 [0] : vector<128x256xf32> to vector<256xf32>
    %17 = vector.shape_cast %16 : vector<256xf32> to vector<1x256xf32>
    %cst_9 = arith.constant 7.812500e-03 : f32
    %18 = vector.broadcast %cst_9 : f32 to vector<1x256xf32>
    %19 = arith.mulf %17, %18 : vector<1x256xf32>
    %20 = arith.mulf %14, %14 : vector<1x256xf32>
    %21 = arith.subf %19, %20 : vector<1x256xf32>
    %cst_10 = arith.constant 0.000000e+00 : f32
    %22 = vector.broadcast %cst_10 : f32 to vector<1x256xf32>
    %23 = arith.maximumf %21, %22 : vector<1x256xf32>
    %c0_11 = arith.constant 0 : index
    %c0_12 = arith.constant 0 : index
    %24 = vector.load %arg4[%c0_11, %c0_12] : memref<1x256xf32, #tpu.memory_space<vmem>>, vector<1x256xf32>
    %cst_13 = arith.constant 9.99999974E-6 : f32
    %25 = vector.broadcast %cst_13 : f32 to vector<1x256xf32>
    %26 = arith.addf %23, %25 : vector<1x256xf32>
    %27 = math.rsqrt %26 : vector<1x256xf32>
    %28 = arith.mulf %24, %27 : vector<1x256xf32>
    %c0_14 = arith.constant 0 : index
    %c0_15 = arith.constant 0 : index
    %29 = vector.load %arg5[%c0_14, %c0_15] : memref<1x256xf32, #tpu.memory_space<vmem>>, vector<1x256xf32>
    %30 = arith.mulf %14, %28 : vector<1x256xf32>
    %31 = arith.subf %29, %30 : vector<1x256xf32>
    %32 = vector.broadcast %28 : vector<1x256xf32> to vector<128x256xf32>
    %33 = arith.mulf %5, %32 : vector<128x256xf32>
    %34 = vector.broadcast %31 : vector<1x256xf32> to vector<128x256xf32>
    %35 = arith.addf %33, %34 : vector<128x256xf32>
    %cst_16 = arith.constant 0.000000e+00 : f32
    %36 = vector.broadcast %cst_16 : f32 to vector<128x256xf32>
    %37 = arith.cmpf oge, %35, %36 : vector<128x256xf32>
    %cst_17 = arith.constant 2.000000e-01 : f32
    %38 = vector.broadcast %cst_17 : f32 to vector<128x256xf32>
    %39 = arith.mulf %38, %35 : vector<128x256xf32>
    %40 = arith.select %37, %35, %39 : vector<128x256xi1>, vector<128x256xf32>
    %41 = arith.truncf %40 : vector<128x256xf32> to vector<128x256xbf16>
    %c0_18 = arith.constant 0 : index
    %c0_19 = arith.constant 0 : index
    %42 = vector.load %arg6[%c0_18, %c0_19] : memref<128x256xbf16, #tpu.memory_space<vmem>>, vector<128x256xbf16>
    tpu.vector_store %arg6[%c0_18, %c0_19], %41 {strides = array<i32>} : memref<128x256xbf16, #tpu.memory_space<vmem>>, vector<128x256xbf16>,
    return
  }
  func.func @transform_0(%arg0: i32) -> (i32, i32) {
    %c0_i32 = arith.constant 0 : i32
    %c0_i32_0 = arith.constant 0 : i32
    %c0_i32_1 = arith.constant 0 : i32
    return %c0_i32, %c0_i32_0 : i32, i32
  }
  func.func @transform_1(%arg0: i32) -> (i32, i32) {
    %c0_i32 = arith.constant 0 : i32
    %c0_i32_0 = arith.constant 0 : i32
    %c0_i32_1 = arith.constant 0 : i32
    return %c0_i32, %c0_i32_0 : i32, i32
  }
  func.func @transform_2(%arg0: i32) -> (i32, i32) {
    %c0_i32 = arith.constant 0 : i32
    %c0_i32_0 = arith.constant 0 : i32
    %c0_i32_1 = arith.constant 0 : i32
    return %c0_i32, %c0_i32_0 : i32, i32
  }
  func.func @transform_3(%arg0: i32) -> (i32, i32) {
    %c0_i32 = arith.constant 0 : i32
    %c0_i32_0 = arith.constant 0 : i32
    %c0_i32_1 = arith.constant 0 : i32
    return %c0_i32, %c0_i32_0 : i32, i32
  }
  func.func @transform_4(%arg0: i32) -> (i32, i32) {
    %c0_i32 = arith.constant 0 : i32
    %c0_i32_0 = arith.constant 0 : i32
    %c0_i32_1 = arith.constant 0 : i32
    return %c0_i32, %c0_i32_0 : i32, i32
  }
  func.func @transform_5(%arg0: i32) -> (i32, i32) {
    %c0_i32 = arith.constant 0 : i32
    %c0_i32_0 = arith.constant 0 : i32
    %c0_i32_1 = arith.constant 0 : i32
    return %c0_i32, %c0_i32_0 : i32, i32
  }
}

module attributes {stable_mosaic.version = 11 : i64} {
  func.func @_mm_bn_lrelu_fused_kernel(%arg0: i32, %arg1: memref<32x4096xbf16, #tpu.memory_space<vmem>>, %arg2: memref<4096x512xbf16, #tpu.memory_space<vmem>>, %arg3: memref<1x512xf32, #tpu.memory_space<vmem>>, %arg4: memref<1x512xf32, #tpu.memory_space<vmem>>, %arg5: memref<1x512xf32, #tpu.memory_space<vmem>>, %arg6: memref<32x512xbf16, #tpu.memory_space<vmem>>) attributes {dimension_semantics = [#tpu.dimension_semantics<arbitrary>], iteration_bounds = array<i64: 1>, scalar_prefetch = 0 : i64, scratch_operands = 0 : i64, tpu.core_type = #tpu.core_type<tc>, window_params = [{pipeline_mode = #tpu.pipeline_mode<synchronous>, transform_indices = @transform_0, window_bounds = array<i64: 32, 4096>}, {pipeline_mode = #tpu.pipeline_mode<synchronous>, transform_indices = @transform_1, window_bounds = array<i64: 4096, 512>}, {pipeline_mode = #tpu.pipeline_mode<synchronous>, transform_indices = @transform_2, window_bounds = array<i64: 1, 512>}, {pipeline_mode = #tpu.pipeline_mode<synchronous>, transform_indices = @transform_3, window_bounds = array<i64: 1, 512>}, {pipeline_mode = #tpu.pipeline_mode<synchronous>, transform_indices = @transform_4, window_bounds = array<i64: 1, 512>}, {pipeline_mode = #tpu.pipeline_mode<synchronous>, transform_indices = @transform_5, window_bounds = array<i64: 32, 512>}]} {
    %c0 = arith.constant 0 : index
    %c0_0 = arith.constant 0 : index
    %0 = vector.load %arg1[%c0, %c0_0] : memref<32x4096xbf16, #tpu.memory_space<vmem>>, vector<32x4096xbf16>
    %c0_1 = arith.constant 0 : index
    %c0_2 = arith.constant 0 : index
    %1 = vector.load %arg2[%c0_1, %c0_2] : memref<4096x512xbf16, #tpu.memory_space<vmem>>, vector<4096x512xbf16>
    %cst = arith.constant dense<0.000000e+00> : vector<32x512xf32>
    %2 = tpu.matmul %0, %1, %cst {dimension_numbers = #tpu.dot_dimension_numbers<[1], [0], [0], [1], [0, 0, 1, 1], [], []>} : vector<32x4096xbf16>, vector<4096x512xbf16>, vector<32x512xf32> -> vector<32x512xf32>
    %c0_3 = arith.constant 0 : index
    %c0_4 = arith.constant 0 : index
    %3 = vector.load %arg3[%c0_3, %c0_4] : memref<1x512xf32, #tpu.memory_space<vmem>>, vector<1x512xf32>
    %4 = vector.broadcast %3 : vector<1x512xf32> to vector<32x512xf32>
    %5 = arith.addf %2, %4 : vector<32x512xf32>
    %6 = tpu.iota {dimensions = array<i32: 0>} : vector<32x512xi32>
    %c32_i32 = arith.constant 32 : i32
    %7 = vector.broadcast %c32_i32 : i32 to vector<32x512xi32>
    %8 = arith.cmpi slt, %6, %7 : vector<32x512xi32>
    %cst_5 = arith.constant 0.000000e+00 : f32
    %9 = vector.broadcast %cst_5 : f32 to vector<32x512xf32>
    %10 = arith.select %8, %5, %9 : vector<32x512xi1>, vector<32x512xf32>
    %cst_6 = arith.constant dense<0.000000e+00> : vector<512xf32>
    %11 = vector.multi_reduction <add>, %10, %cst_6 [0] : vector<32x512xf32> to vector<512xf32>
    %12 = vector.shape_cast %11 : vector<512xf32> to vector<1x512xf32>
    %cst_7 = arith.constant 3.125000e-02 : f32
    %13 = vector.broadcast %cst_7 : f32 to vector<1x512xf32>
    %14 = arith.mulf %12, %13 : vector<1x512xf32>
    %15 = arith.mulf %10, %10 : vector<32x512xf32>
    %cst_8 = arith.constant dense<0.000000e+00> : vector<512xf32>
    %16 = vector.multi_reduction <add>, %15, %cst_8 [0] : vector<32x512xf32> to vector<512xf32>
    %17 = vector.shape_cast %16 : vector<512xf32> to vector<1x512xf32>
    %cst_9 = arith.constant 3.125000e-02 : f32
    %18 = vector.broadcast %cst_9 : f32 to vector<1x512xf32>
    %19 = arith.mulf %17, %18 : vector<1x512xf32>
    %20 = arith.mulf %14, %14 : vector<1x512xf32>
    %21 = arith.subf %19, %20 : vector<1x512xf32>
    %cst_10 = arith.constant 0.000000e+00 : f32
    %22 = vector.broadcast %cst_10 : f32 to vector<1x512xf32>
    %23 = arith.maximumf %21, %22 : vector<1x512xf32>
    %c0_11 = arith.constant 0 : index
    %c0_12 = arith.constant 0 : index
    %24 = vector.load %arg4[%c0_11, %c0_12] : memref<1x512xf32, #tpu.memory_space<vmem>>, vector<1x512xf32>
    %cst_13 = arith.constant 9.99999974E-6 : f32
    %25 = vector.broadcast %cst_13 : f32 to vector<1x512xf32>
    %26 = arith.addf %23, %25 : vector<1x512xf32>
    %27 = math.rsqrt %26 : vector<1x512xf32>
    %28 = arith.mulf %24, %27 : vector<1x512xf32>
    %c0_14 = arith.constant 0 : index
    %c0_15 = arith.constant 0 : index
    %29 = vector.load %arg5[%c0_14, %c0_15] : memref<1x512xf32, #tpu.memory_space<vmem>>, vector<1x512xf32>
    %30 = arith.mulf %14, %28 : vector<1x512xf32>
    %31 = arith.subf %29, %30 : vector<1x512xf32>
    %32 = vector.broadcast %28 : vector<1x512xf32> to vector<32x512xf32>
    %33 = arith.mulf %5, %32 : vector<32x512xf32>
    %34 = vector.broadcast %31 : vector<1x512xf32> to vector<32x512xf32>
    %35 = arith.addf %33, %34 : vector<32x512xf32>
    %cst_16 = arith.constant 0.000000e+00 : f32
    %36 = vector.broadcast %cst_16 : f32 to vector<32x512xf32>
    %37 = arith.cmpf oge, %35, %36 : vector<32x512xf32>
    %cst_17 = arith.constant 2.000000e-01 : f32
    %38 = vector.broadcast %cst_17 : f32 to vector<32x512xf32>
    %39 = arith.mulf %38, %35 : vector<32x512xf32>
    %40 = arith.select %37, %35, %39 : vector<32x512xi1>, vector<32x512xf32>
    %41 = arith.truncf %40 : vector<32x512xf32> to vector<32x512xbf16>
    %c0_18 = arith.constant 0 : index
    %c0_19 = arith.constant 0 : index
    %42 = vector.load %arg6[%c0_18, %c0_19] : memref<32x512xbf16, #tpu.memory_space<vmem>>, vector<32x512xbf16>
    tpu.vector_store %arg6[%c0_18, %c0_19], %41 {strides = array<i32>} : memref<32x512xbf16, #tpu.memory_space<vmem>>, vector<32x512xbf16>,
    return
  }
  func.func @transform_0(%arg0: i32) -> (i32, i32) {
    %c0_i32 = arith.constant 0 : i32
    %c0_i32_0 = arith.constant 0 : i32
    %c0_i32_1 = arith.constant 0 : i32
    return %c0_i32, %c0_i32_0 : i32, i32
  }
  func.func @transform_1(%arg0: i32) -> (i32, i32) {
    %c0_i32 = arith.constant 0 : i32
    %c0_i32_0 = arith.constant 0 : i32
    %c0_i32_1 = arith.constant 0 : i32
    return %c0_i32, %c0_i32_0 : i32, i32
  }
  func.func @transform_2(%arg0: i32) -> (i32, i32) {
    %c0_i32 = arith.constant 0 : i32
    %c0_i32_0 = arith.constant 0 : i32
    %c0_i32_1 = arith.constant 0 : i32
    return %c0_i32, %c0_i32_0 : i32, i32
  }
  func.func @transform_3(%arg0: i32) -> (i32, i32) {
    %c0_i32 = arith.constant 0 : i32
    %c0_i32_0 = arith.constant 0 : i32
    %c0_i32_1 = arith.constant 0 : i32
    return %c0_i32, %c0_i32_0 : i32, i32
  }
  func.func @transform_4(%arg0: i32) -> (i32, i32) {
    %c0_i32 = arith.constant 0 : i32
    %c0_i32_0 = arith.constant 0 : i32
    %c0_i32_1 = arith.constant 0 : i32
    return %c0_i32, %c0_i32_0 : i32, i32
  }
  func.func @transform_5(%arg0: i32) -> (i32, i32) {
    %c0_i32 = arith.constant 0 : i32
    %c0_i32_0 = arith.constant 0 : i32
    %c0_i32_1 = arith.constant 0 : i32
    return %c0_i32, %c0_i32_0 : i32, i32
  }
}

module attributes {stable_mosaic.version = 11 : i64} {
  func.func @_mm_act_kernel(%arg0: i32, %arg1: memref<16x8192xbf16, #tpu.memory_space<vmem>>, %arg2: memref<8192x128xbf16, #tpu.memory_space<vmem>>, %arg3: memref<1x128xf32, #tpu.memory_space<vmem>>, %arg4: memref<16x128xf32, #tpu.memory_space<vmem>>) attributes {dimension_semantics = [#tpu.dimension_semantics<parallel>], iteration_bounds = array<i64: 1>, scalar_prefetch = 0 : i64, scratch_operands = 0 : i64, tpu.core_type = #tpu.core_type<tc>, window_params = [{transform_indices = @transform_0, window_bounds = array<i64: 16, 8192>}, {pipeline_mode = #tpu.pipeline_mode<synchronous>, transform_indices = @transform_1, window_bounds = array<i64: 8192, 128>}, {pipeline_mode = #tpu.pipeline_mode<synchronous>, transform_indices = @transform_2, window_bounds = array<i64: 1, 128>}, {transform_indices = @transform_3, window_bounds = array<i64: 16, 128>}]} {
    %c0 = arith.constant 0 : index
    %c0_0 = arith.constant 0 : index
    %0 = vector.load %arg1[%c0, %c0_0] : memref<16x8192xbf16, #tpu.memory_space<vmem>>, vector<16x8192xbf16>
    %c0_1 = arith.constant 0 : index
    %c0_2 = arith.constant 0 : index
    %1 = vector.load %arg2[%c0_1, %c0_2] : memref<8192x128xbf16, #tpu.memory_space<vmem>>, vector<8192x128xbf16>
    %cst = arith.constant dense<0.000000e+00> : vector<16x128xf32>
    %2 = tpu.matmul %0, %1, %cst {dimension_numbers = #tpu.dot_dimension_numbers<[1], [0], [0], [1], [0, 0, 1, 1], [], []>} : vector<16x8192xbf16>, vector<8192x128xbf16>, vector<16x128xf32> -> vector<16x128xf32>
    %c0_3 = arith.constant 0 : index
    %c0_4 = arith.constant 0 : index
    %3 = vector.load %arg3[%c0_3, %c0_4] : memref<1x128xf32, #tpu.memory_space<vmem>>, vector<1x128xf32>
    %4 = vector.broadcast %3 : vector<1x128xf32> to vector<16x128xf32>
    %5 = arith.addf %2, %4 : vector<16x128xf32>
    %cst_5 = arith.constant 0.000000e+00 : f32
    %6 = vector.broadcast %cst_5 : f32 to vector<16x128xf32>
    %7 = arith.subf %6, %5 : vector<16x128xf32>
    %8 = math.exp %7 : vector<16x128xf32>
    %cst_6 = arith.constant 1.000000e+00 : f32
    %9 = vector.broadcast %cst_6 : f32 to vector<16x128xf32>
    %10 = arith.addf %9, %8 : vector<16x128xf32>
    %11 = tpu.reciprocal %10 {approx = true} : vector<16x128xf32> -> vector<16x128xf32>
    %c0_7 = arith.constant 0 : index
    %c0_8 = arith.constant 0 : index
    %12 = vector.load %arg4[%c0_7, %c0_8] : memref<16x128xf32, #tpu.memory_space<vmem>>, vector<16x128xf32>
    tpu.vector_store %arg4[%c0_7, %c0_8], %11 {strides = array<i32>} : memref<16x128xf32, #tpu.memory_space<vmem>>, vector<16x128xf32>,
    return
  }
  func.func @transform_0(%arg0: i32) -> (i32, i32) {
    %c0_i32 = arith.constant 0 : i32
    %c0_i32_0 = arith.constant 0 : i32
    return %arg0, %c0_i32 : i32, i32
  }
  func.func @transform_1(%arg0: i32) -> (i32, i32) {
    %c0_i32 = arith.constant 0 : i32
    %c0_i32_0 = arith.constant 0 : i32
    %c0_i32_1 = arith.constant 0 : i32
    return %c0_i32, %c0_i32_0 : i32, i32
  }
  func.func @transform_2(%arg0: i32) -> (i32, i32) {
    %c0_i32 = arith.constant 0 : i32
    %c0_i32_0 = arith.constant 0 : i32
    %c0_i32_1 = arith.constant 0 : i32
    return %c0_i32, %c0_i32_0 : i32, i32
  }
  func.func @transform_3(%arg0: i32) -> (i32, i32) {
    %c0_i32 = arith.constant 0 : i32
    %c0_i32_0 = arith.constant 0 : i32
    return %arg0, %c0_i32 : i32, i32
  }
}

</mosaic_0001>

<bundles_post_ra>
// kernel: discriminator_forward.4
= control target key start
LH: loop header
LB: loop body
LE: loop exit
PB: predicated region body
PF: predicated region fallthrough
CT: control target
= control target key end

     0   :  { %v1884_v0 = vmov 0   ;;  %s2342_s1 = inlined_call_operand.vmem [shape: bf16[256,128], index: 1, kind: input, shape index: {}]   ;;  %s2343_s0 = inlined_call_operand.vmem [shape: bf16[512,256], index: 0, kind: input, shape index: {}]   ;;  %s2344_s2 = inlined_call_operand.vmem [shape: f32[1,128], index: 2, kind: input, shape index: {}]   ;;  %s2345_s3 = inlined_call_operand.vmem [shape: bf16[512,128], index: 3, kind: output, shape index: {}]  }
   0x1   :  { %534 = vmatprep.subr.bf16.mxu0 %v1884_v0  ;;  %1739 = vmatprep.subr.bf16.mxu1 %v1884_v0  ;;  %v1772_v1 = vld [vmem:[%s2342_s1] sm:$0xff]   ;;  %v1773_v2 = vld [vmem:[%s2342_s1 + $0x8] sm:$0xff]   ;;  %v1774_v3 = vld [vmem:[%s2342_s1 + $0x10] sm:$0xff]  }
   0x2   :  { %535 = vmatpush1.bf16.msra.mxu0 %v1772_v1  ;;  %1755 = vmatpush1.bf16.msra.mxu1 %v1772_v1  ;;  %v1775_v4 = vld [vmem:[%s2342_s1 + $0x18] sm:$0xff]   ;;  %v1776_v5 = vld [vmem:[%s2342_s1 + $0x20] sm:$0xff]   ;;  %v1777_v7 = vld [vmem:[%s2342_s1 + $0x28] sm:$0xff]  }
   0x3   :  { %536 = vmatprep.subr.bf16.mxu0 %v1884_v0  ;;  %1740 = vmatprep.subr.bf16.mxu1 %v1884_v0  ;;  %v1790_v6 = vld [vmem:[%s2343_s0 + $0x4] ss:$8 sps:$4 sm:$0xff]   ;;  %v1778_v9 = vld [vmem:[%s2342_s1 + $0x30] sm:$0xff]   ;;  %v1779_v10 = vld [vmem:[%s2342_s1 + $0x38] sm:$0xff]  }
   0x4   :  { %v1793_v8 = vld [vmem:[%s2343_s0 + $0x104] ss:$8 sps:$4 sm:$0xff]   ;;  %566 = vmatprep.mubr.bf16.mxu0 %v1790_v6  ;;  %v1782_v13 = vld [vmem:[%s2342_s1 + $0x50] sm:$0xff]   ;;  %v1783_v14 = vld [vmem:[%s2342_s1 + $0x58] sm:$0xff]  }
   0x5   :  { %694 = vmatprep.mubr.bf16.mxu1 %v1793_v8  ;;  %v1780_v11 = vld [vmem:[%s2342_s1 + $0x40] sm:$0xff]   ;;  %v1781_v12 = vld [vmem:[%s2342_s1 + $0x48] sm:$0xff]   ;;  %v1786_v17 = vld [vmem:[%s2342_s1 + $0x70] sm:$0xff]  }
   0x6   :  { %537 = vmatpush1.bf16.msra.mxu0 %v1773_v2  ;;  %1756 = vmatpush1.bf16.msra.mxu1 %v1773_v2  ;;  %v1784_v15 = vld [vmem:[%s2342_s1 + $0x60] sm:$0xff]   ;;  %v1785_v16 = vld [vmem:[%s2342_s1 + $0x68] sm:$0xff]   ;;  %v1787_v18 = vld [vmem:[%s2342_s1 + $0x78] sm:$0xff]  }
   0x7   :  { %538 = vmatprep.subr.bf16.mxu0 %v1884_v0  ;;  %1741 = vmatprep.subr.bf16.mxu1 %v1884_v0  ;;  %v1788_v19 = vld [vmem:[%s2343_s0] ss:$8 sps:$4 sm:$0xff]   ;;  %v1794_v21 = vld [vmem:[%s2343_s0 + $0x14] ss:$8 sps:$4 sm:$0xff]   ;;  %v1798_v23 = vld [vmem:[%s2343_s0 + $0x10] ss:$8 sps:$4 sm:$0xff]  }
   0x8   :  { %v1791_v20 = vld [vmem:[%s2343_s0 + $0x100] ss:$8 sps:$4 sm:$0xff]   ;;  %v1796_v22 = vld [vmem:[%s2343_s0 + $0x114] ss:$8 sps:$4 sm:$0xff]   ;;  %v1799_v24 = vld [vmem:[%s2343_s0 + $0x110] ss:$8 sps:$4 sm:$0xff]  }
   0x9   :  { %v1800_v25 = vld [vmem:[%s2343_s0 + $0x24] ss:$8 sps:$4 sm:$0xff]   ;;  %v1804_v27 = vld [vmem:[%s2343_s0 + $0x20] ss:$8 sps:$4 sm:$0xff]   ;;  %v1806_v29 = vld [vmem:[%s2343_s0 + $0x34] ss:$8 sps:$4 sm:$0xff]  }
   0xa   :  { %539 = vmatpush1.bf16.msra.mxu0 %v1774_v3  ;;  %1757 = vmatpush1.bf16.msra.mxu1 %v1774_v3  ;;  %v1802_v26 = vld [vmem:[%s2343_s0 + $0x124] ss:$8 sps:$4 sm:$0xff]   ;;  %v1805_v28 = vld [vmem:[%s2343_s0 + $0x120] ss:$8 sps:$4 sm:$0xff]   ;;  %v1808_v30 = vld [vmem:[%s2343_s0 + $0x134] ss:$8 sps:$4 sm:$0xff]  }
   0xb   :  { %540 = vmatprep.subr.bf16.mxu0 %v1884_v0  ;;  %1742 = vmatprep.subr.bf16.mxu1 %v1884_v0  ;;  %v1810_v31 = vld [vmem:[%s2343_s0 + $0x30] ss:$8 sps:$4 sm:$0xff]   ;;  %v1812_v33 = vld [vmem:[%s2343_s0 + $0x44] ss:$8 sps:$4 sm:$0xff]   ;;  %v1816_v35 = vld [vmem:[%s2343_s0 + $0x40] ss:$8 sps:$4 sm:$0xff]  }
   0xc   :  { %v1811_v32 = vld [vmem:[%s2343_s0 + $0x130] ss:$8 sps:$4 sm:$0xff]   ;;  %v1814_v34 = vld [vmem:[%s2343_s0 + $0x144] ss:$8 sps:$4 sm:$0xff]   ;;  %v1817_v36 = vld [vmem:[%s2343_s0 + $0x140] ss:$8 sps:$4 sm:$0xff]  }
   0xd   :  { %v1818_v37 = vld [vmem:[%s2343_s0 + $0x54] ss:$8 sps:$4 sm:$0xff]   ;;  %v1822_v39 = vld [vmem:[%s2343_s0 + $0x50] ss:$8 sps:$4 sm:$0xff]   ;;  %v1824_v41 = vld [vmem:[%s2343_s0 + $0x64] ss:$8 sps:$4 sm:$0xff]  }
   0xe   :  { %541 = vmatpush1.bf16.msra.mxu0 %v1775_v4  ;;  %1758 = vmatpush1.bf16.msra.mxu1 %v1775_v4  ;;  %v1820_v38 = vld [vmem:[%s2343_s0 + $0x154] ss:$8 sps:$4 sm:$0xff]   ;;  %v1823_v40 = vld [vmem:[%s2343_s0 + $0x150] ss:$8 sps:$4 sm:$0xff]   ;;  %v1826_v42 = vld [vmem:[%s2343_s0 + $0x164] ss:$8 sps:$4 sm:$0xff]  }
   0xf   :  { %542 = vmatprep.subr.bf16.mxu0 %v1884_v0  ;;  %1743 = vmatprep.subr.bf16.mxu1 %v1884_v0  ;;  %v1828_v43 = vld [vmem:[%s2343_s0 + $0x60] ss:$8 sps:$4 sm:$0xff]   ;;  %v1830_v45 = vld [vmem:[%s2343_s0 + $0x74] ss:$8 sps:$4 sm:$0xff]   ;;  %v1834_v47 = vld [vmem:[%s2343_s0 + $0x70] ss:$8 sps:$4 sm:$0xff]  }
  0x10   :  { %v1829_v44 = vld [vmem:[%s2343_s0 + $0x160] ss:$8 sps:$4 sm:$0xff]   ;;  %v1832_v46 = vld [vmem:[%s2343_s0 + $0x174] ss:$8 sps:$4 sm:$0xff]   ;;  %v1835_v48 = vld [vmem:[%s2343_s0 + $0x170] ss:$8 sps:$4 sm:$0xff]  }
  0x11   :  { %v1836_v49 = vld [vmem:[%s2343_s0 + $0x84] ss:$8 sps:$4 sm:$0xff]   ;;  %v1840_v51 = vld [vmem:[%s2343_s0 + $0x80] ss:$8 sps:$4 sm:$0xff]   ;;  %v1842_v53 = vld [vmem:[%s2343_s0 + $0x94] ss:$8 sps:$4 sm:$0xff]  }
  0x12   :  { %543 = vmatpush1.bf16.msra.mxu0 %v1776_v5  ;;  %1759 = vmatpush1.bf16.msra.mxu1 %v1776_v5  ;;  %v1838_v50 = vld [vmem:[%s2343_s0 + $0x184] ss:$8 sps:$4 sm:$0xff]   ;;  %v1841_v52 = vld [vmem:[%s2343_s0 + $0x180] ss:$8 sps:$4 sm:$0xff]   ;;  %v1844_v54 = vld [vmem:[%s2343_s0 + $0x194] ss:$8 sps:$4 sm:$0xff]  }
  0x13   :  { %544 = vmatprep.subr.bf16.mxu0 %v1884_v0  ;;  %1744 = vmatprep.subr.bf16.mxu1 %v1884_v0  ;;  %v1846_v55 = vld [vmem:[%s2343_s0 + $0x90] ss:$8 sps:$4 sm:$0xff]   ;;  %v1848_v57 = vld [vmem:[%s2343_s0 + $0xa4] ss:$8 sps:$4 sm:$0xff]   ;;  %v1852_v59 = vld [vmem:[%s2343_s0 + $0xa0] ss:$8 sps:$4 sm:$0xff]  }
  0x14   :  { %v1847_v56 = vld [vmem:[%s2343_s0 + $0x190] ss:$8 sps:$4 sm:$0xff]   ;;  %v1850_v58 = vld [vmem:[%s2343_s0 + $0x1a4] ss:$8 sps:$4 sm:$0xff]   ;;  %v1853_v60 = vld [vmem:[%s2343_s0 + $0x1a0] ss:$8 sps:$4 sm:$0xff]  }
  0x15   :  { %v1854_v61 = vld [vmem:[%s2343_s0 + $0xb4] ss:$8 sps:$4 sm:$0xff]   ;;  %v1858_v63 = vld [vmem:[%s2343_s0 + $0xb0] ss:$8 sps:$4 sm:$0xff]   ;;  %v1860_v1 = vld [vmem:[%s2343_s0 + $0xc4] ss:$8 sps:$4 sm:$0xff]  }
  0x16   :  { %545 = vmatpush1.bf16.msra.mxu0 %v1777_v7  ;;  %1760 = vmatpush1.bf16.msra.mxu1 %v1777_v7  ;;  %v1856_v62 = vld [vmem:[%s2343_s0 + $0x1b4] ss:$8 sps:$4 sm:$0xff]   ;;  %v1862_v2 = vld [vmem:[%s2343_s0 + $0x1c4] ss:$8 sps:$4 sm:$0xff]   ;;  %v1864_v3 = vld [vmem:[%s2343_s0 + $0xc0] ss:$8 sps:$4 sm:$0xff]  }
  0x17   :  { %546 = vmatprep.subr.bf16.mxu0 %v1884_v0  ;;  %1745 = vmatprep.subr.bf16.mxu1 %v1884_v0  ;;  %v1865_v4 = vld [vmem:[%s2343_s0 + $0x1c0] ss:$8 sps:$4 sm:$0xff]   ;;  %v1866_v5 = vld [vmem:[%s2343_s0 + $0xd4] ss:$8 sps:$4 sm:$0xff]   ;;  %v1870_v7 = vld [vmem:[%s2343_s0 + $0xd0] ss:$8 sps:$4 sm:$0xff]  }
  0x18   :  { %v1868_v6 = vld [vmem:[%s2343_s0 + $0x1d4] ss:$8 sps:$4 sm:$0xff]   ;;  %v1871_v8 = vld [vmem:[%s2343_s0 + $0x1d0] ss:$8 sps:$4 sm:$0xff]  }
  0x1a   :  { %547 = vmatpush1.bf16.msra.mxu0 %v1778_v9  ;;  %1761 = vmatpush1.bf16.msra.mxu1 %v1778_v9  ;;  %v1872_v9 = vld [vmem:[%s2343_s0 + $0xe4] ss:$8 sps:$4 sm:$0xff]  }
  0x1b   :  { %548 = vmatprep.subr.bf16.mxu0 %v1884_v0  ;;  %1746 = vmatprep.subr.bf16.mxu1 %v1884_v0 }
  0x1e   :  { %549 = vmatpush1.bf16.msra.mxu0 %v1779_v10  ;;  %1762 = vmatpush1.bf16.msra.mxu1 %v1779_v10  ;;  %v1874_v10 = vld [vmem:[%s2343_s0 + $0x1e4] ss:$8 sps:$4 sm:$0xff]  }
  0x1f   :  { %550 = vmatprep.subr.bf16.mxu0 %v1884_v0  ;;  %1747 = vmatprep.subr.bf16.mxu1 %v1884_v0 }
  0x22   :  { %551 = vmatpush1.bf16.msra.mxu0 %v1780_v11  ;;  %1763 = vmatpush1.bf16.msra.mxu1 %v1780_v11  ;;  %v1876_v11 = vld [vmem:[%s2343_s0 + $0xe0] ss:$8 sps:$4 sm:$0xff]  }
  0x23   :  { %552 = vmatprep.subr.bf16.mxu0 %v1884_v0  ;;  %1748 = vmatprep.subr.bf16.mxu1 %v1884_v0 }
  0x26   :  { %553 = vmatpush1.bf16.msra.mxu0 %v1781_v12  ;;  %1764 = vmatpush1.bf16.msra.mxu1 %v1781_v12  ;;  %v1877_v12 = vld [vmem:[%s2343_s0 + $0x1e0] ss:$8 sps:$4 sm:$0xff]  }
  0x27   :  { %554 = vmatprep.subr.bf16.mxu0 %v1884_v0  ;;  %1749 = vmatprep.subr.bf16.mxu1 %v1884_v0 }
  0x2a   :  { %555 = vmatpush1.bf16.msra.mxu0 %v1782_v13  ;;  %1765 = vmatpush1.bf16.msra.mxu1 %v1782_v13  ;;  %v1878_v13 = vld [vmem:[%s2343_s0 + $0xf4] ss:$8 sps:$4 sm:$0xff]  }
  0x2b   :  { %556 = vmatprep.subr.bf16.mxu0 %v1884_v0  ;;  %1750 = vmatprep.subr.bf16.mxu1 %v1884_v0 }
  0x2e   :  { %557 = vmatpush1.bf16.msra.mxu0 %v1783_v14  ;;  %1766 = vmatpush1.bf16.msra.mxu1 %v1783_v14  ;;  %v1880_v14 = vld [vmem:[%s2343_s0 + $0x1f4] ss:$8 sps:$4 sm:$0xff]  }
  0x2f   :  { %558 = vmatprep.subr.bf16.mxu0 %v1884_v0  ;;  %1751 = vmatprep.subr.bf16.mxu1 %v1884_v0 }
  0x32   :  { %559 = vmatpush1.bf16.msra.mxu0 %v1784_v15  ;;  %1767 = vmatpush1.bf16.msra.mxu1 %v1784_v15  ;;  %v1882_v15 = vld [vmem:[%s2343_s0 + $0xf0] ss:$8 sps:$4 sm:$0xff]  }
  0x33   :  { %560 = vmatprep.subr.bf16.mxu0 %v1884_v0  ;;  %1752 = vmatprep.subr.bf16.mxu1 %v1884_v0 }
  0x36   :  { %561 = vmatpush1.bf16.msra.mxu0 %v1785_v16  ;;  %1768 = vmatpush1.bf16.msra.mxu1 %v1785_v16  ;;  %v1883_v16 = vld [vmem:[%s2343_s0 + $0x1f0] ss:$8 sps:$4 sm:$0xff]  }
  0x37   :  { %562 = vmatprep.subr.bf16.mxu0 %v1884_v0  ;;  %1753 = vmatprep.subr.bf16.mxu1 %v1884_v0 }
  0x3a   :  { %563 = vmatpush1.bf16.msra.mxu0 %v1786_v17  ;;  %1769 = vmatpush1.bf16.msra.mxu1 %v1786_v17  ;;  %v2180_v17 = vld [vmem:[%s2344_s2] ss:$0 sm:$0xff] }
  0x3b   :  { %564 = vmatprep.subr.bf16.mxu0 %v1884_v0  ;;  %1754 = vmatprep.subr.bf16.mxu1 %v1884_v0  ;;  %v1859_v0 = vld [vmem:[%s2343_s0 + $0x1b0] ss:$8 sps:$4 sm:$0xff]  }
  0x3e   :  { %565 = vmatpush1.bf16.msra.mxu0 %v1787_v18  ;;  %1770 = vmatpush1.bf16.msra.mxu1 %v1787_v18 }
  0x41   :  { %567 = vmatmul.mubr.bf16.vlgmr.msra.gmra.mrb[0].mxu0 %v1788_v19  ;;  %695 = vmatmul.mubr.bf16.vlgmr.msra.gmra.mrb[0].mxu1 %v1791_v20 }
  0x42   :  { %574 = vmatprep.mubr.bf16.mxu0 %v1794_v21  ;;  %702 = vmatprep.mubr.bf16.mxu1 %v1796_v22 }
  0x49   :  { %575 = vmatmul.mubr.bf16.gmra.mrb[4].mxu0 %v1798_v23  ;;  %703 = vmatmul.mubr.bf16.gmra.mrb[4].mxu1 %v1799_v24 }
  0x4a   :  { %582 = vmatprep.mubr.bf16.mxu0 %v1800_v25  ;;  %710 = vmatprep.mubr.bf16.mxu1 %v1802_v26 }
  0x51   :  { %583 = vmatmul.mubr.bf16.gmra.mrb[8].mxu0 %v1804_v27  ;;  %711 = vmatmul.mubr.bf16.gmra.mrb[8].mxu1 %v1805_v28 }
  0x52   :  { %590 = vmatprep.mubr.bf16.mxu0 %v1806_v29  ;;  %718 = vmatprep.mubr.bf16.mxu1 %v1808_v30 }
  0x59   :  { %591 = vmatmul.mubr.bf16.gmra.mrb[12].mxu0 %v1810_v31  ;;  %719 = vmatmul.mubr.bf16.gmra.mrb[12].mxu1 %v1811_v32 }
  0x5a   :  { %598 = vmatprep.mubr.bf16.mxu0 %v1812_v33  ;;  %726 = vmatprep.mubr.bf16.mxu1 %v1814_v34 }
  0x61   :  { %599 = vmatmul.mubr.bf16.gmra.mrb[16].mxu0 %v1816_v35  ;;  %727 = vmatmul.mubr.bf16.gmra.mrb[16].mxu1 %v1817_v36 }
  0x62   :  { %606 = vmatprep.mubr.bf16.mxu0 %v1818_v37  ;;  %734 = vmatprep.mubr.bf16.mxu1 %v1820_v38 }
  0x69   :  { %607 = vmatmul.mubr.bf16.gmra.mrb[20].mxu0 %v1822_v39  ;;  %735 = vmatmul.mubr.bf16.gmra.mrb[20].mxu1 %v1823_v40 }
  0x6a   :  { %614 = vmatprep.mubr.bf16.mxu0 %v1824_v41  ;;  %742 = vmatprep.mubr.bf16.mxu1 %v1826_v42 }
  0x71   :  { %615 = vmatmul.mubr.bf16.gmra.mrb[24].mxu0 %v1828_v43  ;;  %743 = vmatmul.mubr.bf16.gmra.mrb[24].mxu1 %v1829_v44 }
  0x72   :  { %622 = vmatprep.mubr.bf16.mxu0 %v1830_v45  ;;  %750 = vmatprep.mubr.bf16.mxu1 %v1832_v46 }
  0x79   :  { %623 = vmatmul.mubr.bf16.gmra.mrb[28].mxu0 %v1834_v47  ;;  %751 = vmatmul.mubr.bf16.gmra.mrb[28].mxu1 %v1835_v48 }
  0x7a   :  { %630 = vmatprep.mubr.bf16.mxu0 %v1836_v49  ;;  %758 = vmatprep.mubr.bf16.mxu1 %v1838_v50 }
  0x81   :  { %631 = vmatmul.mubr.bf16.gmra.mrb[32].mxu0 %v1840_v51  ;;  %759 = vmatmul.mubr.bf16.gmra.mrb[32].mxu1 %v1841_v52 }
  0x82   :  { %638 = vmatprep.mubr.bf16.mxu0 %v1842_v53  ;;  %766 = vmatprep.mubr.bf16.mxu1 %v1844_v54 }
  0x89   :  { %639 = vmatmul.mubr.bf16.gmra.mrb[36].mxu0 %v1846_v55  ;;  %767 = vmatmul.mubr.bf16.gmra.mrb[36].mxu1 %v1847_v56 }
  0x8a   :  { %646 = vmatprep.mubr.bf16.mxu0 %v1848_v57  ;;  %774 = vmatprep.mubr.bf16.mxu1 %v1850_v58 }
  0x91   :  { %647 = vmatmul.mubr.bf16.gmra.mrb[40].mxu0 %v1852_v59  ;;  %775 = vmatmul.mubr.bf16.gmra.mrb[40].mxu1 %v1853_v60 }
  0x92   :  { %654 = vmatprep.mubr.bf16.mxu0 %v1854_v61  ;;  %782 = vmatprep.mubr.bf16.mxu1 %v1856_v62 }
  0x99   :  { %655 = vmatmul.mubr.bf16.gmra.mrb[44].mxu0 %v1858_v63  ;;  %783 = vmatmul.mubr.bf16.gmra.mrb[44].mxu1 %v1859_v0 }
  0x9a   :  { %662 = vmatprep.mubr.bf16.mxu0 %v1860_v1  ;;  %790 = vmatprep.mubr.bf16.mxu1 %v1862_v2 }
  0xa1   :  { %663 = vmatmul.mubr.bf16.gmra.mrb[48].mxu0 %v1864_v3  ;;  %791 = vmatmul.mubr.bf16.gmra.mrb[48].mxu1 %v1865_v4 }
  0xa2   :  { %670 = vmatprep.mubr.bf16.mxu0 %v1866_v5  ;;  %798 = vmatprep.mubr.bf16.mxu1 %v1868_v6 }
  0xa9   :  { %671 = vmatmul.mubr.bf16.gmra.mrb[52].mxu0 %v1870_v7  ;;  %799 = vmatmul.mubr.bf16.gmra.mrb[52].mxu1 %v1871_v8 }
  0xaa   :  { %678 = vmatprep.mubr.bf16.mxu0 %v1872_v9  ;;  %806 = vmatprep.mubr.bf16.mxu1 %v1874_v10 }
  0xb1   :  { %679 = vmatmul.mubr.bf16.gmra.mrb[56].mxu0 %v1876_v11  ;;  %807 = vmatmul.mubr.bf16.gmra.mrb[56].mxu1 %v1877_v12 }
  0xb2   :  { %686 = vmatprep.mubr.bf16.mxu0 %v1878_v13  ;;  %814 = vmatprep.mubr.bf16.mxu1 %v1880_v14 }
  0xb9   :  { %687 = vmatmul.mubr.bf16.gmra.mrb[60].mxu0 %v1882_v15  ;;  %815 = vmatmul.mubr.bf16.gmra.mrb[60].mxu1 %v1883_v16 }
 0x114   :  { %v568_v18 = vpop.f32.mrb[0].mxu0  ;;  %v696_v19 = vpop.f32.mrb[0].mxu1 }
 0x115   :  { %v569_v20 = vadd.f32 %v2180_v17, %v568_v18  ;;  %v697_v21 = vadd.f32 %v2180_v17, %v696_v19  ;;  %v570_v22 = vpop.f32.mrb[1].mxu0  ;;  %v698_v23 = vpop.f32.mrb[1].mxu1 }
 0x116   :  { %v571_v24 = vpop.f32.mrb[2].mxu0  ;;  %v699_v25 = vpop.f32.mrb[2].mxu1 }
 0x117   :  { %v887_v26 = vmul.f32 0.2, %v569_v20  ;;  %v919_v27 = vmul.f32 0.2, %v697_v21  ;;  %v572_v28 = vadd.f32 %v2180_v17, %v571_v24  ;;  %v700_v29 = vadd.f32 %v2180_v17, %v699_v25  ;;  %v573_v30 = vpop.f32.mrb[3].mxu0  ;;  %v701_v31 = vpop.f32.mrb[3].mxu1 }
 0x118   :  { %vm823_vm0 = vcmp.ge.f32.partialorder %v569_v20, 0.0  ;;  %vm855_vm1 = vcmp.ge.f32.partialorder %v697_v21, 0.0 }
 0x119   :  { %vm824_vm2 = vcmp.ge.f32.partialorder %v572_v28, 0.0  ;;  %v888_v32 = vmul.f32 0.2, %v572_v28  ;;  %vm856_vm3 = vcmp.ge.f32.partialorder %v700_v29, 0.0  ;;  %v920_v33 = vmul.f32 0.2, %v700_v29 }
 0x11a   :  { %v951_v34 = vsel %vm823_vm0, %v569_v20, %v887_v26  ;;  %v983_v35 = vsel %vm855_vm1, %v697_v21, %v919_v27 }
 0x11b   :  { %v952_v36 = vsel %vm824_vm2, %v572_v28, %v888_v32  ;;  %v984_v37 = vsel %vm856_vm3, %v700_v29, %v920_v33 }
 0x11c   :  { %v576_v38 = vpop.f32.mrb[4].mxu0  ;;  %v704_v39 = vpop.f32.mrb[4].mxu1  ;;  %v1551_v40 = vpack.c.bf16 %v952_v36, %v951_v34  ;;  %v1631_v41 = vpack.c.bf16 %v984_v37, %v983_v35 }
 0x11d   :  { %v577_v42 = vadd.f32 %v2180_v17, %v576_v38  ;;  %v705_v43 = vadd.f32 %v2180_v17, %v704_v39  ;;  %v578_v44 = vpop.f32.mrb[5].mxu0  ;;  %v706_v45 = vpop.f32.mrb[5].mxu1 }
 0x11e   :  { %v579_v46 = vpop.f32.mrb[6].mxu0  ;;  %v707_v47 = vpop.f32.mrb[6].mxu1  ;;  %1552 = vst [vmem:[%s2345_s3] sm:$0xff] %v1551_v40   ;;  %1723 = vst [vmem:[%s2345_s3 + $0x80] sm:$0xff] %v1631_v41  }
 0x11f   :  { %v889_v48 = vmul.f32 0.2, %v577_v42  ;;  %v921_v49 = vmul.f32 0.2, %v705_v43  ;;  %v580_v50 = vadd.f32 %v2180_v17, %v579_v46  ;;  %v708_v51 = vadd.f32 %v2180_v17, %v707_v47  ;;  %v581_v52 = vpop.f32.mrb[7].mxu0  ;;  %v709_v53 = vpop.f32.mrb[7].mxu1 }
 0x120   :  { %vm825_vm4 = vcmp.ge.f32.partialorder %v577_v42, 0.0  ;;  %vm857_vm5 = vcmp.ge.f32.partialorder %v705_v43, 0.0 }
 0x121   :  { %vm826_vm6 = vcmp.ge.f32.partialorder %v580_v50, 0.0  ;;  %v890_v54 = vmul.f32 0.2, %v580_v50  ;;  %vm858_vm7 = vcmp.ge.f32.partialorder %v708_v51, 0.0  ;;  %v922_v55 = vmul.f32 0.2, %v708_v51 }
 0x122   :  { %v953_v56 = vsel %vm825_vm4, %v577_v42, %v889_v48  ;;  %v985_v57 = vsel %vm857_vm5, %v705_v43, %v921_v49 }
 0x123   :  { %v954_v58 = vsel %vm826_vm6, %v580_v50, %v890_v54  ;;  %v986_v59 = vsel %vm858_vm7, %v708_v51, %v922_v55 }
 0x124   :  { %v584_v60 = vpop.f32.mrb[8].mxu0  ;;  %v712_v61 = vpop.f32.mrb[8].mxu1  ;;  %v1556_v62 = vpack.c.bf16 %v954_v58, %v953_v56  ;;  %v1636_v63 = vpack.c.bf16 %v986_v59, %v985_v57 }
 0x125   :  { %v585_v0 = vadd.f32 %v2180_v17, %v584_v60  ;;  %v713_v1 = vadd.f32 %v2180_v17, %v712_v61  ;;  %v586_v2 = vpop.f32.mrb[9].mxu0  ;;  %v714_v3 = vpop.f32.mrb[9].mxu1 }
 0x126   :  { %v587_v4 = vpop.f32.mrb[10].mxu0  ;;  %v715_v5 = vpop.f32.mrb[10].mxu1  ;;  %1708 = vst [vmem:[%s2345_s3 + $0x8] sm:$0xff] %v1556_v62   ;;  %1724 = vst [vmem:[%s2345_s3 + $0x88] sm:$0xff] %v1636_v63  }
 0x127   :  { %v891_v6 = vmul.f32 0.2, %v585_v0  ;;  %v923_v7 = vmul.f32 0.2, %v713_v1  ;;  %v588_v8 = vadd.f32 %v2180_v17, %v587_v4  ;;  %v716_v9 = vadd.f32 %v2180_v17, %v715_v5  ;;  %v589_v10 = vpop.f32.mrb[11].mxu0  ;;  %v717_v11 = vpop.f32.mrb[11].mxu1 }
 0x128   :  { %vm827_vm8 = vcmp.ge.f32.partialorder %v585_v0, 0.0  ;;  %vm859_vm9 = vcmp.ge.f32.partialorder %v713_v1, 0.0 }
 0x129   :  { %vm828_vm10 = vcmp.ge.f32.partialorder %v588_v8, 0.0  ;;  %v892_v12 = vmul.f32 0.2, %v588_v8  ;;  %vm860_vm11 = vcmp.ge.f32.partialorder %v716_v9, 0.0  ;;  %v924_v13 = vmul.f32 0.2, %v716_v9 }
 0x12a   :  { %v955_v14 = vsel %vm827_vm8, %v585_v0, %v891_v6  ;;  %v987_v15 = vsel %vm859_vm9, %v713_v1, %v923_v7 }
 0x12b   :  { %v956_v16 = vsel %vm828_vm10, %v588_v8, %v892_v12  ;;  %v988_v18 = vsel %vm860_vm11, %v716_v9, %v924_v13 }
 0x12c   :  { %v592_v19 = vpop.f32.mrb[12].mxu0  ;;  %v720_v20 = vpop.f32.mrb[12].mxu1  ;;  %v1561_v21 = vpack.c.bf16 %v956_v16, %v955_v14  ;;  %v1641_v22 = vpack.c.bf16 %v988_v18, %v987_v15 }
 0x12d   :  { %v593_v23 = vadd.f32 %v2180_v17, %v592_v19  ;;  %v721_v24 = vadd.f32 %v2180_v17, %v720_v20  ;;  %v594_v25 = vpop.f32.mrb[13].mxu0  ;;  %v722_v26 = vpop.f32.mrb[13].mxu1 }
 0x12e   :  { %v595_v27 = vpop.f32.mrb[14].mxu0  ;;  %v723_v28 = vpop.f32.mrb[14].mxu1  ;;  %1709 = vst [vmem:[%s2345_s3 + $0x10] sm:$0xff] %v1561_v21   ;;  %1725 = vst [vmem:[%s2345_s3 + $0x90] sm:$0xff] %v1641_v22  }
 0x12f   :  { %v893_v29 = vmul.f32 0.2, %v593_v23  ;;  %v925_v30 = vmul.f32 0.2, %v721_v24  ;;  %v596_v31 = vadd.f32 %v2180_v17, %v595_v27  ;;  %v724_v32 = vadd.f32 %v2180_v17, %v723_v28  ;;  %v597_v33 = vpop.f32.mrb[15].mxu0  ;;  %v725_v34 = vpop.f32.mrb[15].mxu1 }
 0x130   :  { %vm829_vm12 = vcmp.ge.f32.partialorder %v593_v23, 0.0  ;;  %vm861_vm13 = vcmp.ge.f32.partialorder %v721_v24, 0.0 }
 0x131   :  { %vm830_vm14 = vcmp.ge.f32.partialorder %v596_v31, 0.0  ;;  %v894_v35 = vmul.f32 0.2, %v596_v31  ;;  %vm862_vm15 = vcmp.ge.f32.partialorder %v724_v32, 0.0  ;;  %v926_v36 = vmul.f32 0.2, %v724_v32 }
 0x132   :  { %v957_v37 = vsel %vm829_vm12, %v593_v23, %v893_v29  ;;  %v989_v38 = vsel %vm861_vm13, %v721_v24, %v925_v30 }
 0x133   :  { %v958_v39 = vsel %vm830_vm14, %v596_v31, %v894_v35  ;;  %v990_v40 = vsel %vm862_vm15, %v724_v32, %v926_v36 }
 0x134   :  { %v600_v41 = vpop.f32.mrb[16].mxu0  ;;  %v728_v42 = vpop.f32.mrb[16].mxu1  ;;  %v1566_v43 = vpack.c.bf16 %v958_v39, %v957_v37  ;;  %v1646_v44 = vpack.c.bf16 %v990_v40, %v989_v38 }
 0x135   :  { %v601_v45 = vadd.f32 %v2180_v17, %v600_v41  ;;  %v729_v46 = vadd.f32 %v2180_v17, %v728_v42  ;;  %v602_v47 = vpop.f32.mrb[17].mxu0  ;;  %v730_v48 = vpop.f32.mrb[17].mxu1 }
 0x136   :  { %v603_v49 = vpop.f32.mrb[18].mxu0  ;;  %v731_v50 = vpop.f32.mrb[18].mxu1  ;;  %1710 = vst [vmem:[%s2345_s3 + $0x18] sm:$0xff] %v1566_v43   ;;  %1726 = vst [vmem:[%s2345_s3 + $0x98] sm:$0xff] %v1646_v44  }
 0x137   :  { %v895_v51 = vmul.f32 0.2, %v601_v45  ;;  %v927_v52 = vmul.f32 0.2, %v729_v46  ;;  %v604_v53 = vadd.f32 %v2180_v17, %v603_v49  ;;  %v732_v54 = vadd.f32 %v2180_v17, %v731_v50  ;;  %v605_v55 = vpop.f32.mrb[19].mxu0  ;;  %v733_v56 = vpop.f32.mrb[19].mxu1 }
 0x138   :  { %vm831_vm0 = vcmp.ge.f32.partialorder %v601_v45, 0.0  ;;  %vm863_vm1 = vcmp.ge.f32.partialorder %v729_v46, 0.0 }
 0x139   :  { %vm832_vm2 = vcmp.ge.f32.partialorder %v604_v53, 0.0  ;;  %v896_v57 = vmul.f32 0.2, %v604_v53  ;;  %vm864_vm3 = vcmp.ge.f32.partialorder %v732_v54, 0.0  ;;  %v928_v58 = vmul.f32 0.2, %v732_v54 }
 0x13a   :  { %v959_v59 = vsel %vm831_vm0, %v601_v45, %v895_v51  ;;  %v991_v60 = vsel %vm863_vm1, %v729_v46, %v927_v52 }
 0x13b   :  { %v960_v61 = vsel %vm832_vm2, %v604_v53, %v896_v57  ;;  %v992_v62 = vsel %vm864_vm3, %v732_v54, %v928_v58 }
 0x13c   :  { %v608_v63 = vpop.f32.mrb[20].mxu0  ;;  %v736_v0 = vpop.f32.mrb[20].mxu1  ;;  %v1571_v1 = vpack.c.bf16 %v960_v61, %v959_v59  ;;  %v1651_v2 = vpack.c.bf16 %v992_v62, %v991_v60 }
 0x13d   :  { %v609_v3 = vadd.f32 %v2180_v17, %v608_v63  ;;  %v737_v4 = vadd.f32 %v2180_v17, %v736_v0  ;;  %v610_v5 = vpop.f32.mrb[21].mxu0  ;;  %v738_v6 = vpop.f32.mrb[21].mxu1 }
 0x13e   :  { %v611_v7 = vpop.f32.mrb[22].mxu0  ;;  %v739_v8 = vpop.f32.mrb[22].mxu1  ;;  %1711 = vst [vmem:[%s2345_s3 + $0x20] sm:$0xff] %v1571_v1   ;;  %1727 = vst [vmem:[%s2345_s3 + $0xa0] sm:$0xff] %v1651_v2  }
 0x13f   :  { %v897_v9 = vmul.f32 0.2, %v609_v3  ;;  %v929_v10 = vmul.f32 0.2, %v737_v4  ;;  %v612_v11 = vadd.f32 %v2180_v17, %v611_v7  ;;  %v740_v12 = vadd.f32 %v2180_v17, %v739_v8  ;;  %v613_v13 = vpop.f32.mrb[23].mxu0  ;;  %v741_v14 = vpop.f32.mrb[23].mxu1 }
 0x140   :  { %vm833_vm4 = vcmp.ge.f32.partialorder %v609_v3, 0.0  ;;  %vm865_vm5 = vcmp.ge.f32.partialorder %v737_v4, 0.0 }
 0x141   :  { %vm834_vm6 = vcmp.ge.f32.partialorder %v612_v11, 0.0  ;;  %v898_v15 = vmul.f32 0.2, %v612_v11  ;;  %vm866_vm7 = vcmp.ge.f32.partialorder %v740_v12, 0.0  ;;  %v930_v16 = vmul.f32 0.2, %v740_v12 }
 0x142   :  { %v961_v18 = vsel %vm833_vm4, %v609_v3, %v897_v9  ;;  %v993_v19 = vsel %vm865_vm5, %v737_v4, %v929_v10 }
 0x143   :  { %v962_v20 = vsel %vm834_vm6, %v612_v11, %v898_v15  ;;  %v994_v21 = vsel %vm866_vm7, %v740_v12, %v930_v16 }
 0x144   :  { %v616_v22 = vpop.f32.mrb[24].mxu0  ;;  %v744_v23 = vpop.f32.mrb[24].mxu1  ;;  %v1576_v24 = vpack.c.bf16 %v962_v20, %v961_v18  ;;  %v1656_v25 = vpack.c.bf16 %v994_v21, %v993_v19 }
 0x145   :  { %v617_v26 = vadd.f32 %v2180_v17, %v616_v22  ;;  %v745_v27 = vadd.f32 %v2180_v17, %v744_v23  ;;  %v618_v28 = vpop.f32.mrb[25].mxu0  ;;  %v746_v29 = vpop.f32.mrb[25].mxu1 }
 0x146   :  { %v619_v30 = vpop.f32.mrb[26].mxu0  ;;  %v747_v31 = vpop.f32.mrb[26].mxu1  ;;  %1712 = vst [vmem:[%s2345_s3 + $0x28] sm:$0xff] %v1576_v24   ;;  %1728 = vst [vmem:[%s2345_s3 + $0xa8] sm:$0xff] %v1656_v25  }
 0x147   :  { %v899_v32 = vmul.f32 0.2, %v617_v26  ;;  %v931_v33 = vmul.f32 0.2, %v745_v27  ;;  %v620_v34 = vadd.f32 %v2180_v17, %v619_v30  ;;  %v748_v35 = vadd.f32 %v2180_v17, %v747_v31  ;;  %v621_v36 = vpop.f32.mrb[27].mxu0  ;;  %v749_v37 = vpop.f32.mrb[27].mxu1 }
 0x148   :  { %vm835_vm8 = vcmp.ge.f32.partialorder %v617_v26, 0.0  ;;  %vm867_vm9 = vcmp.ge.f32.partialorder %v745_v27, 0.0 }
 0x149   :  { %vm836_vm10 = vcmp.ge.f32.partialorder %v620_v34, 0.0  ;;  %v900_v38 = vmul.f32 0.2, %v620_v34  ;;  %vm868_vm11 = vcmp.ge.f32.partialorder %v748_v35, 0.0  ;;  %v932_v39 = vmul.f32 0.2, %v748_v35 }
 0x14a   :  { %v963_v40 = vsel %vm835_vm8, %v617_v26, %v899_v32  ;;  %v995_v41 = vsel %vm867_vm9, %v745_v27, %v931_v33 }
 0x14b   :  { %v964_v42 = vsel %vm836_vm10, %v620_v34, %v900_v38  ;;  %v996_v43 = vsel %vm868_vm11, %v748_v35, %v932_v39 }
 0x14c   :  { %v624_v44 = vpop.f32.mrb[28].mxu0  ;;  %v752_v45 = vpop.f32.mrb[28].mxu1  ;;  %v1581_v46 = vpack.c.bf16 %v964_v42, %v963_v40  ;;  %v1661_v47 = vpack.c.bf16 %v996_v43, %v995_v41 }
 0x14d   :  { %v625_v48 = vadd.f32 %v2180_v17, %v624_v44  ;;  %v753_v49 = vadd.f32 %v2180_v17, %v752_v45  ;;  %v626_v50 = vpop.f32.mrb[29].mxu0  ;;  %v754_v51 = vpop.f32.mrb[29].mxu1 }
 0x14e   :  { %v627_v52 = vpop.f32.mrb[30].mxu0  ;;  %v755_v53 = vpop.f32.mrb[30].mxu1  ;;  %1713 = vst [vmem:[%s2345_s3 + $0x30] sm:$0xff] %v1581_v46   ;;  %1729 = vst [vmem:[%s2345_s3 + $0xb0] sm:$0xff] %v1661_v47  }
 0x14f   :  { %v901_v54 = vmul.f32 0.2, %v625_v48  ;;  %v933_v55 = vmul.f32 0.2, %v753_v49  ;;  %v628_v56 = vadd.f32 %v2180_v17, %v627_v52  ;;  %v756_v57 = vadd.f32 %v2180_v17, %v755_v53  ;;  %v629_v58 = vpop.f32.mrb[31].mxu0  ;;  %v757_v59 = vpop.f32.mrb[31].mxu1 }
 0x150   :  { %vm837_vm12 = vcmp.ge.f32.partialorder %v625_v48, 0.0  ;;  %vm869_vm13 = vcmp.ge.f32.partialorder %v753_v49, 0.0 }
 0x151   :  { %vm838_vm14 = vcmp.ge.f32.partialorder %v628_v56, 0.0  ;;  %v902_v60 = vmul.f32 0.2, %v628_v56  ;;  %vm870_vm15 = vcmp.ge.f32.partialorder %v756_v57, 0.0  ;;  %v934_v61 = vmul.f32 0.2, %v756_v57 }
 0x152   :  { %v965_v62 = vsel %vm837_vm12, %v625_v48, %v901_v54  ;;  %v997_v63 = vsel %vm869_vm13, %v753_v49, %v933_v55 }
 0x153   :  { %v966_v0 = vsel %vm838_vm14, %v628_v56, %v902_v60  ;;  %v998_v1 = vsel %vm870_vm15, %v756_v57, %v934_v61 }
 0x154   :  { %v632_v2 = vpop.f32.mrb[32].mxu0  ;;  %v760_v3 = vpop.f32.mrb[32].mxu1  ;;  %v1586_v4 = vpack.c.bf16 %v966_v0, %v965_v62  ;;  %v1666_v5 = vpack.c.bf16 %v998_v1, %v997_v63 }
 0x155   :  { %v633_v6 = vadd.f32 %v2180_v17, %v632_v2  ;;  %v761_v7 = vadd.f32 %v2180_v17, %v760_v3  ;;  %v634_v8 = vpop.f32.mrb[33].mxu0  ;;  %v762_v9 = vpop.f32.mrb[33].mxu1 }
 0x156   :  { %v635_v10 = vpop.f32.mrb[34].mxu0  ;;  %v763_v11 = vpop.f32.mrb[34].mxu1  ;;  %1714 = vst [vmem:[%s2345_s3 + $0x38] sm:$0xff] %v1586_v4   ;;  %1730 = vst [vmem:[%s2345_s3 + $0xb8] sm:$0xff] %v1666_v5  }
 0x157   :  { %v903_v12 = vmul.f32 0.2, %v633_v6  ;;  %v935_v13 = vmul.f32 0.2, %v761_v7  ;;  %v636_v14 = vadd.f32 %v2180_v17, %v635_v10  ;;  %v764_v15 = vadd.f32 %v2180_v17, %v763_v11  ;;  %v637_v16 = vpop.f32.mrb[35].mxu0  ;;  %v765_v18 = vpop.f32.mrb[35].mxu1 }
 0x158   :  { %vm839_vm0 = vcmp.ge.f32.partialorder %v633_v6, 0.0  ;;  %vm871_vm1 = vcmp.ge.f32.partialorder %v761_v7, 0.0 }
 0x159   :  { %vm840_vm2 = vcmp.ge.f32.partialorder %v636_v14, 0.0  ;;  %v904_v19 = vmul.f32 0.2, %v636_v14  ;;  %vm872_vm3 = vcmp.ge.f32.partialorder %v764_v15, 0.0  ;;  %v936_v20 = vmul.f32 0.2, %v764_v15 }
 0x15a   :  { %v967_v21 = vsel %vm839_vm0, %v633_v6, %v903_v12  ;;  %v999_v22 = vsel %vm871_vm1, %v761_v7, %v935_v13 }
 0x15b   :  { %v968_v23 = vsel %vm840_vm2, %v636_v14, %v904_v19  ;;  %v1000_v24 = vsel %vm872_vm3, %v764_v15, %v936_v20 }
 0x15c   :  { %v640_v25 = vpop.f32.mrb[36].mxu0  ;;  %v768_v26 = vpop.f32.mrb[36].mxu1  ;;  %v1591_v27 = vpack.c.bf16 %v968_v23, %v967_v21  ;;  %v1671_v28 = vpack.c.bf16 %v1000_v24, %v999_v22 }
 0x15d   :  { %v641_v29 = vadd.f32 %v2180_v17, %v640_v25  ;;  %v769_v30 = vadd.f32 %v2180_v17, %v768_v26  ;;  %v642_v31 = vpop.f32.mrb[37].mxu0  ;;  %v770_v32 = vpop.f32.mrb[37].mxu1 }
 0x15e   :  { %v643_v33 = vpop.f32.mrb[38].mxu0  ;;  %v771_v34 = vpop.f32.mrb[38].mxu1  ;;  %1715 = vst [vmem:[%s2345_s3 + $0x40] sm:$0xff] %v1591_v27   ;;  %1731 = vst [vmem:[%s2345_s3 + $0xc0] sm:$0xff] %v1671_v28  }
 0x15f   :  { %v905_v35 = vmul.f32 0.2, %v641_v29  ;;  %v937_v36 = vmul.f32 0.2, %v769_v30  ;;  %v644_v37 = vadd.f32 %v2180_v17, %v643_v33  ;;  %v772_v38 = vadd.f32 %v2180_v17, %v771_v34  ;;  %v645_v39 = vpop.f32.mrb[39].mxu0  ;;  %v773_v40 = vpop.f32.mrb[39].mxu1 }
 0x160   :  { %vm841_vm4 = vcmp.ge.f32.partialorder %v641_v29, 0.0  ;;  %vm873_vm5 = vcmp.ge.f32.partialorder %v769_v30, 0.0 }
 0x161   :  { %vm842_vm6 = vcmp.ge.f32.partialorder %v644_v37, 0.0  ;;  %v906_v41 = vmul.f32 0.2, %v644_v37  ;;  %vm874_vm7 = vcmp.ge.f32.partialorder %v772_v38, 0.0  ;;  %v938_v42 = vmul.f32 0.2, %v772_v38 }
 0x162   :  { %v969_v43 = vsel %vm841_vm4, %v641_v29, %v905_v35  ;;  %v1001_v44 = vsel %vm873_vm5, %v769_v30, %v937_v36 }
 0x163   :  { %v970_v45 = vsel %vm842_vm6, %v644_v37, %v906_v41  ;;  %v1002_v46 = vsel %vm874_vm7, %v772_v38, %v938_v42 }
 0x164   :  { %v648_v47 = vpop.f32.mrb[40].mxu0  ;;  %v776_v48 = vpop.f32.mrb[40].mxu1  ;;  %v1596_v49 = vpack.c.bf16 %v970_v45, %v969_v43  ;;  %v1676_v50 = vpack.c.bf16 %v1002_v46, %v1001_v44 }
 0x165   :  { %v649_v51 = vadd.f32 %v2180_v17, %v648_v47  ;;  %v777_v52 = vadd.f32 %v2180_v17, %v776_v48  ;;  %v650_v53 = vpop.f32.mrb[41].mxu0  ;;  %v778_v54 = vpop.f32.mrb[41].mxu1 }
 0x166   :  { %v651_v55 = vpop.f32.mrb[42].mxu0  ;;  %v779_v56 = vpop.f32.mrb[42].mxu1  ;;  %1716 = vst [vmem:[%s2345_s3 + $0x48] sm:$0xff] %v1596_v49   ;;  %1732 = vst [vmem:[%s2345_s3 + $0xc8] sm:$0xff] %v1676_v50  }
 0x167   :  { %v907_v57 = vmul.f32 0.2, %v649_v51  ;;  %v939_v58 = vmul.f32 0.2, %v777_v52  ;;  %v652_v59 = vadd.f32 %v2180_v17, %v651_v55  ;;  %v780_v60 = vadd.f32 %v2180_v17, %v779_v56  ;;  %v653_v61 = vpop.f32.mrb[43].mxu0  ;;  %v781_v62 = vpop.f32.mrb[43].mxu1 }
 0x168   :  { %vm843_vm8 = vcmp.ge.f32.partialorder %v649_v51, 0.0  ;;  %vm875_vm9 = vcmp.ge.f32.partialorder %v777_v52, 0.0 }
 0x169   :  { %vm844_vm10 = vcmp.ge.f32.partialorder %v652_v59, 0.0  ;;  %v908_v63 = vmul.f32 0.2, %v652_v59  ;;  %vm876_vm11 = vcmp.ge.f32.partialorder %v780_v60, 0.0  ;;  %v940_v0 = vmul.f32 0.2, %v780_v60 }
 0x16a   :  { %v971_v1 = vsel %vm843_vm8, %v649_v51, %v907_v57  ;;  %v1003_v2 = vsel %vm875_vm9, %v777_v52, %v939_v58 }
 0x16b   :  { %v972_v3 = vsel %vm844_vm10, %v652_v59, %v908_v63  ;;  %v1004_v4 = vsel %vm876_vm11, %v780_v60, %v940_v0 }
 0x16c   :  { %v656_v5 = vpop.f32.mrb[44].mxu0  ;;  %v784_v6 = vpop.f32.mrb[44].mxu1  ;;  %v1601_v7 = vpack.c.bf16 %v972_v3, %v971_v1  ;;  %v1681_v8 = vpack.c.bf16 %v1004_v4, %v1003_v2 }
 0x16d   :  { %v657_v9 = vadd.f32 %v2180_v17, %v656_v5  ;;  %v785_v10 = vadd.f32 %v2180_v17, %v784_v6  ;;  %v658_v11 = vpop.f32.mrb[45].mxu0  ;;  %v786_v12 = vpop.f32.mrb[45].mxu1 }
 0x16e   :  { %v659_v13 = vpop.f32.mrb[46].mxu0  ;;  %v787_v14 = vpop.f32.mrb[46].mxu1  ;;  %1717 = vst [vmem:[%s2345_s3 + $0x50] sm:$0xff] %v1601_v7   ;;  %1733 = vst [vmem:[%s2345_s3 + $0xd0] sm:$0xff] %v1681_v8  }
 0x16f   :  { %v909_v15 = vmul.f32 0.2, %v657_v9  ;;  %v941_v16 = vmul.f32 0.2, %v785_v10  ;;  %v660_v18 = vadd.f32 %v2180_v17, %v659_v13  ;;  %v788_v19 = vadd.f32 %v2180_v17, %v787_v14  ;;  %v661_v20 = vpop.f32.mrb[47].mxu0  ;;  %v789_v21 = vpop.f32.mrb[47].mxu1 }
 0x170   :  { %vm845_vm12 = vcmp.ge.f32.partialorder %v657_v9, 0.0  ;;  %vm877_vm13 = vcmp.ge.f32.partialorder %v785_v10, 0.0 }
 0x171   :  { %vm846_vm14 = vcmp.ge.f32.partialorder %v660_v18, 0.0  ;;  %v910_v22 = vmul.f32 0.2, %v660_v18  ;;  %vm878_vm15 = vcmp.ge.f32.partialorder %v788_v19, 0.0  ;;  %v942_v23 = vmul.f32 0.2, %v788_v19 }
 0x172   :  { %v973_v24 = vsel %vm845_vm12, %v657_v9, %v909_v15  ;;  %v1005_v25 = vsel %vm877_vm13, %v785_v10, %v941_v16 }
 0x173   :  { %v974_v26 = vsel %vm846_vm14, %v660_v18, %v910_v22  ;;  %v1006_v27 = vsel %vm878_vm15, %v788_v19, %v942_v23 }
 0x174   :  { %v664_v28 = vpop.f32.mrb[48].mxu0  ;;  %v792_v29 = vpop.f32.mrb[48].mxu1  ;;  %v1606_v30 = vpack.c.bf16 %v974_v26, %v973_v24  ;;  %v1686_v31 = vpack.c.bf16 %v1006_v27, %v1005_v25 }
 0x175   :  { %v665_v32 = vadd.f32 %v2180_v17, %v664_v28  ;;  %v793_v33 = vadd.f32 %v2180_v17, %v792_v29  ;;  %v666_v34 = vpop.f32.mrb[49].mxu0  ;;  %v794_v35 = vpop.f32.mrb[49].mxu1 }
 0x176   :  { %v667_v36 = vpop.f32.mrb[50].mxu0  ;;  %v795_v37 = vpop.f32.mrb[50].mxu1  ;;  %1718 = vst [vmem:[%s2345_s3 + $0x58] sm:$0xff] %v1606_v30   ;;  %1734 = vst [vmem:[%s2345_s3 + $0xd8] sm:$0xff] %v1686_v31  }
 0x177   :  { %v911_v38 = vmul.f32 0.2, %v665_v32  ;;  %v943_v39 = vmul.f32 0.2, %v793_v33  ;;  %v668_v40 = vadd.f32 %v2180_v17, %v667_v36  ;;  %v796_v41 = vadd.f32 %v2180_v17, %v795_v37  ;;  %v669_v42 = vpop.f32.mrb[51].mxu0  ;;  %v797_v43 = vpop.f32.mrb[51].mxu1 }
 0x178   :  { %vm847_vm0 = vcmp.ge.f32.partialorder %v665_v32, 0.0  ;;  %vm879_vm1 = vcmp.ge.f32.partialorder %v793_v33, 0.0 }
 0x179   :  { %vm848_vm2 = vcmp.ge.f32.partialorder %v668_v40, 0.0  ;;  %v912_v44 = vmul.f32 0.2, %v668_v40  ;;  %vm880_vm3 = vcmp.ge.f32.partialorder %v796_v41, 0.0  ;;  %v944_v45 = vmul.f32 0.2, %v796_v41 }
 0x17a   :  { %v975_v46 = vsel %vm847_vm0, %v665_v32, %v911_v38  ;;  %v1007_v47 = vsel %vm879_vm1, %v793_v33, %v943_v39 }
 0x17b   :  { %v976_v48 = vsel %vm848_vm2, %v668_v40, %v912_v44  ;;  %v1008_v49 = vsel %vm880_vm3, %v796_v41, %v944_v45 }
 0x17c   :  { %v672_v50 = vpop.f32.mrb[52].mxu0  ;;  %v800_v51 = vpop.f32.mrb[52].mxu1  ;;  %v1611_v52 = vpack.c.bf16 %v976_v48, %v975_v46  ;;  %v1691_v53 = vpack.c.bf16 %v1008_v49, %v1007_v47 }
 0x17d   :  { %v673_v54 = vadd.f32 %v2180_v17, %v672_v50  ;;  %v801_v55 = vadd.f32 %v2180_v17, %v800_v51  ;;  %v674_v56 = vpop.f32.mrb[53].mxu0  ;;  %v802_v57 = vpop.f32.mrb[53].mxu1 }
 0x17e   :  { %v675_v58 = vpop.f32.mrb[54].mxu0  ;;  %v803_v59 = vpop.f32.mrb[54].mxu1  ;;  %1719 = vst [vmem:[%s2345_s3 + $0x60] sm:$0xff] %v1611_v52   ;;  %1735 = vst [vmem:[%s2345_s3 + $0xe0] sm:$0xff] %v1691_v53  }
 0x17f   :  { %v913_v60 = vmul.f32 0.2, %v673_v54  ;;  %v945_v61 = vmul.f32 0.2, %v801_v55  ;;  %v676_v62 = vadd.f32 %v2180_v17, %v675_v58  ;;  %v804_v63 = vadd.f32 %v2180_v17, %v803_v59  ;;  %v677_v0 = vpop.f32.mrb[55].mxu0  ;;  %v805_v1 = vpop.f32.mrb[55].mxu1 }
 0x180   :  { %vm849_vm4 = vcmp.ge.f32.partialorder %v673_v54, 0.0  ;;  %vm881_vm5 = vcmp.ge.f32.partialorder %v801_v55, 0.0 }
 0x181   :  { %vm850_vm6 = vcmp.ge.f32.partialorder %v676_v62, 0.0  ;;  %v914_v2 = vmul.f32 0.2, %v676_v62  ;;  %vm882_vm7 = vcmp.ge.f32.partialorder %v804_v63, 0.0  ;;  %v946_v3 = vmul.f32 0.2, %v804_v63 }
 0x182   :  { %v977_v4 = vsel %vm849_vm4, %v673_v54, %v913_v60  ;;  %v1009_v5 = vsel %vm881_vm5, %v801_v55, %v945_v61 }
 0x183   :  { %v978_v6 = vsel %vm850_vm6, %v676_v62, %v914_v2  ;;  %v1010_v7 = vsel %vm882_vm7, %v804_v63, %v946_v3 }
 0x184   :  { %v680_v8 = vpop.f32.mrb[56].mxu0  ;;  %v808_v9 = vpop.f32.mrb[56].mxu1  ;;  %v1616_v10 = vpack.c.bf16 %v978_v6, %v977_v4  ;;  %v1696_v11 = vpack.c.bf16 %v1010_v7, %v1009_v5 }
 0x185   :  { %v681_v12 = vadd.f32 %v2180_v17, %v680_v8  ;;  %v809_v13 = vadd.f32 %v2180_v17, %v808_v9  ;;  %v682_v14 = vpop.f32.mrb[57].mxu0  ;;  %v810_v15 = vpop.f32.mrb[57].mxu1 }
 0x186   :  { %v683_v16 = vpop.f32.mrb[58].mxu0  ;;  %v811_v18 = vpop.f32.mrb[58].mxu1  ;;  %1720 = vst [vmem:[%s2345_s3 + $0x68] sm:$0xff] %v1616_v10   ;;  %1736 = vst [vmem:[%s2345_s3 + $0xe8] sm:$0xff] %v1696_v11  }
 0x187   :  { %v915_v19 = vmul.f32 0.2, %v681_v12  ;;  %v947_v20 = vmul.f32 0.2, %v809_v13  ;;  %v684_v21 = vadd.f32 %v2180_v17, %v683_v16  ;;  %v812_v22 = vadd.f32 %v2180_v17, %v811_v18  ;;  %v685_v23 = vpop.f32.mrb[59].mxu0  ;;  %v813_v24 = vpop.f32.mrb[59].mxu1 }
 0x188   :  { %vm851_vm8 = vcmp.ge.f32.partialorder %v681_v12, 0.0  ;;  %vm883_vm9 = vcmp.ge.f32.partialorder %v809_v13, 0.0 }
 0x189   :  { %vm852_vm10 = vcmp.ge.f32.partialorder %v684_v21, 0.0  ;;  %v916_v25 = vmul.f32 0.2, %v684_v21  ;;  %vm884_vm11 = vcmp.ge.f32.partialorder %v812_v22, 0.0  ;;  %v948_v26 = vmul.f32 0.2, %v812_v22 }
 0x18a   :  { %v979_v27 = vsel %vm851_vm8, %v681_v12, %v915_v19  ;;  %v1011_v28 = vsel %vm883_vm9, %v809_v13, %v947_v20 }
 0x18b   :  { %v980_v29 = vsel %vm852_vm10, %v684_v21, %v916_v25  ;;  %v1012_v30 = vsel %vm884_vm11, %v812_v22, %v948_v26 }
 0x18c   :  { %v688_v31 = vpop.f32.mrb[60].mxu0  ;;  %v816_v32 = vpop.f32.mrb[60].mxu1  ;;  %v1621_v33 = vpack.c.bf16 %v980_v29, %v979_v27  ;;  %v1701_v34 = vpack.c.bf16 %v1012_v30, %v1011_v28 }
 0x18d   :  { %v689_v35 = vadd.f32 %v2180_v17, %v688_v31  ;;  %v817_v36 = vadd.f32 %v2180_v17, %v816_v32  ;;  %v690_v37 = vpop.f32.mrb[61].mxu0  ;;  %v818_v38 = vpop.f32.mrb[61].mxu1 }
 0x18e   :  { %v691_v39 = vpop.f32.mrb[62].mxu0  ;;  %v819_v40 = vpop.f32.mrb[62].mxu1  ;;  %1721 = vst [vmem:[%s2345_s3 + $0x70] sm:$0xff] %v1621_v33   ;;  %1737 = vst [vmem:[%s2345_s3 + $0xf0] sm:$0xff] %v1701_v34  }
 0x18f   :  { %v917_v41 = vmul.f32 0.2, %v689_v35  ;;  %v949_v42 = vmul.f32 0.2, %v817_v36  ;;  %v692_v43 = vadd.f32 %v2180_v17, %v691_v39  ;;  %v820_v44 = vadd.f32 %v2180_v17, %v819_v40  ;;  %v693_v45 = vpop.f32.mrb[63].mxu0  ;;  %v821_v46 = vpop.f32.mrb[63].mxu1 }
 0x190   :  { %vm853_vm12 = vcmp.ge.f32.partialorder %v689_v35, 0.0  ;;  %vm885_vm13 = vcmp.ge.f32.partialorder %v817_v36, 0.0 }
 0x191   :  { %vm854_vm14 = vcmp.ge.f32.partialorder %v692_v43, 0.0  ;;  %v918_v47 = vmul.f32 0.2, %v692_v43  ;;  %vm886_vm15 = vcmp.ge.f32.partialorder %v820_v44, 0.0  ;;  %v950_v48 = vmul.f32 0.2, %v820_v44 }
 0x192   :  { %v981_v49 = vsel %vm853_vm12, %v689_v35, %v917_v41  ;;  %v1013_v50 = vsel %vm885_vm13, %v817_v36, %v949_v42 }
 0x193   :  { %v982_v51 = vsel %vm854_vm14, %v692_v43, %v918_v47  ;;  %v1014_v52 = vsel %vm886_vm15, %v820_v44, %v950_v48 }
 0x194   :  { %v1626_v53 = vpack.c.bf16 %v982_v51, %v981_v49  ;;  %v1706_v54 = vpack.c.bf16 %v1014_v52, %v1013_v50 }
 0x196   :  { %1722 = vst [vmem:[%s2345_s3 + $0x78] sm:$0xff] %v1626_v53   ;;  %1738 = vst [vmem:[%s2345_s3 + $0xf8] sm:$0xff] %v1706_v54  }

// kernel: discriminator_forward.5
= control target key start
LH: loop header
LB: loop body
LE: loop exit
PB: predicated region body
PF: predicated region fallthrough
CT: control target
= control target key end

     0   :  { %s6549_s1 = inlined_call_operand.vmem [shape: bf16[2048,256], index: 1, kind: input, shape index: {}]   ;;  %s6550_s0 = inlined_call_operand.vmem [shape: bf16[128,2048], index: 0, kind: input, shape index: {}]   ;;  %s6551_s2 = inlined_call_operand.vmem [shape: f32[1,256], index: 2, kind: input, shape index: {}]   ;;  %s6552_s3 = inlined_call_operand.vmem [shape: f32[1,256], index: 3, kind: input, shape index: {}]   ;;  %s6553_s4 = inlined_call_operand.vmem [shape: f32[1,256], index: 4, kind: input, shape index: {}]   ;;  %s6554_s5 = inlined_call_operand.vmem [shape: bf16[128,256], index: 5, kind: output, shape index: {}]  }
   0x1   :  { %v4448_v0 = vld [vmem:[%s6549_s1 + $0x4] ss:$8 sps:$4 sm:$0xff]   ;;  %v4452_v2 = vld [vmem:[%s6549_s1] ss:$8 sps:$4 sm:$0xff]   ;;  %v4454_v4 = vld [vmem:[%s6549_s1 + $0x14] ss:$8 sps:$4 sm:$0xff]  }
   0x2   :  { %v4450_v1 = vld [vmem:[%s6549_s1 + $0x404] ss:$8 sps:$4 sm:$0xff]   ;;  %2336 = vmatprep.subr.bf16.mxu1 %v4448_v0  ;;  %v4453_v3 = vld [vmem:[%s6549_s1 + $0x400] ss:$8 sps:$4 sm:$0xff]   ;;  %v4456_v5 = vld [vmem:[%s6549_s1 + $0x414] ss:$8 sps:$4 sm:$0xff]  }
   0x3   :  { %2788 = vmatprep.subr.bf16.mxu0 %v4450_v1  ;;  %2337 = vmatpush1.bf16.msra.mxu1 %v4452_v2  ;;  %v4458_v6 = vld [vmem:[%s6549_s1 + $0x10] ss:$8 sps:$4 sm:$0xff]   ;;  %v4460_v8 = vld [vmem:[%s6549_s1 + $0x24] ss:$8 sps:$4 sm:$0xff]   ;;  %v4464_v10 = vld [vmem:[%s6549_s1 + $0x20] ss:$8 sps:$4 sm:$0xff]  }
   0x4   :  { %2789 = vmatpush1.bf16.msra.mxu0 %v4453_v3  ;;  %2338 = vmatprep.subr.bf16.mxu1 %v4454_v4  ;;  %v4459_v7 = vld [vmem:[%s6549_s1 + $0x410] ss:$8 sps:$4 sm:$0xff]   ;;  %v4462_v9 = vld [vmem:[%s6549_s1 + $0x424] ss:$8 sps:$4 sm:$0xff]   ;;  %v4465_v11 = vld [vmem:[%s6549_s1 + $0x420] ss:$8 sps:$4 sm:$0xff]  }
   0x5   :  { %2790 = vmatprep.subr.bf16.mxu0 %v4456_v5  ;;  %v4466_v12 = vld [vmem:[%s6549_s1 + $0x34] ss:$8 sps:$4 sm:$0xff]   ;;  %v4470_v14 = vld [vmem:[%s6549_s1 + $0x30] ss:$8 sps:$4 sm:$0xff]   ;;  %v4472_v16 = vld [vmem:[%s6549_s1 + $0x44] ss:$8 sps:$4 sm:$0xff]  }
   0x6   :  { %v4468_v13 = vld [vmem:[%s6549_s1 + $0x434] ss:$8 sps:$4 sm:$0xff]   ;;  %v4471_v15 = vld [vmem:[%s6549_s1 + $0x430] ss:$8 sps:$4 sm:$0xff]   ;;  %v4474_v17 = vld [vmem:[%s6549_s1 + $0x444] ss:$8 sps:$4 sm:$0xff]  }
   0x7   :  { %2339 = vmatpush1.bf16.msra.mxu1 %v4458_v6  ;;  %v4476_v18 = vld [vmem:[%s6549_s1 + $0x40] ss:$8 sps:$4 sm:$0xff]   ;;  %v4478_v20 = vld [vmem:[%s6549_s1 + $0x54] ss:$8 sps:$4 sm:$0xff]   ;;  %v4482_v22 = vld [vmem:[%s6549_s1 + $0x50] ss:$8 sps:$4 sm:$0xff]  }
   0x8   :  { %2791 = vmatpush1.bf16.msra.mxu0 %v4459_v7  ;;  %2340 = vmatprep.subr.bf16.mxu1 %v4460_v8  ;;  %v4477_v19 = vld [vmem:[%s6549_s1 + $0x440] ss:$8 sps:$4 sm:$0xff]   ;;  %v4480_v21 = vld [vmem:[%s6549_s1 + $0x454] ss:$8 sps:$4 sm:$0xff]   ;;  %v4483_v23 = vld [vmem:[%s6549_s1 + $0x450] ss:$8 sps:$4 sm:$0xff]  }
   0x9   :  { %2792 = vmatprep.subr.bf16.mxu0 %v4462_v9  ;;  %v4484_v24 = vld [vmem:[%s6549_s1 + $0x64] ss:$8 sps:$4 sm:$0xff]   ;;  %v4488_v26 = vld [vmem:[%s6549_s1 + $0x60] ss:$8 sps:$4 sm:$0xff]   ;;  %v4490_v28 = vld [vmem:[%s6549_s1 + $0x74] ss:$8 sps:$4 sm:$0xff]  }
   0xa   :  { %v4486_v25 = vld [vmem:[%s6549_s1 + $0x464] ss:$8 sps:$4 sm:$0xff]   ;;  %v4489_v27 = vld [vmem:[%s6549_s1 + $0x460] ss:$8 sps:$4 sm:$0xff]   ;;  %v4492_v29 = vld [vmem:[%s6549_s1 + $0x474] ss:$8 sps:$4 sm:$0xff]  }
   0xb   :  { %2341 = vmatpush1.bf16.msra.mxu1 %v4464_v10  ;;  %v4494_v30 = vld [vmem:[%s6549_s1 + $0x70] ss:$8 sps:$4 sm:$0xff]   ;;  %v4496_v32 = vld [vmem:[%s6549_s1 + $0x84] ss:$8 sps:$4 sm:$0xff]   ;;  %v4500_v34 = vld [vmem:[%s6549_s1 + $0x80] ss:$8 sps:$4 sm:$0xff]  }
   0xc   :  { %2793 = vmatpush1.bf16.msra.mxu0 %v4465_v11  ;;  %2342 = vmatprep.subr.bf16.mxu1 %v4466_v12  ;;  %v4495_v31 = vld [vmem:[%s6549_s1 + $0x470] ss:$8 sps:$4 sm:$0xff]   ;;  %v4498_v33 = vld [vmem:[%s6549_s1 + $0x484] ss:$8 sps:$4 sm:$0xff]   ;;  %v4501_v35 = vld [vmem:[%s6549_s1 + $0x480] ss:$8 sps:$4 sm:$0xff]  }
   0xd   :  { %2794 = vmatprep.subr.bf16.mxu0 %v4468_v13  ;;  %v4502_v36 = vld [vmem:[%s6549_s1 + $0x94] ss:$8 sps:$4 sm:$0xff]   ;;  %v4506_v38 = vld [vmem:[%s6549_s1 + $0x90] ss:$8 sps:$4 sm:$0xff]   ;;  %v4508_v40 = vld [vmem:[%s6549_s1 + $0xa4] ss:$8 sps:$4 sm:$0xff]  }
   0xe   :  { %v4504_v37 = vld [vmem:[%s6549_s1 + $0x494] ss:$8 sps:$4 sm:$0xff]   ;;  %v4507_v39 = vld [vmem:[%s6549_s1 + $0x490] ss:$8 sps:$4 sm:$0xff]   ;;  %v4510_v41 = vld [vmem:[%s6549_s1 + $0x4a4] ss:$8 sps:$4 sm:$0xff]  }
   0xf   :  { %2343 = vmatpush1.bf16.msra.mxu1 %v4470_v14  ;;  %v4512_v42 = vld [vmem:[%s6549_s1 + $0xa0] ss:$8 sps:$4 sm:$0xff]   ;;  %v4514_v44 = vld [vmem:[%s6549_s1 + $0xb4] ss:$8 sps:$4 sm:$0xff]   ;;  %v4518_v46 = vld [vmem:[%s6549_s1 + $0xb0] ss:$8 sps:$4 sm:$0xff]  }
  0x10   :  { %2795 = vmatpush1.bf16.msra.mxu0 %v4471_v15  ;;  %2344 = vmatprep.subr.bf16.mxu1 %v4472_v16  ;;  %v4513_v43 = vld [vmem:[%s6549_s1 + $0x4a0] ss:$8 sps:$4 sm:$0xff]   ;;  %v4516_v45 = vld [vmem:[%s6549_s1 + $0x4b4] ss:$8 sps:$4 sm:$0xff]   ;;  %v4519_v47 = vld [vmem:[%s6549_s1 + $0x4b0] ss:$8 sps:$4 sm:$0xff]  }
  0x11   :  { %2796 = vmatprep.subr.bf16.mxu0 %v4474_v17  ;;  %v20_v48 = vld [vmem:[%s6550_s0] sm:$0xff]  ;;  %v4526_v58 = vld [vmem:[%s6549_s1 + $0xd4] ss:$8 sps:$4 sm:$0xff]   ;;  %v4530_v60 = vld [vmem:[%s6549_s1 + $0xd0] ss:$8 sps:$4 sm:$0xff]  }
  0x12   :  { %v28_v49 = vld [vmem:[%s6550_s0 + $0x40] sm:$0xff]  ;;  %v4528_v59 = vld [vmem:[%s6549_s1 + $0x4d4] ss:$8 sps:$4 sm:$0xff]   ;;  %v4531_v61 = vld [vmem:[%s6549_s1 + $0x4d0] ss:$8 sps:$4 sm:$0xff]  }
  0x13   :  { %2345 = vmatpush1.bf16.msra.mxu1 %v4476_v18  ;;  %v24_v50 = vld [vmem:[%s6550_s0 + $0x20] sm:$0xff]  ;;  %v3776_v53 = vcombine.high %v20_v48, %v28_v49  ;;  %v4538_v2 = vld [vmem:[%s6549_s1 + $0xf4] ss:$8 sps:$4 sm:$0xff]   ;;  %v4542_v4 = vld [vmem:[%s6549_s1 + $0xf0] ss:$8 sps:$4 sm:$0xff]   ;;  %v3775_v11 = vcombine.low %v20_v48, %v28_v49 }
  0x14   :  { %2797 = vmatpush1.bf16.msra.mxu0 %v4477_v19  ;;  %2346 = vmatprep.subr.bf16.mxu1 %v4478_v20  ;;  %v32_v51 = vld [vmem:[%s6550_s0 + $0x60] sm:$0xff]  ;;  %v4540_v3 = vld [vmem:[%s6549_s1 + $0x4f4] ss:$8 sps:$4 sm:$0xff]   ;;  %v4543_v5 = vld [vmem:[%s6549_s1 + $0x4f0] ss:$8 sps:$4 sm:$0xff]  }
  0x15   :  { %2798 = vmatprep.subr.bf16.mxu0 %v4480_v21  ;;  %v4520_v52 = vld [vmem:[%s6549_s1 + $0xc4] ss:$8 sps:$4 sm:$0xff]   ;;  %v3784_v55 = vcombine.high %v24_v50, %v32_v51  ;;  %2368 = vmatprep.mubr.bf16.mxu1 %v3776_v53  ;;  %v4524_v56 = vld [vmem:[%s6549_s1 + $0xc0] ss:$8 sps:$4 sm:$0xff]   ;;  %v3783_v12 = vcombine.low %v24_v50, %v32_v51  ;;  %v4552_v16 = vld [vmem:[%s6549_s1 + $0x114] ss:$8 sps:$4 sm:$0xff]  }
  0x16   :  { %v4522_v54 = vld [vmem:[%s6549_s1 + $0x4c4] ss:$8 sps:$4 sm:$0xff]   ;;  %v4525_v57 = vld [vmem:[%s6549_s1 + $0x4c0] ss:$8 sps:$4 sm:$0xff]   ;;  %v4555_v17 = vld [vmem:[%s6549_s1 + $0x514] ss:$8 sps:$4 sm:$0xff]  }
  0x17   :  { %2347 = vmatpush1.bf16.msra.mxu1 %v4482_v22  ;;  %2820 = vmatprep.mubr.bf16.mxu0 %v3784_v55  ;;  %v4532_v62 = vld [vmem:[%s6549_s1 + $0xe4] ss:$8 sps:$4 sm:$0xff]   ;;  %v4536_v0 = vld [vmem:[%s6549_s1 + $0xe0] ss:$8 sps:$4 sm:$0xff]   ;;  %v4550_v20 = vld [vmem:[%s6549_s1 + $0x110] ss:$8 sps:$4 sm:$0xff]  }
  0x18   :  { %2799 = vmatpush1.bf16.msra.mxu0 %v4483_v23  ;;  %2348 = vmatprep.subr.bf16.mxu1 %v4484_v24  ;;  %v4534_v63 = vld [vmem:[%s6549_s1 + $0x4e4] ss:$8 sps:$4 sm:$0xff]   ;;  %v4537_v1 = vld [vmem:[%s6549_s1 + $0x4e0] ss:$8 sps:$4 sm:$0xff]   ;;  %v4553_v21 = vld [vmem:[%s6549_s1 + $0x510] ss:$8 sps:$4 sm:$0xff]  }
  0x19   :  { %2800 = vmatprep.subr.bf16.mxu0 %v4486_v25  ;;  %v4546_v6 = vld [vmem:[%s6549_s1 + $0x104] ss:$8 sps:$4 sm:$0xff]   ;;  %v4544_v8 = vld [vmem:[%s6549_s1 + $0x100] ss:$8 sps:$4 sm:$0xff]   ;;  %v4576_v48 = vld [vmem:[%s6549_s1 + $0x154] ss:$8 sps:$4 sm:$0xff]  }
  0x1a   :  { %v4549_v7 = vld [vmem:[%s6549_s1 + $0x504] ss:$8 sps:$4 sm:$0xff]   ;;  %v4547_v9 = vld [vmem:[%s6549_s1 + $0x500] ss:$8 sps:$4 sm:$0xff]   ;;  %v4579_v49 = vld [vmem:[%s6549_s1 + $0x554] ss:$8 sps:$4 sm:$0xff]  }
  0x1b   :  { %2349 = vmatpush1.bf16.msra.mxu1 %v4488_v26  ;;  %v36_v10 = vld [vmem:[%s6550_s0 + $0x80] sm:$0xff]  ;;  %v4577_v53 = vld [vmem:[%s6549_s1 + $0x550] ss:$8 sps:$4 sm:$0xff]  }
  0x1c   :  { %2801 = vmatpush1.bf16.msra.mxu0 %v4489_v27  ;;  %2350 = vmatprep.subr.bf16.mxu1 %v4490_v28  ;;  %v44_v13 = vld [vmem:[%s6550_s0 + $0xc0] sm:$0xff] }
  0x1d   :  { %2802 = vmatprep.subr.bf16.mxu0 %v4492_v29  ;;  %v40_v14 = vld [vmem:[%s6550_s0 + $0xa0] sm:$0xff]  ;;  %v3792_v18 = vcombine.high %v36_v10, %v44_v13  ;;  %v3791_v28 = vcombine.low %v36_v10, %v44_v13 }
  0x1e   :  { %v48_v15 = vld [vmem:[%s6550_s0 + $0xe0] sm:$0xff] }
  0x1f   :  { %2351 = vmatpush1.bf16.msra.mxu1 %v4494_v30  ;;  %v3800_v19 = vcombine.high %v40_v14, %v48_v15  ;;  %v4558_v22 = vld [vmem:[%s6549_s1 + $0x124] ss:$8 sps:$4 sm:$0xff]   ;;  %v4556_v24 = vld [vmem:[%s6549_s1 + $0x120] ss:$8 sps:$4 sm:$0xff]   ;;  %v3799_v29 = vcombine.low %v40_v14, %v48_v15 }
  0x20   :  { %2803 = vmatpush1.bf16.msra.mxu0 %v4495_v31  ;;  %2352 = vmatprep.subr.bf16.mxu1 %v4496_v32  ;;  %v4561_v23 = vld [vmem:[%s6549_s1 + $0x524] ss:$8 sps:$4 sm:$0xff]   ;;  %v4559_v25 = vld [vmem:[%s6549_s1 + $0x520] ss:$8 sps:$4 sm:$0xff]   ;;  %v4564_v32 = vld [vmem:[%s6549_s1 + $0x134] ss:$8 sps:$4 sm:$0xff]  }
  0x21   :  { %2804 = vmatprep.subr.bf16.mxu0 %v4498_v33  ;;  %v52_v26 = vld [vmem:[%s6550_s0 + $0x100] sm:$0xff]  ;;  %v4567_v33 = vld [vmem:[%s6549_s1 + $0x534] ss:$8 sps:$4 sm:$0xff]  }
  0x22   :  { %v60_v27 = vld [vmem:[%s6550_s0 + $0x140] sm:$0xff] }
  0x23   :  { %2353 = vmatpush1.bf16.msra.mxu1 %v4500_v34  ;;  %v56_v30 = vld [vmem:[%s6550_s0 + $0x120] sm:$0xff]  ;;  %v3808_v34 = vcombine.high %v52_v26, %v60_v27 }
  0x24   :  { %2805 = vmatpush1.bf16.msra.mxu0 %v4501_v35  ;;  %2354 = vmatprep.subr.bf16.mxu1 %v4502_v36  ;;  %v64_v31 = vld [vmem:[%s6550_s0 + $0x160] sm:$0xff]  ;;  %v4562_v36 = vld [vmem:[%s6549_s1 + $0x130] ss:$8 sps:$4 sm:$0xff]  }
  0x25   :  { %2806 = vmatprep.subr.bf16.mxu0 %v4504_v37  ;;  %v3816_v35 = vcombine.high %v56_v30, %v64_v31  ;;  %v4565_v37 = vld [vmem:[%s6549_s1 + $0x530] ss:$8 sps:$4 sm:$0xff]   ;;  %v4585_v55 = vld [vmem:[%s6549_s1 + $0x564] ss:$8 sps:$4 sm:$0xff]   ;;  %v4592_v14 = vld [vmem:[%s6549_s1 + $0x180] ss:$8 sps:$4 sm:$0xff]  }
  0x26   :  { %v112_v13 = vld [vmem:[%s6550_s0 + $0x2e0] sm:$0xff] }
  0x27   :  { %2355 = vmatpush1.bf16.msra.mxu1 %v4506_v38  ;;  %v4570_v38 = vld [vmem:[%s6549_s1 + $0x144] ss:$8 sps:$4 sm:$0xff]   ;;  %v4595_v15 = vld [vmem:[%s6549_s1 + $0x580] ss:$8 sps:$4 sm:$0xff]  }
  0x28   :  { %2807 = vmatpush1.bf16.msra.mxu0 %v4507_v39  ;;  %2356 = vmatprep.subr.bf16.mxu1 %v4508_v40  ;;  %v4573_v39 = vld [vmem:[%s6549_s1 + $0x544] ss:$8 sps:$4 sm:$0xff]   ;;  %v4568_v40 = vld [vmem:[%s6549_s1 + $0x140] ss:$8 sps:$4 sm:$0xff]  }
  0x29   :  { %2808 = vmatprep.subr.bf16.mxu0 %v4510_v41  ;;  %v4571_v41 = vld [vmem:[%s6549_s1 + $0x540] ss:$8 sps:$4 sm:$0xff]  }
  0x2b   :  { %2357 = vmatpush1.bf16.msra.mxu1 %v4512_v42  ;;  %v68_v42 = vld [vmem:[%s6550_s0 + $0x180] sm:$0xff] }
  0x2c   :  { %2809 = vmatpush1.bf16.msra.mxu0 %v4513_v43  ;;  %2358 = vmatprep.subr.bf16.mxu1 %v4514_v44  ;;  %v76_v43 = vld [vmem:[%s6550_s0 + $0x1c0] sm:$0xff]  ;;  %v3807_v44 = vcombine.low %v52_v26, %v60_v27 }
  0x2d   :  { %2810 = vmatprep.subr.bf16.mxu0 %v4516_v45  ;;  %v3815_v45 = vcombine.low %v56_v30, %v64_v31  ;;  %v3824_v50 = vcombine.high %v68_v42, %v76_v43  ;;  %v116_v26 = vld [vmem:[%s6550_s0 + $0x300] sm:$0xff] }
  0x2e   :  { %v120_v30 = vld [vmem:[%s6550_s0 + $0x320] sm:$0xff] }
  0x2f   :  { %2359 = vmatpush1.bf16.msra.mxu1 %v4518_v46  ;;  %v72_v46 = vld [vmem:[%s6550_s0 + $0x1a0] sm:$0xff] }
  0x30   :  { %2811 = vmatpush1.bf16.msra.mxu0 %v4519_v47  ;;  %2360 = vmatprep.subr.bf16.mxu1 %v4520_v52  ;;  %v80_v47 = vld [vmem:[%s6550_s0 + $0x1e0] sm:$0xff]  ;;  %v4574_v52 = vld [vmem:[%s6549_s1 + $0x150] ss:$8 sps:$4 sm:$0xff]  }
  0x31   :  { %2812 = vmatprep.subr.bf16.mxu0 %v4522_v54  ;;  %v3832_v51 = vcombine.high %v72_v46, %v80_v47  ;;  %v4582_v54 = vld [vmem:[%s6549_s1 + $0x164] ss:$8 sps:$4 sm:$0xff]  }
  0x32   :  { %v128_v31 = vld [vmem:[%s6550_s0 + $0x360] sm:$0xff] }
  0x33   :  { %2361 = vmatpush1.bf16.msra.mxu1 %v4524_v56  ;;  %v4580_v56 = vld [vmem:[%s6549_s1 + $0x160] ss:$8 sps:$4 sm:$0xff]  }
  0x34   :  { %2813 = vmatpush1.bf16.msra.mxu0 %v4525_v57  ;;  %2362 = vmatprep.subr.bf16.mxu1 %v4526_v58  ;;  %v84_v57 = vld [vmem:[%s6550_s0 + $0x200] sm:$0xff] }
  0x35   :  { %2814 = vmatprep.subr.bf16.mxu0 %v4528_v59  ;;  %v92_v58 = vld [vmem:[%s6550_s0 + $0x240] sm:$0xff]  ;;  %v3823_v59 = vcombine.low %v68_v42, %v76_v43 }
  0x36   :  { %v3839_v10 = vcombine.low %v84_v57, %v92_v58  ;;  %v132_v42 = vld [vmem:[%s6550_s0 + $0x380] sm:$0xff] }
  0x37   :  { %2363 = vmatpush1.bf16.msra.mxu1 %v4530_v60  ;;  %v3831_v60 = vcombine.low %v72_v46, %v80_v47  ;;  %v140_v43 = vld [vmem:[%s6550_s0 + $0x3c0] sm:$0xff] }
  0x38   :  { %2815 = vmatpush1.bf16.msra.mxu0 %v4531_v61  ;;  %2364 = vmatprep.subr.bf16.mxu1 %v4532_v62  ;;  %v88_v61 = vld [vmem:[%s6550_s0 + $0x220] sm:$0xff] }
  0x39   :  { %2816 = vmatprep.subr.bf16.mxu0 %v4534_v63  ;;  %v96_v62 = vld [vmem:[%s6550_s0 + $0x260] sm:$0xff] }
  0x3a   :  { %v4583_v63 = vld [vmem:[%s6549_s1 + $0x560] ss:$8 sps:$4 sm:$0xff]  }
  0x3b   :  { %2365 = vmatpush1.bf16.msra.mxu1 %v4536_v0  ;;  %v4588_v0 = vld [vmem:[%s6549_s1 + $0x174] ss:$8 sps:$4 sm:$0xff]   ;;  %v136_v46 = vld [vmem:[%s6550_s0 + $0x3a0] sm:$0xff] }
  0x3c   :  { %2817 = vmatpush1.bf16.msra.mxu0 %v4537_v1  ;;  %2366 = vmatprep.subr.bf16.mxu1 %v4538_v2  ;;  %v4591_v1 = vld [vmem:[%s6549_s1 + $0x574] ss:$8 sps:$4 sm:$0xff]   ;;  %v3840_v2 = vcombine.high %v84_v57, %v92_v58  ;;  %v144_v47 = vld [vmem:[%s6550_s0 + $0x3e0] sm:$0xff]  ;;  %v21_v58 = vld [vmem:[%s6550_s0 + $0x8] sm:$0xff] }
  0x3d   :  { %2818 = vmatprep.subr.bf16.mxu0 %v4540_v3  ;;  %v3848_v3 = vcombine.high %v88_v61, %v96_v62  ;;  %v4631_v57 = vld [vmem:[%s6549_s1 + $0x5e0] ss:$8 sps:$4 sm:$0xff]  }
  0x3f   :  { %2367 = vmatpush1.bf16.msra.mxu1 %v4542_v4  ;;  %v4586_v4 = vld [vmem:[%s6549_s1 + $0x170] ss:$8 sps:$4 sm:$0xff]  }
  0x40   :  { %2819 = vmatpush1.bf16.msra.mxu0 %v4543_v5  ;;  %2449 = vmatprep.subr.bf16.mxu1 %v4546_v6  ;;  %v4589_v5 = vld [vmem:[%s6549_s1 + $0x570] ss:$8 sps:$4 sm:$0xff]   ;;  %v4594_v6 = vld [vmem:[%s6549_s1 + $0x184] ss:$8 sps:$4 sm:$0xff]  }
  0x41   :  { %2901 = vmatprep.subr.bf16.mxu0 %v4549_v7  ;;  %v4597_v7 = vld [vmem:[%s6549_s1 + $0x584] ss:$8 sps:$4 sm:$0xff]  }
  0x42   :  { %2369 = vmatmul.mubr.bf16.vlgmr.msra.gmra.mrb[0].mxu1 %v3775_v11  ;;  %v3847_v11 = vcombine.low %v88_v61, %v96_v62  ;;  %v3895_v61 = vcombine.low %v136_v46, %v144_v47  ;;  %v25_v62 = vld [vmem:[%s6550_s0 + $0x28] sm:$0xff] }
  0x43   :  { %2821 = vmatmul.mubr.bf16.vlgmr.msra.gmra.mrb[0].mxu0 %v3783_v12  ;;  %2450 = vmatpush1.bf16.msra.mxu1 %v4544_v8  ;;  %v100_v8 = vld [vmem:[%s6550_s0 + $0x280] sm:$0xff] }
  0x44   :  { %2902 = vmatpush1.bf16.msra.mxu0 %v4547_v9  ;;  %2451 = vmatprep.subr.bf16.mxu1 %v4552_v16  ;;  %v108_v9 = vld [vmem:[%s6550_s0 + $0x2c0] sm:$0xff]  ;;  %v4600_v16 = vld [vmem:[%s6549_s1 + $0x194] ss:$8 sps:$4 sm:$0xff]  }
  0x45   :  { %2903 = vmatprep.subr.bf16.mxu0 %v4555_v17  ;;  %2378 = vmatprep.mubr.bf16.mxu1 %v3792_v18  ;;  %v104_v12 = vld [vmem:[%s6550_s0 + $0x2a0] sm:$0xff]  ;;  %v4603_v17 = vld [vmem:[%s6549_s1 + $0x594] ss:$8 sps:$4 sm:$0xff]   ;;  %v3856_v18 = vcombine.high %v100_v8, %v108_v9  ;;  %v3855_v27 = vcombine.low %v100_v8, %v108_v9  ;;  %v37_v9 = vld [vmem:[%s6550_s0 + $0x88] sm:$0xff] }
  0x46   :  { %2830 = vmatprep.mubr.bf16.mxu0 %v3800_v19  ;;  %v3864_v19 = vcombine.high %v104_v12, %v112_v13  ;;  %v4640_v8 = vld [vmem:[%s6549_s1 + $0x200] ss:$8 sps:$4 sm:$0xff]  }
  0x47   :  { %2452 = vmatpush1.bf16.msra.mxu1 %v4550_v20  ;;  %v4598_v20 = vld [vmem:[%s6549_s1 + $0x190] ss:$8 sps:$4 sm:$0xff]  }
  0x48   :  { %2904 = vmatpush1.bf16.msra.mxu0 %v4553_v21  ;;  %2453 = vmatprep.subr.bf16.mxu1 %v4558_v22  ;;  %v4601_v21 = vld [vmem:[%s6549_s1 + $0x590] ss:$8 sps:$4 sm:$0xff]   ;;  %v4606_v22 = vld [vmem:[%s6549_s1 + $0x1a4] ss:$8 sps:$4 sm:$0xff]  }
  0x49   :  { %2905 = vmatprep.subr.bf16.mxu0 %v4561_v23  ;;  %v4609_v23 = vld [vmem:[%s6549_s1 + $0x5a4] ss:$8 sps:$4 sm:$0xff]  }
  0x4a   :  { %2379 = vmatmul.mubr.bf16.gmra.mrb[4].mxu1 %v3791_v28  ;;  %v3863_v28 = vcombine.low %v104_v12, %v112_v13  ;;  %v41_v13 = vld [vmem:[%s6550_s0 + $0xa8] sm:$0xff] }
  0x4b   :  { %2831 = vmatmul.mubr.bf16.gmra.mrb[4].mxu0 %v3799_v29  ;;  %2454 = vmatpush1.bf16.msra.mxu1 %v4556_v24  ;;  %v4604_v24 = vld [vmem:[%s6549_s1 + $0x1a0] ss:$8 sps:$4 sm:$0xff]  }
  0x4c   :  { %2906 = vmatpush1.bf16.msra.mxu0 %v4559_v25  ;;  %2455 = vmatprep.subr.bf16.mxu1 %v4564_v32  ;;  %v4607_v25 = vld [vmem:[%s6549_s1 + $0x5a0] ss:$8 sps:$4 sm:$0xff]   ;;  %v4612_v32 = vld [vmem:[%s6549_s1 + $0x1b4] ss:$8 sps:$4 sm:$0xff]  }
  0x4d   :  { %2907 = vmatprep.subr.bf16.mxu0 %v4567_v33  ;;  %2388 = vmatprep.mubr.bf16.mxu1 %v3808_v34  ;;  %v124_v29 = vld [vmem:[%s6550_s0 + $0x340] sm:$0xff]  ;;  %v4615_v33 = vld [vmem:[%s6549_s1 + $0x5b4] ss:$8 sps:$4 sm:$0xff]  }
  0x4e   :  { %2840 = vmatprep.mubr.bf16.mxu0 %v3816_v35  ;;  %v3872_v34 = vcombine.high %v116_v26, %v124_v29  ;;  %v3880_v35 = vcombine.high %v120_v30, %v128_v31 }
  0x4f   :  { %2456 = vmatpush1.bf16.msra.mxu1 %v4562_v36  ;;  %v4610_v36 = vld [vmem:[%s6549_s1 + $0x1b0] ss:$8 sps:$4 sm:$0xff]  }
  0x50   :  { %2908 = vmatpush1.bf16.msra.mxu0 %v4565_v37  ;;  %2457 = vmatprep.subr.bf16.mxu1 %v4570_v38  ;;  %v4613_v37 = vld [vmem:[%s6549_s1 + $0x5b0] ss:$8 sps:$4 sm:$0xff]   ;;  %v4618_v38 = vld [vmem:[%s6549_s1 + $0x1c4] ss:$8 sps:$4 sm:$0xff]  }
  0x51   :  { %2909 = vmatprep.subr.bf16.mxu0 %v4573_v39  ;;  %v4621_v39 = vld [vmem:[%s6549_s1 + $0x5c4] ss:$8 sps:$4 sm:$0xff]  }
  0x52   :  { %2389 = vmatmul.mubr.bf16.gmra.mrb[8].mxu1 %v3807_v44  ;;  %v3871_v44 = vcombine.low %v116_v26, %v124_v29  ;;  %v65_v29 = vld [vmem:[%s6550_s0 + $0x168] sm:$0xff] }
  0x53   :  { %2841 = vmatmul.mubr.bf16.gmra.mrb[8].mxu0 %v3815_v45  ;;  %2458 = vmatpush1.bf16.msra.mxu1 %v4568_v40  ;;  %v4616_v40 = vld [vmem:[%s6549_s1 + $0x1c0] ss:$8 sps:$4 sm:$0xff]   ;;  %v3879_v45 = vcombine.low %v120_v30, %v128_v31 }
  0x54   :  { %2910 = vmatpush1.bf16.msra.mxu0 %v4571_v41  ;;  %2459 = vmatprep.subr.bf16.mxu1 %v4576_v48  ;;  %v4619_v41 = vld [vmem:[%s6549_s1 + $0x5c0] ss:$8 sps:$4 sm:$0xff]   ;;  %v4624_v48 = vld [vmem:[%s6549_s1 + $0x1d4] ss:$8 sps:$4 sm:$0xff]  }
  0x55   :  { %2911 = vmatprep.subr.bf16.mxu0 %v4579_v49  ;;  %2398 = vmatprep.mubr.bf16.mxu1 %v3824_v50  ;;  %v4627_v49 = vld [vmem:[%s6549_s1 + $0x5d4] ss:$8 sps:$4 sm:$0xff]   ;;  %v3888_v50 = vcombine.high %v132_v42, %v140_v43  ;;  %v4652_v30 = vld [vmem:[%s6549_s1 + $0x220] ss:$8 sps:$4 sm:$0xff]  }
  0x56   :  { %2850 = vmatprep.mubr.bf16.mxu0 %v3832_v51  ;;  %v3896_v51 = vcombine.high %v136_v46, %v144_v47  ;;  %v4655_v31 = vld [vmem:[%s6549_s1 + $0x620] ss:$8 sps:$4 sm:$0xff]  }
  0x57   :  { %2460 = vmatpush1.bf16.msra.mxu1 %v4574_v52  ;;  %v4622_v52 = vld [vmem:[%s6549_s1 + $0x1d0] ss:$8 sps:$4 sm:$0xff]   ;;  %v73_v46 = vld [vmem:[%s6550_s0 + $0x1a8] sm:$0xff] }
  0x58   :  { %2912 = vmatpush1.bf16.msra.mxu0 %v4577_v53  ;;  %2461 = vmatprep.subr.bf16.mxu1 %v4582_v54  ;;  %v4625_v53 = vld [vmem:[%s6549_s1 + $0x5d0] ss:$8 sps:$4 sm:$0xff]   ;;  %v4630_v54 = vld [vmem:[%s6549_s1 + $0x1e4] ss:$8 sps:$4 sm:$0xff]  }
  0x59   :  { %2913 = vmatprep.subr.bf16.mxu0 %v4585_v55  ;;  %v4633_v55 = vld [vmem:[%s6549_s1 + $0x5e4] ss:$8 sps:$4 sm:$0xff]  }
  0x5a   :  { %2399 = vmatmul.mubr.bf16.gmra.mrb[12].mxu1 %v3823_v59  ;;  %v29_v59 = vld [vmem:[%s6550_s0 + $0x48] sm:$0xff] }
  0x5b   :  { %2851 = vmatmul.mubr.bf16.gmra.mrb[12].mxu0 %v3831_v60  ;;  %2462 = vmatpush1.bf16.msra.mxu1 %v4580_v56  ;;  %v4628_v56 = vld [vmem:[%s6549_s1 + $0x1e0] ss:$8 sps:$4 sm:$0xff]   ;;  %v3887_v60 = vcombine.low %v132_v42, %v140_v43 }
  0x5c   :  { %2914 = vmatpush1.bf16.msra.mxu0 %v4583_v63  ;;  %2463 = vmatprep.subr.bf16.mxu1 %v4588_v0  ;;  %v33_v63 = vld [vmem:[%s6550_s0 + $0x68] sm:$0xff]  ;;  %v4636_v0 = vld [vmem:[%s6549_s1 + $0x1f4] ss:$8 sps:$4 sm:$0xff]  }
  0x5d   :  { %2915 = vmatprep.subr.bf16.mxu0 %v4591_v1  ;;  %2408 = vmatprep.mubr.bf16.mxu1 %v3840_v2  ;;  %v4639_v1 = vld [vmem:[%s6549_s1 + $0x5f4] ss:$8 sps:$4 sm:$0xff]   ;;  %v3778_v2 = vcombine.high %v21_v58, %v29_v59  ;;  %v3785_v12 = vcombine.low %v25_v62, %v33_v63  ;;  %v69_v42 = vld [vmem:[%s6550_s0 + $0x188] sm:$0xff] }
  0x5e   :  { %2860 = vmatprep.mubr.bf16.mxu0 %v3848_v3  ;;  %v3786_v3 = vcombine.high %v25_v62, %v33_v63  ;;  %v81_v47 = vld [vmem:[%s6550_s0 + $0x1e8] sm:$0xff] }
  0x5f   :  { %2464 = vmatpush1.bf16.msra.mxu1 %v4586_v4  ;;  %v4634_v4 = vld [vmem:[%s6549_s1 + $0x1f0] ss:$8 sps:$4 sm:$0xff]   ;;  %v89_v62 = vld [vmem:[%s6550_s0 + $0x228] sm:$0xff] }
  0x60   :  { %2916 = vmatpush1.bf16.msra.mxu0 %v4589_v5  ;;  %2465 = vmatprep.subr.bf16.mxu1 %v4594_v6  ;;  %v4637_v5 = vld [vmem:[%s6549_s1 + $0x5f0] ss:$8 sps:$4 sm:$0xff]   ;;  %v4642_v6 = vld [vmem:[%s6549_s1 + $0x204] ss:$8 sps:$4 sm:$0xff]  }
  0x61   :  { %2917 = vmatprep.subr.bf16.mxu0 %v4597_v7  ;;  %v4645_v7 = vld [vmem:[%s6549_s1 + $0x604] ss:$8 sps:$4 sm:$0xff]  }
  0x62   :  { %2409 = vmatmul.mubr.bf16.gmra.mrb[16].mxu1 %v3839_v10  ;;  %v45_v10 = vld [vmem:[%s6550_s0 + $0xc8] sm:$0xff] }
  0x63   :  { %2861 = vmatmul.mubr.bf16.gmra.mrb[16].mxu0 %v3847_v11  ;;  %2466 = vmatpush1.bf16.msra.mxu1 %v4592_v14  ;;  %v3777_v11 = vcombine.low %v21_v58, %v29_v59  ;;  %v49_v14 = vld [vmem:[%s6550_s0 + $0xe8] sm:$0xff]  ;;  %v3793_v26 = vcombine.low %v37_v9, %v45_v10 }
  0x64   :  { %2918 = vmatpush1.bf16.msra.mxu0 %v4595_v15  ;;  %2467 = vmatprep.subr.bf16.mxu1 %v4600_v16  ;;  %v4643_v15 = vld [vmem:[%s6549_s1 + $0x600] ss:$8 sps:$4 sm:$0xff]   ;;  %v4648_v16 = vld [vmem:[%s6549_s1 + $0x214] ss:$8 sps:$4 sm:$0xff]  }
  0x65   :  { %2919 = vmatprep.subr.bf16.mxu0 %v4603_v17  ;;  %2418 = vmatprep.mubr.bf16.mxu1 %v3856_v18  ;;  %v4651_v17 = vld [vmem:[%s6549_s1 + $0x614] ss:$8 sps:$4 sm:$0xff]   ;;  %v3794_v18 = vcombine.high %v37_v9, %v45_v10  ;;  %v85_v58 = vld [vmem:[%s6550_s0 + $0x208] sm:$0xff] }
  0x66   :  { %2870 = vmatprep.mubr.bf16.mxu0 %v3864_v19  ;;  %v3802_v19 = vcombine.high %v41_v13, %v49_v14  ;;  %v93_v59 = vld [vmem:[%s6550_s0 + $0x248] sm:$0xff] }
  0x67   :  { %2468 = vmatpush1.bf16.msra.mxu1 %v4598_v20  ;;  %v4646_v20 = vld [vmem:[%s6549_s1 + $0x210] ss:$8 sps:$4 sm:$0xff]   ;;  %v97_v63 = vld [vmem:[%s6550_s0 + $0x268] sm:$0xff] }
  0x68   :  { %2920 = vmatpush1.bf16.msra.mxu0 %v4601_v21  ;;  %2469 = vmatprep.subr.bf16.mxu1 %v4606_v22  ;;  %v4649_v21 = vld [vmem:[%s6549_s1 + $0x610] ss:$8 sps:$4 sm:$0xff]   ;;  %v4654_v22 = vld [vmem:[%s6549_s1 + $0x224] ss:$8 sps:$4 sm:$0xff]   ;;  %v4691_v9 = vld [vmem:[%s6549_s1 + $0x680] ss:$8 sps:$4 sm:$0xff]  }
  0x69   :  { %2921 = vmatprep.subr.bf16.mxu0 %v4609_v23  ;;  %v4657_v23 = vld [vmem:[%s6549_s1 + $0x624] ss:$8 sps:$4 sm:$0xff]  }
  0x6a   :  { %2419 = vmatmul.mubr.bf16.gmra.mrb[20].mxu1 %v3855_v27  ;;  %v3801_v27 = vcombine.low %v41_v13, %v49_v14  ;;  %v101_v10 = vld [vmem:[%s6550_s0 + $0x288] sm:$0xff]  ;;  %v3849_v13 = vcombine.low %v89_v62, %v97_v63 }
  0x6b   :  { %2871 = vmatmul.mubr.bf16.gmra.mrb[20].mxu0 %v3863_v28  ;;  %2470 = vmatpush1.bf16.msra.mxu1 %v4604_v24  ;;  %v53_v24 = vld [vmem:[%s6550_s0 + $0x108] sm:$0xff] }
  0x6c   :  { %2922 = vmatpush1.bf16.msra.mxu0 %v4607_v25  ;;  %2471 = vmatprep.subr.bf16.mxu1 %v4612_v32  ;;  %v61_v25 = vld [vmem:[%s6550_s0 + $0x148] sm:$0xff]  ;;  %v4660_v32 = vld [vmem:[%s6549_s1 + $0x234] ss:$8 sps:$4 sm:$0xff]  }
  0x6d   :  { %2923 = vmatprep.subr.bf16.mxu0 %v4615_v33  ;;  %2428 = vmatprep.mubr.bf16.mxu1 %v3872_v34  ;;  %v57_v28 = vld [vmem:[%s6550_s0 + $0x128] sm:$0xff]  ;;  %v4663_v33 = vld [vmem:[%s6549_s1 + $0x634] ss:$8 sps:$4 sm:$0xff]   ;;  %v3810_v34 = vcombine.high %v53_v24, %v61_v25  ;;  %v3809_v43 = vcombine.low %v53_v24, %v61_v25 }
  0x6e   :  { %2880 = vmatprep.mubr.bf16.mxu0 %v3880_v35  ;;  %v3818_v35 = vcombine.high %v57_v28, %v65_v29  ;;  %v105_v14 = vld [vmem:[%s6550_s0 + $0x2a8] sm:$0xff] }
  0x6f   :  { %2472 = vmatpush1.bf16.msra.mxu1 %v4610_v36  ;;  %v4658_v36 = vld [vmem:[%s6549_s1 + $0x230] ss:$8 sps:$4 sm:$0xff]   ;;  %v4700_v24 = vld [vmem:[%s6549_s1 + $0x2a0] ss:$8 sps:$4 sm:$0xff]  }
  0x70   :  { %2924 = vmatpush1.bf16.msra.mxu0 %v4613_v37  ;;  %2473 = vmatprep.subr.bf16.mxu1 %v4618_v38  ;;  %v4661_v37 = vld [vmem:[%s6549_s1 + $0x630] ss:$8 sps:$4 sm:$0xff]   ;;  %v4666_v38 = vld [vmem:[%s6549_s1 + $0x244] ss:$8 sps:$4 sm:$0xff]  }
  0x71   :  { %2925 = vmatprep.subr.bf16.mxu0 %v4621_v39  ;;  %v4669_v39 = vld [vmem:[%s6549_s1 + $0x644] ss:$8 sps:$4 sm:$0xff]  }
  0x72   :  { %2429 = vmatmul.mubr.bf16.gmra.mrb[24].mxu1 %v3871_v44  ;;  %v3817_v44 = vcombine.low %v57_v28, %v65_v29  ;;  %v117_v25 = vld [vmem:[%s6550_s0 + $0x308] sm:$0xff] }
  0x73   :  { %2881 = vmatmul.mubr.bf16.gmra.mrb[24].mxu0 %v3879_v45  ;;  %2474 = vmatpush1.bf16.msra.mxu1 %v4616_v40  ;;  %v4664_v40 = vld [vmem:[%s6549_s1 + $0x240] ss:$8 sps:$4 sm:$0xff]  }
  0x74   :  { %2926 = vmatpush1.bf16.msra.mxu0 %v4619_v41  ;;  %2475 = vmatprep.subr.bf16.mxu1 %v4624_v48  ;;  %v4667_v41 = vld [vmem:[%s6549_s1 + $0x640] ss:$8 sps:$4 sm:$0xff]   ;;  %v4672_v48 = vld [vmem:[%s6549_s1 + $0x254] ss:$8 sps:$4 sm:$0xff]  }
  0x75   :  { %2927 = vmatprep.subr.bf16.mxu0 %v4627_v49  ;;  %2438 = vmatprep.mubr.bf16.mxu1 %v3888_v50  ;;  %v77_v45 = vld [vmem:[%s6550_s0 + $0x1c8] sm:$0xff]  ;;  %v4675_v49 = vld [vmem:[%s6549_s1 + $0x654] ss:$8 sps:$4 sm:$0xff]  }
  0x76   :  { %2890 = vmatprep.mubr.bf16.mxu0 %v3896_v51  ;;  %v3826_v50 = vcombine.high %v69_v42, %v77_v45  ;;  %v3834_v51 = vcombine.high %v73_v46, %v81_v47  ;;  %v121_v29 = vld [vmem:[%s6550_s0 + $0x328] sm:$0xff] }
  0x77   :  { %2476 = vmatpush1.bf16.msra.mxu1 %v4622_v52  ;;  %v4670_v52 = vld [vmem:[%s6549_s1 + $0x250] ss:$8 sps:$4 sm:$0xff]  }
  0x78   :  { %2928 = vmatpush1.bf16.msra.mxu0 %v4625_v53  ;;  %2477 = vmatprep.subr.bf16.mxu1 %v4630_v54  ;;  %v4673_v53 = vld [vmem:[%s6549_s1 + $0x650] ss:$8 sps:$4 sm:$0xff]   ;;  %v4678_v54 = vld [vmem:[%s6549_s1 + $0x264] ss:$8 sps:$4 sm:$0xff]  }
  0x79   :  { %2929 = vmatprep.subr.bf16.mxu0 %v4633_v55  ;;  %v4681_v55 = vld [vmem:[%s6549_s1 + $0x664] ss:$8 sps:$4 sm:$0xff]  }
  0x7a   :  { %2439 = vmatmul.mubr.bf16.gmra.mrb[28].mxu1 %v3887_v60  ;;  %v3825_v60 = vcombine.low %v69_v42, %v77_v45  ;;  %v145_v45 = vld [vmem:[%s6550_s0 + $0x3e8] sm:$0xff] }
  0x7b   :  { %2891 = vmatmul.mubr.bf16.gmra.mrb[28].mxu0 %v3895_v61  ;;  %2478 = vmatpush1.bf16.msra.mxu1 %v4628_v56  ;;  %v4676_v56 = vld [vmem:[%s6549_s1 + $0x260] ss:$8 sps:$4 sm:$0xff]   ;;  %v3833_v61 = vcombine.low %v73_v46, %v81_v47 }
  0x7c   :  { %2930 = vmatpush1.bf16.msra.mxu0 %v4631_v57  ;;  %2479 = vmatprep.subr.bf16.mxu1 %v4636_v0  ;;  %v4679_v57 = vld [vmem:[%s6549_s1 + $0x660] ss:$8 sps:$4 sm:$0xff]   ;;  %v4684_v0 = vld [vmem:[%s6549_s1 + $0x274] ss:$8 sps:$4 sm:$0xff]  }
  0x7d   :  { %2931 = vmatprep.subr.bf16.mxu0 %v4639_v1  ;;  %2481 = vmatprep.mubr.bf16.mxu1 %v3778_v2  ;;  %v4687_v1 = vld [vmem:[%s6549_s1 + $0x674] ss:$8 sps:$4 sm:$0xff]   ;;  %v3842_v2 = vcombine.high %v85_v58, %v93_v59  ;;  %v4712_v46 = vld [vmem:[%s6549_s1 + $0x2c0] ss:$8 sps:$4 sm:$0xff]  }
  0x7e   :  { %2933 = vmatprep.mubr.bf16.mxu0 %v3786_v3  ;;  %v3850_v3 = vcombine.high %v89_v62, %v97_v63  ;;  %v4715_v47 = vld [vmem:[%s6549_s1 + $0x6c0] ss:$8 sps:$4 sm:$0xff]   ;;  %v26_v62 = vld [vmem:[%s6550_s0 + $0x30] sm:$0xff] }
  0x7f   :  { %2480 = vmatpush1.bf16.msra.mxu1 %v4634_v4  ;;  %v4682_v4 = vld [vmem:[%s6549_s1 + $0x270] ss:$8 sps:$4 sm:$0xff]  }
  0x80   :  { %2932 = vmatpush1.bf16.msra.mxu0 %v4637_v5  ;;  %2562 = vmatprep.subr.bf16.mxu1 %v4642_v6  ;;  %v4685_v5 = vld [vmem:[%s6549_s1 + $0x670] ss:$8 sps:$4 sm:$0xff]   ;;  %v4690_v6 = vld [vmem:[%s6549_s1 + $0x284] ss:$8 sps:$4 sm:$0xff]  }
  0x81   :  { %3014 = vmatprep.subr.bf16.mxu0 %v4645_v7  ;;  %v4693_v7 = vld [vmem:[%s6549_s1 + $0x684] ss:$8 sps:$4 sm:$0xff]   ;;  %v34_v63 = vld [vmem:[%s6550_s0 + $0x70] sm:$0xff] }
  0x82   :  { %2482 = vmatmul.mubr.bf16.vlgmr.msra.gmra.mrb[0].mxu1 %v3777_v11  ;;  %v109_v11 = vld [vmem:[%s6550_s0 + $0x2c8] sm:$0xff] }
  0x83   :  { %2934 = vmatmul.mubr.bf16.vlgmr.msra.gmra.mrb[0].mxu0 %v3785_v12  ;;  %2563 = vmatpush1.bf16.msra.mxu1 %v4640_v8  ;;  %v4688_v8 = vld [vmem:[%s6549_s1 + $0x280] ss:$8 sps:$4 sm:$0xff]   ;;  %v3841_v12 = vcombine.low %v85_v58, %v93_v59  ;;  %v22_v58 = vld [vmem:[%s6550_s0 + $0x10] sm:$0xff] }
  0x84   :  { %3015 = vmatpush1.bf16.msra.mxu0 %v4643_v15  ;;  %2564 = vmatprep.subr.bf16.mxu1 %v4648_v16  ;;  %v113_v15 = vld [vmem:[%s6550_s0 + $0x2e8] sm:$0xff]  ;;  %v4696_v16 = vld [vmem:[%s6549_s1 + $0x294] ss:$8 sps:$4 sm:$0xff]  }
  0x85   :  { %3016 = vmatprep.subr.bf16.mxu0 %v4651_v17  ;;  %2491 = vmatprep.mubr.bf16.mxu1 %v3794_v18  ;;  %v4699_v17 = vld [vmem:[%s6549_s1 + $0x694] ss:$8 sps:$4 sm:$0xff]   ;;  %v3858_v18 = vcombine.high %v101_v10, %v109_v11  ;;  %v3865_v28 = vcombine.low %v105_v14, %v113_v15 }
  0x86   :  { %2943 = vmatprep.mubr.bf16.mxu0 %v3802_v19  ;;  %v3866_v19 = vcombine.high %v105_v14, %v113_v15  ;;  %v42_v14 = vld [vmem:[%s6550_s0 + $0xb0] sm:$0xff] }
  0x87   :  { %2565 = vmatpush1.bf16.msra.mxu1 %v4646_v20  ;;  %v4694_v20 = vld [vmem:[%s6549_s1 + $0x290] ss:$8 sps:$4 sm:$0xff]  }
  0x88   :  { %3017 = vmatpush1.bf16.msra.mxu0 %v4649_v21  ;;  %2566 = vmatprep.subr.bf16.mxu1 %v4654_v22  ;;  %v4697_v21 = vld [vmem:[%s6549_s1 + $0x690] ss:$8 sps:$4 sm:$0xff]   ;;  %v4702_v22 = vld [vmem:[%s6549_s1 + $0x2a4] ss:$8 sps:$4 sm:$0xff]  }
  0x89   :  { %3018 = vmatprep.subr.bf16.mxu0 %v4657_v23  ;;  %v4705_v23 = vld [vmem:[%s6549_s1 + $0x6a4] ss:$8 sps:$4 sm:$0xff]   ;;  %v50_v15 = vld [vmem:[%s6550_s0 + $0xf0] sm:$0xff] }
  0x8a   :  { %2492 = vmatmul.mubr.bf16.gmra.mrb[4].mxu1 %v3793_v26  ;;  %v125_v26 = vld [vmem:[%s6550_s0 + $0x348] sm:$0xff] }
  0x8b   :  { %2944 = vmatmul.mubr.bf16.gmra.mrb[4].mxu0 %v3801_v27  ;;  %2567 = vmatpush1.bf16.msra.mxu1 %v4652_v30  ;;  %v3857_v27 = vcombine.low %v101_v10, %v109_v11  ;;  %v129_v30 = vld [vmem:[%s6550_s0 + $0x368] sm:$0xff]  ;;  %v3873_v42 = vcombine.low %v117_v25, %v125_v26  ;;  %v38_v10 = vld [vmem:[%s6550_s0 + $0x90] sm:$0xff] }
  0x8c   :  { %3019 = vmatpush1.bf16.msra.mxu0 %v4655_v31  ;;  %2568 = vmatprep.subr.bf16.mxu1 %v4660_v32  ;;  %v4703_v31 = vld [vmem:[%s6549_s1 + $0x6a0] ss:$8 sps:$4 sm:$0xff]   ;;  %v4708_v32 = vld [vmem:[%s6549_s1 + $0x2b4] ss:$8 sps:$4 sm:$0xff]  }
  0x8d   :  { %3020 = vmatprep.subr.bf16.mxu0 %v4663_v33  ;;  %2501 = vmatprep.mubr.bf16.mxu1 %v3810_v34  ;;  %v4711_v33 = vld [vmem:[%s6549_s1 + $0x6b4] ss:$8 sps:$4 sm:$0xff]   ;;  %v3874_v34 = vcombine.high %v117_v25, %v125_v26  ;;  %v4751_v25 = vld [vmem:[%s6549_s1 + $0x720] ss:$8 sps:$4 sm:$0xff]  }
  0x8e   :  { %2953 = vmatprep.mubr.bf16.mxu0 %v3818_v35  ;;  %v3882_v35 = vcombine.high %v121_v29, %v129_v30  ;;  %v46_v11 = vld [vmem:[%s6550_s0 + $0xd0] sm:$0xff] }
  0x8f   :  { %2569 = vmatpush1.bf16.msra.mxu1 %v4658_v36  ;;  %v4706_v36 = vld [vmem:[%s6549_s1 + $0x2b0] ss:$8 sps:$4 sm:$0xff]  }
  0x90   :  { %3021 = vmatpush1.bf16.msra.mxu0 %v4661_v37  ;;  %2570 = vmatprep.subr.bf16.mxu1 %v4666_v38  ;;  %v4709_v37 = vld [vmem:[%s6549_s1 + $0x6b0] ss:$8 sps:$4 sm:$0xff]   ;;  %v4714_v38 = vld [vmem:[%s6549_s1 + $0x2c4] ss:$8 sps:$4 sm:$0xff]  }
  0x91   :  { %3022 = vmatprep.subr.bf16.mxu0 %v4669_v39  ;;  %v4717_v39 = vld [vmem:[%s6549_s1 + $0x6c4] ss:$8 sps:$4 sm:$0xff]   ;;  %v54_v26 = vld [vmem:[%s6550_s0 + $0x110] sm:$0xff] }
  0x92   :  { %2502 = vmatmul.mubr.bf16.gmra.mrb[8].mxu1 %v3809_v43  ;;  %v3881_v43 = vcombine.low %v121_v29, %v129_v30  ;;  %v3803_v29 = vcombine.low %v42_v14, %v50_v15  ;;  %v58_v30 = vld [vmem:[%s6550_s0 + $0x130] sm:$0xff] }
  0x93   :  { %2954 = vmatmul.mubr.bf16.gmra.mrb[8].mxu0 %v3817_v44  ;;  %2571 = vmatpush1.bf16.msra.mxu1 %v4664_v40  ;;  %v133_v40 = vld [vmem:[%s6550_s0 + $0x388] sm:$0xff] }
  0x94   :  { %3023 = vmatpush1.bf16.msra.mxu0 %v4667_v41  ;;  %2572 = vmatprep.subr.bf16.mxu1 %v4672_v48  ;;  %v141_v41 = vld [vmem:[%s6550_s0 + $0x3c8] sm:$0xff]  ;;  %v4720_v48 = vld [vmem:[%s6549_s1 + $0x2d4] ss:$8 sps:$4 sm:$0xff]  }
  0x95   :  { %3024 = vmatprep.subr.bf16.mxu0 %v4675_v49  ;;  %2511 = vmatprep.mubr.bf16.mxu1 %v3826_v50  ;;  %v137_v44 = vld [vmem:[%s6550_s0 + $0x3a8] sm:$0xff]  ;;  %v4723_v49 = vld [vmem:[%s6549_s1 + $0x6d4] ss:$8 sps:$4 sm:$0xff]   ;;  %v3890_v50 = vcombine.high %v133_v40, %v141_v41  ;;  %v3889_v59 = vcombine.low %v133_v40, %v141_v41 }
  0x96   :  { %2963 = vmatprep.mubr.bf16.mxu0 %v3834_v51  ;;  %v3898_v51 = vcombine.high %v137_v44, %v145_v45  ;;  %v70_v40 = vld [vmem:[%s6550_s0 + $0x190] sm:$0xff] }
  0x97   :  { %2573 = vmatpush1.bf16.msra.mxu1 %v4670_v52  ;;  %v4718_v52 = vld [vmem:[%s6549_s1 + $0x2d0] ss:$8 sps:$4 sm:$0xff]  }
  0x98   :  { %3025 = vmatpush1.bf16.msra.mxu0 %v4673_v53  ;;  %2574 = vmatprep.subr.bf16.mxu1 %v4678_v54  ;;  %v4721_v53 = vld [vmem:[%s6549_s1 + $0x6d0] ss:$8 sps:$4 sm:$0xff]   ;;  %v4726_v54 = vld [vmem:[%s6549_s1 + $0x2e4] ss:$8 sps:$4 sm:$0xff]  }
  0x99   :  { %3026 = vmatprep.subr.bf16.mxu0 %v4681_v55  ;;  %v4729_v55 = vld [vmem:[%s6549_s1 + $0x6e4] ss:$8 sps:$4 sm:$0xff]  }
  0x9a   :  { %2512 = vmatmul.mubr.bf16.gmra.mrb[12].mxu1 %v3825_v60  ;;  %v3897_v60 = vcombine.low %v137_v44, %v145_v45  ;;  %v74_v44 = vld [vmem:[%s6550_s0 + $0x1b0] sm:$0xff] }
  0x9b   :  { %2964 = vmatmul.mubr.bf16.gmra.mrb[12].mxu0 %v3833_v61  ;;  %2575 = vmatpush1.bf16.msra.mxu1 %v4676_v56  ;;  %v4724_v56 = vld [vmem:[%s6549_s1 + $0x2e0] ss:$8 sps:$4 sm:$0xff]   ;;  %v30_v61 = vld [vmem:[%s6550_s0 + $0x50] sm:$0xff] }
  0x9c   :  { %3027 = vmatpush1.bf16.msra.mxu0 %v4679_v57  ;;  %2576 = vmatprep.subr.bf16.mxu1 %v4684_v0  ;;  %v4727_v57 = vld [vmem:[%s6549_s1 + $0x6e0] ss:$8 sps:$4 sm:$0xff]   ;;  %v4732_v0 = vld [vmem:[%s6549_s1 + $0x2f4] ss:$8 sps:$4 sm:$0xff]  }
  0x9d   :  { %3028 = vmatprep.subr.bf16.mxu0 %v4687_v1  ;;  %2521 = vmatprep.mubr.bf16.mxu1 %v3842_v2  ;;  %v4735_v1 = vld [vmem:[%s6549_s1 + $0x6f4] ss:$8 sps:$4 sm:$0xff]   ;;  %v3780_v2 = vcombine.high %v22_v58, %v30_v61 }
  0x9e   :  { %2973 = vmatprep.mubr.bf16.mxu0 %v3850_v3  ;;  %v3788_v3 = vcombine.high %v26_v62, %v34_v63  ;;  %v82_v45 = vld [vmem:[%s6550_s0 + $0x1f0] sm:$0xff] }
  0x9f   :  { %2577 = vmatpush1.bf16.msra.mxu1 %v4682_v4  ;;  %v4730_v4 = vld [vmem:[%s6549_s1 + $0x2f0] ss:$8 sps:$4 sm:$0xff]  }
  0xa0   :  { %3029 = vmatpush1.bf16.msra.mxu0 %v4685_v5  ;;  %2578 = vmatprep.subr.bf16.mxu1 %v4690_v6  ;;  %v4733_v5 = vld [vmem:[%s6549_s1 + $0x6f0] ss:$8 sps:$4 sm:$0xff]   ;;  %v4738_v6 = vld [vmem:[%s6549_s1 + $0x304] ss:$8 sps:$4 sm:$0xff]  }
  0xa1   :  { %3030 = vmatprep.subr.bf16.mxu0 %v4693_v7  ;;  %v4741_v7 = vld [vmem:[%s6549_s1 + $0x704] ss:$8 sps:$4 sm:$0xff]  }
  0xa2   :  { %2522 = vmatmul.mubr.bf16.gmra.mrb[16].mxu1 %v3841_v12  ;;  %v3779_v12 = vcombine.low %v22_v58, %v30_v61  ;;  %v3835_v58 = vcombine.low %v74_v44, %v82_v45  ;;  %v98_v61 = vld [vmem:[%s6550_s0 + $0x270] sm:$0xff] }
  0xa3   :  { %2974 = vmatmul.mubr.bf16.gmra.mrb[16].mxu0 %v3849_v13  ;;  %2579 = vmatpush1.bf16.msra.mxu1 %v4688_v8  ;;  %v4736_v8 = vld [vmem:[%s6549_s1 + $0x300] ss:$8 sps:$4 sm:$0xff]   ;;  %v3787_v13 = vcombine.low %v26_v62, %v34_v63 }
  0xa4   :  { %3031 = vmatpush1.bf16.msra.mxu0 %v4691_v9  ;;  %2580 = vmatprep.subr.bf16.mxu1 %v4696_v16  ;;  %v4739_v9 = vld [vmem:[%s6549_s1 + $0x700] ss:$8 sps:$4 sm:$0xff]   ;;  %v4744_v16 = vld [vmem:[%s6549_s1 + $0x314] ss:$8 sps:$4 sm:$0xff]  }
  0xa5   :  { %3032 = vmatprep.subr.bf16.mxu0 %v4699_v17  ;;  %2531 = vmatprep.mubr.bf16.mxu1 %v3858_v18  ;;  %v4747_v17 = vld [vmem:[%s6549_s1 + $0x714] ss:$8 sps:$4 sm:$0xff]   ;;  %v3796_v18 = vcombine.high %v38_v10, %v46_v11  ;;  %v4772_v62 = vld [vmem:[%s6549_s1 + $0x360] ss:$8 sps:$4 sm:$0xff]  }
  0xa6   :  { %2983 = vmatprep.mubr.bf16.mxu0 %v3866_v19  ;;  %v3804_v19 = vcombine.high %v42_v14, %v50_v15  ;;  %v4775_v63 = vld [vmem:[%s6549_s1 + $0x760] ss:$8 sps:$4 sm:$0xff]  }
  0xa7   :  { %2581 = vmatpush1.bf16.msra.mxu1 %v4694_v20  ;;  %v4742_v20 = vld [vmem:[%s6549_s1 + $0x310] ss:$8 sps:$4 sm:$0xff]   ;;  %v4784_v14 = vld [vmem:[%s6549_s1 + $0x380] ss:$8 sps:$4 sm:$0xff]  }
  0xa8   :  { %3033 = vmatpush1.bf16.msra.mxu0 %v4697_v21  ;;  %2582 = vmatprep.subr.bf16.mxu1 %v4702_v22  ;;  %v4745_v21 = vld [vmem:[%s6549_s1 + $0x710] ss:$8 sps:$4 sm:$0xff]   ;;  %v4750_v22 = vld [vmem:[%s6549_s1 + $0x324] ss:$8 sps:$4 sm:$0xff]   ;;  %v4787_v15 = vld [vmem:[%s6549_s1 + $0x780] ss:$8 sps:$4 sm:$0xff]  }
  0xa9   :  { %3034 = vmatprep.subr.bf16.mxu0 %v4705_v23  ;;  %v4753_v23 = vld [vmem:[%s6549_s1 + $0x724] ss:$8 sps:$4 sm:$0xff]  }
  0xaa   :  { %2532 = vmatmul.mubr.bf16.gmra.mrb[20].mxu1 %v3857_v27  ;;  %v62_v27 = vld [vmem:[%s6550_s0 + $0x150] sm:$0xff] }
  0xab   :  { %2984 = vmatmul.mubr.bf16.gmra.mrb[20].mxu0 %v3865_v28  ;;  %2583 = vmatpush1.bf16.msra.mxu1 %v4700_v24  ;;  %v4748_v24 = vld [vmem:[%s6549_s1 + $0x320] ss:$8 sps:$4 sm:$0xff]   ;;  %v3795_v28 = vcombine.low %v38_v10, %v46_v11  ;;  %v3811_v41 = vcombine.low %v54_v26, %v62_v27  ;;  %v110_v11 = vld [vmem:[%s6550_s0 + $0x2d0] sm:$0xff] }
  0xac   :  { %3035 = vmatpush1.bf16.msra.mxu0 %v4703_v31  ;;  %2584 = vmatprep.subr.bf16.mxu1 %v4708_v32  ;;  %v66_v31 = vld [vmem:[%s6550_s0 + $0x170] sm:$0xff] }
  0xad   :  { %3036 = vmatprep.subr.bf16.mxu0 %v4711_v33  ;;  %2541 = vmatprep.mubr.bf16.mxu1 %v3874_v34  ;;  %v4756_v32 = vld [vmem:[%s6549_s1 + $0x334] ss:$8 sps:$4 sm:$0xff]   ;;  %v3812_v34 = vcombine.high %v54_v26, %v62_v27 }
  0xae   :  { %2993 = vmatprep.mubr.bf16.mxu0 %v3882_v35  ;;  %v4759_v33 = vld [vmem:[%s6549_s1 + $0x734] ss:$8 sps:$4 sm:$0xff]   ;;  %v3820_v35 = vcombine.high %v58_v30, %v66_v31 }
  0xaf   :  { %2585 = vmatpush1.bf16.msra.mxu1 %v4706_v36  ;;  %v4754_v36 = vld [vmem:[%s6549_s1 + $0x330] ss:$8 sps:$4 sm:$0xff]  }
  0xb0   :  { %3037 = vmatpush1.bf16.msra.mxu0 %v4709_v37  ;;  %2586 = vmatprep.subr.bf16.mxu1 %v4714_v38  ;;  %v4757_v37 = vld [vmem:[%s6549_s1 + $0x730] ss:$8 sps:$4 sm:$0xff]   ;;  %v4762_v38 = vld [vmem:[%s6549_s1 + $0x344] ss:$8 sps:$4 sm:$0xff]  }
  0xb1   :  { %3038 = vmatprep.subr.bf16.mxu0 %v4717_v39  ;;  %v4765_v39 = vld [vmem:[%s6549_s1 + $0x744] ss:$8 sps:$4 sm:$0xff]   ;;  %v126_v27 = vld [vmem:[%s6550_s0 + $0x350] sm:$0xff] }
  0xb2   :  { %2542 = vmatmul.mubr.bf16.gmra.mrb[24].mxu1 %v3873_v42  ;;  %v3819_v42 = vcombine.low %v58_v30, %v66_v31  ;;  %v4796_v30 = vld [vmem:[%s6549_s1 + $0x3a0] ss:$8 sps:$4 sm:$0xff]  }
  0xb3   :  { %2994 = vmatmul.mubr.bf16.gmra.mrb[24].mxu0 %v3881_v43  ;;  %2587 = vmatpush1.bf16.msra.mxu1 %v4712_v46  ;;  %v78_v43 = vld [vmem:[%s6550_s0 + $0x1d0] sm:$0xff]  ;;  %v4760_v46 = vld [vmem:[%s6549_s1 + $0x340] ss:$8 sps:$4 sm:$0xff]  }
  0xb4   :  { %3039 = vmatpush1.bf16.msra.mxu0 %v4715_v47  ;;  %2588 = vmatprep.subr.bf16.mxu1 %v4720_v48  ;;  %v4763_v47 = vld [vmem:[%s6549_s1 + $0x740] ss:$8 sps:$4 sm:$0xff]   ;;  %v4768_v48 = vld [vmem:[%s6549_s1 + $0x354] ss:$8 sps:$4 sm:$0xff]  }
  0xb5   :  { %3040 = vmatprep.subr.bf16.mxu0 %v4723_v49  ;;  %2551 = vmatprep.mubr.bf16.mxu1 %v3890_v50  ;;  %v4771_v49 = vld [vmem:[%s6549_s1 + $0x754] ss:$8 sps:$4 sm:$0xff]   ;;  %v3828_v50 = vcombine.high %v70_v40, %v78_v43  ;;  %v4799_v31 = vld [vmem:[%s6549_s1 + $0x7a0] ss:$8 sps:$4 sm:$0xff]  }
  0xb6   :  { %3003 = vmatprep.mubr.bf16.mxu0 %v3898_v51  ;;  %v3836_v51 = vcombine.high %v74_v44, %v82_v45  ;;  %v138_v44 = vld [vmem:[%s6550_s0 + $0x3b0] sm:$0xff] }
  0xb7   :  { %2589 = vmatpush1.bf16.msra.mxu1 %v4718_v52  ;;  %v4766_v52 = vld [vmem:[%s6549_s1 + $0x350] ss:$8 sps:$4 sm:$0xff]  }
  0xb8   :  { %3041 = vmatpush1.bf16.msra.mxu0 %v4721_v53  ;;  %2590 = vmatprep.subr.bf16.mxu1 %v4726_v54  ;;  %v4769_v53 = vld [vmem:[%s6549_s1 + $0x750] ss:$8 sps:$4 sm:$0xff]   ;;  %v4774_v54 = vld [vmem:[%s6549_s1 + $0x364] ss:$8 sps:$4 sm:$0xff]  }
  0xb9   :  { %3042 = vmatprep.subr.bf16.mxu0 %v4729_v55  ;;  %v4777_v55 = vld [vmem:[%s6549_s1 + $0x764] ss:$8 sps:$4 sm:$0xff]   ;;  %v146_v45 = vld [vmem:[%s6550_s0 + $0x3f0] sm:$0xff] }
  0xba   :  { %2552 = vmatmul.mubr.bf16.gmra.mrb[28].mxu1 %v3889_v59  ;;  %v94_v59 = vld [vmem:[%s6550_s0 + $0x250] sm:$0xff] }
  0xbb   :  { %3004 = vmatmul.mubr.bf16.gmra.mrb[28].mxu0 %v3897_v60  ;;  %2591 = vmatpush1.bf16.msra.mxu1 %v4724_v56  ;;  %v86_v56 = vld [vmem:[%s6550_s0 + $0x210] sm:$0xff] }
  0xbc   :  { %3043 = vmatpush1.bf16.msra.mxu0 %v4727_v57  ;;  %2592 = vmatprep.subr.bf16.mxu1 %v4732_v0  ;;  %v3827_v57 = vcombine.low %v70_v40, %v78_v43  ;;  %v90_v60 = vld [vmem:[%s6550_s0 + $0x230] sm:$0xff] }
  0xbd   :  { %3044 = vmatprep.subr.bf16.mxu0 %v4735_v1  ;;  %2594 = vmatprep.mubr.bf16.mxu1 %v3780_v2  ;;  %v4780_v0 = vld [vmem:[%s6549_s1 + $0x374] ss:$8 sps:$4 sm:$0xff]   ;;  %v3844_v2 = vcombine.high %v86_v56, %v94_v59  ;;  %v3851_v10 = vcombine.low %v90_v60, %v98_v61 }
  0xbe   :  { %3046 = vmatprep.mubr.bf16.mxu0 %v3788_v3  ;;  %v4783_v1 = vld [vmem:[%s6549_s1 + $0x774] ss:$8 sps:$4 sm:$0xff]   ;;  %v3852_v3 = vcombine.high %v90_v60, %v98_v61 }
  0xbf   :  { %2593 = vmatpush1.bf16.msra.mxu1 %v4730_v4  ;;  %v4778_v4 = vld [vmem:[%s6549_s1 + $0x370] ss:$8 sps:$4 sm:$0xff]  }
  0xc0   :  { %3045 = vmatpush1.bf16.msra.mxu0 %v4733_v5  ;;  %2675 = vmatprep.subr.bf16.mxu1 %v4738_v6  ;;  %v4781_v5 = vld [vmem:[%s6549_s1 + $0x770] ss:$8 sps:$4 sm:$0xff]   ;;  %v4786_v6 = vld [vmem:[%s6549_s1 + $0x384] ss:$8 sps:$4 sm:$0xff]  }
  0xc1   :  { %3127 = vmatprep.subr.bf16.mxu0 %v4741_v7  ;;  %v4789_v7 = vld [vmem:[%s6549_s1 + $0x784] ss:$8 sps:$4 sm:$0xff]   ;;  %v134_v40 = vld [vmem:[%s6550_s0 + $0x390] sm:$0xff]  ;;  %v27_v60 = vld [vmem:[%s6550_s0 + $0x38] sm:$0xff] }
  0xc2   :  { %2595 = vmatmul.mubr.bf16.vlgmr.msra.gmra.mrb[0].mxu1 %v3779_v12  ;;  %v106_v12 = vld [vmem:[%s6550_s0 + $0x2b0] sm:$0xff]  ;;  %v35_v61 = vld [vmem:[%s6550_s0 + $0x78] sm:$0xff] }
  0xc3   :  { %3047 = vmatmul.mubr.bf16.vlgmr.msra.gmra.mrb[0].mxu0 %v3787_v13  ;;  %2676 = vmatpush1.bf16.msra.mxu1 %v4736_v8  ;;  %v102_v8 = vld [vmem:[%s6550_s0 + $0x290] sm:$0xff] }
  0xc4   :  { %3128 = vmatpush1.bf16.msra.mxu0 %v4739_v9  ;;  %2677 = vmatprep.subr.bf16.mxu1 %v4744_v16  ;;  %v3843_v9 = vcombine.low %v86_v56, %v94_v59  ;;  %v114_v13 = vld [vmem:[%s6550_s0 + $0x2f0] sm:$0xff]  ;;  %v23_v56 = vld [vmem:[%s6550_s0 + $0x18] sm:$0xff] }
  0xc5   :  { %3129 = vmatprep.subr.bf16.mxu0 %v4747_v17  ;;  %2604 = vmatprep.mubr.bf16.mxu1 %v3796_v18  ;;  %v4792_v16 = vld [vmem:[%s6549_s1 + $0x394] ss:$8 sps:$4 sm:$0xff]   ;;  %v3860_v18 = vcombine.high %v102_v8, %v110_v11  ;;  %v3867_v26 = vcombine.low %v106_v12, %v114_v13 }
  0xc6   :  { %3056 = vmatprep.mubr.bf16.mxu0 %v3804_v19  ;;  %v4795_v17 = vld [vmem:[%s6549_s1 + $0x794] ss:$8 sps:$4 sm:$0xff]   ;;  %v3868_v19 = vcombine.high %v106_v12, %v114_v13 }
  0xc7   :  { %2678 = vmatpush1.bf16.msra.mxu1 %v4742_v20  ;;  %v4790_v20 = vld [vmem:[%s6549_s1 + $0x390] ss:$8 sps:$4 sm:$0xff]  }
  0xc8   :  { %3130 = vmatpush1.bf16.msra.mxu0 %v4745_v21  ;;  %2679 = vmatprep.subr.bf16.mxu1 %v4750_v22  ;;  %v4793_v21 = vld [vmem:[%s6549_s1 + $0x790] ss:$8 sps:$4 sm:$0xff]   ;;  %v4798_v22 = vld [vmem:[%s6549_s1 + $0x3a4] ss:$8 sps:$4 sm:$0xff]  }
  0xc9   :  { %3131 = vmatprep.subr.bf16.mxu0 %v4753_v23  ;;  %v4801_v23 = vld [vmem:[%s6549_s1 + $0x7a4] ss:$8 sps:$4 sm:$0xff]   ;;  %v142_v43 = vld [vmem:[%s6550_s0 + $0x3d0] sm:$0xff]  ;;  %v31_v59 = vld [vmem:[%s6550_s0 + $0x58] sm:$0xff] }
  0xca   :  { %2605 = vmatmul.mubr.bf16.gmra.mrb[4].mxu1 %v3795_v28  ;;  %v122_v28 = vld [vmem:[%s6550_s0 + $0x330] sm:$0xff] }
  0xcb   :  { %3057 = vmatmul.mubr.bf16.gmra.mrb[4].mxu0 %v3803_v29  ;;  %2680 = vmatpush1.bf16.msra.mxu1 %v4748_v24  ;;  %v118_v24 = vld [vmem:[%s6550_s0 + $0x310] sm:$0xff] }
  0xcc   :  { %3132 = vmatpush1.bf16.msra.mxu0 %v4751_v25  ;;  %2681 = vmatprep.subr.bf16.mxu1 %v4756_v32  ;;  %v3859_v25 = vcombine.low %v102_v8, %v110_v11  ;;  %v130_v29 = vld [vmem:[%s6550_s0 + $0x370] sm:$0xff]  ;;  %v43_v8 = vld [vmem:[%s6550_s0 + $0xb8] sm:$0xff]  ;;  %v3789_v11 = vcombine.low %v27_v60, %v35_v61 }
  0xcd   :  { %3133 = vmatprep.subr.bf16.mxu0 %v4759_v33  ;;  %2614 = vmatprep.mubr.bf16.mxu1 %v3812_v34  ;;  %v4804_v32 = vld [vmem:[%s6549_s1 + $0x3b4] ss:$8 sps:$4 sm:$0xff]   ;;  %v3876_v34 = vcombine.high %v118_v24, %v126_v27 }
  0xce   :  { %3066 = vmatprep.mubr.bf16.mxu0 %v3820_v35  ;;  %v4807_v33 = vld [vmem:[%s6549_s1 + $0x7b4] ss:$8 sps:$4 sm:$0xff]   ;;  %v3884_v35 = vcombine.high %v122_v28, %v130_v29 }
  0xcf   :  { %2682 = vmatpush1.bf16.msra.mxu1 %v4754_v36  ;;  %v4802_v36 = vld [vmem:[%s6549_s1 + $0x3b0] ss:$8 sps:$4 sm:$0xff]  }
  0xd0   :  { %3134 = vmatpush1.bf16.msra.mxu0 %v4757_v37  ;;  %2683 = vmatprep.subr.bf16.mxu1 %v4762_v38  ;;  %v4805_v37 = vld [vmem:[%s6549_s1 + $0x7b0] ss:$8 sps:$4 sm:$0xff]   ;;  %v4810_v38 = vld [vmem:[%s6549_s1 + $0x3c4] ss:$8 sps:$4 sm:$0xff]  }
  0xd1   :  { %3135 = vmatprep.subr.bf16.mxu0 %v4765_v39  ;;  %v4813_v39 = vld [vmem:[%s6549_s1 + $0x7c4] ss:$8 sps:$4 sm:$0xff]  }
  0xd2   :  { %2615 = vmatmul.mubr.bf16.gmra.mrb[8].mxu1 %v3811_v41  ;;  %v3875_v41 = vcombine.low %v118_v24, %v126_v27  ;;  %v75_v24 = vld [vmem:[%s6550_s0 + $0x1b8] sm:$0xff] }
  0xd3   :  { %3067 = vmatmul.mubr.bf16.gmra.mrb[8].mxu0 %v3819_v42  ;;  %2684 = vmatpush1.bf16.msra.mxu1 %v4760_v46  ;;  %v3883_v42 = vcombine.low %v122_v28, %v130_v29  ;;  %v4808_v46 = vld [vmem:[%s6549_s1 + $0x3c0] ss:$8 sps:$4 sm:$0xff]  }
  0xd4   :  { %3136 = vmatpush1.bf16.msra.mxu0 %v4763_v47  ;;  %2685 = vmatprep.subr.bf16.mxu1 %v4768_v48  ;;  %v4811_v47 = vld [vmem:[%s6549_s1 + $0x7c0] ss:$8 sps:$4 sm:$0xff]   ;;  %v4816_v48 = vld [vmem:[%s6549_s1 + $0x3d4] ss:$8 sps:$4 sm:$0xff]  }
  0xd5   :  { %3137 = vmatprep.subr.bf16.mxu0 %v4771_v49  ;;  %2624 = vmatprep.mubr.bf16.mxu1 %v3828_v50  ;;  %v4819_v49 = vld [vmem:[%s6549_s1 + $0x7d4] ss:$8 sps:$4 sm:$0xff]   ;;  %v3892_v50 = vcombine.high %v134_v40, %v142_v43 }
  0xd6   :  { %3076 = vmatprep.mubr.bf16.mxu0 %v3836_v51  ;;  %v3900_v51 = vcombine.high %v138_v44, %v146_v45 }
  0xd7   :  { %2686 = vmatpush1.bf16.msra.mxu1 %v4766_v52  ;;  %v4814_v52 = vld [vmem:[%s6549_s1 + $0x3d0] ss:$8 sps:$4 sm:$0xff]  }
  0xd8   :  { %3138 = vmatpush1.bf16.msra.mxu0 %v4769_v53  ;;  %2687 = vmatprep.subr.bf16.mxu1 %v4774_v54  ;;  %v4817_v53 = vld [vmem:[%s6549_s1 + $0x7d0] ss:$8 sps:$4 sm:$0xff]   ;;  %v4822_v54 = vld [vmem:[%s6549_s1 + $0x3e4] ss:$8 sps:$4 sm:$0xff]  }
  0xd9   :  { %3139 = vmatprep.subr.bf16.mxu0 %v4777_v55  ;;  %v4825_v55 = vld [vmem:[%s6549_s1 + $0x7e4] ss:$8 sps:$4 sm:$0xff]  }
  0xda   :  { %2625 = vmatmul.mubr.bf16.gmra.mrb[12].mxu1 %v3827_v57  ;;  %v3891_v57 = vcombine.low %v134_v40, %v142_v43  ;;  %v107_v40 = vld [vmem:[%s6550_s0 + $0x2b8] sm:$0xff] }
  0xdb   :  { %3077 = vmatmul.mubr.bf16.gmra.mrb[12].mxu0 %v3835_v58  ;;  %2688 = vmatpush1.bf16.msra.mxu1 %v4772_v62  ;;  %v3899_v58 = vcombine.low %v138_v44, %v146_v45  ;;  %v4820_v62 = vld [vmem:[%s6549_s1 + $0x3e0] ss:$8 sps:$4 sm:$0xff]  }
  0xdc   :  { %3140 = vmatpush1.bf16.msra.mxu0 %v4775_v63  ;;  %2689 = vmatprep.subr.bf16.mxu1 %v4780_v0  ;;  %v4823_v63 = vld [vmem:[%s6549_s1 + $0x7e0] ss:$8 sps:$4 sm:$0xff]   ;;  %v4828_v0 = vld [vmem:[%s6549_s1 + $0x3f4] ss:$8 sps:$4 sm:$0xff]  }
  0xdd   :  { %3141 = vmatprep.subr.bf16.mxu0 %v4783_v1  ;;  %2634 = vmatprep.mubr.bf16.mxu1 %v3844_v2  ;;  %v4831_v1 = vld [vmem:[%s6549_s1 + $0x7f4] ss:$8 sps:$4 sm:$0xff]   ;;  %v3782_v2 = vcombine.high %v23_v56, %v31_v59 }
  0xde   :  { %3086 = vmatprep.mubr.bf16.mxu0 %v3852_v3  ;;  %v3790_v3 = vcombine.high %v27_v60, %v35_v61 }
  0xdf   :  { %2690 = vmatpush1.bf16.msra.mxu1 %v4778_v4  ;;  %v4826_v4 = vld [vmem:[%s6549_s1 + $0x3f0] ss:$8 sps:$4 sm:$0xff]  }
  0xe0   :  { %3142 = vmatpush1.bf16.msra.mxu0 %v4781_v5  ;;  %2691 = vmatprep.subr.bf16.mxu1 %v4786_v6  ;;  %v4829_v5 = vld [vmem:[%s6549_s1 + $0x7f0] ss:$8 sps:$4 sm:$0xff]  }
  0xe1   :  { %3143 = vmatprep.subr.bf16.mxu0 %v4789_v7  ;;  %v39_v6 = vld [vmem:[%s6550_s0 + $0x98] sm:$0xff] }
  0xe2   :  { %2635 = vmatmul.mubr.bf16.gmra.mrb[16].mxu1 %v3843_v9  ;;  %v47_v7 = vld [vmem:[%s6550_s0 + $0xd8] sm:$0xff] }
  0xe3   :  { %3087 = vmatmul.mubr.bf16.gmra.mrb[16].mxu0 %v3851_v10  ;;  %2692 = vmatpush1.bf16.msra.mxu1 %v4784_v14  ;;  %v51_v9 = vld [vmem:[%s6550_s0 + $0xf8] sm:$0xff]  ;;  %v3781_v10 = vcombine.low %v23_v56, %v31_v59  ;;  %v3798_v12 = vcombine.high %v39_v6, %v47_v7 }
  0xe4   :  { %3144 = vmatpush1.bf16.msra.mxu0 %v4787_v15  ;;  %2693 = vmatprep.subr.bf16.mxu1 %v4792_v16  ;;  %v3806_v13 = vcombine.high %v43_v8, %v51_v9  ;;  %v55_v14 = vld [vmem:[%s6550_s0 + $0x118] sm:$0xff] }
  0xe5   :  { %3145 = vmatprep.subr.bf16.mxu0 %v4795_v17  ;;  %2644 = vmatprep.mubr.bf16.mxu1 %v3860_v18  ;;  %v63_v15 = vld [vmem:[%s6550_s0 + $0x158] sm:$0xff]  ;;  %v3797_v18 = vcombine.low %v39_v6, %v47_v7 }
  0xe6   :  { %3096 = vmatprep.mubr.bf16.mxu0 %v3868_v19  ;;  %v59_v16 = vld [vmem:[%s6550_s0 + $0x138] sm:$0xff]  ;;  %v3805_v19 = vcombine.low %v43_v8, %v51_v9 }
  0xe7   :  { %2694 = vmatpush1.bf16.msra.mxu1 %v4790_v20  ;;  %v67_v17 = vld [vmem:[%s6550_s0 + $0x178] sm:$0xff]  ;;  %v3814_v20 = vcombine.high %v55_v14, %v63_v15 }
  0xe8   :  { %3146 = vmatpush1.bf16.msra.mxu0 %v4793_v21  ;;  %2695 = vmatprep.subr.bf16.mxu1 %v4798_v22  ;;  %v3822_v21 = vcombine.high %v59_v16, %v67_v17  ;;  %v71_v22 = vld [vmem:[%s6550_s0 + $0x198] sm:$0xff]  ;;  %v3821_v27 = vcombine.low %v59_v16, %v67_v17 }
  0xe9   :  { %3147 = vmatprep.subr.bf16.mxu0 %v4801_v23  ;;  %v79_v23 = vld [vmem:[%s6550_s0 + $0x1d8] sm:$0xff] }
  0xea   :  { %2645 = vmatmul.mubr.bf16.gmra.mrb[20].mxu1 %v3859_v25  ;;  %v83_v25 = vld [vmem:[%s6550_s0 + $0x1f8] sm:$0xff]  ;;  %v3830_v28 = vcombine.high %v71_v22, %v79_v23 }
  0xeb   :  { %3097 = vmatmul.mubr.bf16.gmra.mrb[20].mxu0 %v3867_v26  ;;  %2696 = vmatpush1.bf16.msra.mxu1 %v4796_v30  ;;  %v3813_v26 = vcombine.low %v55_v14, %v63_v15  ;;  %v3838_v29 = vcombine.high %v75_v24, %v83_v25  ;;  %v87_v30 = vld [vmem:[%s6550_s0 + $0x218] sm:$0xff] }
  0xec   :  { %3148 = vmatpush1.bf16.msra.mxu0 %v4799_v31  ;;  %2697 = vmatprep.subr.bf16.mxu1 %v4804_v32  ;;  %v95_v31 = vld [vmem:[%s6550_s0 + $0x258] sm:$0xff] }
  0xed   :  { %3149 = vmatprep.subr.bf16.mxu0 %v4807_v33  ;;  %2654 = vmatprep.mubr.bf16.mxu1 %v3876_v34  ;;  %v91_v32 = vld [vmem:[%s6550_s0 + $0x238] sm:$0xff]  ;;  %v3829_v34 = vcombine.low %v71_v22, %v79_v23 }
  0xee   :  { %3106 = vmatprep.mubr.bf16.mxu0 %v3884_v35  ;;  %v99_v33 = vld [vmem:[%s6550_s0 + $0x278] sm:$0xff]  ;;  %v3837_v35 = vcombine.low %v75_v24, %v83_v25 }
  0xef   :  { %2698 = vmatpush1.bf16.msra.mxu1 %v4802_v36  ;;  %v3846_v36 = vcombine.high %v87_v30, %v95_v31  ;;  %v3853_v43 = vcombine.low %v91_v32, %v99_v33  ;;  %v139_v56 = vld [vmem:[%s6550_s0 + $0x3b8] sm:$0xff] }
  0xf0   :  { %3150 = vmatpush1.bf16.msra.mxu0 %v4805_v37  ;;  %2699 = vmatprep.subr.bf16.mxu1 %v4810_v38  ;;  %v3854_v37 = vcombine.high %v91_v32, %v99_v33  ;;  %v103_v38 = vld [vmem:[%s6550_s0 + $0x298] sm:$0xff] }
  0xf1   :  { %3151 = vmatprep.subr.bf16.mxu0 %v4813_v39  ;;  %v111_v39 = vld [vmem:[%s6550_s0 + $0x2d8] sm:$0xff] }
  0xf2   :  { %2655 = vmatmul.mubr.bf16.gmra.mrb[24].mxu1 %v3875_v41  ;;  %v115_v41 = vld [vmem:[%s6550_s0 + $0x2f8] sm:$0xff]  ;;  %v3862_v44 = vcombine.high %v103_v38, %v111_v39 }
  0xf3   :  { %3107 = vmatmul.mubr.bf16.gmra.mrb[24].mxu0 %v3883_v42  ;;  %2700 = vmatpush1.bf16.msra.mxu1 %v4808_v46  ;;  %v3845_v42 = vcombine.low %v87_v30, %v95_v31  ;;  %v3870_v45 = vcombine.high %v107_v40, %v115_v41  ;;  %v119_v46 = vld [vmem:[%s6550_s0 + $0x318] sm:$0xff] }
  0xf4   :  { %3152 = vmatpush1.bf16.msra.mxu0 %v4811_v47  ;;  %2701 = vmatprep.subr.bf16.mxu1 %v4816_v48  ;;  %v127_v47 = vld [vmem:[%s6550_s0 + $0x358] sm:$0xff] }
  0xf5   :  { %3153 = vmatprep.subr.bf16.mxu0 %v4819_v49  ;;  %2664 = vmatprep.mubr.bf16.mxu1 %v3892_v50  ;;  %v123_v48 = vld [vmem:[%s6550_s0 + $0x338] sm:$0xff]  ;;  %v3861_v50 = vcombine.low %v103_v38, %v111_v39 }
  0xf6   :  { %3116 = vmatprep.mubr.bf16.mxu0 %v3900_v51  ;;  %v131_v49 = vld [vmem:[%s6550_s0 + $0x378] sm:$0xff]  ;;  %v3869_v51 = vcombine.low %v107_v40, %v115_v41 }
  0xf7   :  { %2702 = vmatpush1.bf16.msra.mxu1 %v4814_v52  ;;  %v3878_v52 = vcombine.high %v119_v46, %v127_v47  ;;  %v3885_v59 = vcombine.low %v123_v48, %v131_v49 }
  0xf8   :  { %3154 = vmatpush1.bf16.msra.mxu0 %v4817_v53  ;;  %2703 = vmatprep.subr.bf16.mxu1 %v4822_v54  ;;  %v3886_v53 = vcombine.high %v123_v48, %v131_v49  ;;  %v135_v54 = vld [vmem:[%s6550_s0 + $0x398] sm:$0xff] }
  0xf9   :  { %3155 = vmatprep.subr.bf16.mxu0 %v4825_v55  ;;  %v143_v55 = vld [vmem:[%s6550_s0 + $0x3d8] sm:$0xff] }
  0xfa   :  { %2665 = vmatmul.mubr.bf16.gmra.mrb[28].mxu1 %v3891_v57  ;;  %v147_v57 = vld [vmem:[%s6550_s0 + $0x3f8] sm:$0xff]  ;;  %v3894_v60 = vcombine.high %v135_v54, %v143_v55 }
  0xfb   :  { %3117 = vmatmul.mubr.bf16.gmra.mrb[28].mxu0 %v3899_v58  ;;  %2704 = vmatpush1.bf16.msra.mxu1 %v4820_v62  ;;  %v3877_v58 = vcombine.low %v119_v46, %v127_v47  ;;  %v3902_v61 = vcombine.high %v139_v56, %v147_v57  ;;  %v3893_v62 = vcombine.low %v135_v54, %v143_v55 }
  0xfc   :  { %3156 = vmatpush1.bf16.msra.mxu0 %v4823_v63  ;;  %2705 = vmatprep.subr.bf16.mxu1 %v4828_v0  ;;  %v3901_v63 = vcombine.low %v139_v56, %v147_v57  ;;  %v406_v0 = vlaneseq }
  0xfd   :  { %3157 = vmatprep.subr.bf16.mxu0 %v4831_v1  ;;  %2707 = vmatprep.mubr.bf16.mxu1 %v3782_v2 }
  0xfe   :  { %3159 = vmatprep.mubr.bf16.mxu0 %v3790_v3  ;;  %v6019_v1 = vshrl.u32 %v406_v0, 7  ;;  %v404_v3 = vld [vmem:[%s6551_s2] sm:$0x3] }
  0xff   :  { %2706 = vmatpush1.bf16.msra.mxu1 %v4826_v4 }
 0x100   :  { %3158 = vmatpush1.bf16.msra.mxu0 %v4829_v5  ;;  %v6022_v2 = vsub.s32 0, %v6019_v1  ;;  %v6028_v4 = vsub.s32 1, %v6019_v1 }
 0x102   :  { %2708 = vmatmul.mubr.bf16.vlgmr.msra.gmra.mrb[0].mxu1 %v3781_v10  ;;  %v6031_v5 = vrot.slane %v404_v3, %v6022_v2  ;;  %v6034_v6 = vrot.slane %v404_v3, %v6028_v4 }
 0x103   :  { %3160 = vmatmul.mubr.bf16.vlgmr.msra.gmra.mrb[0].mxu0 %v3789_v11  ;;  %2717 = vmatprep.mubr.bf16.mxu1 %v3798_v12 }
 0x104   :  { %3169 = vmatprep.mubr.bf16.mxu0 %v3806_v13 }
 0x10a   :  { %2718 = vmatmul.mubr.bf16.gmra.mrb[4].mxu1 %v3797_v18 }
 0x10b   :  { %3170 = vmatmul.mubr.bf16.gmra.mrb[4].mxu0 %v3805_v19  ;;  %2727 = vmatprep.mubr.bf16.mxu1 %v3814_v20 }
 0x10c   :  { %3179 = vmatprep.mubr.bf16.mxu0 %v3822_v21 }
 0x112   :  { %2728 = vmatmul.mubr.bf16.gmra.mrb[8].mxu1 %v3813_v26 }
 0x113   :  { %3180 = vmatmul.mubr.bf16.gmra.mrb[8].mxu0 %v3821_v27  ;;  %2737 = vmatprep.mubr.bf16.mxu1 %v3830_v28 }
 0x114   :  { %3189 = vmatprep.mubr.bf16.mxu0 %v3838_v29 }
 0x11a   :  { %2738 = vmatmul.mubr.bf16.gmra.mrb[12].mxu1 %v3829_v34 }
 0x11b   :  { %3190 = vmatmul.mubr.bf16.gmra.mrb[12].mxu0 %v3837_v35  ;;  %2747 = vmatprep.mubr.bf16.mxu1 %v3846_v36 }
 0x11c   :  { %3199 = vmatprep.mubr.bf16.mxu0 %v3854_v37 }
 0x122   :  { %2748 = vmatmul.mubr.bf16.gmra.mrb[16].mxu1 %v3845_v42 }
 0x123   :  { %3200 = vmatmul.mubr.bf16.gmra.mrb[16].mxu0 %v3853_v43  ;;  %2757 = vmatprep.mubr.bf16.mxu1 %v3862_v44 }
 0x124   :  { %3209 = vmatprep.mubr.bf16.mxu0 %v3870_v45 }
 0x12a   :  { %2758 = vmatmul.mubr.bf16.gmra.mrb[20].mxu1 %v3861_v50 }
 0x12b   :  { %3210 = vmatmul.mubr.bf16.gmra.mrb[20].mxu0 %v3869_v51  ;;  %2767 = vmatprep.mubr.bf16.mxu1 %v3878_v52 }
 0x12c   :  { %3219 = vmatprep.mubr.bf16.mxu0 %v3886_v53 }
 0x132   :  { %2768 = vmatmul.mubr.bf16.gmra.mrb[24].mxu1 %v3877_v58 }
 0x133   :  { %3220 = vmatmul.mubr.bf16.gmra.mrb[24].mxu0 %v3885_v59  ;;  %2777 = vmatprep.mubr.bf16.mxu1 %v3894_v60 }
 0x134   :  { %3229 = vmatprep.mubr.bf16.mxu0 %v3902_v61 }
 0x13a   :  { %2778 = vmatmul.mubr.bf16.gmra.mrb[28].mxu1 %v3893_v62 }
 0x13b   :  { %3230 = vmatmul.mubr.bf16.gmra.mrb[28].mxu0 %v3901_v63 }
 0x1d5   :  { %v2709_v7 = vpop.f32.mrb[0].mxu1 }
 0x1d6   :  { %v3161_v8 = vpop.f32.mrb[0].mxu0  ;;  %v4191_v9 = vadd.f32 %v2709_v7, %v6031_v5  ;;  %v2711_v10 = vpop.f32.mrb[1].mxu1 }
 0x1d7   :  { %v3163_v11 = vpop.f32.mrb[1].mxu0  ;;  %v4193_v12 = vadd.f32 %v2711_v10, %v6034_v6  ;;  %v2713_v13 = vpop.f32.mrb[2].mxu1 }
 0x1d8   :  { %v3165_v14 = vpop.f32.mrb[2].mxu0  ;;  %v6038_v15 = vadd.f32 %v4191_v9, %v3161_v8  ;;  %v4195_v16 = vadd.f32 %v2713_v13, %v6031_v5  ;;  %v2715_v17 = vpop.f32.mrb[3].mxu1 }
 0x1d9   :  { %v3167_v18 = vpop.f32.mrb[3].mxu0  ;;  %v6041_v19 = vadd.f32 %v4193_v12, %v3163_v11  ;;  %v4197_v20 = vadd.f32 %v2715_v17, %v6034_v6 }
 0x1da   :  { %v6044_v21 = vadd.f32 %v4195_v16, %v3165_v14  ;;  %v3349_v55 = vmul.f32 %v6038_v15, %v6038_v15 }
 0x1db   :  { %v6046_v22 = vadd.f32 %v4197_v20, %v3167_v18  ;;  %v3350_v59 = vmul.f32 %v6041_v19, %v6041_v19 }
 0x1dc   :  { %v3351_v47 = vmul.f32 %v6044_v21, %v6044_v21  ;;  %v3305_v56 = vadd.f32 %v6044_v21, %v6038_v15 }
 0x1dd   :  { %v2719_v23 = vpop.f32.mrb[4].mxu1  ;;  %v3352_v52 = vmul.f32 %v6046_v22, %v6046_v22  ;;  %v3326_v60 = vadd.f32 %v6046_v22, %v6041_v19 }
 0x1de   :  { %v3171_v24 = vpop.f32.mrb[4].mxu0  ;;  %v4199_v25 = vadd.f32 %v2719_v23, %v6031_v5  ;;  %v2721_v26 = vpop.f32.mrb[5].mxu1  ;;  %v3381_v63 = vadd.f32 %v3351_v47, %v3349_v55 }
 0x1df   :  { %v3173_v27 = vpop.f32.mrb[5].mxu0  ;;  %v4201_v28 = vadd.f32 %v2721_v26, %v6034_v6  ;;  %v2723_v29 = vpop.f32.mrb[6].mxu1  ;;  %v3402_v3 = vadd.f32 %v3352_v52, %v3350_v59 }
 0x1e0   :  { %v3175_v30 = vpop.f32.mrb[6].mxu0  ;;  %v6050_v31 = vadd.f32 %v4199_v25, %v3171_v24  ;;  %v4203_v32 = vadd.f32 %v2723_v29, %v6031_v5  ;;  %v2725_v33 = vpop.f32.mrb[7].mxu1 }
 0x1e1   :  { %v3177_v34 = vpop.f32.mrb[7].mxu0  ;;  %v6053_v35 = vadd.f32 %v4201_v28, %v3173_v27  ;;  %v4205_v36 = vadd.f32 %v2725_v33, %v6034_v6 }
 0x1e2   :  { %v6056_v37 = vadd.f32 %v4203_v32, %v3175_v30  ;;  %v3353_v57 = vmul.f32 %v6050_v31, %v6050_v31  ;;  %v3306_v0 = vadd.f32 %v6050_v31, %v3305_v56 }
 0x1e3   :  { %v6058_v38 = vadd.f32 %v4205_v36, %v3177_v34  ;;  %v3354_v61 = vmul.f32 %v6053_v35, %v6053_v35  ;;  %v3327_v7 = vadd.f32 %v6053_v35, %v3326_v60 }
 0x1e4   :  { %v3382_v10 = vadd.f32 %v3381_v63, %v3353_v57  ;;  %v3355_v11 = vmul.f32 %v6056_v37, %v6056_v37  ;;  %v3307_v24 = vadd.f32 %v6056_v37, %v3306_v0 }
 0x1e5   :  { %v2729_v39 = vpop.f32.mrb[8].mxu1  ;;  %v3403_v16 = vadd.f32 %v3402_v3, %v3354_v61  ;;  %v3356_v17 = vmul.f32 %v6058_v38, %v6058_v38  ;;  %v3328_v30 = vadd.f32 %v6058_v38, %v3327_v7 }
 0x1e6   :  { %v3181_v40 = vpop.f32.mrb[8].mxu0  ;;  %v4207_v41 = vadd.f32 %v2729_v39, %v6031_v5  ;;  %v2731_v42 = vpop.f32.mrb[9].mxu1  ;;  %v3383_v36 = vadd.f32 %v3382_v10, %v3355_v11 }
 0x1e7   :  { %v3183_v43 = vpop.f32.mrb[9].mxu0  ;;  %v4209_v44 = vadd.f32 %v2731_v42, %v6034_v6  ;;  %v2733_v45 = vpop.f32.mrb[10].mxu1 }
 0x1e8   :  { %v3185_v46 = vpop.f32.mrb[10].mxu0  ;;  %v6064_v48 = vadd.f32 %v4207_v41, %v3181_v40  ;;  %v4211_v49 = vadd.f32 %v2733_v45, %v6031_v5  ;;  %v2735_v50 = vpop.f32.mrb[11].mxu1  ;;  %v3404_v41 = vadd.f32 %v3403_v16, %v3356_v17 }
 0x1e9   :  { %v3187_v51 = vpop.f32.mrb[11].mxu0  ;;  %v6069_v53 = vadd.f32 %v4209_v44, %v3183_v43  ;;  %v4213_v54 = vadd.f32 %v2735_v50, %v6034_v6 }
 0x1ea   :  { %v6078_v58 = vadd.f32 %v4211_v49, %v3185_v46  ;;  %v3357_v25 = vmul.f32 %v6064_v48, %v6064_v48  ;;  %v3308_v39 = vadd.f32 %v6064_v48, %v3307_v24 }
 0x1eb   :  { %v6086_v62 = vadd.f32 %v4213_v54, %v3187_v51  ;;  %v3358_v32 = vmul.f32 %v6069_v53, %v6069_v53  ;;  %v3329_v42 = vadd.f32 %v6069_v53, %v3328_v30 }
 0x1ec   :  { %v3384_v44 = vadd.f32 %v3383_v36, %v3357_v25  ;;  %v3359_v45 = vmul.f32 %v6078_v58, %v6078_v58  ;;  %v3309_v51 = vadd.f32 %v6078_v58, %v3308_v39 }
 0x1ed   :  { %v2739_v8 = vpop.f32.mrb[12].mxu1  ;;  %v3405_v46 = vadd.f32 %v3404_v41, %v3358_v32  ;;  %v3360_v47 = vmul.f32 %v6086_v62, %v6086_v62  ;;  %v3330_v57 = vadd.f32 %v6086_v62, %v3329_v42 }
 0x1ee   :  { %v3191_v9 = vpop.f32.mrb[12].mxu0  ;;  %v4215_v12 = vadd.f32 %v2739_v8, %v6031_v5  ;;  %v2741_v13 = vpop.f32.mrb[13].mxu1  ;;  %v3385_v0 = vadd.f32 %v3384_v44, %v3359_v45 }
 0x1ef   :  { %v3193_v14 = vpop.f32.mrb[13].mxu0  ;;  %v4217_v18 = vadd.f32 %v2741_v13, %v6034_v6  ;;  %v2743_v20 = vpop.f32.mrb[14].mxu1  ;;  %v3406_v11 = vadd.f32 %v3405_v46, %v3360_v47 }
 0x1f0   :  { %v3195_v23 = vpop.f32.mrb[14].mxu0  ;;  %v6099_v26 = vadd.f32 %v4215_v12, %v3191_v9  ;;  %v4219_v27 = vadd.f32 %v2743_v20, %v6031_v5  ;;  %v2745_v28 = vpop.f32.mrb[15].mxu1 }
 0x1f1   :  { %v3197_v29 = vpop.f32.mrb[15].mxu0  ;;  %v6105_v33 = vadd.f32 %v4217_v18, %v3193_v14  ;;  %v4221_v34 = vadd.f32 %v2745_v28, %v6034_v6 }
 0x1f2   :  { %v6109_v40 = vadd.f32 %v4219_v27, %v3195_v23  ;;  %v3361_v52 = vmul.f32 %v6099_v26, %v6099_v26  ;;  %v3310_v3 = vadd.f32 %v6099_v26, %v3309_v51 }
 0x1f3   :  { %v6112_v43 = vadd.f32 %v4221_v34, %v3197_v29  ;;  %v3362_v59 = vmul.f32 %v6105_v33, %v6105_v33  ;;  %v3331_v12 = vadd.f32 %v6105_v33, %v3330_v57 }
 0x1f4   :  { %v3386_v16 = vadd.f32 %v3385_v0, %v3361_v52  ;;  %v3363_v17 = vmul.f32 %v6109_v40, %v6109_v40  ;;  %v3311_v25 = vadd.f32 %v6109_v40, %v3310_v3 }
 0x1f5   :  { %v2749_v49 = vpop.f32.mrb[16].mxu1  ;;  %v3407_v20 = vadd.f32 %v3406_v11, %v3362_v59  ;;  %v3364_v23 = vmul.f32 %v6112_v43, %v6112_v43  ;;  %v3332_v28 = vadd.f32 %v6112_v43, %v3331_v12 }
 0x1f6   :  { %v3201_v50 = vpop.f32.mrb[16].mxu0  ;;  %v4223_v54 = vadd.f32 %v2749_v49, %v6031_v5  ;;  %v2751_v55 = vpop.f32.mrb[17].mxu1  ;;  %v3387_v34 = vadd.f32 %v3386_v16, %v3363_v17 }
 0x1f7   :  { %v3203_v56 = vpop.f32.mrb[17].mxu0  ;;  %v4225_v60 = vadd.f32 %v2751_v55, %v6034_v6  ;;  %v2753_v61 = vpop.f32.mrb[18].mxu1  ;;  %v3408_v44 = vadd.f32 %v3407_v20, %v3364_v23 }
 0x1f8   :  { %v3205_v63 = vpop.f32.mrb[18].mxu0  ;;  %v6127_v7 = vadd.f32 %v4223_v54, %v3201_v50  ;;  %v4227_v8 = vadd.f32 %v2753_v61, %v6031_v5  ;;  %v2755_v9 = vpop.f32.mrb[19].mxu1 }
 0x1f9   :  { %v3207_v10 = vpop.f32.mrb[19].mxu0  ;;  %v6131_v13 = vadd.f32 %v4225_v60, %v3203_v56  ;;  %v4229_v14 = vadd.f32 %v2755_v9, %v6034_v6 }
 0x1fa   :  { %v6136_v18 = vadd.f32 %v4227_v8, %v3205_v63  ;;  %v3365_v27 = vmul.f32 %v6127_v7, %v6127_v7  ;;  %v3312_v36 = vadd.f32 %v6127_v7, %v3311_v25 }
 0x1fb   :  { %v6140_v24 = vadd.f32 %v4229_v14, %v3207_v10  ;;  %v3366_v29 = vmul.f32 %v6131_v13, %v6131_v13  ;;  %v3333_v45 = vadd.f32 %v6131_v13, %v3332_v28 }
 0x1fc   :  { %v3388_v50 = vadd.f32 %v3387_v34, %v3365_v27  ;;  %v3367_v51 = vmul.f32 %v6136_v18, %v6136_v18  ;;  %v3313_v63 = vadd.f32 %v6136_v18, %v3312_v36 }
 0x1fd   :  { %v2759_v30 = vpop.f32.mrb[20].mxu1  ;;  %v3409_v57 = vadd.f32 %v3408_v44, %v3366_v29  ;;  %v3368_v59 = vmul.f32 %v6140_v24, %v6140_v24  ;;  %v3334_v8 = vadd.f32 %v6140_v24, %v3333_v45 }
 0x1fe   :  { %v3211_v32 = vpop.f32.mrb[20].mxu0  ;;  %v4231_v39 = vadd.f32 %v2759_v30, %v6031_v5  ;;  %v2761_v41 = vpop.f32.mrb[21].mxu1  ;;  %v3389_v11 = vadd.f32 %v3388_v50, %v3367_v51 }
 0x1ff   :  { %v3213_v42 = vpop.f32.mrb[21].mxu0  ;;  %v4233_v46 = vadd.f32 %v2761_v41, %v6034_v6  ;;  %v2763_v47 = vpop.f32.mrb[22].mxu1  ;;  %v3410_v14 = vadd.f32 %v3409_v57, %v3368_v59 }
 0x200   :  { %v3215_v49 = vpop.f32.mrb[22].mxu0  ;;  %v6154_v52 = vadd.f32 %v4231_v39, %v3211_v32  ;;  %v4235_v54 = vadd.f32 %v2763_v47, %v6031_v5  ;;  %v2765_v55 = vpop.f32.mrb[23].mxu1 }
 0x201   :  { %v3217_v56 = vpop.f32.mrb[23].mxu0  ;;  %v6159_v60 = vadd.f32 %v4233_v46, %v3213_v42  ;;  %v4237_v61 = vadd.f32 %v2765_v55, %v6034_v6 }
 0x202   :  { %v3369_v0 = vmul.f32 %v6154_v52, %v6154_v52  ;;  %v6165_v3 = vadd.f32 %v4235_v54, %v3215_v49  ;;  %v3314_v12 = vadd.f32 %v6154_v52, %v3313_v63 }
 0x203   :  { %v3370_v9 = vmul.f32 %v6159_v60, %v6159_v60  ;;  %v6170_v10 = vadd.f32 %v4237_v61, %v3217_v56  ;;  %v3335_v16 = vadd.f32 %v6159_v60, %v3334_v8 }
 0x204   :  { %v3390_v23 = vadd.f32 %v3389_v11, %v3369_v0  ;;  %v3371_v25 = vmul.f32 %v6165_v3, %v6165_v3  ;;  %v3315_v41 = vadd.f32 %v6165_v3, %v3314_v12 }
 0x205   :  { %v2769_v17 = vpop.f32.mrb[24].mxu1  ;;  %v3411_v30 = vadd.f32 %v3410_v14, %v3370_v9  ;;  %v3372_v32 = vmul.f32 %v6170_v10, %v6170_v10  ;;  %v3336_v47 = vadd.f32 %v6170_v10, %v3335_v16 }
 0x206   :  { %v3221_v20 = vpop.f32.mrb[24].mxu0  ;;  %v4239_v27 = vadd.f32 %v2769_v17, %v6031_v5  ;;  %v2771_v28 = vpop.f32.mrb[25].mxu1  ;;  %v3391_v51 = vadd.f32 %v3390_v23, %v3371_v25 }
 0x207   :  { %v3223_v29 = vpop.f32.mrb[25].mxu0  ;;  %v4241_v34 = vadd.f32 %v2771_v28, %v6034_v6  ;;  %v2773_v36 = vpop.f32.mrb[26].mxu1  ;;  %v3412_v57 = vadd.f32 %v3411_v30, %v3372_v32 }
 0x208   :  { %v3225_v39 = vpop.f32.mrb[26].mxu0  ;;  %v6181_v42 = vadd.f32 %v4239_v27, %v3221_v20  ;;  %v4243_v44 = vadd.f32 %v2773_v36, %v6031_v5  ;;  %v2775_v45 = vpop.f32.mrb[27].mxu1 }
 0x209   :  { %v3227_v46 = vpop.f32.mrb[27].mxu0  ;;  %v6185_v49 = vadd.f32 %v4241_v34, %v3223_v29  ;;  %v4245_v50 = vadd.f32 %v2775_v45, %v6034_v6 }
 0x20a   :  { %v3316_v54 = vadd.f32 %v6181_v42, %v3315_v41  ;;  %v3373_v55 = vmul.f32 %v6181_v42, %v6181_v42  ;;  %v6191_v56 = vadd.f32 %v4243_v44, %v3225_v39 }
 0x20b   :  { %v3337_v59 = vadd.f32 %v6185_v49, %v3336_v47  ;;  %v3374_v61 = vmul.f32 %v6185_v49, %v6185_v49  ;;  %v6196_v63 = vadd.f32 %v4245_v50, %v3227_v46 }
 0x20c   :  { %v3392_v0 = vadd.f32 %v3391_v51, %v3373_v55  ;;  %v3317_v8 = vadd.f32 %v6191_v56, %v3316_v54  ;;  %v3375_v9 = vmul.f32 %v6191_v56, %v6191_v56 }
 0x20d   :  { %v3413_v11 = vadd.f32 %v3412_v57, %v3374_v61  ;;  %v3338_v12 = vadd.f32 %v6196_v63, %v3337_v59  ;;  %v3376_v14 = vmul.f32 %v6196_v63, %v6196_v63  ;;  %v2779_v16 = vpop.f32.mrb[28].mxu1 }
 0x20e   :  { %v3231_v17 = vpop.f32.mrb[28].mxu0  ;;  %v3393_v20 = vadd.f32 %v3392_v0, %v3375_v9  ;;  %v4247_v23 = vadd.f32 %v2779_v16, %v6031_v5  ;;  %v2781_v25 = vpop.f32.mrb[29].mxu1 }
 0x20f   :  { %v3233_v27 = vpop.f32.mrb[29].mxu0  ;;  %v3414_v28 = vadd.f32 %v3413_v11, %v3376_v14  ;;  %v4249_v29 = vadd.f32 %v2781_v25, %v6034_v6  ;;  %v2783_v30 = vpop.f32.mrb[30].mxu1 }
 0x210   :  { %v3235_v32 = vpop.f32.mrb[30].mxu0  ;;  %v6206_v34 = vadd.f32 %v4247_v23, %v3231_v17  ;;  %v4251_v36 = vadd.f32 %v2783_v30, %v6031_v5  ;;  %v2785_v39 = vpop.f32.mrb[31].mxu1 }
 0x211   :  { %v3237_v41 = vpop.f32.mrb[31].mxu0  ;;  %v6209_v44 = vadd.f32 %v4249_v29, %v3233_v27  ;;  %v4253_v45 = vadd.f32 %v2785_v39, %v6034_v6 }
 0x212   :  { %v3318_v46 = vadd.f32 %v6206_v34, %v3317_v8  ;;  %v3377_v47 = vmul.f32 %v6206_v34, %v6206_v34  ;;  %v6215_v50 = vadd.f32 %v4251_v36, %v3235_v32 }
 0x213   :  { %v3339_v51 = vadd.f32 %v6209_v44, %v3338_v12  ;;  %v3378_v54 = vmul.f32 %v6209_v44, %v6209_v44  ;;  %v6220_v55 = vadd.f32 %v4253_v45, %v3237_v41 }
 0x214   :  { %v3394_v5 = vadd.f32 %v3393_v20, %v3377_v47  ;;  %v3319_v57 = vadd.f32 %v6215_v50, %v3318_v46  ;;  %v3379_v6 = vmul.f32 %v6215_v50, %v6215_v50 }
 0x215   :  { %v3415_v59 = vadd.f32 %v3414_v28, %v3378_v54  ;;  %v3340_v61 = vadd.f32 %v6220_v55, %v3339_v51  ;;  %v3380_v0 = vmul.f32 %v6220_v55, %v6220_v55 }
 0x216   :  { %v3320_v8 = vrot.slane %v3319_v57, 4  ;;  %v3395_v9 = vadd.f32 %v3394_v5, %v3379_v6 }
 0x217   :  { %v3341_v11 = vrot.slane %v3340_v61, 4  ;;  %v3416_v12 = vadd.f32 %v3415_v59, %v3380_v0 }
 0x218   :  { %v3321_v14 = vadd.f32 %v3320_v8, %v3319_v57  ;;  %v3396_v16 = vrot.slane %v3395_v9, 4 }
 0x219   :  { %v3342_v17 = vadd.f32 %v3341_v11, %v3340_v61  ;;  %v3417_v23 = vrot.slane %v3416_v12, 4 }
 0x21a   :  { %v3322_v20 = vrot.slane %v3321_v14, 2  ;;  %v3397_v25 = vadd.f32 %v3396_v16, %v3395_v9 }
 0x21b   :  { %v3343_v27 = vrot.slane %v3342_v17, 2  ;;  %v3418_v29 = vadd.f32 %v3417_v23, %v3416_v12 }
 0x21c   :  { %v3323_v30 = vadd.f32 %v3322_v20, %v3321_v14  ;;  %v3398_v32 = vrot.slane %v3397_v25, 2 }
 0x21d   :  { %v3344_v28 = vadd.f32 %v3343_v27, %v3342_v17  ;;  %v3419_v36 = vrot.slane %v3418_v29, 2 }
 0x21e   :  { %v3324_v39 = vrot.slane %v3323_v30, 1  ;;  %v3399_v41 = vadd.f32 %v3398_v32, %v3397_v25  ;;  %v4836_v25 = vmov 1966171168  }
 0x21f   :  { %v3345_v45 = vrot.slane %v3344_v28, 1  ;;  %v3420_v46 = vadd.f32 %v3419_v36, %v3418_v29  ;;  %v3440_v27 = vunpack.c.l.s4 %v4836_v25 }
 0x220   :  { %v3325_v47 = vadd.f32 %v3324_v39, %v3323_v30  ;;  %v3400_v51 = vrot.slane %v3399_v41, 1 }
 0x221   :  { %v3346_v54 = vadd.f32 %v3345_v45, %v3344_v28  ;;  %v3421_v5 = vrot.slane %v3420_v46, 1  ;;  %v3441_v29 = vunpack.c.0.s8 %v3440_v27 }
 0x222   :  { %v3347_v57 = vmul.f32 0.0078125, %v3325_v47  ;;  %v3401_v6 = vadd.f32 %v3400_v51, %v3399_v41  ;;  %v3431_v41 = vld [vmem:[%s6552_s3] sm:$0x3] }
 0x223   :  { %v3348_v59 = vmul.f32 0.0078125, %v3346_v54  ;;  %v3422_v61 = vadd.f32 %v3421_v5, %v3420_v46  ;;  %v3444_v32 = vsub.s32 %v3441_v29, %v6019_v1 }
 0x224   :  { %v3423_v0 = vmul.f32 0.0078125, %v3401_v6  ;;  %v3425_v8 = vmul.f32 %v3347_v57, %v3347_v57 }
 0x225   :  { %v3424_v9 = vmul.f32 0.0078125, %v3422_v61  ;;  %v3426_v11 = vmul.f32 %v3348_v59, %v3348_v59 }
 0x226   :  { %v3427_v12 = vsub.f32 %v3423_v0, %v3425_v8 }
 0x227   :  { %v3428_v14 = vsub.f32 %v3424_v9, %v3426_v11 }
 0x228   :  { %v3429_v16 = vmax.f32 %v3427_v12, 0.0 }
 0x229   :  { %v3430_v17 = vmax.f32 %v3428_v14, 0.0 }
 0x22a   :  { %v3432_v23 = vadd.f32 1e-05, %v3429_v16 }
 0x22b   :  { %v3433_v20 = vadd.f32 1e-05, %v3430_v17 }
 0x22c   :  { %4832 = vrsqrt.f32 %v3432_v23 }
 0x22d   :  { %4834 = vrsqrt.f32 %v3433_v20 }
 0x236   :  { %v4833_v30 = vpop.eup %4832 }
 0x237   :  { %v4835_v28 = vpop.eup %4834 }
 0x238   :  { %v3438_v36 = vcombine.low %v4833_v30, %v4835_v28 }
 0x23a   :  { %v3445_v39 = vrot.slane %v3438_v36, %v3444_v32 }
 0x23c   :  { %v3452_v45 = vrot.slane %v3445_v39, %v3444_v32 }
 0x23e   :  { %v3454_v46 = vmul.f32 %v3452_v45, %v3431_v41 }
 0x240   :  { %v3460_v47 = vrot.slane %v3454_v46, %v6022_v2  ;;  %v3464_v51 = vrot.slane %v3454_v46, %v6028_v4 }
 0x242   :  { %v3467_v54 = vmul.f32 %v3460_v47, %v3347_v57  ;;  %v3468_v5 = vmul.f32 %v3464_v51, %v3348_v59  ;;  %v3488_v61 = vmul.f32 %v6038_v15, %v3460_v47  ;;  %v3489_v1 = vmul.f32 %v6041_v19, %v3464_v51  ;;  %v3455_v57 = vld [vmem:[%s6553_s4] sm:$0x3] }
 0x243   :  { %v3490_v0 = vmul.f32 %v6044_v21, %v3460_v47  ;;  %v3491_v8 = vmul.f32 %v6046_v22, %v3464_v51  ;;  %v3492_v9 = vmul.f32 %v6050_v31, %v3460_v47  ;;  %v3493_v12 = vmul.f32 %v6053_v35, %v3464_v51 }
 0x244   :  { %v3471_v6 = vcombine.low %v3467_v54, %v3468_v5  ;;  %v3494_v14 = vmul.f32 %v6056_v37, %v3460_v47  ;;  %v3495_v16 = vmul.f32 %v6058_v38, %v3464_v51  ;;  %v3496_v15 = vmul.f32 %v6064_v48, %v3460_v47 }
 0x245   :  { %v3497_v19 = vmul.f32 %v6069_v53, %v3464_v51  ;;  %v3498_v21 = vmul.f32 %v6078_v58, %v3460_v47  ;;  %v3499_v22 = vmul.f32 %v6086_v62, %v3464_v51  ;;  %v3500_v59 = vmul.f32 %v6099_v26, %v3460_v47 }
 0x246   :  { %v3478_v11 = vrot.slane %v3471_v6, %v3444_v32  ;;  %v3501_v35 = vmul.f32 %v6105_v33, %v3464_v51  ;;  %v3502_v37 = vmul.f32 %v6109_v40, %v3460_v47  ;;  %v3503_v38 = vmul.f32 %v6112_v43, %v3464_v51 }
 0x247   :  { %v3512_v17 = vmul.f32 %v6181_v42, %v3460_v47  ;;  %v3513_v23 = vmul.f32 %v6185_v49, %v3464_v51  ;;  %v3514_v48 = vmul.f32 %v6191_v56, %v3460_v47  ;;  %v3515_v58 = vmul.f32 %v6196_v63, %v3464_v51 }
 0x248   :  { %v3485_v31 = vrot.slane %v3478_v11, %v3444_v32  ;;  %v3516_v62 = vmul.f32 %v6206_v34, %v3460_v47  ;;  %v3517_v20 = vmul.f32 %v6209_v44, %v3464_v51  ;;  %v3504_v26 = vmul.f32 %v6127_v7, %v3460_v47 }
 0x249   :  { %v3505_v33 = vmul.f32 %v6131_v13, %v3464_v51  ;;  %v3518_v40 = vmul.f32 %v6215_v50, %v3460_v47  ;;  %v3519_v43 = vmul.f32 %v6220_v55, %v3464_v51  ;;  %v3506_v42 = vmul.f32 %v6136_v18, %v3460_v47 }
 0x24a   :  { %v3487_v53 = vsub.f32 %v3455_v57, %v3485_v31  ;;  %v3507_v49 = vmul.f32 %v6140_v24, %v3464_v51  ;;  %v3508_v34 = vmul.f32 %v6154_v52, %v3460_v47  ;;  %v3509_v44 = vmul.f32 %v6159_v60, %v3464_v51 }
 0x24b   :  { %v3510_v7 = vmul.f32 %v6165_v3, %v3460_v47  ;;  %v3511_v13 = vmul.f32 %v6170_v10, %v3464_v51 }
 0x24c   :  { %v3524_v56 = vrot.slane %v3487_v53, %v6022_v2  ;;  %v3528_v63 = vrot.slane %v3487_v53, %v6028_v4 }
 0x24e   :  { %v6271_v25 = vadd.f32 %v3524_v56, %v3488_v61  ;;  %v6273_v50 = vadd.f32 %v3528_v63, %v3489_v1  ;;  %v6275_v55 = vadd.f32 %v3524_v56, %v3490_v0  ;;  %v6277_v18 = vadd.f32 %v3528_v63, %v3491_v8 }
 0x24f   :  { %v6279_v24 = vadd.f32 %v3524_v56, %v3492_v9  ;;  %v6281_v2 = vadd.f32 %v3528_v63, %v3493_v12  ;;  %v6283_v4 = vadd.f32 %v3524_v56, %v3494_v14  ;;  %v6285_v52 = vadd.f32 %v3528_v63, %v3495_v16 }
 0x250   :  { %v6287_v60 = vadd.f32 %v3524_v56, %v3496_v15  ;;  %v6289_v3 = vadd.f32 %v3528_v63, %v3497_v19  ;;  %v6291_v10 = vadd.f32 %v3524_v56, %v3498_v21  ;;  %v6293_v27 = vadd.f32 %v3528_v63, %v3499_v22 }
 0x251   :  { %v6295_v29 = vadd.f32 %v3524_v56, %v3500_v59  ;;  %v6297_v30 = vadd.f32 %v3528_v63, %v3501_v35  ;;  %v6299_v32 = vadd.f32 %v3524_v56, %v3502_v37  ;;  %v6301_v28 = vadd.f32 %v3528_v63, %v3503_v38 }
 0x252   :  { %v6303_v36 = vadd.f32 %v3524_v56, %v3504_v26  ;;  %v6305_v39 = vadd.f32 %v3528_v63, %v3505_v33  ;;  %v6307_v41 = vadd.f32 %v3524_v56, %v3506_v42  ;;  %v6309_v45 = vadd.f32 %v3528_v63, %v3507_v49 }
 0x253   :  { %v6311_v46 = vadd.f32 %v3524_v56, %v3508_v34  ;;  %v6313_v47 = vadd.f32 %v3528_v63, %v3509_v44  ;;  %v6315_v51 = vadd.f32 %v3524_v56, %v3510_v7  ;;  %v6317_v54 = vadd.f32 %v3528_v63, %v3511_v13 }
 0x254   :  { %v6319_v5 = vadd.f32 %v3524_v56, %v3512_v17  ;;  %v6321_v6 = vadd.f32 %v3528_v63, %v3513_v23  ;;  %v6323_v61 = vadd.f32 %v3524_v56, %v3514_v48  ;;  %v6325_v1 = vadd.f32 %v3528_v63, %v3515_v58 }
 0x255   :  { %v6327_v0 = vadd.f32 %v3524_v56, %v3516_v62  ;;  %v6329_v8 = vadd.f32 %v3528_v63, %v3517_v20  ;;  %v6331_v9 = vadd.f32 %v3524_v56, %v3518_v40  ;;  %v6333_v11 = vadd.f32 %v3528_v63, %v3519_v43 }
 0x256   :  { %vm3563_vm0 = vcmp.ge.f32.partialorder %v6271_v25, 0.0  ;;  %vm3564_vm1 = vcmp.ge.f32.partialorder %v6273_v50, 0.0  ;;  %vm3565_vm2 = vcmp.ge.f32.partialorder %v6275_v55, 0.0  ;;  %vm3566_vm3 = vcmp.ge.f32.partialorder %v6277_v18, 0.0 }
 0x257   :  { %vm3567_vm4 = vcmp.ge.f32.partialorder %v6279_v24, 0.0  ;;  %vm3568_vm5 = vcmp.ge.f32.partialorder %v6281_v2, 0.0  ;;  %vm3569_vm6 = vcmp.ge.f32.partialorder %v6283_v4, 0.0  ;;  %vm3570_vm7 = vcmp.ge.f32.partialorder %v6285_v52, 0.0 }
 0x258   :  { %vm3571_vm8 = vcmp.ge.f32.partialorder %v6287_v60, 0.0  ;;  %v3595_v12 = vmul.f32 0.2, %v6271_v25  ;;  %v3596_v14 = vmul.f32 0.2, %v6273_v50  ;;  %vm3578_vm15 = vcmp.ge.f32.partialorder %v6301_v28, 0.0 }
 0x259   :  { %v3597_v16 = vmul.f32 0.2, %v6275_v55  ;;  %vm3579_vm9 = vcmp.ge.f32.partialorder %v6303_v36, 0.0  ;;  %v3598_v57 = vmul.f32 0.2, %v6277_v18  ;;  %vm3584_vm14 = vcmp.ge.f32.partialorder %v6313_v47, 0.0 }
 0x25a   :  { %v3599_v15 = vmul.f32 0.2, %v6279_v24  ;;  %v3600_v19 = vmul.f32 0.2, %v6281_v2  ;;  %v3601_v21 = vmul.f32 0.2, %v6283_v4  ;;  %v6369_v59 = vsel %vm3563_vm0, %v6271_v25, %v3595_v12 }
 0x25b   :  { %v3602_v22 = vmul.f32 0.2, %v6285_v52  ;;  %v3603_v31 = vmul.f32 0.2, %v6287_v60  ;;  %vm3588_vm11 = vcmp.ge.f32.partialorder %v6321_v6, 0.0  ;;  %v6381_v17 = vsel %vm3564_vm1, %v6273_v50, %v3596_v14 }
 0x25c   :  { %v3604_v35 = vmul.f32 0.2, %v6289_v3  ;;  %v3605_v37 = vmul.f32 0.2, %v6291_v10  ;;  %v3606_v38 = vmul.f32 0.2, %v6293_v27  ;;  %v3629_v58 = vsel %vm3565_vm2, %v6275_v55, %v3597_v16 }
 0x25d   :  { %vm3590_vm10 = vcmp.ge.f32.partialorder %v6325_v1, 0.0  ;;  %vm3591_vm13 = vcmp.ge.f32.partialorder %v6327_v0, 0.0  ;;  %vm3592_vm12 = vcmp.ge.f32.partialorder %v6329_v8, 0.0  ;;  %v3607_v23 = vmul.f32 0.2, %v6295_v29 }
 0x25e   :  { %v3608_v48 = vmul.f32 0.2, %v6297_v30  ;;  %v3609_v53 = vmul.f32 0.2, %v6299_v32  ;;  %vm3593_vm1 = vcmp.ge.f32.partialorder %v6331_v9, 0.0  ;;  %vm3594_vm0 = vcmp.ge.f32.partialorder %v6333_v11, 0.0 }
 0x25f   :  { %v3610_v62 = vmul.f32 0.2, %v6301_v28  ;;  %v3611_v20 = vmul.f32 0.2, %v6303_v36  ;;  %v3612_v26 = vmul.f32 0.2, %v6305_v39  ;;  %v3630_v33 = vsel %vm3566_vm3, %v6277_v18, %v3598_v57 }
 0x260   :  { %v3613_v40 = vmul.f32 0.2, %v6307_v41  ;;  %v3614_v43 = vmul.f32 0.2, %v6309_v45  ;;  %v3615_v42 = vmul.f32 0.2, %v6311_v46  ;;  %v3631_v49 = vsel %vm3567_vm4, %v6279_v24, %v3599_v15 }
 0x261   :  { %v3616_v56 = vmul.f32 0.2, %v6313_v47  ;;  %v3617_v63 = vmul.f32 0.2, %v6315_v51  ;;  %v3618_v34 = vmul.f32 0.2, %v6317_v54  ;;  %v3632_v44 = vsel %vm3568_vm5, %v6281_v2, %v3600_v19 }
 0x262   :  { %v3619_v7 = vmul.f32 0.2, %v6319_v5  ;;  %v3620_v13 = vmul.f32 0.2, %v6321_v6  ;;  %v3621_v25 = vmul.f32 0.2, %v6323_v61  ;;  %v3633_v50 = vsel %vm3569_vm6, %v6283_v4, %v3601_v21 }
 0x263   :  { %v3622_v55 = vmul.f32 0.2, %v6325_v1  ;;  %v3623_v18 = vmul.f32 0.2, %v6327_v0  ;;  %v3624_v24 = vmul.f32 0.2, %v6329_v8  ;;  %v3634_v2 = vsel %vm3570_vm7, %v6285_v52, %v3602_v22 }
 0x264   :  { %v3625_v12 = vmul.f32 0.2, %v6331_v9  ;;  %v3626_v14 = vmul.f32 0.2, %v6333_v11  ;;  %v3635_v16 = vsel %vm3571_vm8, %v6287_v60, %v3603_v31  ;;  %vm6555_vm2 = vcmp.ge.f32.partialorder %v6289_v3, 0.0 }
 0x265   :  { %v3636_v4 = vsel %vm6555_vm2, %v6289_v3, %v3604_v35  ;;  %vm6556_vm3 = vcmp.ge.f32.partialorder %v6291_v10, 0.0  ;;  %vm6557_vm4 = vcmp.ge.f32.partialorder %v6293_v27, 0.0  ;;  %vm6558_vm5 = vcmp.ge.f32.partialorder %v6295_v29, 0.0 }
 0x266   :  { %v3637_v57 = vsel %vm6556_vm3, %v6291_v10, %v3605_v37  ;;  %v3638_v52 = vsel %vm6557_vm4, %v6293_v27, %v3606_v38  ;;  %v3639_v15 = vsel %vm6558_vm5, %v6295_v29, %v3607_v23  ;;  %vm6559_vm6 = vcmp.ge.f32.partialorder %v6297_v30, 0.0 }
 0x267   :  { %v3640_v60 = vsel %vm6559_vm6, %v6297_v30, %v3608_v48  ;;  %vm6560_vm7 = vcmp.ge.f32.partialorder %v6299_v32, 0.0  ;;  %v3642_v10 = vsel %vm3578_vm15, %v6301_v28, %v3610_v62  ;;  %v3643_v27 = vsel %vm3579_vm9, %v6303_v36, %v3611_v20 }
 0x268   :  { %v3641_v3 = vsel %vm6560_vm7, %v6299_v32, %v3609_v53  ;;  %vm6561_vm8 = vcmp.ge.f32.partialorder %v6305_v39, 0.0  ;;  %vm6562_vm2 = vcmp.ge.f32.partialorder %v6307_v41, 0.0  ;;  %vm6563_vm3 = vcmp.ge.f32.partialorder %v6309_v45, 0.0 }
 0x269   :  { %v3644_v29 = vsel %vm6561_vm8, %v6305_v39, %v3612_v26  ;;  %v3645_v30 = vsel %vm6562_vm2, %v6307_v41, %v3613_v40  ;;  %v3646_v32 = vsel %vm6563_vm3, %v6309_v45, %v3614_v43  ;;  %vm6564_vm4 = vcmp.ge.f32.partialorder %v6311_v46, 0.0 }
 0x26a   :  { %v3647_v28 = vsel %vm6564_vm4, %v6311_v46, %v3615_v42  ;;  %v3648_v36 = vsel %vm3584_vm14, %v6313_v47, %v3616_v56  ;;  %vm6565_vm9 = vcmp.ge.f32.partialorder %v6315_v51, 0.0  ;;  %vm6566_vm15 = vcmp.ge.f32.partialorder %v6317_v54, 0.0 }
 0x26b   :  { %v3649_v39 = vsel %vm6565_vm9, %v6315_v51, %v3617_v63  ;;  %v3650_v41 = vsel %vm6566_vm15, %v6317_v54, %v3618_v34  ;;  %vm6567_vm5 = vcmp.ge.f32.partialorder %v6319_v5, 0.0  ;;  %v3652_v46 = vsel %vm3588_vm11, %v6321_v6, %v3620_v13 }
 0x26c   :  { %v3651_v45 = vsel %vm6567_vm5, %v6319_v5, %v3619_v7  ;;  %vm6568_vm6 = vcmp.ge.f32.partialorder %v6323_v61, 0.0  ;;  %v3654_v51 = vsel %vm3590_vm10, %v6325_v1, %v3622_v55  ;;  %v3655_v54 = vsel %vm3591_vm13, %v6327_v0, %v3623_v18 }
 0x26d   :  { %v3653_v47 = vsel %vm6568_vm6, %v6323_v61, %v3621_v25  ;;  %v3656_v5 = vsel %vm3592_vm12, %v6329_v8, %v3624_v24  ;;  %v3657_v6 = vsel %vm3593_vm1, %v6331_v9, %v3625_v12  ;;  %v3658_v61 = vsel %vm3594_vm0, %v6333_v11, %v3626_v14 }
 0x26e   :  { %v4175_v19 = vpack.c.bf16 %v6381_v17, %v6369_v59  ;;  %v4176_v1 = vpack.c.bf16 %v3630_v33, %v3629_v58  ;;  %v4177_v21 = vpack.c.bf16 %v3632_v44, %v3631_v49  ;;  %v4178_v22 = vpack.c.bf16 %v3634_v2, %v3633_v50 }
 0x26f   :  { %v4179_v31 = vpack.c.bf16 %v3636_v4, %v3635_v16  ;;  %v4180_v0 = vpack.c.bf16 %v3638_v52, %v3637_v57  ;;  %v4181_v35 = vpack.c.bf16 %v3640_v60, %v3639_v15  ;;  %v4182_v37 = vpack.c.bf16 %v3642_v10, %v3641_v3 }
 0x270   :  { %v4183_v38 = vpack.c.bf16 %v3644_v29, %v3643_v27  ;;  %v4184_v8 = vpack.c.bf16 %v3646_v32, %v3645_v30  ;;  %3755 = vst [vmem:[%s6554_s5] sm:$0xff] %v4175_v19  ;;  %3756 = vst [vmem:[%s6554_s5 + $0x8] sm:$0xff] %v4176_v1  ;;  %v4185_v9 = vpack.c.bf16 %v3648_v36, %v3647_v28 }
 0x271   :  { %v4186_v11 = vpack.c.bf16 %v3650_v41, %v3649_v39  ;;  %v4187_v59 = vpack.c.bf16 %v3652_v46, %v3651_v45  ;;  %v4188_v17 = vpack.c.bf16 %v3654_v51, %v3653_v47  ;;  %3757 = vst [vmem:[%s6554_s5 + $0x10] sm:$0xff] %v4177_v21  ;;  %3758 = vst [vmem:[%s6554_s5 + $0x18] sm:$0xff] %v4178_v22 }
 0x272   :  { %3759 = vst [vmem:[%s6554_s5 + $0x20] sm:$0xff] %v4179_v31  ;;  %3760 = vst [vmem:[%s6554_s5 + $0x28] sm:$0xff] %v4180_v0  ;;  %v4189_v23 = vpack.c.bf16 %v3656_v5, %v3655_v54  ;;  %v4190_v48 = vpack.c.bf16 %v3658_v61, %v3657_v6 }
 0x273   :  { %3761 = vst [vmem:[%s6554_s5 + $0x30] sm:$0xff] %v4181_v35  ;;  %3762 = vst [vmem:[%s6554_s5 + $0x38] sm:$0xff] %v4182_v37 }
 0x274   :  { %3763 = vst [vmem:[%s6554_s5 + $0x40] sm:$0xff] %v4183_v38  ;;  %3764 = vst [vmem:[%s6554_s5 + $0x48] sm:$0xff] %v4184_v8 }
 0x275   :  { %3765 = vst [vmem:[%s6554_s5 + $0x50] sm:$0xff] %v4185_v9  ;;  %3766 = vst [vmem:[%s6554_s5 + $0x58] sm:$0xff] %v4186_v11 }
 0x276   :  { %3767 = vst [vmem:[%s6554_s5 + $0x60] sm:$0xff] %v4187_v59  ;;  %3768 = vst [vmem:[%s6554_s5 + $0x68] sm:$0xff] %v4188_v17 }
 0x277   :  { %3769 = vst [vmem:[%s6554_s5 + $0x70] sm:$0xff] %v4189_v23  ;;  %3770 = vst [vmem:[%s6554_s5 + $0x78] sm:$0xff] %v4190_v48 }

// kernel: discriminator_forward.6
= control target key start
LH: loop header
LB: loop body
LE: loop exit
PB: predicated region body
PF: predicated region fallthrough
CT: control target
= control target key end

     0   :  { %s15147_s1 = inlined_call_operand.vmem [shape: bf16[4096,512], index: 1, kind: input, shape index: {}]   ;;  %s15148_s0 = inlined_call_operand.vmem [shape: bf16[32,4096], index: 0, kind: input, shape index: {}]   ;;  %s15149_s2 = inlined_call_operand.vmem [shape: f32[1,512], index: 2, kind: input, shape index: {}]   ;;  %s15150_s3 = inlined_call_operand.vmem [shape: f32[1,512], index: 3, kind: input, shape index: {}]   ;;  %s15151_s4 = inlined_call_operand.vmem [shape: f32[1,512], index: 4, kind: input, shape index: {}]   ;;  %s15152_s5 = inlined_call_operand.vmem [shape: bf16[32,512], index: 5, kind: output, shape index: {}]  }
   0x1   :  { %v10016_v0 = vld [vmem:[%s15147_s1 + $0x4] ss:$16 sps:$4 sm:$0xff]   ;;  %v10018_v1 = vld [vmem:[%s15147_s1 + $0xc] ss:$16 sps:$4 sm:$0xff]   ;;  %v10020_v2 = vld [vmem:[%s15147_s1] ss:$16 sps:$4 sm:$0xff]  }
   0x2   :  { %6570 = vmatprep.subr.bf16.mxu0 %v10016_v0  ;;  %v10021_v3 = vld [vmem:[%s15147_s1 + $0x8] ss:$16 sps:$4 sm:$0xff]   ;;  %7418 = vmatprep.subr.bf16.mxu1 %v10018_v1  ;;  %v10022_v4 = vld [vmem:[%s15147_s1 + $0x24] ss:$16 sps:$4 sm:$0xff]   ;;  %v10024_v5 = vld [vmem:[%s15147_s1 + $0x2c] ss:$16 sps:$4 sm:$0xff]  }
   0x3   :  { %6571 = vmatpush1.bf16.msra.mxu0 %v10020_v2  ;;  %7419 = vmatpush1.bf16.msra.mxu1 %v10021_v3  ;;  %v10026_v6 = vld [vmem:[%s15147_s1 + $0x20] ss:$16 sps:$4 sm:$0xff]   ;;  %v10027_v7 = vld [vmem:[%s15147_s1 + $0x28] ss:$16 sps:$4 sm:$0xff]   ;;  %v10028_v8 = vld [vmem:[%s15147_s1 + $0x44] ss:$16 sps:$4 sm:$0xff]  }
   0x4   :  { %6572 = vmatprep.subr.bf16.mxu0 %v10022_v4  ;;  %7420 = vmatprep.subr.bf16.mxu1 %v10024_v5  ;;  %v10030_v9 = vld [vmem:[%s15147_s1 + $0x4c] ss:$16 sps:$4 sm:$0xff]   ;;  %v10032_v10 = vld [vmem:[%s15147_s1 + $0x40] ss:$16 sps:$4 sm:$0xff]   ;;  %v10033_v11 = vld [vmem:[%s15147_s1 + $0x48] ss:$16 sps:$4 sm:$0xff]  }
   0x5   :  { %v10034_v12 = vld [vmem:[%s15147_s1 + $0x64] ss:$16 sps:$4 sm:$0xff]   ;;  %v10036_v13 = vld [vmem:[%s15147_s1 + $0x6c] ss:$16 sps:$4 sm:$0xff]   ;;  %v10038_v14 = vld [vmem:[%s15147_s1 + $0x60] ss:$16 sps:$4 sm:$0xff]  }
   0x6   :  { %v10039_v15 = vld [vmem:[%s15147_s1 + $0x68] ss:$16 sps:$4 sm:$0xff]   ;;  %v10040_v16 = vld [vmem:[%s15147_s1 + $0x84] ss:$16 sps:$4 sm:$0xff]   ;;  %v10042_v17 = vld [vmem:[%s15147_s1 + $0x8c] ss:$16 sps:$4 sm:$0xff]  }
   0x7   :  { %6573 = vmatpush1.bf16.msra.mxu0 %v10026_v6  ;;  %7421 = vmatpush1.bf16.msra.mxu1 %v10027_v7  ;;  %v10044_v18 = vld [vmem:[%s15147_s1 + $0x80] ss:$16 sps:$4 sm:$0xff]   ;;  %v10045_v19 = vld [vmem:[%s15147_s1 + $0x88] ss:$16 sps:$4 sm:$0xff]   ;;  %v10046_v20 = vld [vmem:[%s15147_s1 + $0xa4] ss:$16 sps:$4 sm:$0xff]  }
   0x8   :  { %6574 = vmatprep.subr.bf16.mxu0 %v10028_v8  ;;  %7422 = vmatprep.subr.bf16.mxu1 %v10030_v9  ;;  %v10048_v21 = vld [vmem:[%s15147_s1 + $0xac] ss:$16 sps:$4 sm:$0xff]   ;;  %v10050_v22 = vld [vmem:[%s15147_s1 + $0xa0] ss:$16 sps:$4 sm:$0xff]   ;;  %v10051_v23 = vld [vmem:[%s15147_s1 + $0xa8] ss:$16 sps:$4 sm:$0xff]  }
   0x9   :  { %v10052_v24 = vld [vmem:[%s15147_s1 + $0xc4] ss:$16 sps:$4 sm:$0xff]   ;;  %v10054_v25 = vld [vmem:[%s15147_s1 + $0xcc] ss:$16 sps:$4 sm:$0xff]   ;;  %v10056_v26 = vld [vmem:[%s15147_s1 + $0xc0] ss:$16 sps:$4 sm:$0xff]  }
   0xa   :  { %v10057_v27 = vld [vmem:[%s15147_s1 + $0xc8] ss:$16 sps:$4 sm:$0xff]   ;;  %v10058_v28 = vld [vmem:[%s15147_s1 + $0xe4] ss:$16 sps:$4 sm:$0xff]   ;;  %v10060_v29 = vld [vmem:[%s15147_s1 + $0xec] ss:$16 sps:$4 sm:$0xff]  }
   0xb   :  { %6575 = vmatpush1.bf16.msra.mxu0 %v10032_v10  ;;  %7423 = vmatpush1.bf16.msra.mxu1 %v10033_v11  ;;  %v10062_v30 = vld [vmem:[%s15147_s1 + $0xe0] ss:$16 sps:$4 sm:$0xff]   ;;  %v10063_v31 = vld [vmem:[%s15147_s1 + $0xe8] ss:$16 sps:$4 sm:$0xff]   ;;  %v10064_v32 = vld [vmem:[%s15147_s1 + $0x104] ss:$16 sps:$4 sm:$0xff]  }
   0xc   :  { %6576 = vmatprep.subr.bf16.mxu0 %v10034_v12  ;;  %7424 = vmatprep.subr.bf16.mxu1 %v10036_v13  ;;  %v10066_v33 = vld [vmem:[%s15147_s1 + $0x10c] ss:$16 sps:$4 sm:$0xff]   ;;  %v10068_v34 = vld [vmem:[%s15147_s1 + $0x100] ss:$16 sps:$4 sm:$0xff]   ;;  %v10069_v35 = vld [vmem:[%s15147_s1 + $0x108] ss:$16 sps:$4 sm:$0xff]  }
   0xd   :  { %v10070_v36 = vld [vmem:[%s15147_s1 + $0x124] ss:$16 sps:$4 sm:$0xff]   ;;  %v10072_v37 = vld [vmem:[%s15147_s1 + $0x12c] ss:$16 sps:$4 sm:$0xff]   ;;  %v10074_v38 = vld [vmem:[%s15147_s1 + $0x120] ss:$16 sps:$4 sm:$0xff]  }
   0xe   :  { %v10075_v39 = vld [vmem:[%s15147_s1 + $0x128] ss:$16 sps:$4 sm:$0xff]   ;;  %v10076_v40 = vld [vmem:[%s15147_s1 + $0x144] ss:$16 sps:$4 sm:$0xff]   ;;  %v10078_v41 = vld [vmem:[%s15147_s1 + $0x14c] ss:$16 sps:$4 sm:$0xff]  }
   0xf   :  { %6577 = vmatpush1.bf16.msra.mxu0 %v10038_v14  ;;  %7425 = vmatpush1.bf16.msra.mxu1 %v10039_v15  ;;  %v10080_v42 = vld [vmem:[%s15147_s1 + $0x140] ss:$16 sps:$4 sm:$0xff]   ;;  %v10081_v43 = vld [vmem:[%s15147_s1 + $0x148] ss:$16 sps:$4 sm:$0xff]   ;;  %v10082_v44 = vld [vmem:[%s15147_s1 + $0x164] ss:$16 sps:$4 sm:$0xff]  }
  0x10   :  { %6578 = vmatprep.subr.bf16.mxu0 %v10040_v16  ;;  %7426 = vmatprep.subr.bf16.mxu1 %v10042_v17  ;;  %v10084_v45 = vld [vmem:[%s15147_s1 + $0x16c] ss:$16 sps:$4 sm:$0xff]   ;;  %v20_v46 = vld [vmem:[%s15148_s0] sm:$0xff]  ;;  %v10087_v49 = vld [vmem:[%s15147_s1 + $0x168] ss:$16 sps:$4 sm:$0xff]  }
  0x11   :  { %v36_v47 = vld [vmem:[%s15148_s0 + $0x80] sm:$0xff]  ;;  %v10090_v52 = vld [vmem:[%s15147_s1 + $0x18c] ss:$16 sps:$4 sm:$0xff]   ;;  %v10093_v54 = vld [vmem:[%s15147_s1 + $0x188] ss:$16 sps:$4 sm:$0xff]  }
  0x12   :  { %v10086_v48 = vld [vmem:[%s15147_s1 + $0x160] ss:$16 sps:$4 sm:$0xff]   ;;  %v8656_v50 = vcombine.high %v20_v46, %v36_v47  ;;  %v10088_v51 = vld [vmem:[%s15147_s1 + $0x184] ss:$16 sps:$4 sm:$0xff]   ;;  %v10096_v56 = vld [vmem:[%s15147_s1 + $0x1ac] ss:$16 sps:$4 sm:$0xff]   ;;  %v8655_v5 = vcombine.low %v20_v46, %v36_v47 }
  0x13   :  { %6579 = vmatpush1.bf16.msra.mxu0 %v10044_v18  ;;  %7427 = vmatpush1.bf16.msra.mxu1 %v10045_v19  ;;  %v10092_v53 = vld [vmem:[%s15147_s1 + $0x180] ss:$16 sps:$4 sm:$0xff]   ;;  %v10094_v55 = vld [vmem:[%s15147_s1 + $0x1a4] ss:$16 sps:$4 sm:$0xff]   ;;  %v10099_v58 = vld [vmem:[%s15147_s1 + $0x1a8] ss:$16 sps:$4 sm:$0xff]  }
  0x14   :  { %6580 = vmatprep.subr.bf16.mxu0 %v10046_v20  ;;  %7428 = vmatprep.subr.bf16.mxu1 %v10048_v21  ;;  %v10098_v57 = vld [vmem:[%s15147_s1 + $0x1a0] ss:$16 sps:$4 sm:$0xff]   ;;  %v10100_v59 = vld [vmem:[%s15147_s1 + $0x1c4] ss:$16 sps:$4 sm:$0xff]   ;;  %v10102_v60 = vld [vmem:[%s15147_s1 + $0x1cc] ss:$16 sps:$4 sm:$0xff]  }
  0x15   :  { %6602 = vmatprep.mubr.bf16.mxu0 %v8656_v50  ;;  %7450 = vmatprep.mubr.bf16.mxu1 %v8656_v50  ;;  %v10104_v61 = vld [vmem:[%s15147_s1 + $0x1c0] ss:$16 sps:$4 sm:$0xff]   ;;  %v10105_v62 = vld [vmem:[%s15147_s1 + $0x1c8] ss:$16 sps:$4 sm:$0xff]   ;;  %v10106_v63 = vld [vmem:[%s15147_s1 + $0x1e4] ss:$16 sps:$4 sm:$0xff]  }
  0x16   :  { %v10108_v0 = vld [vmem:[%s15147_s1 + $0x1ec] ss:$16 sps:$4 sm:$0xff]   ;;  %v10110_v1 = vld [vmem:[%s15147_s1 + $0x1e0] ss:$16 sps:$4 sm:$0xff]   ;;  %v10111_v2 = vld [vmem:[%s15147_s1 + $0x1e8] ss:$16 sps:$4 sm:$0xff]  }
  0x17   :  { %6581 = vmatpush1.bf16.msra.mxu0 %v10050_v22  ;;  %7429 = vmatpush1.bf16.msra.mxu1 %v10051_v23  ;;  %v10114_v3 = vld [vmem:[%s15147_s1 + $0x204] ss:$16 sps:$4 sm:$0xff]   ;;  %v10117_v4 = vld [vmem:[%s15147_s1 + $0x20c] ss:$16 sps:$4 sm:$0xff]   ;;  %v10112_v6 = vld [vmem:[%s15147_s1 + $0x200] ss:$16 sps:$4 sm:$0xff]  }
  0x18   :  { %6582 = vmatprep.subr.bf16.mxu0 %v10052_v24  ;;  %7430 = vmatprep.subr.bf16.mxu1 %v10054_v25  ;;  %v10115_v7 = vld [vmem:[%s15147_s1 + $0x208] ss:$16 sps:$4 sm:$0xff]   ;;  %v10120_v8 = vld [vmem:[%s15147_s1 + $0x224] ss:$16 sps:$4 sm:$0xff]   ;;  %v10123_v9 = vld [vmem:[%s15147_s1 + $0x22c] ss:$16 sps:$4 sm:$0xff]  }
  0x19   :  { %v10118_v10 = vld [vmem:[%s15147_s1 + $0x220] ss:$16 sps:$4 sm:$0xff]   ;;  %v10121_v11 = vld [vmem:[%s15147_s1 + $0x228] ss:$16 sps:$4 sm:$0xff]   ;;  %v10126_v12 = vld [vmem:[%s15147_s1 + $0x244] ss:$16 sps:$4 sm:$0xff]  }
  0x1a   :  { %v10129_v13 = vld [vmem:[%s15147_s1 + $0x24c] ss:$16 sps:$4 sm:$0xff]   ;;  %v10124_v14 = vld [vmem:[%s15147_s1 + $0x240] ss:$16 sps:$4 sm:$0xff]   ;;  %v10127_v15 = vld [vmem:[%s15147_s1 + $0x248] ss:$16 sps:$4 sm:$0xff]  }
  0x1b   :  { %6583 = vmatpush1.bf16.msra.mxu0 %v10056_v26  ;;  %7431 = vmatpush1.bf16.msra.mxu1 %v10057_v27  ;;  %v10132_v16 = vld [vmem:[%s15147_s1 + $0x264] ss:$16 sps:$4 sm:$0xff]   ;;  %v10135_v17 = vld [vmem:[%s15147_s1 + $0x26c] ss:$16 sps:$4 sm:$0xff]   ;;  %v10130_v18 = vld [vmem:[%s15147_s1 + $0x260] ss:$16 sps:$4 sm:$0xff]  }
  0x1c   :  { %6584 = vmatprep.subr.bf16.mxu0 %v10058_v28  ;;  %7432 = vmatprep.subr.bf16.mxu1 %v10060_v29  ;;  %v10133_v19 = vld [vmem:[%s15147_s1 + $0x268] ss:$16 sps:$4 sm:$0xff]   ;;  %v10138_v20 = vld [vmem:[%s15147_s1 + $0x284] ss:$16 sps:$4 sm:$0xff]   ;;  %v10141_v21 = vld [vmem:[%s15147_s1 + $0x28c] ss:$16 sps:$4 sm:$0xff]  }
  0x1d   :  { %v10136_v22 = vld [vmem:[%s15147_s1 + $0x280] ss:$16 sps:$4 sm:$0xff]   ;;  %v10139_v23 = vld [vmem:[%s15147_s1 + $0x288] ss:$16 sps:$4 sm:$0xff]   ;;  %v10144_v24 = vld [vmem:[%s15147_s1 + $0x2a4] ss:$16 sps:$4 sm:$0xff]  }
  0x1e   :  { %v10147_v25 = vld [vmem:[%s15147_s1 + $0x2ac] ss:$16 sps:$4 sm:$0xff]   ;;  %v52_v26 = vld [vmem:[%s15148_s0 + $0x100] sm:$0xff]  ;;  %v10163_v46 = vld [vmem:[%s15147_s1 + $0x308] ss:$16 sps:$4 sm:$0xff]  }
  0x1f   :  { %6585 = vmatpush1.bf16.msra.mxu0 %v10062_v30  ;;  %7433 = vmatpush1.bf16.msra.mxu1 %v10063_v31  ;;  %v68_v27 = vld [vmem:[%s15148_s0 + $0x180] sm:$0xff]  ;;  %v10145_v30 = vld [vmem:[%s15147_s1 + $0x2a8] ss:$16 sps:$4 sm:$0xff]  }
  0x20   :  { %6586 = vmatprep.subr.bf16.mxu0 %v10064_v32  ;;  %7434 = vmatprep.subr.bf16.mxu1 %v10066_v33  ;;  %v8688_v28 = vcombine.high %v52_v26, %v68_v27  ;;  %v10142_v29 = vld [vmem:[%s15147_s1 + $0x2a0] ss:$16 sps:$4 sm:$0xff]   ;;  %v8687_v31 = vcombine.low %v52_v26, %v68_v27  ;;  %v10150_v32 = vld [vmem:[%s15147_s1 + $0x2c4] ss:$16 sps:$4 sm:$0xff]   ;;  %v10153_v33 = vld [vmem:[%s15147_s1 + $0x2cc] ss:$16 sps:$4 sm:$0xff]  }
  0x21   :  { %v10168_v47 = vld [vmem:[%s15147_s1 + $0x324] ss:$16 sps:$4 sm:$0xff]   ;;  %v10169_v50 = vld [vmem:[%s15147_s1 + $0x328] ss:$16 sps:$4 sm:$0xff]  }
  0x22   :  { %v12045_v27 = vld [vmem:[%s15148_s0 + $0x90] sm:$0xff] }
  0x23   :  { %6587 = vmatpush1.bf16.msra.mxu0 %v10068_v34  ;;  %7435 = vmatpush1.bf16.msra.mxu1 %v10069_v35  ;;  %v11876_v34 = vld [vmem:[%s15148_s0 + $0x8] sm:$0xff] }
  0x24   :  { %6588 = vmatprep.subr.bf16.mxu0 %v10070_v36  ;;  %7436 = vmatprep.subr.bf16.mxu1 %v10072_v37  ;;  %v11881_v35 = vld [vmem:[%s15148_s0 + $0x88] sm:$0xff]  ;;  %v10148_v36 = vld [vmem:[%s15147_s1 + $0x2c0] ss:$16 sps:$4 sm:$0xff]  }
  0x25   :  { %v10151_v37 = vld [vmem:[%s15147_s1 + $0x2c8] ss:$16 sps:$4 sm:$0xff]  }
  0x27   :  { %6589 = vmatpush1.bf16.msra.mxu0 %v10074_v38  ;;  %7437 = vmatpush1.bf16.msra.mxu1 %v10075_v39  ;;  %v8658_v38 = vcombine.high %v11876_v34, %v11881_v35  ;;  %v10156_v39 = vld [vmem:[%s15147_s1 + $0x2e4] ss:$16 sps:$4 sm:$0xff]  }
  0x28   :  { %6590 = vmatprep.subr.bf16.mxu0 %v10076_v40  ;;  %7438 = vmatprep.subr.bf16.mxu1 %v10078_v41  ;;  %v10159_v40 = vld [vmem:[%s15147_s1 + $0x2ec] ss:$16 sps:$4 sm:$0xff]   ;;  %v10154_v41 = vld [vmem:[%s15147_s1 + $0x2e0] ss:$16 sps:$4 sm:$0xff]  }
  0x2b   :  { %6591 = vmatpush1.bf16.msra.mxu0 %v10080_v42  ;;  %7439 = vmatpush1.bf16.msra.mxu1 %v10081_v43  ;;  %v10157_v42 = vld [vmem:[%s15147_s1 + $0x2e8] ss:$16 sps:$4 sm:$0xff]   ;;  %v10162_v43 = vld [vmem:[%s15147_s1 + $0x304] ss:$16 sps:$4 sm:$0xff]  }
  0x2c   :  { %6592 = vmatprep.subr.bf16.mxu0 %v10082_v44  ;;  %7440 = vmatprep.subr.bf16.mxu1 %v10084_v45  ;;  %v10165_v44 = vld [vmem:[%s15147_s1 + $0x30c] ss:$16 sps:$4 sm:$0xff]   ;;  %v10160_v45 = vld [vmem:[%s15147_s1 + $0x300] ss:$16 sps:$4 sm:$0xff]  }
  0x2f   :  { %6593 = vmatpush1.bf16.msra.mxu0 %v10086_v48  ;;  %7441 = vmatpush1.bf16.msra.mxu1 %v10087_v49  ;;  %v10171_v48 = vld [vmem:[%s15147_s1 + $0x32c] ss:$16 sps:$4 sm:$0xff]   ;;  %v10166_v49 = vld [vmem:[%s15147_s1 + $0x320] ss:$16 sps:$4 sm:$0xff]  }
  0x30   :  { %6594 = vmatprep.subr.bf16.mxu0 %v10088_v51  ;;  %7442 = vmatprep.subr.bf16.mxu1 %v10090_v52  ;;  %v10174_v51 = vld [vmem:[%s15147_s1 + $0x344] ss:$16 sps:$4 sm:$0xff]   ;;  %v10177_v52 = vld [vmem:[%s15147_s1 + $0x34c] ss:$16 sps:$4 sm:$0xff]  }
  0x33   :  { %6595 = vmatpush1.bf16.msra.mxu0 %v10092_v53  ;;  %7443 = vmatpush1.bf16.msra.mxu1 %v10093_v54  ;;  %v10172_v53 = vld [vmem:[%s15147_s1 + $0x340] ss:$16 sps:$4 sm:$0xff]   ;;  %v10175_v54 = vld [vmem:[%s15147_s1 + $0x348] ss:$16 sps:$4 sm:$0xff]  }
  0x34   :  { %6596 = vmatprep.subr.bf16.mxu0 %v10094_v55  ;;  %7444 = vmatprep.subr.bf16.mxu1 %v10096_v56  ;;  %v10180_v55 = vld [vmem:[%s15147_s1 + $0x364] ss:$16 sps:$4 sm:$0xff]   ;;  %v10183_v56 = vld [vmem:[%s15147_s1 + $0x36c] ss:$16 sps:$4 sm:$0xff]  }
  0x37   :  { %6597 = vmatpush1.bf16.msra.mxu0 %v10098_v57  ;;  %7445 = vmatpush1.bf16.msra.mxu1 %v10099_v58  ;;  %v10178_v57 = vld [vmem:[%s15147_s1 + $0x360] ss:$16 sps:$4 sm:$0xff]   ;;  %v10181_v58 = vld [vmem:[%s15147_s1 + $0x368] ss:$16 sps:$4 sm:$0xff]  }
  0x38   :  { %6598 = vmatprep.subr.bf16.mxu0 %v10100_v59  ;;  %7446 = vmatprep.subr.bf16.mxu1 %v10102_v60  ;;  %v10186_v59 = vld [vmem:[%s15147_s1 + $0x384] ss:$16 sps:$4 sm:$0xff]   ;;  %v10189_v60 = vld [vmem:[%s15147_s1 + $0x38c] ss:$16 sps:$4 sm:$0xff]  }
  0x3b   :  { %6599 = vmatpush1.bf16.msra.mxu0 %v10104_v61  ;;  %7447 = vmatpush1.bf16.msra.mxu1 %v10105_v62  ;;  %v10184_v61 = vld [vmem:[%s15147_s1 + $0x380] ss:$16 sps:$4 sm:$0xff]   ;;  %v10187_v62 = vld [vmem:[%s15147_s1 + $0x388] ss:$16 sps:$4 sm:$0xff]  }
  0x3c   :  { %6600 = vmatprep.subr.bf16.mxu0 %v10106_v63  ;;  %7448 = vmatprep.subr.bf16.mxu1 %v10108_v0  ;;  %v10192_v63 = vld [vmem:[%s15147_s1 + $0x3a4] ss:$16 sps:$4 sm:$0xff]   ;;  %v10195_v0 = vld [vmem:[%s15147_s1 + $0x3ac] ss:$16 sps:$4 sm:$0xff]  }
  0x3f   :  { %6601 = vmatpush1.bf16.msra.mxu0 %v10110_v1  ;;  %7449 = vmatpush1.bf16.msra.mxu1 %v10111_v2  ;;  %v10190_v1 = vld [vmem:[%s15147_s1 + $0x3a0] ss:$16 sps:$4 sm:$0xff]   ;;  %v10193_v2 = vld [vmem:[%s15147_s1 + $0x3a8] ss:$16 sps:$4 sm:$0xff]  }
  0x40   :  { %6623 = vmatprep.subr.bf16.mxu0 %v10114_v3  ;;  %7471 = vmatprep.subr.bf16.mxu1 %v10117_v4  ;;  %v10198_v3 = vld [vmem:[%s15147_s1 + $0x3c4] ss:$16 sps:$4 sm:$0xff]   ;;  %v10201_v4 = vld [vmem:[%s15147_s1 + $0x3cc] ss:$16 sps:$4 sm:$0xff]  }
  0x42   :  { %6603 = vmatmul.mubr.bf16.vlgmr.msra.gmra.mrb[0].mxu0 %v8655_v5  ;;  %7451 = vmatmul.mubr.bf16.vlgmr.msra.gmra.mrb[0].mxu1 %v8655_v5  ;;  %v10196_v5 = vld [vmem:[%s15147_s1 + $0x3c0] ss:$16 sps:$4 sm:$0xff]  }
  0x43   :  { %6624 = vmatpush1.bf16.msra.mxu0 %v10112_v6  ;;  %7472 = vmatpush1.bf16.msra.mxu1 %v10115_v7  ;;  %v10199_v6 = vld [vmem:[%s15147_s1 + $0x3c8] ss:$16 sps:$4 sm:$0xff]   ;;  %v10204_v7 = vld [vmem:[%s15147_s1 + $0x3e4] ss:$16 sps:$4 sm:$0xff]  }
  0x44   :  { %6625 = vmatprep.subr.bf16.mxu0 %v10120_v8  ;;  %7473 = vmatprep.subr.bf16.mxu1 %v10123_v9  ;;  %v10207_v8 = vld [vmem:[%s15147_s1 + $0x3ec] ss:$16 sps:$4 sm:$0xff]   ;;  %v10202_v9 = vld [vmem:[%s15147_s1 + $0x3e0] ss:$16 sps:$4 sm:$0xff]  }
  0x45   :  { %6612 = vmatprep.mubr.bf16.mxu0 %v8688_v28  ;;  %7460 = vmatprep.mubr.bf16.mxu1 %v8688_v28  ;;  %v10220_v28 = vld [vmem:[%s15147_s1 + $0x440] ss:$16 sps:$4 sm:$0xff]  }
  0x47   :  { %6626 = vmatpush1.bf16.msra.mxu0 %v10118_v10  ;;  %7474 = vmatpush1.bf16.msra.mxu1 %v10121_v11  ;;  %v10205_v10 = vld [vmem:[%s15147_s1 + $0x3e8] ss:$16 sps:$4 sm:$0xff]   ;;  %v10210_v11 = vld [vmem:[%s15147_s1 + $0x404] ss:$16 sps:$4 sm:$0xff]  }
  0x48   :  { %6627 = vmatprep.subr.bf16.mxu0 %v10126_v12  ;;  %7475 = vmatprep.subr.bf16.mxu1 %v10129_v13  ;;  %v10213_v12 = vld [vmem:[%s15147_s1 + $0x40c] ss:$16 sps:$4 sm:$0xff]   ;;  %v10208_v13 = vld [vmem:[%s15147_s1 + $0x400] ss:$16 sps:$4 sm:$0xff]  }
  0x4a   :  { %6613 = vmatmul.mubr.bf16.gmra.mrb[4].mxu0 %v8687_v31  ;;  %7461 = vmatmul.mubr.bf16.gmra.mrb[4].mxu1 %v8687_v31  ;;  %v10231_v31 = vld [vmem:[%s15147_s1 + $0x46c] ss:$16 sps:$4 sm:$0xff]  }
  0x4b   :  { %6628 = vmatpush1.bf16.msra.mxu0 %v10124_v14  ;;  %7476 = vmatpush1.bf16.msra.mxu1 %v10127_v15  ;;  %v10211_v14 = vld [vmem:[%s15147_s1 + $0x408] ss:$16 sps:$4 sm:$0xff]   ;;  %v8657_v15 = vcombine.low %v11876_v34, %v11881_v35  ;;  %v10234_v35 = vld [vmem:[%s15147_s1 + $0x484] ss:$16 sps:$4 sm:$0xff]  }
  0x4c   :  { %6629 = vmatprep.subr.bf16.mxu0 %v10132_v16  ;;  %7477 = vmatprep.subr.bf16.mxu1 %v10135_v17  ;;  %v53_v16 = vld [vmem:[%s15148_s0 + $0x108] sm:$0xff] }
  0x4d   :  { %6655 = vmatprep.mubr.bf16.mxu0 %v8658_v38  ;;  %7503 = vmatprep.mubr.bf16.mxu1 %v8658_v38  ;;  %v69_v17 = vld [vmem:[%s15148_s0 + $0x188] sm:$0xff] }
  0x4e   :  { %v8689_v26 = vcombine.low %v53_v16, %v69_v17  ;;  %v10229_v34 = vld [vmem:[%s15147_s1 + $0x468] ss:$16 sps:$4 sm:$0xff]  }
  0x4f   :  { %6630 = vmatpush1.bf16.msra.mxu0 %v10130_v18  ;;  %7478 = vmatpush1.bf16.msra.mxu1 %v10133_v19  ;;  %v10216_v18 = vld [vmem:[%s15147_s1 + $0x424] ss:$16 sps:$4 sm:$0xff]   ;;  %v10219_v19 = vld [vmem:[%s15147_s1 + $0x42c] ss:$16 sps:$4 sm:$0xff]   ;;  %v10235_v38 = vld [vmem:[%s15147_s1 + $0x488] ss:$16 sps:$4 sm:$0xff]  }
  0x50   :  { %6631 = vmatprep.subr.bf16.mxu0 %v10138_v20  ;;  %7479 = vmatprep.subr.bf16.mxu1 %v10141_v21  ;;  %v8690_v20 = vcombine.high %v53_v16, %v69_v17  ;;  %v10214_v21 = vld [vmem:[%s15147_s1 + $0x420] ss:$16 sps:$4 sm:$0xff]   ;;  %v10303_v16 = vld [vmem:[%s15147_s1 + $0x5ec] ss:$16 sps:$4 sm:$0xff]  }
  0x51   :  { %v10298_v17 = vld [vmem:[%s15147_s1 + $0x5e0] ss:$16 sps:$4 sm:$0xff]  }
  0x53   :  { %6632 = vmatpush1.bf16.msra.mxu0 %v10136_v22  ;;  %7480 = vmatpush1.bf16.msra.mxu1 %v10139_v23  ;;  %v10217_v22 = vld [vmem:[%s15147_s1 + $0x428] ss:$16 sps:$4 sm:$0xff]   ;;  %v10222_v23 = vld [vmem:[%s15147_s1 + $0x444] ss:$16 sps:$4 sm:$0xff]  }
  0x54   :  { %6633 = vmatprep.subr.bf16.mxu0 %v10144_v24  ;;  %7481 = vmatprep.subr.bf16.mxu1 %v10147_v25  ;;  %v10225_v24 = vld [vmem:[%s15147_s1 + $0x44c] ss:$16 sps:$4 sm:$0xff]   ;;  %v12040_v25 = vld [vmem:[%s15148_s0 + $0x10] sm:$0xff] }
  0x57   :  { %6634 = vmatpush1.bf16.msra.mxu0 %v10142_v29  ;;  %7482 = vmatpush1.bf16.msra.mxu1 %v10145_v30  ;;  %v10223_v29 = vld [vmem:[%s15147_s1 + $0x448] ss:$16 sps:$4 sm:$0xff]   ;;  %v10228_v30 = vld [vmem:[%s15147_s1 + $0x464] ss:$16 sps:$4 sm:$0xff]  }
  0x58   :  { %6635 = vmatprep.subr.bf16.mxu0 %v10150_v32  ;;  %7483 = vmatprep.subr.bf16.mxu1 %v10153_v33  ;;  %v8660_v32 = vcombine.high %v12040_v25, %v12045_v27  ;;  %v10226_v33 = vld [vmem:[%s15147_s1 + $0x460] ss:$16 sps:$4 sm:$0xff]  }
  0x5b   :  { %6636 = vmatpush1.bf16.msra.mxu0 %v10148_v36  ;;  %7484 = vmatpush1.bf16.msra.mxu1 %v10151_v37  ;;  %v10237_v36 = vld [vmem:[%s15147_s1 + $0x48c] ss:$16 sps:$4 sm:$0xff]   ;;  %v10232_v37 = vld [vmem:[%s15147_s1 + $0x480] ss:$16 sps:$4 sm:$0xff]  }
  0x5c   :  { %6637 = vmatprep.subr.bf16.mxu0 %v10156_v39  ;;  %7485 = vmatprep.subr.bf16.mxu1 %v10159_v40  ;;  %v10240_v39 = vld [vmem:[%s15147_s1 + $0x4a4] ss:$16 sps:$4 sm:$0xff]   ;;  %v10243_v40 = vld [vmem:[%s15147_s1 + $0x4ac] ss:$16 sps:$4 sm:$0xff]  }
  0x5f   :  { %6638 = vmatpush1.bf16.msra.mxu0 %v10154_v41  ;;  %7486 = vmatpush1.bf16.msra.mxu1 %v10157_v42  ;;  %v10238_v41 = vld [vmem:[%s15147_s1 + $0x4a0] ss:$16 sps:$4 sm:$0xff]   ;;  %v10241_v42 = vld [vmem:[%s15147_s1 + $0x4a8] ss:$16 sps:$4 sm:$0xff]  }
  0x60   :  { %6639 = vmatprep.subr.bf16.mxu0 %v10162_v43  ;;  %7487 = vmatprep.subr.bf16.mxu1 %v10165_v44  ;;  %v10246_v43 = vld [vmem:[%s15147_s1 + $0x4c4] ss:$16 sps:$4 sm:$0xff]   ;;  %v10249_v44 = vld [vmem:[%s15147_s1 + $0x4cc] ss:$16 sps:$4 sm:$0xff]  }
  0x63   :  { %6640 = vmatpush1.bf16.msra.mxu0 %v10160_v45  ;;  %7488 = vmatpush1.bf16.msra.mxu1 %v10163_v46  ;;  %v10244_v45 = vld [vmem:[%s15147_s1 + $0x4c0] ss:$16 sps:$4 sm:$0xff]   ;;  %v10247_v46 = vld [vmem:[%s15147_s1 + $0x4c8] ss:$16 sps:$4 sm:$0xff]  }
  0x64   :  { %6641 = vmatprep.subr.bf16.mxu0 %v10168_v47  ;;  %7489 = vmatprep.subr.bf16.mxu1 %v10171_v48  ;;  %v10252_v47 = vld [vmem:[%s15147_s1 + $0x4e4] ss:$16 sps:$4 sm:$0xff]   ;;  %v10255_v48 = vld [vmem:[%s15147_s1 + $0x4ec] ss:$16 sps:$4 sm:$0xff]  }
  0x67   :  { %6642 = vmatpush1.bf16.msra.mxu0 %v10166_v49  ;;  %7490 = vmatpush1.bf16.msra.mxu1 %v10169_v50  ;;  %v10250_v49 = vld [vmem:[%s15147_s1 + $0x4e0] ss:$16 sps:$4 sm:$0xff]   ;;  %v10253_v50 = vld [vmem:[%s15147_s1 + $0x4e8] ss:$16 sps:$4 sm:$0xff]  }
  0x68   :  { %6643 = vmatprep.subr.bf16.mxu0 %v10174_v51  ;;  %7491 = vmatprep.subr.bf16.mxu1 %v10177_v52  ;;  %v10258_v51 = vld [vmem:[%s15147_s1 + $0x504] ss:$16 sps:$4 sm:$0xff]   ;;  %v10261_v52 = vld [vmem:[%s15147_s1 + $0x50c] ss:$16 sps:$4 sm:$0xff]  }
  0x6b   :  { %6644 = vmatpush1.bf16.msra.mxu0 %v10172_v53  ;;  %7492 = vmatpush1.bf16.msra.mxu1 %v10175_v54  ;;  %v10256_v53 = vld [vmem:[%s15147_s1 + $0x500] ss:$16 sps:$4 sm:$0xff]   ;;  %v10259_v54 = vld [vmem:[%s15147_s1 + $0x508] ss:$16 sps:$4 sm:$0xff]  }
  0x6c   :  { %6645 = vmatprep.subr.bf16.mxu0 %v10180_v55  ;;  %7493 = vmatprep.subr.bf16.mxu1 %v10183_v56  ;;  %v10264_v55 = vld [vmem:[%s15147_s1 + $0x524] ss:$16 sps:$4 sm:$0xff]   ;;  %v10267_v56 = vld [vmem:[%s15147_s1 + $0x52c] ss:$16 sps:$4 sm:$0xff]  }
  0x6f   :  { %6646 = vmatpush1.bf16.msra.mxu0 %v10178_v57  ;;  %7494 = vmatpush1.bf16.msra.mxu1 %v10181_v58  ;;  %v10262_v57 = vld [vmem:[%s15147_s1 + $0x520] ss:$16 sps:$4 sm:$0xff]   ;;  %v10265_v58 = vld [vmem:[%s15147_s1 + $0x528] ss:$16 sps:$4 sm:$0xff]  }
  0x70   :  { %6647 = vmatprep.subr.bf16.mxu0 %v10186_v59  ;;  %7495 = vmatprep.subr.bf16.mxu1 %v10189_v60  ;;  %v10270_v59 = vld [vmem:[%s15147_s1 + $0x544] ss:$16 sps:$4 sm:$0xff]   ;;  %v10273_v60 = vld [vmem:[%s15147_s1 + $0x54c] ss:$16 sps:$4 sm:$0xff]  }
  0x73   :  { %6648 = vmatpush1.bf16.msra.mxu0 %v10184_v61  ;;  %7496 = vmatpush1.bf16.msra.mxu1 %v10187_v62  ;;  %v10268_v61 = vld [vmem:[%s15147_s1 + $0x540] ss:$16 sps:$4 sm:$0xff]   ;;  %v10271_v62 = vld [vmem:[%s15147_s1 + $0x548] ss:$16 sps:$4 sm:$0xff]  }
  0x74   :  { %6649 = vmatprep.subr.bf16.mxu0 %v10192_v63  ;;  %7497 = vmatprep.subr.bf16.mxu1 %v10195_v0  ;;  %v10276_v63 = vld [vmem:[%s15147_s1 + $0x564] ss:$16 sps:$4 sm:$0xff]   ;;  %v10279_v0 = vld [vmem:[%s15147_s1 + $0x56c] ss:$16 sps:$4 sm:$0xff]  }
  0x77   :  { %6650 = vmatpush1.bf16.msra.mxu0 %v10190_v1  ;;  %7498 = vmatpush1.bf16.msra.mxu1 %v10193_v2  ;;  %v10274_v1 = vld [vmem:[%s15147_s1 + $0x560] ss:$16 sps:$4 sm:$0xff]   ;;  %v10277_v2 = vld [vmem:[%s15147_s1 + $0x568] ss:$16 sps:$4 sm:$0xff]  }
  0x78   :  { %6651 = vmatprep.subr.bf16.mxu0 %v10198_v3  ;;  %7499 = vmatprep.subr.bf16.mxu1 %v10201_v4  ;;  %v10282_v3 = vld [vmem:[%s15147_s1 + $0x584] ss:$16 sps:$4 sm:$0xff]   ;;  %v10285_v4 = vld [vmem:[%s15147_s1 + $0x58c] ss:$16 sps:$4 sm:$0xff]  }
  0x7b   :  { %6652 = vmatpush1.bf16.msra.mxu0 %v10196_v5  ;;  %7500 = vmatpush1.bf16.msra.mxu1 %v10199_v6  ;;  %v10280_v5 = vld [vmem:[%s15147_s1 + $0x580] ss:$16 sps:$4 sm:$0xff]   ;;  %v10283_v6 = vld [vmem:[%s15147_s1 + $0x588] ss:$16 sps:$4 sm:$0xff]  }
  0x7c   :  { %6653 = vmatprep.subr.bf16.mxu0 %v10204_v7  ;;  %7501 = vmatprep.subr.bf16.mxu1 %v10207_v8  ;;  %v10288_v7 = vld [vmem:[%s15147_s1 + $0x5a4] ss:$16 sps:$4 sm:$0xff]   ;;  %v10291_v8 = vld [vmem:[%s15147_s1 + $0x5ac] ss:$16 sps:$4 sm:$0xff]  }
  0x7f   :  { %6654 = vmatpush1.bf16.msra.mxu0 %v10202_v9  ;;  %7502 = vmatpush1.bf16.msra.mxu1 %v10205_v10  ;;  %v10286_v9 = vld [vmem:[%s15147_s1 + $0x5a0] ss:$16 sps:$4 sm:$0xff]   ;;  %v10289_v10 = vld [vmem:[%s15147_s1 + $0x5a8] ss:$16 sps:$4 sm:$0xff]  }
  0x80   :  { %6676 = vmatprep.subr.bf16.mxu0 %v10210_v11  ;;  %7524 = vmatprep.subr.bf16.mxu1 %v10213_v12  ;;  %v10294_v11 = vld [vmem:[%s15147_s1 + $0x5c4] ss:$16 sps:$4 sm:$0xff]   ;;  %v10297_v12 = vld [vmem:[%s15147_s1 + $0x5cc] ss:$16 sps:$4 sm:$0xff]  }
  0x82   :  { %6656 = vmatmul.mubr.bf16.vlgmr.msra.gmra.mrb[0].mxu0 %v8657_v15  ;;  %7504 = vmatmul.mubr.bf16.vlgmr.msra.gmra.mrb[0].mxu1 %v8657_v15  ;;  %v10300_v15 = vld [vmem:[%s15147_s1 + $0x5e4] ss:$16 sps:$4 sm:$0xff]  }
  0x83   :  { %6677 = vmatpush1.bf16.msra.mxu0 %v10208_v13  ;;  %7525 = vmatpush1.bf16.msra.mxu1 %v10211_v14  ;;  %v10292_v13 = vld [vmem:[%s15147_s1 + $0x5c0] ss:$16 sps:$4 sm:$0xff]   ;;  %v10295_v14 = vld [vmem:[%s15147_s1 + $0x5c8] ss:$16 sps:$4 sm:$0xff]  }
  0x84   :  { %6678 = vmatprep.subr.bf16.mxu0 %v10216_v18  ;;  %7526 = vmatprep.subr.bf16.mxu1 %v10219_v19  ;;  %v10301_v18 = vld [vmem:[%s15147_s1 + $0x5e8] ss:$16 sps:$4 sm:$0xff]   ;;  %v10306_v19 = vld [vmem:[%s15147_s1 + $0x604] ss:$16 sps:$4 sm:$0xff]  }
  0x85   :  { %6665 = vmatprep.mubr.bf16.mxu0 %v8690_v20  ;;  %7513 = vmatprep.mubr.bf16.mxu1 %v8690_v20  ;;  %v10309_v20 = vld [vmem:[%s15147_s1 + $0x60c] ss:$16 sps:$4 sm:$0xff]  }
  0x87   :  { %6679 = vmatpush1.bf16.msra.mxu0 %v10214_v21  ;;  %7527 = vmatpush1.bf16.msra.mxu1 %v10217_v22  ;;  %v54_v21 = vld [vmem:[%s15148_s0 + $0x110] sm:$0xff]  ;;  %v8659_v22 = vcombine.low %v12040_v25, %v12045_v27  ;;  %v10315_v27 = vld [vmem:[%s15147_s1 + $0x62c] ss:$16 sps:$4 sm:$0xff]  }
  0x88   :  { %6680 = vmatprep.subr.bf16.mxu0 %v10222_v23  ;;  %7528 = vmatprep.subr.bf16.mxu1 %v10225_v24  ;;  %v70_v23 = vld [vmem:[%s15148_s0 + $0x190] sm:$0xff] }
  0x89   :  { %v10304_v24 = vld [vmem:[%s15147_s1 + $0x600] ss:$16 sps:$4 sm:$0xff]   ;;  %v10312_v25 = vld [vmem:[%s15147_s1 + $0x624] ss:$16 sps:$4 sm:$0xff]  }
  0x8a   :  { %6666 = vmatmul.mubr.bf16.gmra.mrb[4].mxu0 %v8689_v26  ;;  %7514 = vmatmul.mubr.bf16.gmra.mrb[4].mxu1 %v8689_v26  ;;  %v10307_v26 = vld [vmem:[%s15147_s1 + $0x608] ss:$16 sps:$4 sm:$0xff]  }
  0x8b   :  { %6681 = vmatpush1.bf16.msra.mxu0 %v10220_v28  ;;  %7529 = vmatpush1.bf16.msra.mxu1 %v10223_v29  ;;  %v8692_v28 = vcombine.high %v54_v21, %v70_v23  ;;  %v10310_v29 = vld [vmem:[%s15147_s1 + $0x620] ss:$16 sps:$4 sm:$0xff]  }
  0x8c   :  { %6682 = vmatprep.subr.bf16.mxu0 %v10228_v30  ;;  %7530 = vmatprep.subr.bf16.mxu1 %v10231_v31  ;;  %v10313_v30 = vld [vmem:[%s15147_s1 + $0x628] ss:$16 sps:$4 sm:$0xff]   ;;  %v10318_v31 = vld [vmem:[%s15147_s1 + $0x644] ss:$16 sps:$4 sm:$0xff]  }
  0x8d   :  { %6708 = vmatprep.mubr.bf16.mxu0 %v8660_v32  ;;  %7556 = vmatprep.mubr.bf16.mxu1 %v8660_v32  ;;  %v10321_v32 = vld [vmem:[%s15147_s1 + $0x64c] ss:$16 sps:$4 sm:$0xff]  }
  0x8f   :  { %6683 = vmatpush1.bf16.msra.mxu0 %v10226_v33  ;;  %7531 = vmatpush1.bf16.msra.mxu1 %v10229_v34  ;;  %v12252_v33 = vld [vmem:[%s15148_s0 + $0x18] sm:$0xff]  ;;  %v8691_v34 = vcombine.low %v54_v21, %v70_v23  ;;  %v10388_v21 = vld [vmem:[%s15147_s1 + $0x7c0] ss:$16 sps:$4 sm:$0xff]   ;;  %v10396_v23 = vld [vmem:[%s15147_s1 + $0x7e4] ss:$16 sps:$4 sm:$0xff]  }
  0x90   :  { %6684 = vmatprep.subr.bf16.mxu0 %v10234_v35  ;;  %7532 = vmatprep.subr.bf16.mxu1 %v10237_v36  ;;  %v12257_v35 = vld [vmem:[%s15148_s0 + $0x98] sm:$0xff]  ;;  %v10316_v36 = vld [vmem:[%s15147_s1 + $0x640] ss:$16 sps:$4 sm:$0xff]  }
  0x93   :  { %6685 = vmatpush1.bf16.msra.mxu0 %v10232_v37  ;;  %7533 = vmatpush1.bf16.msra.mxu1 %v10235_v38  ;;  %v10319_v37 = vld [vmem:[%s15147_s1 + $0x648] ss:$16 sps:$4 sm:$0xff]   ;;  %v10324_v38 = vld [vmem:[%s15147_s1 + $0x664] ss:$16 sps:$4 sm:$0xff]  }
  0x94   :  { %6686 = vmatprep.subr.bf16.mxu0 %v10240_v39  ;;  %7534 = vmatprep.subr.bf16.mxu1 %v10243_v40  ;;  %v10327_v39 = vld [vmem:[%s15147_s1 + $0x66c] ss:$16 sps:$4 sm:$0xff]   ;;  %v8662_v40 = vcombine.high %v12252_v33, %v12257_v35 }
  0x97   :  { %6687 = vmatpush1.bf16.msra.mxu0 %v10238_v41  ;;  %7535 = vmatpush1.bf16.msra.mxu1 %v10241_v42  ;;  %v10322_v41 = vld [vmem:[%s15147_s1 + $0x660] ss:$16 sps:$4 sm:$0xff]   ;;  %v10325_v42 = vld [vmem:[%s15147_s1 + $0x668] ss:$16 sps:$4 sm:$0xff]  }
  0x98   :  { %6688 = vmatprep.subr.bf16.mxu0 %v10246_v43  ;;  %7536 = vmatprep.subr.bf16.mxu1 %v10249_v44  ;;  %v10330_v43 = vld [vmem:[%s15147_s1 + $0x684] ss:$16 sps:$4 sm:$0xff]   ;;  %v10333_v44 = vld [vmem:[%s15147_s1 + $0x68c] ss:$16 sps:$4 sm:$0xff]  }
  0x9b   :  { %6689 = vmatpush1.bf16.msra.mxu0 %v10244_v45  ;;  %7537 = vmatpush1.bf16.msra.mxu1 %v10247_v46  ;;  %v10328_v45 = vld [vmem:[%s15147_s1 + $0x680] ss:$16 sps:$4 sm:$0xff]   ;;  %v10331_v46 = vld [vmem:[%s15147_s1 + $0x688] ss:$16 sps:$4 sm:$0xff]  }
  0x9c   :  { %6690 = vmatprep.subr.bf16.mxu0 %v10252_v47  ;;  %7538 = vmatprep.subr.bf16.mxu1 %v10255_v48  ;;  %v10336_v47 = vld [vmem:[%s15147_s1 + $0x6a4] ss:$16 sps:$4 sm:$0xff]   ;;  %v10339_v48 = vld [vmem:[%s15147_s1 + $0x6ac] ss:$16 sps:$4 sm:$0xff]  }
  0x9f   :  { %6691 = vmatpush1.bf16.msra.mxu0 %v10250_v49  ;;  %7539 = vmatpush1.bf16.msra.mxu1 %v10253_v50  ;;  %v10334_v49 = vld [vmem:[%s15147_s1 + $0x6a0] ss:$16 sps:$4 sm:$0xff]   ;;  %v10337_v50 = vld [vmem:[%s15147_s1 + $0x6a8] ss:$16 sps:$4 sm:$0xff]  }
  0xa0   :  { %6692 = vmatprep.subr.bf16.mxu0 %v10258_v51  ;;  %7540 = vmatprep.subr.bf16.mxu1 %v10261_v52  ;;  %v10342_v51 = vld [vmem:[%s15147_s1 + $0x6c4] ss:$16 sps:$4 sm:$0xff]   ;;  %v10345_v52 = vld [vmem:[%s15147_s1 + $0x6cc] ss:$16 sps:$4 sm:$0xff]  }
  0xa3   :  { %6693 = vmatpush1.bf16.msra.mxu0 %v10256_v53  ;;  %7541 = vmatpush1.bf16.msra.mxu1 %v10259_v54  ;;  %v10340_v53 = vld [vmem:[%s15147_s1 + $0x6c0] ss:$16 sps:$4 sm:$0xff]   ;;  %v10343_v54 = vld [vmem:[%s15147_s1 + $0x6c8] ss:$16 sps:$4 sm:$0xff]  }
  0xa4   :  { %6694 = vmatprep.subr.bf16.mxu0 %v10264_v55  ;;  %7542 = vmatprep.subr.bf16.mxu1 %v10267_v56  ;;  %v10348_v55 = vld [vmem:[%s15147_s1 + $0x6e4] ss:$16 sps:$4 sm:$0xff]   ;;  %v10351_v56 = vld [vmem:[%s15147_s1 + $0x6ec] ss:$16 sps:$4 sm:$0xff]  }
  0xa7   :  { %6695 = vmatpush1.bf16.msra.mxu0 %v10262_v57  ;;  %7543 = vmatpush1.bf16.msra.mxu1 %v10265_v58  ;;  %v10346_v57 = vld [vmem:[%s15147_s1 + $0x6e0] ss:$16 sps:$4 sm:$0xff]   ;;  %v10349_v58 = vld [vmem:[%s15147_s1 + $0x6e8] ss:$16 sps:$4 sm:$0xff]  }
  0xa8   :  { %6696 = vmatprep.subr.bf16.mxu0 %v10270_v59  ;;  %7544 = vmatprep.subr.bf16.mxu1 %v10273_v60  ;;  %v10354_v59 = vld [vmem:[%s15147_s1 + $0x704] ss:$16 sps:$4 sm:$0xff]   ;;  %v10357_v60 = vld [vmem:[%s15147_s1 + $0x70c] ss:$16 sps:$4 sm:$0xff]  }
  0xab   :  { %6697 = vmatpush1.bf16.msra.mxu0 %v10268_v61  ;;  %7545 = vmatpush1.bf16.msra.mxu1 %v10271_v62  ;;  %v10352_v61 = vld [vmem:[%s15147_s1 + $0x700] ss:$16 sps:$4 sm:$0xff]   ;;  %v10355_v62 = vld [vmem:[%s15147_s1 + $0x708] ss:$16 sps:$4 sm:$0xff]  }
  0xac   :  { %6698 = vmatprep.subr.bf16.mxu0 %v10276_v63  ;;  %7546 = vmatprep.subr.bf16.mxu1 %v10279_v0  ;;  %v10360_v63 = vld [vmem:[%s15147_s1 + $0x724] ss:$16 sps:$4 sm:$0xff]   ;;  %v10363_v0 = vld [vmem:[%s15147_s1 + $0x72c] ss:$16 sps:$4 sm:$0xff]  }
  0xaf   :  { %6699 = vmatpush1.bf16.msra.mxu0 %v10274_v1  ;;  %7547 = vmatpush1.bf16.msra.mxu1 %v10277_v2  ;;  %v10358_v1 = vld [vmem:[%s15147_s1 + $0x720] ss:$16 sps:$4 sm:$0xff]   ;;  %v10361_v2 = vld [vmem:[%s15147_s1 + $0x728] ss:$16 sps:$4 sm:$0xff]  }
  0xb0   :  { %6700 = vmatprep.subr.bf16.mxu0 %v10282_v3  ;;  %7548 = vmatprep.subr.bf16.mxu1 %v10285_v4  ;;  %v10366_v3 = vld [vmem:[%s15147_s1 + $0x744] ss:$16 sps:$4 sm:$0xff]   ;;  %v10369_v4 = vld [vmem:[%s15147_s1 + $0x74c] ss:$16 sps:$4 sm:$0xff]  }
  0xb3   :  { %6701 = vmatpush1.bf16.msra.mxu0 %v10280_v5  ;;  %7549 = vmatpush1.bf16.msra.mxu1 %v10283_v6  ;;  %v10364_v5 = vld [vmem:[%s15147_s1 + $0x740] ss:$16 sps:$4 sm:$0xff]   ;;  %v10367_v6 = vld [vmem:[%s15147_s1 + $0x748] ss:$16 sps:$4 sm:$0xff]  }
  0xb4   :  { %6702 = vmatprep.subr.bf16.mxu0 %v10288_v7  ;;  %7550 = vmatprep.subr.bf16.mxu1 %v10291_v8  ;;  %v10372_v7 = vld [vmem:[%s15147_s1 + $0x764] ss:$16 sps:$4 sm:$0xff]   ;;  %v10375_v8 = vld [vmem:[%s15147_s1 + $0x76c] ss:$16 sps:$4 sm:$0xff]  }
  0xb7   :  { %6703 = vmatpush1.bf16.msra.mxu0 %v10286_v9  ;;  %7551 = vmatpush1.bf16.msra.mxu1 %v10289_v10  ;;  %v10370_v9 = vld [vmem:[%s15147_s1 + $0x760] ss:$16 sps:$4 sm:$0xff]   ;;  %v10373_v10 = vld [vmem:[%s15147_s1 + $0x768] ss:$16 sps:$4 sm:$0xff]  }
  0xb8   :  { %6704 = vmatprep.subr.bf16.mxu0 %v10294_v11  ;;  %7552 = vmatprep.subr.bf16.mxu1 %v10297_v12  ;;  %v10378_v11 = vld [vmem:[%s15147_s1 + $0x784] ss:$16 sps:$4 sm:$0xff]   ;;  %v10381_v12 = vld [vmem:[%s15147_s1 + $0x78c] ss:$16 sps:$4 sm:$0xff]  }
  0xbb   :  { %6705 = vmatpush1.bf16.msra.mxu0 %v10292_v13  ;;  %7553 = vmatpush1.bf16.msra.mxu1 %v10295_v14  ;;  %v10376_v13 = vld [vmem:[%s15147_s1 + $0x780] ss:$16 sps:$4 sm:$0xff]   ;;  %v10379_v14 = vld [vmem:[%s15147_s1 + $0x788] ss:$16 sps:$4 sm:$0xff]  }
  0xbc   :  { %6706 = vmatprep.subr.bf16.mxu0 %v10300_v15  ;;  %7554 = vmatprep.subr.bf16.mxu1 %v10303_v16  ;;  %v10384_v15 = vld [vmem:[%s15147_s1 + $0x7a4] ss:$16 sps:$4 sm:$0xff]   ;;  %v10387_v16 = vld [vmem:[%s15147_s1 + $0x7ac] ss:$16 sps:$4 sm:$0xff]  }
  0xbf   :  { %6707 = vmatpush1.bf16.msra.mxu0 %v10298_v17  ;;  %7555 = vmatpush1.bf16.msra.mxu1 %v10301_v18  ;;  %v10382_v17 = vld [vmem:[%s15147_s1 + $0x7a0] ss:$16 sps:$4 sm:$0xff]   ;;  %v10385_v18 = vld [vmem:[%s15147_s1 + $0x7a8] ss:$16 sps:$4 sm:$0xff]  }
  0xc0   :  { %6729 = vmatprep.subr.bf16.mxu0 %v10306_v19  ;;  %7577 = vmatprep.subr.bf16.mxu1 %v10309_v20  ;;  %v10390_v19 = vld [vmem:[%s15147_s1 + $0x7c4] ss:$16 sps:$4 sm:$0xff]   ;;  %v10393_v20 = vld [vmem:[%s15147_s1 + $0x7cc] ss:$16 sps:$4 sm:$0xff]  }
  0xc2   :  { %6709 = vmatmul.mubr.bf16.vlgmr.msra.gmra.mrb[0].mxu0 %v8659_v22  ;;  %7557 = vmatmul.mubr.bf16.vlgmr.msra.gmra.mrb[0].mxu1 %v8659_v22  ;;  %v10391_v22 = vld [vmem:[%s15147_s1 + $0x7c8] ss:$16 sps:$4 sm:$0xff]  }
  0xc3   :  { %6730 = vmatpush1.bf16.msra.mxu0 %v10304_v24  ;;  %7578 = vmatpush1.bf16.msra.mxu1 %v10307_v26  ;;  %v10399_v24 = vld [vmem:[%s15147_s1 + $0x7ec] ss:$16 sps:$4 sm:$0xff]   ;;  %v10394_v26 = vld [vmem:[%s15147_s1 + $0x7e0] ss:$16 sps:$4 sm:$0xff]  }
  0xc4   :  { %6731 = vmatprep.subr.bf16.mxu0 %v10312_v25  ;;  %7579 = vmatprep.subr.bf16.mxu1 %v10315_v27  ;;  %v10397_v25 = vld [vmem:[%s15147_s1 + $0x7e8] ss:$16 sps:$4 sm:$0xff]   ;;  %v10402_v27 = vld [vmem:[%s15147_s1 + $0x804] ss:$16 sps:$4 sm:$0xff]  }
  0xc5   :  { %6718 = vmatprep.mubr.bf16.mxu0 %v8692_v28  ;;  %7566 = vmatprep.mubr.bf16.mxu1 %v8692_v28  ;;  %v10405_v28 = vld [vmem:[%s15147_s1 + $0x80c] ss:$16 sps:$4 sm:$0xff]  }
  0xc7   :  { %6732 = vmatpush1.bf16.msra.mxu0 %v10310_v29  ;;  %7580 = vmatpush1.bf16.msra.mxu1 %v10313_v30  ;;  %v55_v29 = vld [vmem:[%s15148_s0 + $0x118] sm:$0xff]  ;;  %v8661_v30 = vcombine.low %v12252_v33, %v12257_v35 }
  0xc8   :  { %6733 = vmatprep.subr.bf16.mxu0 %v10318_v31  ;;  %7581 = vmatprep.subr.bf16.mxu1 %v10321_v32  ;;  %v71_v31 = vld [vmem:[%s15148_s0 + $0x198] sm:$0xff]  ;;  %v10400_v32 = vld [vmem:[%s15147_s1 + $0x800] ss:$16 sps:$4 sm:$0xff]  }
  0xc9   :  { %v10411_v33 = vld [vmem:[%s15147_s1 + $0x82c] ss:$16 sps:$4 sm:$0xff]   ;;  %v8694_v35 = vcombine.high %v55_v29, %v71_v31 }
  0xca   :  { %6719 = vmatmul.mubr.bf16.gmra.mrb[4].mxu0 %v8691_v34  ;;  %7567 = vmatmul.mubr.bf16.gmra.mrb[4].mxu1 %v8691_v34  ;;  %v10403_v34 = vld [vmem:[%s15147_s1 + $0x808] ss:$16 sps:$4 sm:$0xff]  }
  0xcb   :  { %6734 = vmatpush1.bf16.msra.mxu0 %v10316_v36  ;;  %7582 = vmatpush1.bf16.msra.mxu1 %v10319_v37  ;;  %v10408_v36 = vld [vmem:[%s15147_s1 + $0x824] ss:$16 sps:$4 sm:$0xff]   ;;  %v10406_v37 = vld [vmem:[%s15147_s1 + $0x820] ss:$16 sps:$4 sm:$0xff]  }
  0xcc   :  { %6735 = vmatprep.subr.bf16.mxu0 %v10324_v38  ;;  %7583 = vmatprep.subr.bf16.mxu1 %v10327_v39  ;;  %v10409_v38 = vld [vmem:[%s15147_s1 + $0x828] ss:$16 sps:$4 sm:$0xff]   ;;  %v10414_v39 = vld [vmem:[%s15147_s1 + $0x844] ss:$16 sps:$4 sm:$0xff]  }
  0xcd   :  { %6761 = vmatprep.mubr.bf16.mxu0 %v8662_v40  ;;  %7609 = vmatprep.mubr.bf16.mxu1 %v8662_v40  ;;  %v10417_v40 = vld [vmem:[%s15147_s1 + $0x84c] ss:$16 sps:$4 sm:$0xff]  }
  0xcf   :  { %6736 = vmatpush1.bf16.msra.mxu0 %v10322_v41  ;;  %7584 = vmatpush1.bf16.msra.mxu1 %v10325_v42  ;;  %v12464_v41 = vld [vmem:[%s15148_s0 + $0x20] sm:$0xff]  ;;  %v8693_v42 = vcombine.low %v55_v29, %v71_v31 }
  0xd0   :  { %6737 = vmatprep.subr.bf16.mxu0 %v10330_v43  ;;  %7585 = vmatprep.subr.bf16.mxu1 %v10333_v44  ;;  %v12469_v43 = vld [vmem:[%s15148_s0 + $0xa0] sm:$0xff] }
  0xd1   :  { %v10412_v44 = vld [vmem:[%s15147_s1 + $0x840] ss:$16 sps:$4 sm:$0xff]   ;;  %v10492_v31 = vld [vmem:[%s15147_s1 + $0x9e4] ss:$16 sps:$4 sm:$0xff]  }
  0xd2   :  { %v10484_v29 = vld [vmem:[%s15147_s1 + $0x9c0] ss:$16 sps:$4 sm:$0xff]  }
  0xd3   :  { %6738 = vmatpush1.bf16.msra.mxu0 %v10328_v45  ;;  %7586 = vmatpush1.bf16.msra.mxu1 %v10331_v46  ;;  %v10415_v45 = vld [vmem:[%s15147_s1 + $0x848] ss:$16 sps:$4 sm:$0xff]   ;;  %v10420_v46 = vld [vmem:[%s15147_s1 + $0x864] ss:$16 sps:$4 sm:$0xff]  }
  0xd4   :  { %6739 = vmatprep.subr.bf16.mxu0 %v10336_v47  ;;  %7587 = vmatprep.subr.bf16.mxu1 %v10339_v48  ;;  %v10423_v47 = vld [vmem:[%s15147_s1 + $0x86c] ss:$16 sps:$4 sm:$0xff]   ;;  %v8664_v48 = vcombine.high %v12464_v41, %v12469_v43 }
  0xd7   :  { %6740 = vmatpush1.bf16.msra.mxu0 %v10334_v49  ;;  %7588 = vmatpush1.bf16.msra.mxu1 %v10337_v50  ;;  %v10418_v49 = vld [vmem:[%s15147_s1 + $0x860] ss:$16 sps:$4 sm:$0xff]   ;;  %v10421_v50 = vld [vmem:[%s15147_s1 + $0x868] ss:$16 sps:$4 sm:$0xff]  }
  0xd8   :  { %6741 = vmatprep.subr.bf16.mxu0 %v10342_v51  ;;  %7589 = vmatprep.subr.bf16.mxu1 %v10345_v52  ;;  %v10426_v51 = vld [vmem:[%s15147_s1 + $0x884] ss:$16 sps:$4 sm:$0xff]   ;;  %v10429_v52 = vld [vmem:[%s15147_s1 + $0x88c] ss:$16 sps:$4 sm:$0xff]  }
  0xdb   :  { %6742 = vmatpush1.bf16.msra.mxu0 %v10340_v53  ;;  %7590 = vmatpush1.bf16.msra.mxu1 %v10343_v54  ;;  %v10424_v53 = vld [vmem:[%s15147_s1 + $0x880] ss:$16 sps:$4 sm:$0xff]   ;;  %v10427_v54 = vld [vmem:[%s15147_s1 + $0x888] ss:$16 sps:$4 sm:$0xff]  }
  0xdc   :  { %6743 = vmatprep.subr.bf16.mxu0 %v10348_v55  ;;  %7591 = vmatprep.subr.bf16.mxu1 %v10351_v56  ;;  %v10432_v55 = vld [vmem:[%s15147_s1 + $0x8a4] ss:$16 sps:$4 sm:$0xff]   ;;  %v10435_v56 = vld [vmem:[%s15147_s1 + $0x8ac] ss:$16 sps:$4 sm:$0xff]  }
  0xdf   :  { %6744 = vmatpush1.bf16.msra.mxu0 %v10346_v57  ;;  %7592 = vmatpush1.bf16.msra.mxu1 %v10349_v58  ;;  %v10430_v57 = vld [vmem:[%s15147_s1 + $0x8a0] ss:$16 sps:$4 sm:$0xff]   ;;  %v10433_v58 = vld [vmem:[%s15147_s1 + $0x8a8] ss:$16 sps:$4 sm:$0xff]  }
  0xe0   :  { %6745 = vmatprep.subr.bf16.mxu0 %v10354_v59  ;;  %7593 = vmatprep.subr.bf16.mxu1 %v10357_v60  ;;  %v10438_v59 = vld [vmem:[%s15147_s1 + $0x8c4] ss:$16 sps:$4 sm:$0xff]   ;;  %v10441_v60 = vld [vmem:[%s15147_s1 + $0x8cc] ss:$16 sps:$4 sm:$0xff]  }
  0xe3   :  { %6746 = vmatpush1.bf16.msra.mxu0 %v10352_v61  ;;  %7594 = vmatpush1.bf16.msra.mxu1 %v10355_v62  ;;  %v10436_v61 = vld [vmem:[%s15147_s1 + $0x8c0] ss:$16 sps:$4 sm:$0xff]   ;;  %v10439_v62 = vld [vmem:[%s15147_s1 + $0x8c8] ss:$16 sps:$4 sm:$0xff]  }
  0xe4   :  { %6747 = vmatprep.subr.bf16.mxu0 %v10360_v63  ;;  %7595 = vmatprep.subr.bf16.mxu1 %v10363_v0  ;;  %v10444_v63 = vld [vmem:[%s15147_s1 + $0x8e4] ss:$16 sps:$4 sm:$0xff]   ;;  %v10447_v0 = vld [vmem:[%s15147_s1 + $0x8ec] ss:$16 sps:$4 sm:$0xff]  }
  0xe7   :  { %6748 = vmatpush1.bf16.msra.mxu0 %v10358_v1  ;;  %7596 = vmatpush1.bf16.msra.mxu1 %v10361_v2  ;;  %v10442_v1 = vld [vmem:[%s15147_s1 + $0x8e0] ss:$16 sps:$4 sm:$0xff]   ;;  %v10445_v2 = vld [vmem:[%s15147_s1 + $0x8e8] ss:$16 sps:$4 sm:$0xff]  }
  0xe8   :  { %6749 = vmatprep.subr.bf16.mxu0 %v10366_v3  ;;  %7597 = vmatprep.subr.bf16.mxu1 %v10369_v4  ;;  %v10450_v3 = vld [vmem:[%s15147_s1 + $0x904] ss:$16 sps:$4 sm:$0xff]   ;;  %v10453_v4 = vld [vmem:[%s15147_s1 + $0x90c] ss:$16 sps:$4 sm:$0xff]  }
  0xeb   :  { %6750 = vmatpush1.bf16.msra.mxu0 %v10364_v5  ;;  %7598 = vmatpush1.bf16.msra.mxu1 %v10367_v6  ;;  %v10448_v5 = vld [vmem:[%s15147_s1 + $0x900] ss:$16 sps:$4 sm:$0xff]   ;;  %v10451_v6 = vld [vmem:[%s15147_s1 + $0x908] ss:$16 sps:$4 sm:$0xff]  }
  0xec   :  { %6751 = vmatprep.subr.bf16.mxu0 %v10372_v7  ;;  %7599 = vmatprep.subr.bf16.mxu1 %v10375_v8  ;;  %v10456_v7 = vld [vmem:[%s15147_s1 + $0x924] ss:$16 sps:$4 sm:$0xff]   ;;  %v10459_v8 = vld [vmem:[%s15147_s1 + $0x92c] ss:$16 sps:$4 sm:$0xff]  }
  0xef   :  { %6752 = vmatpush1.bf16.msra.mxu0 %v10370_v9  ;;  %7600 = vmatpush1.bf16.msra.mxu1 %v10373_v10  ;;  %v10454_v9 = vld [vmem:[%s15147_s1 + $0x920] ss:$16 sps:$4 sm:$0xff]   ;;  %v10457_v10 = vld [vmem:[%s15147_s1 + $0x928] ss:$16 sps:$4 sm:$0xff]  }
  0xf0   :  { %6753 = vmatprep.subr.bf16.mxu0 %v10378_v11  ;;  %7601 = vmatprep.subr.bf16.mxu1 %v10381_v12  ;;  %v10462_v11 = vld [vmem:[%s15147_s1 + $0x944] ss:$16 sps:$4 sm:$0xff]   ;;  %v10465_v12 = vld [vmem:[%s15147_s1 + $0x94c] ss:$16 sps:$4 sm:$0xff]  }
  0xf3   :  { %6754 = vmatpush1.bf16.msra.mxu0 %v10376_v13  ;;  %7602 = vmatpush1.bf16.msra.mxu1 %v10379_v14  ;;  %v10460_v13 = vld [vmem:[%s15147_s1 + $0x940] ss:$16 sps:$4 sm:$0xff]   ;;  %v10463_v14 = vld [vmem:[%s15147_s1 + $0x948] ss:$16 sps:$4 sm:$0xff]  }
  0xf4   :  { %6755 = vmatprep.subr.bf16.mxu0 %v10384_v15  ;;  %7603 = vmatprep.subr.bf16.mxu1 %v10387_v16  ;;  %v10468_v15 = vld [vmem:[%s15147_s1 + $0x964] ss:$16 sps:$4 sm:$0xff]   ;;  %v10471_v16 = vld [vmem:[%s15147_s1 + $0x96c] ss:$16 sps:$4 sm:$0xff]  }
  0xf7   :  { %6756 = vmatpush1.bf16.msra.mxu0 %v10382_v17  ;;  %7604 = vmatpush1.bf16.msra.mxu1 %v10385_v18  ;;  %v10466_v17 = vld [vmem:[%s15147_s1 + $0x960] ss:$16 sps:$4 sm:$0xff]   ;;  %v10469_v18 = vld [vmem:[%s15147_s1 + $0x968] ss:$16 sps:$4 sm:$0xff]  }
  0xf8   :  { %6757 = vmatprep.subr.bf16.mxu0 %v10390_v19  ;;  %7605 = vmatprep.subr.bf16.mxu1 %v10393_v20  ;;  %v10474_v19 = vld [vmem:[%s15147_s1 + $0x984] ss:$16 sps:$4 sm:$0xff]   ;;  %v10477_v20 = vld [vmem:[%s15147_s1 + $0x98c] ss:$16 sps:$4 sm:$0xff]  }
  0xfb   :  { %6758 = vmatpush1.bf16.msra.mxu0 %v10388_v21  ;;  %7606 = vmatpush1.bf16.msra.mxu1 %v10391_v22  ;;  %v10472_v21 = vld [vmem:[%s15147_s1 + $0x980] ss:$16 sps:$4 sm:$0xff]   ;;  %v10475_v22 = vld [vmem:[%s15147_s1 + $0x988] ss:$16 sps:$4 sm:$0xff]  }
  0xfc   :  { %6759 = vmatprep.subr.bf16.mxu0 %v10396_v23  ;;  %7607 = vmatprep.subr.bf16.mxu1 %v10399_v24  ;;  %v10480_v23 = vld [vmem:[%s15147_s1 + $0x9a4] ss:$16 sps:$4 sm:$0xff]   ;;  %v10483_v24 = vld [vmem:[%s15147_s1 + $0x9ac] ss:$16 sps:$4 sm:$0xff]  }
  0xff   :  { %6760 = vmatpush1.bf16.msra.mxu0 %v10394_v26  ;;  %7608 = vmatpush1.bf16.msra.mxu1 %v10397_v25  ;;  %v10478_v26 = vld [vmem:[%s15147_s1 + $0x9a0] ss:$16 sps:$4 sm:$0xff]   ;;  %v10481_v25 = vld [vmem:[%s15147_s1 + $0x9a8] ss:$16 sps:$4 sm:$0xff]  }
 0x100   :  { %6782 = vmatprep.subr.bf16.mxu0 %v10402_v27  ;;  %7630 = vmatprep.subr.bf16.mxu1 %v10405_v28  ;;  %v10486_v27 = vld [vmem:[%s15147_s1 + $0x9c4] ss:$16 sps:$4 sm:$0xff]   ;;  %v10489_v28 = vld [vmem:[%s15147_s1 + $0x9cc] ss:$16 sps:$4 sm:$0xff]  }
 0x102   :  { %6762 = vmatmul.mubr.bf16.vlgmr.msra.gmra.mrb[0].mxu0 %v8661_v30  ;;  %7610 = vmatmul.mubr.bf16.vlgmr.msra.gmra.mrb[0].mxu1 %v8661_v30  ;;  %v10487_v30 = vld [vmem:[%s15147_s1 + $0x9c8] ss:$16 sps:$4 sm:$0xff]  }
 0x103   :  { %6783 = vmatpush1.bf16.msra.mxu0 %v10400_v32  ;;  %7631 = vmatpush1.bf16.msra.mxu1 %v10403_v34  ;;  %v10495_v32 = vld [vmem:[%s15147_s1 + $0x9ec] ss:$16 sps:$4 sm:$0xff]   ;;  %v10490_v34 = vld [vmem:[%s15147_s1 + $0x9e0] ss:$16 sps:$4 sm:$0xff]  }
 0x104   :  { %6784 = vmatprep.subr.bf16.mxu0 %v10408_v36  ;;  %7632 = vmatprep.subr.bf16.mxu1 %v10411_v33  ;;  %v10493_v36 = vld [vmem:[%s15147_s1 + $0x9e8] ss:$16 sps:$4 sm:$0xff]   ;;  %v10498_v33 = vld [vmem:[%s15147_s1 + $0xa04] ss:$16 sps:$4 sm:$0xff]  }
 0x105   :  { %6771 = vmatprep.mubr.bf16.mxu0 %v8694_v35  ;;  %7619 = vmatprep.mubr.bf16.mxu1 %v8694_v35  ;;  %v10501_v35 = vld [vmem:[%s15147_s1 + $0xa0c] ss:$16 sps:$4 sm:$0xff]  }
 0x107   :  { %6785 = vmatpush1.bf16.msra.mxu0 %v10406_v37  ;;  %7633 = vmatpush1.bf16.msra.mxu1 %v10409_v38  ;;  %v56_v37 = vld [vmem:[%s15148_s0 + $0x120] sm:$0xff] }
 0x108   :  { %6786 = vmatprep.subr.bf16.mxu0 %v10414_v39  ;;  %7634 = vmatprep.subr.bf16.mxu1 %v10417_v40  ;;  %v72_v38 = vld [vmem:[%s15148_s0 + $0x1a0] sm:$0xff]  ;;  %v8663_v39 = vcombine.low %v12464_v41, %v12469_v43  ;;  %v10507_v41 = vld [vmem:[%s15147_s1 + $0xa2c] ss:$16 sps:$4 sm:$0xff]  }
 0x109   :  { %v10496_v40 = vld [vmem:[%s15147_s1 + $0xa00] ss:$16 sps:$4 sm:$0xff]  }
 0x10a   :  { %6772 = vmatmul.mubr.bf16.gmra.mrb[4].mxu0 %v8693_v42  ;;  %7620 = vmatmul.mubr.bf16.gmra.mrb[4].mxu1 %v8693_v42  ;;  %v10499_v42 = vld [vmem:[%s15147_s1 + $0xa08] ss:$16 sps:$4 sm:$0xff]   ;;  %v10502_v43 = vld [vmem:[%s15147_s1 + $0xa20] ss:$16 sps:$4 sm:$0xff]  }
 0x10b   :  { %6787 = vmatpush1.bf16.msra.mxu0 %v10412_v44  ;;  %7635 = vmatpush1.bf16.msra.mxu1 %v10415_v45  ;;  %v10504_v44 = vld [vmem:[%s15147_s1 + $0xa24] ss:$16 sps:$4 sm:$0xff]   ;;  %v10505_v45 = vld [vmem:[%s15147_s1 + $0xa28] ss:$16 sps:$4 sm:$0xff]  }
 0x10c   :  { %6788 = vmatprep.subr.bf16.mxu0 %v10420_v46  ;;  %7636 = vmatprep.subr.bf16.mxu1 %v10423_v47  ;;  %v8696_v46 = vcombine.high %v56_v37, %v72_v38  ;;  %v10510_v47 = vld [vmem:[%s15147_s1 + $0xa44] ss:$16 sps:$4 sm:$0xff]  }
 0x10d   :  { %6814 = vmatprep.mubr.bf16.mxu0 %v8664_v48  ;;  %7662 = vmatprep.mubr.bf16.mxu1 %v8664_v48  ;;  %v10513_v48 = vld [vmem:[%s15147_s1 + $0xa4c] ss:$16 sps:$4 sm:$0xff]  }
 0x10f   :  { %6789 = vmatpush1.bf16.msra.mxu0 %v10418_v49  ;;  %7637 = vmatpush1.bf16.msra.mxu1 %v10421_v50  ;;  %v12676_v49 = vld [vmem:[%s15148_s0 + $0x28] sm:$0xff] }
 0x110   :  { %6790 = vmatprep.subr.bf16.mxu0 %v10426_v51  ;;  %7638 = vmatprep.subr.bf16.mxu1 %v10429_v52  ;;  %v12681_v50 = vld [vmem:[%s15148_s0 + $0xa8] sm:$0xff]  ;;  %v8695_v51 = vcombine.low %v56_v37, %v72_v38  ;;  %v10508_v52 = vld [vmem:[%s15147_s1 + $0xa40] ss:$16 sps:$4 sm:$0xff]  }
 0x111   :  { %v10580_v37 = vld [vmem:[%s15147_s1 + $0xbc0] ss:$16 sps:$4 sm:$0xff]   ;;  %v10583_v38 = vld [vmem:[%s15147_s1 + $0xbc8] ss:$16 sps:$4 sm:$0xff]  }
 0x113   :  { %6791 = vmatpush1.bf16.msra.mxu0 %v10424_v53  ;;  %7639 = vmatpush1.bf16.msra.mxu1 %v10427_v54  ;;  %v10511_v53 = vld [vmem:[%s15147_s1 + $0xa48] ss:$16 sps:$4 sm:$0xff]   ;;  %v10516_v54 = vld [vmem:[%s15147_s1 + $0xa64] ss:$16 sps:$4 sm:$0xff]  }
 0x114   :  { %6792 = vmatprep.subr.bf16.mxu0 %v10432_v55  ;;  %7640 = vmatprep.subr.bf16.mxu1 %v10435_v56  ;;  %v10519_v55 = vld [vmem:[%s15147_s1 + $0xa6c] ss:$16 sps:$4 sm:$0xff]   ;;  %v8666_v56 = vcombine.high %v12676_v49, %v12681_v50 }
 0x117   :  { %6793 = vmatpush1.bf16.msra.mxu0 %v10430_v57  ;;  %7641 = vmatpush1.bf16.msra.mxu1 %v10433_v58  ;;  %v10514_v57 = vld [vmem:[%s15147_s1 + $0xa60] ss:$16 sps:$4 sm:$0xff]   ;;  %v10517_v58 = vld [vmem:[%s15147_s1 + $0xa68] ss:$16 sps:$4 sm:$0xff]  }
 0x118   :  { %6794 = vmatprep.subr.bf16.mxu0 %v10438_v59  ;;  %7642 = vmatprep.subr.bf16.mxu1 %v10441_v60  ;;  %v10522_v59 = vld [vmem:[%s15147_s1 + $0xa84] ss:$16 sps:$4 sm:$0xff]   ;;  %v10525_v60 = vld [vmem:[%s15147_s1 + $0xa8c] ss:$16 sps:$4 sm:$0xff]  }
 0x11b   :  { %6795 = vmatpush1.bf16.msra.mxu0 %v10436_v61  ;;  %7643 = vmatpush1.bf16.msra.mxu1 %v10439_v62  ;;  %v10520_v61 = vld [vmem:[%s15147_s1 + $0xa80] ss:$16 sps:$4 sm:$0xff]   ;;  %v10523_v62 = vld [vmem:[%s15147_s1 + $0xa88] ss:$16 sps:$4 sm:$0xff]  }
 0x11c   :  { %6796 = vmatprep.subr.bf16.mxu0 %v10444_v63  ;;  %7644 = vmatprep.subr.bf16.mxu1 %v10447_v0  ;;  %v10528_v63 = vld [vmem:[%s15147_s1 + $0xaa4] ss:$16 sps:$4 sm:$0xff]   ;;  %v10531_v0 = vld [vmem:[%s15147_s1 + $0xaac] ss:$16 sps:$4 sm:$0xff]  }
 0x11f   :  { %6797 = vmatpush1.bf16.msra.mxu0 %v10442_v1  ;;  %7645 = vmatpush1.bf16.msra.mxu1 %v10445_v2  ;;  %v10526_v1 = vld [vmem:[%s15147_s1 + $0xaa0] ss:$16 sps:$4 sm:$0xff]   ;;  %v10529_v2 = vld [vmem:[%s15147_s1 + $0xaa8] ss:$16 sps:$4 sm:$0xff]  }
 0x120   :  { %6798 = vmatprep.subr.bf16.mxu0 %v10450_v3  ;;  %7646 = vmatprep.subr.bf16.mxu1 %v10453_v4  ;;  %v10534_v3 = vld [vmem:[%s15147_s1 + $0xac4] ss:$16 sps:$4 sm:$0xff]   ;;  %v10537_v4 = vld [vmem:[%s15147_s1 + $0xacc] ss:$16 sps:$4 sm:$0xff]  }
 0x123   :  { %6799 = vmatpush1.bf16.msra.mxu0 %v10448_v5  ;;  %7647 = vmatpush1.bf16.msra.mxu1 %v10451_v6  ;;  %v10532_v5 = vld [vmem:[%s15147_s1 + $0xac0] ss:$16 sps:$4 sm:$0xff]   ;;  %v10535_v6 = vld [vmem:[%s15147_s1 + $0xac8] ss:$16 sps:$4 sm:$0xff]  }
 0x124   :  { %6800 = vmatprep.subr.bf16.mxu0 %v10456_v7  ;;  %7648 = vmatprep.subr.bf16.mxu1 %v10459_v8  ;;  %v10540_v7 = vld [vmem:[%s15147_s1 + $0xae4] ss:$16 sps:$4 sm:$0xff]   ;;  %v10543_v8 = vld [vmem:[%s15147_s1 + $0xaec] ss:$16 sps:$4 sm:$0xff]  }
 0x127   :  { %6801 = vmatpush1.bf16.msra.mxu0 %v10454_v9  ;;  %7649 = vmatpush1.bf16.msra.mxu1 %v10457_v10  ;;  %v10538_v9 = vld [vmem:[%s15147_s1 + $0xae0] ss:$16 sps:$4 sm:$0xff]   ;;  %v10541_v10 = vld [vmem:[%s15147_s1 + $0xae8] ss:$16 sps:$4 sm:$0xff]  }
 0x128   :  { %6802 = vmatprep.subr.bf16.mxu0 %v10462_v11  ;;  %7650 = vmatprep.subr.bf16.mxu1 %v10465_v12  ;;  %v10546_v11 = vld [vmem:[%s15147_s1 + $0xb04] ss:$16 sps:$4 sm:$0xff]   ;;  %v10549_v12 = vld [vmem:[%s15147_s1 + $0xb0c] ss:$16 sps:$4 sm:$0xff]  }
 0x12b   :  { %6803 = vmatpush1.bf16.msra.mxu0 %v10460_v13  ;;  %7651 = vmatpush1.bf16.msra.mxu1 %v10463_v14  ;;  %v10544_v13 = vld [vmem:[%s15147_s1 + $0xb00] ss:$16 sps:$4 sm:$0xff]   ;;  %v10547_v14 = vld [vmem:[%s15147_s1 + $0xb08] ss:$16 sps:$4 sm:$0xff]  }
 0x12c   :  { %6804 = vmatprep.subr.bf16.mxu0 %v10468_v15  ;;  %7652 = vmatprep.subr.bf16.mxu1 %v10471_v16  ;;  %v10552_v15 = vld [vmem:[%s15147_s1 + $0xb24] ss:$16 sps:$4 sm:$0xff]   ;;  %v10555_v16 = vld [vmem:[%s15147_s1 + $0xb2c] ss:$16 sps:$4 sm:$0xff]  }
 0x12f   :  { %6805 = vmatpush1.bf16.msra.mxu0 %v10466_v17  ;;  %7653 = vmatpush1.bf16.msra.mxu1 %v10469_v18  ;;  %v10550_v17 = vld [vmem:[%s15147_s1 + $0xb20] ss:$16 sps:$4 sm:$0xff]   ;;  %v10553_v18 = vld [vmem:[%s15147_s1 + $0xb28] ss:$16 sps:$4 sm:$0xff]  }
 0x130   :  { %6806 = vmatprep.subr.bf16.mxu0 %v10474_v19  ;;  %7654 = vmatprep.subr.bf16.mxu1 %v10477_v20  ;;  %v10558_v19 = vld [vmem:[%s15147_s1 + $0xb44] ss:$16 sps:$4 sm:$0xff]   ;;  %v10561_v20 = vld [vmem:[%s15147_s1 + $0xb4c] ss:$16 sps:$4 sm:$0xff]  }
 0x133   :  { %6807 = vmatpush1.bf16.msra.mxu0 %v10472_v21  ;;  %7655 = vmatpush1.bf16.msra.mxu1 %v10475_v22  ;;  %v10556_v21 = vld [vmem:[%s15147_s1 + $0xb40] ss:$16 sps:$4 sm:$0xff]   ;;  %v10559_v22 = vld [vmem:[%s15147_s1 + $0xb48] ss:$16 sps:$4 sm:$0xff]  }
 0x134   :  { %6808 = vmatprep.subr.bf16.mxu0 %v10480_v23  ;;  %7656 = vmatprep.subr.bf16.mxu1 %v10483_v24  ;;  %v10564_v23 = vld [vmem:[%s15147_s1 + $0xb64] ss:$16 sps:$4 sm:$0xff]   ;;  %v10567_v24 = vld [vmem:[%s15147_s1 + $0xb6c] ss:$16 sps:$4 sm:$0xff]  }
 0x137   :  { %6809 = vmatpush1.bf16.msra.mxu0 %v10478_v26  ;;  %7657 = vmatpush1.bf16.msra.mxu1 %v10481_v25  ;;  %v10562_v26 = vld [vmem:[%s15147_s1 + $0xb60] ss:$16 sps:$4 sm:$0xff]   ;;  %v10565_v25 = vld [vmem:[%s15147_s1 + $0xb68] ss:$16 sps:$4 sm:$0xff]  }
 0x138   :  { %6810 = vmatprep.subr.bf16.mxu0 %v10486_v27  ;;  %7658 = vmatprep.subr.bf16.mxu1 %v10489_v28  ;;  %v10570_v27 = vld [vmem:[%s15147_s1 + $0xb84] ss:$16 sps:$4 sm:$0xff]   ;;  %v10573_v28 = vld [vmem:[%s15147_s1 + $0xb8c] ss:$16 sps:$4 sm:$0xff]  }
 0x13b   :  { %6811 = vmatpush1.bf16.msra.mxu0 %v10484_v29  ;;  %7659 = vmatpush1.bf16.msra.mxu1 %v10487_v30  ;;  %v10568_v29 = vld [vmem:[%s15147_s1 + $0xb80] ss:$16 sps:$4 sm:$0xff]   ;;  %v10571_v30 = vld [vmem:[%s15147_s1 + $0xb88] ss:$16 sps:$4 sm:$0xff]  }
 0x13c   :  { %6812 = vmatprep.subr.bf16.mxu0 %v10492_v31  ;;  %7660 = vmatprep.subr.bf16.mxu1 %v10495_v32  ;;  %v10576_v31 = vld [vmem:[%s15147_s1 + $0xba4] ss:$16 sps:$4 sm:$0xff]   ;;  %v10579_v32 = vld [vmem:[%s15147_s1 + $0xbac] ss:$16 sps:$4 sm:$0xff]  }
 0x13f   :  { %6813 = vmatpush1.bf16.msra.mxu0 %v10490_v34  ;;  %7661 = vmatpush1.bf16.msra.mxu1 %v10493_v36  ;;  %v10574_v34 = vld [vmem:[%s15147_s1 + $0xba0] ss:$16 sps:$4 sm:$0xff]   ;;  %v10577_v36 = vld [vmem:[%s15147_s1 + $0xba8] ss:$16 sps:$4 sm:$0xff]  }
 0x140   :  { %6835 = vmatprep.subr.bf16.mxu0 %v10498_v33  ;;  %7683 = vmatprep.subr.bf16.mxu1 %v10501_v35  ;;  %v10582_v33 = vld [vmem:[%s15147_s1 + $0xbc4] ss:$16 sps:$4 sm:$0xff]   ;;  %v10585_v35 = vld [vmem:[%s15147_s1 + $0xbcc] ss:$16 sps:$4 sm:$0xff]  }
 0x142   :  { %6815 = vmatmul.mubr.bf16.vlgmr.msra.gmra.mrb[0].mxu0 %v8663_v39  ;;  %7663 = vmatmul.mubr.bf16.vlgmr.msra.gmra.mrb[0].mxu1 %v8663_v39  ;;  %v10588_v39 = vld [vmem:[%s15147_s1 + $0xbe4] ss:$16 sps:$4 sm:$0xff]  }
 0x143   :  { %6836 = vmatpush1.bf16.msra.mxu0 %v10496_v40  ;;  %7684 = vmatpush1.bf16.msra.mxu1 %v10499_v42  ;;  %v10591_v40 = vld [vmem:[%s15147_s1 + $0xbec] ss:$16 sps:$4 sm:$0xff]   ;;  %v10586_v42 = vld [vmem:[%s15147_s1 + $0xbe0] ss:$16 sps:$4 sm:$0xff]  }
 0x144   :  { %6837 = vmatprep.subr.bf16.mxu0 %v10504_v44  ;;  %7685 = vmatprep.subr.bf16.mxu1 %v10507_v41  ;;  %v10589_v44 = vld [vmem:[%s15147_s1 + $0xbe8] ss:$16 sps:$4 sm:$0xff]   ;;  %v10594_v41 = vld [vmem:[%s15147_s1 + $0xc04] ss:$16 sps:$4 sm:$0xff]  }
 0x145   :  { %6824 = vmatprep.mubr.bf16.mxu0 %v8696_v46  ;;  %7672 = vmatprep.mubr.bf16.mxu1 %v8696_v46  ;;  %v73_v46 = vld [vmem:[%s15148_s0 + $0x1a8] sm:$0xff] }
 0x147   :  { %6838 = vmatpush1.bf16.msra.mxu0 %v10502_v43  ;;  %7686 = vmatpush1.bf16.msra.mxu1 %v10505_v45  ;;  %v10597_v43 = vld [vmem:[%s15147_s1 + $0xc0c] ss:$16 sps:$4 sm:$0xff]  }
 0x148   :  { %6839 = vmatprep.subr.bf16.mxu0 %v10510_v47  ;;  %7687 = vmatprep.subr.bf16.mxu1 %v10513_v48  ;;  %v57_v45 = vld [vmem:[%s15148_s0 + $0x128] sm:$0xff]  ;;  %v8665_v47 = vcombine.low %v12676_v49, %v12681_v50  ;;  %v10592_v48 = vld [vmem:[%s15147_s1 + $0xc00] ss:$16 sps:$4 sm:$0xff]  }
 0x149   :  { %v10603_v49 = vld [vmem:[%s15147_s1 + $0xc2c] ss:$16 sps:$4 sm:$0xff]   ;;  %v10598_v50 = vld [vmem:[%s15147_s1 + $0xc20] ss:$16 sps:$4 sm:$0xff]  }
 0x14a   :  { %6825 = vmatmul.mubr.bf16.gmra.mrb[4].mxu0 %v8695_v51  ;;  %7673 = vmatmul.mubr.bf16.gmra.mrb[4].mxu1 %v8695_v51  ;;  %v10595_v51 = vld [vmem:[%s15147_s1 + $0xc08] ss:$16 sps:$4 sm:$0xff]  }
 0x14b   :  { %6840 = vmatpush1.bf16.msra.mxu0 %v10508_v52  ;;  %7688 = vmatpush1.bf16.msra.mxu1 %v10511_v53  ;;  %v10600_v52 = vld [vmem:[%s15147_s1 + $0xc24] ss:$16 sps:$4 sm:$0xff]   ;;  %v10601_v53 = vld [vmem:[%s15147_s1 + $0xc28] ss:$16 sps:$4 sm:$0xff]  }
 0x14c   :  { %6841 = vmatprep.subr.bf16.mxu0 %v10516_v54  ;;  %7689 = vmatprep.subr.bf16.mxu1 %v10519_v55  ;;  %v8698_v54 = vcombine.high %v57_v45, %v73_v46  ;;  %v10606_v55 = vld [vmem:[%s15147_s1 + $0xc44] ss:$16 sps:$4 sm:$0xff]  }
 0x14d   :  { %6867 = vmatprep.mubr.bf16.mxu0 %v8666_v56  ;;  %7715 = vmatprep.mubr.bf16.mxu1 %v8666_v56  ;;  %v10609_v56 = vld [vmem:[%s15147_s1 + $0xc4c] ss:$16 sps:$4 sm:$0xff]  }
 0x14f   :  { %6842 = vmatpush1.bf16.msra.mxu0 %v10514_v57  ;;  %7690 = vmatpush1.bf16.msra.mxu1 %v10517_v58  ;;  %v12888_v57 = vld [vmem:[%s15148_s0 + $0x30] sm:$0xff] }
 0x150   :  { %6843 = vmatprep.subr.bf16.mxu0 %v10522_v59  ;;  %7691 = vmatprep.subr.bf16.mxu1 %v10525_v60  ;;  %v12893_v58 = vld [vmem:[%s15148_s0 + $0xb0] sm:$0xff]  ;;  %v8697_v59 = vcombine.low %v57_v45, %v73_v46  ;;  %v10679_v46 = vld [vmem:[%s15147_s1 + $0xdc8] ss:$16 sps:$4 sm:$0xff]  }
 0x151   :  { %v10604_v60 = vld [vmem:[%s15147_s1 + $0xc40] ss:$16 sps:$4 sm:$0xff]  }
 0x152   :  { %v10676_v45 = vld [vmem:[%s15147_s1 + $0xdc0] ss:$16 sps:$4 sm:$0xff]  }
 0x153   :  { %6844 = vmatpush1.bf16.msra.mxu0 %v10520_v61  ;;  %7692 = vmatpush1.bf16.msra.mxu1 %v10523_v62  ;;  %v10607_v61 = vld [vmem:[%s15147_s1 + $0xc48] ss:$16 sps:$4 sm:$0xff]   ;;  %v10612_v62 = vld [vmem:[%s15147_s1 + $0xc64] ss:$16 sps:$4 sm:$0xff]  }
 0x154   :  { %6845 = vmatprep.subr.bf16.mxu0 %v10528_v63  ;;  %7693 = vmatprep.subr.bf16.mxu1 %v10531_v0  ;;  %v10615_v63 = vld [vmem:[%s15147_s1 + $0xc6c] ss:$16 sps:$4 sm:$0xff]   ;;  %v8668_v0 = vcombine.high %v12888_v57, %v12893_v58 }
 0x157   :  { %6846 = vmatpush1.bf16.msra.mxu0 %v10526_v1  ;;  %7694 = vmatpush1.bf16.msra.mxu1 %v10529_v2  ;;  %v10610_v1 = vld [vmem:[%s15147_s1 + $0xc60] ss:$16 sps:$4 sm:$0xff]   ;;  %v10613_v2 = vld [vmem:[%s15147_s1 + $0xc68] ss:$16 sps:$4 sm:$0xff]  }
 0x158   :  { %6847 = vmatprep.subr.bf16.mxu0 %v10534_v3  ;;  %7695 = vmatprep.subr.bf16.mxu1 %v10537_v4  ;;  %v10618_v3 = vld [vmem:[%s15147_s1 + $0xc84] ss:$16 sps:$4 sm:$0xff]   ;;  %v10621_v4 = vld [vmem:[%s15147_s1 + $0xc8c] ss:$16 sps:$4 sm:$0xff]  }
 0x15b   :  { %6848 = vmatpush1.bf16.msra.mxu0 %v10532_v5  ;;  %7696 = vmatpush1.bf16.msra.mxu1 %v10535_v6  ;;  %v10616_v5 = vld [vmem:[%s15147_s1 + $0xc80] ss:$16 sps:$4 sm:$0xff]   ;;  %v10619_v6 = vld [vmem:[%s15147_s1 + $0xc88] ss:$16 sps:$4 sm:$0xff]  }
 0x15c   :  { %6849 = vmatprep.subr.bf16.mxu0 %v10540_v7  ;;  %7697 = vmatprep.subr.bf16.mxu1 %v10543_v8  ;;  %v10624_v7 = vld [vmem:[%s15147_s1 + $0xca4] ss:$16 sps:$4 sm:$0xff]   ;;  %v10627_v8 = vld [vmem:[%s15147_s1 + $0xcac] ss:$16 sps:$4 sm:$0xff]  }
 0x15f   :  { %6850 = vmatpush1.bf16.msra.mxu0 %v10538_v9  ;;  %7698 = vmatpush1.bf16.msra.mxu1 %v10541_v10  ;;  %v10622_v9 = vld [vmem:[%s15147_s1 + $0xca0] ss:$16 sps:$4 sm:$0xff]   ;;  %v10625_v10 = vld [vmem:[%s15147_s1 + $0xca8] ss:$16 sps:$4 sm:$0xff]  }
 0x160   :  { %6851 = vmatprep.subr.bf16.mxu0 %v10546_v11  ;;  %7699 = vmatprep.subr.bf16.mxu1 %v10549_v12  ;;  %v10630_v11 = vld [vmem:[%s15147_s1 + $0xcc4] ss:$16 sps:$4 sm:$0xff]   ;;  %v10633_v12 = vld [vmem:[%s15147_s1 + $0xccc] ss:$16 sps:$4 sm:$0xff]  }
 0x163   :  { %6852 = vmatpush1.bf16.msra.mxu0 %v10544_v13  ;;  %7700 = vmatpush1.bf16.msra.mxu1 %v10547_v14  ;;  %v10628_v13 = vld [vmem:[%s15147_s1 + $0xcc0] ss:$16 sps:$4 sm:$0xff]   ;;  %v10631_v14 = vld [vmem:[%s15147_s1 + $0xcc8] ss:$16 sps:$4 sm:$0xff]  }
 0x164   :  { %6853 = vmatprep.subr.bf16.mxu0 %v10552_v15  ;;  %7701 = vmatprep.subr.bf16.mxu1 %v10555_v16  ;;  %v10636_v15 = vld [vmem:[%s15147_s1 + $0xce4] ss:$16 sps:$4 sm:$0xff]   ;;  %v10639_v16 = vld [vmem:[%s15147_s1 + $0xcec] ss:$16 sps:$4 sm:$0xff]  }
 0x167   :  { %6854 = vmatpush1.bf16.msra.mxu0 %v10550_v17  ;;  %7702 = vmatpush1.bf16.msra.mxu1 %v10553_v18  ;;  %v10634_v17 = vld [vmem:[%s15147_s1 + $0xce0] ss:$16 sps:$4 sm:$0xff]   ;;  %v10637_v18 = vld [vmem:[%s15147_s1 + $0xce8] ss:$16 sps:$4 sm:$0xff]  }
 0x168   :  { %6855 = vmatprep.subr.bf16.mxu0 %v10558_v19  ;;  %7703 = vmatprep.subr.bf16.mxu1 %v10561_v20  ;;  %v10642_v19 = vld [vmem:[%s15147_s1 + $0xd04] ss:$16 sps:$4 sm:$0xff]   ;;  %v10645_v20 = vld [vmem:[%s15147_s1 + $0xd0c] ss:$16 sps:$4 sm:$0xff]  }
 0x16b   :  { %6856 = vmatpush1.bf16.msra.mxu0 %v10556_v21  ;;  %7704 = vmatpush1.bf16.msra.mxu1 %v10559_v22  ;;  %v10640_v21 = vld [vmem:[%s15147_s1 + $0xd00] ss:$16 sps:$4 sm:$0xff]   ;;  %v10643_v22 = vld [vmem:[%s15147_s1 + $0xd08] ss:$16 sps:$4 sm:$0xff]  }
 0x16c   :  { %6857 = vmatprep.subr.bf16.mxu0 %v10564_v23  ;;  %7705 = vmatprep.subr.bf16.mxu1 %v10567_v24  ;;  %v10648_v23 = vld [vmem:[%s15147_s1 + $0xd24] ss:$16 sps:$4 sm:$0xff]   ;;  %v10651_v24 = vld [vmem:[%s15147_s1 + $0xd2c] ss:$16 sps:$4 sm:$0xff]  }
 0x16f   :  { %6858 = vmatpush1.bf16.msra.mxu0 %v10562_v26  ;;  %7706 = vmatpush1.bf16.msra.mxu1 %v10565_v25  ;;  %v10646_v26 = vld [vmem:[%s15147_s1 + $0xd20] ss:$16 sps:$4 sm:$0xff]   ;;  %v10649_v25 = vld [vmem:[%s15147_s1 + $0xd28] ss:$16 sps:$4 sm:$0xff]  }
 0x170   :  { %6859 = vmatprep.subr.bf16.mxu0 %v10570_v27  ;;  %7707 = vmatprep.subr.bf16.mxu1 %v10573_v28  ;;  %v10654_v27 = vld [vmem:[%s15147_s1 + $0xd44] ss:$16 sps:$4 sm:$0xff]   ;;  %v10657_v28 = vld [vmem:[%s15147_s1 + $0xd4c] ss:$16 sps:$4 sm:$0xff]  }
 0x173   :  { %6860 = vmatpush1.bf16.msra.mxu0 %v10568_v29  ;;  %7708 = vmatpush1.bf16.msra.mxu1 %v10571_v30  ;;  %v10652_v29 = vld [vmem:[%s15147_s1 + $0xd40] ss:$16 sps:$4 sm:$0xff]   ;;  %v10655_v30 = vld [vmem:[%s15147_s1 + $0xd48] ss:$16 sps:$4 sm:$0xff]  }
 0x174   :  { %6861 = vmatprep.subr.bf16.mxu0 %v10576_v31  ;;  %7709 = vmatprep.subr.bf16.mxu1 %v10579_v32  ;;  %v10660_v31 = vld [vmem:[%s15147_s1 + $0xd64] ss:$16 sps:$4 sm:$0xff]   ;;  %v10663_v32 = vld [vmem:[%s15147_s1 + $0xd6c] ss:$16 sps:$4 sm:$0xff]  }
 0x177   :  { %6862 = vmatpush1.bf16.msra.mxu0 %v10574_v34  ;;  %7710 = vmatpush1.bf16.msra.mxu1 %v10577_v36  ;;  %v10658_v34 = vld [vmem:[%s15147_s1 + $0xd60] ss:$16 sps:$4 sm:$0xff]   ;;  %v10661_v36 = vld [vmem:[%s15147_s1 + $0xd68] ss:$16 sps:$4 sm:$0xff]  }
 0x178   :  { %6863 = vmatprep.subr.bf16.mxu0 %v10582_v33  ;;  %7711 = vmatprep.subr.bf16.mxu1 %v10585_v35  ;;  %v10666_v33 = vld [vmem:[%s15147_s1 + $0xd84] ss:$16 sps:$4 sm:$0xff]   ;;  %v10669_v35 = vld [vmem:[%s15147_s1 + $0xd8c] ss:$16 sps:$4 sm:$0xff]  }
 0x17b   :  { %6864 = vmatpush1.bf16.msra.mxu0 %v10580_v37  ;;  %7712 = vmatpush1.bf16.msra.mxu1 %v10583_v38  ;;  %v10664_v37 = vld [vmem:[%s15147_s1 + $0xd80] ss:$16 sps:$4 sm:$0xff]   ;;  %v10667_v38 = vld [vmem:[%s15147_s1 + $0xd88] ss:$16 sps:$4 sm:$0xff]  }
 0x17c   :  { %6865 = vmatprep.subr.bf16.mxu0 %v10588_v39  ;;  %7713 = vmatprep.subr.bf16.mxu1 %v10591_v40  ;;  %v10672_v39 = vld [vmem:[%s15147_s1 + $0xda4] ss:$16 sps:$4 sm:$0xff]   ;;  %v10675_v40 = vld [vmem:[%s15147_s1 + $0xdac] ss:$16 sps:$4 sm:$0xff]  }
 0x17f   :  { %6866 = vmatpush1.bf16.msra.mxu0 %v10586_v42  ;;  %7714 = vmatpush1.bf16.msra.mxu1 %v10589_v44  ;;  %v10670_v42 = vld [vmem:[%s15147_s1 + $0xda0] ss:$16 sps:$4 sm:$0xff]   ;;  %v10673_v44 = vld [vmem:[%s15147_s1 + $0xda8] ss:$16 sps:$4 sm:$0xff]  }
 0x180   :  { %6888 = vmatprep.subr.bf16.mxu0 %v10594_v41  ;;  %7736 = vmatprep.subr.bf16.mxu1 %v10597_v43  ;;  %v10678_v41 = vld [vmem:[%s15147_s1 + $0xdc4] ss:$16 sps:$4 sm:$0xff]   ;;  %v10681_v43 = vld [vmem:[%s15147_s1 + $0xdcc] ss:$16 sps:$4 sm:$0xff]  }
 0x182   :  { %6868 = vmatmul.mubr.bf16.vlgmr.msra.gmra.mrb[0].mxu0 %v8665_v47  ;;  %7716 = vmatmul.mubr.bf16.vlgmr.msra.gmra.mrb[0].mxu1 %v8665_v47  ;;  %v10684_v47 = vld [vmem:[%s15147_s1 + $0xde4] ss:$16 sps:$4 sm:$0xff]  }
 0x183   :  { %6889 = vmatpush1.bf16.msra.mxu0 %v10592_v48  ;;  %7737 = vmatpush1.bf16.msra.mxu1 %v10595_v51  ;;  %v10687_v48 = vld [vmem:[%s15147_s1 + $0xdec] ss:$16 sps:$4 sm:$0xff]   ;;  %v10682_v51 = vld [vmem:[%s15147_s1 + $0xde0] ss:$16 sps:$4 sm:$0xff]  }
 0x184   :  { %6890 = vmatprep.subr.bf16.mxu0 %v10600_v52  ;;  %7738 = vmatprep.subr.bf16.mxu1 %v10603_v49  ;;  %v10685_v52 = vld [vmem:[%s15147_s1 + $0xde8] ss:$16 sps:$4 sm:$0xff]   ;;  %v10690_v49 = vld [vmem:[%s15147_s1 + $0xe04] ss:$16 sps:$4 sm:$0xff]  }
 0x185   :  { %6877 = vmatprep.mubr.bf16.mxu0 %v8698_v54  ;;  %7725 = vmatprep.mubr.bf16.mxu1 %v8698_v54  ;;  %v74_v54 = vld [vmem:[%s15148_s0 + $0x1b0] sm:$0xff] }
 0x187   :  { %6891 = vmatpush1.bf16.msra.mxu0 %v10598_v50  ;;  %7739 = vmatpush1.bf16.msra.mxu1 %v10601_v53  ;;  %v10693_v50 = vld [vmem:[%s15147_s1 + $0xe0c] ss:$16 sps:$4 sm:$0xff]   ;;  %v58_v53 = vld [vmem:[%s15148_s0 + $0x130] sm:$0xff] }
 0x188   :  { %6892 = vmatprep.subr.bf16.mxu0 %v10606_v55  ;;  %7740 = vmatprep.subr.bf16.mxu1 %v10609_v56  ;;  %v8667_v55 = vcombine.low %v12888_v57, %v12893_v58  ;;  %v10688_v56 = vld [vmem:[%s15147_s1 + $0xe00] ss:$16 sps:$4 sm:$0xff]   ;;  %v10699_v57 = vld [vmem:[%s15147_s1 + $0xe2c] ss:$16 sps:$4 sm:$0xff]  }
 0x189   :  { %v10694_v58 = vld [vmem:[%s15147_s1 + $0xe20] ss:$16 sps:$4 sm:$0xff]  }
 0x18a   :  { %6878 = vmatmul.mubr.bf16.gmra.mrb[4].mxu0 %v8697_v59  ;;  %7726 = vmatmul.mubr.bf16.gmra.mrb[4].mxu1 %v8697_v59  ;;  %v10691_v59 = vld [vmem:[%s15147_s1 + $0xe08] ss:$16 sps:$4 sm:$0xff]  }
 0x18b   :  { %6893 = vmatpush1.bf16.msra.mxu0 %v10604_v60  ;;  %7741 = vmatpush1.bf16.msra.mxu1 %v10607_v61  ;;  %v10696_v60 = vld [vmem:[%s15147_s1 + $0xe24] ss:$16 sps:$4 sm:$0xff]   ;;  %v10697_v61 = vld [vmem:[%s15147_s1 + $0xe28] ss:$16 sps:$4 sm:$0xff]  }
 0x18c   :  { %6894 = vmatprep.subr.bf16.mxu0 %v10612_v62  ;;  %7742 = vmatprep.subr.bf16.mxu1 %v10615_v63  ;;  %v8700_v62 = vcombine.high %v58_v53, %v74_v54  ;;  %v10702_v63 = vld [vmem:[%s15147_s1 + $0xe44] ss:$16 sps:$4 sm:$0xff]  }
 0x18d   :  { %6920 = vmatprep.mubr.bf16.mxu0 %v8668_v0  ;;  %7768 = vmatprep.mubr.bf16.mxu1 %v8668_v0  ;;  %v10705_v0 = vld [vmem:[%s15147_s1 + $0xe4c] ss:$16 sps:$4 sm:$0xff]  }
 0x18f   :  { %6895 = vmatpush1.bf16.msra.mxu0 %v10610_v1  ;;  %7743 = vmatpush1.bf16.msra.mxu1 %v10613_v2  ;;  %v13100_v1 = vld [vmem:[%s15148_s0 + $0x38] sm:$0xff] }
 0x190   :  { %6896 = vmatprep.subr.bf16.mxu0 %v10618_v3  ;;  %7744 = vmatprep.subr.bf16.mxu1 %v10621_v4  ;;  %v13105_v2 = vld [vmem:[%s15148_s0 + $0xb8] sm:$0xff]  ;;  %v8699_v3 = vcombine.low %v58_v53, %v74_v54  ;;  %v10700_v4 = vld [vmem:[%s15147_s1 + $0xe40] ss:$16 sps:$4 sm:$0xff]  }
 0x191   :  { %v10772_v53 = vld [vmem:[%s15147_s1 + $0xfc0] ss:$16 sps:$4 sm:$0xff]   ;;  %v10775_v54 = vld [vmem:[%s15147_s1 + $0xfc8] ss:$16 sps:$4 sm:$0xff]  }
 0x193   :  { %6897 = vmatpush1.bf16.msra.mxu0 %v10616_v5  ;;  %7745 = vmatpush1.bf16.msra.mxu1 %v10619_v6  ;;  %v10703_v5 = vld [vmem:[%s15147_s1 + $0xe48] ss:$16 sps:$4 sm:$0xff]   ;;  %v10708_v6 = vld [vmem:[%s15147_s1 + $0xe64] ss:$16 sps:$4 sm:$0xff]  }
 0x194   :  { %6898 = vmatprep.subr.bf16.mxu0 %v10624_v7  ;;  %7746 = vmatprep.subr.bf16.mxu1 %v10627_v8  ;;  %v10711_v7 = vld [vmem:[%s15147_s1 + $0xe6c] ss:$16 sps:$4 sm:$0xff]   ;;  %v8670_v8 = vcombine.high %v13100_v1, %v13105_v2 }
 0x197   :  { %6899 = vmatpush1.bf16.msra.mxu0 %v10622_v9  ;;  %7747 = vmatpush1.bf16.msra.mxu1 %v10625_v10  ;;  %v10706_v9 = vld [vmem:[%s15147_s1 + $0xe60] ss:$16 sps:$4 sm:$0xff]   ;;  %v10709_v10 = vld [vmem:[%s15147_s1 + $0xe68] ss:$16 sps:$4 sm:$0xff]  }
 0x198   :  { %6900 = vmatprep.subr.bf16.mxu0 %v10630_v11  ;;  %7748 = vmatprep.subr.bf16.mxu1 %v10633_v12  ;;  %v10714_v11 = vld [vmem:[%s15147_s1 + $0xe84] ss:$16 sps:$4 sm:$0xff]   ;;  %v10717_v12 = vld [vmem:[%s15147_s1 + $0xe8c] ss:$16 sps:$4 sm:$0xff]  }
 0x19b   :  { %6901 = vmatpush1.bf16.msra.mxu0 %v10628_v13  ;;  %7749 = vmatpush1.bf16.msra.mxu1 %v10631_v14  ;;  %v10712_v13 = vld [vmem:[%s15147_s1 + $0xe80] ss:$16 sps:$4 sm:$0xff]   ;;  %v10715_v14 = vld [vmem:[%s15147_s1 + $0xe88] ss:$16 sps:$4 sm:$0xff]  }
 0x19c   :  { %6902 = vmatprep.subr.bf16.mxu0 %v10636_v15  ;;  %7750 = vmatprep.subr.bf16.mxu1 %v10639_v16  ;;  %v10720_v15 = vld [vmem:[%s15147_s1 + $0xea4] ss:$16 sps:$4 sm:$0xff]   ;;  %v10723_v16 = vld [vmem:[%s15147_s1 + $0xeac] ss:$16 sps:$4 sm:$0xff]  }
 0x19f   :  { %6903 = vmatpush1.bf16.msra.mxu0 %v10634_v17  ;;  %7751 = vmatpush1.bf16.msra.mxu1 %v10637_v18  ;;  %v10718_v17 = vld [vmem:[%s15147_s1 + $0xea0] ss:$16 sps:$4 sm:$0xff]   ;;  %v10721_v18 = vld [vmem:[%s15147_s1 + $0xea8] ss:$16 sps:$4 sm:$0xff]  }
 0x1a0   :  { %6904 = vmatprep.subr.bf16.mxu0 %v10642_v19  ;;  %7752 = vmatprep.subr.bf16.mxu1 %v10645_v20  ;;  %v10726_v19 = vld [vmem:[%s15147_s1 + $0xec4] ss:$16 sps:$4 sm:$0xff]   ;;  %v10729_v20 = vld [vmem:[%s15147_s1 + $0xecc] ss:$16 sps:$4 sm:$0xff]  }
 0x1a3   :  { %6905 = vmatpush1.bf16.msra.mxu0 %v10640_v21  ;;  %7753 = vmatpush1.bf16.msra.mxu1 %v10643_v22  ;;  %v10724_v21 = vld [vmem:[%s15147_s1 + $0xec0] ss:$16 sps:$4 sm:$0xff]   ;;  %v10727_v22 = vld [vmem:[%s15147_s1 + $0xec8] ss:$16 sps:$4 sm:$0xff]  }
 0x1a4   :  { %6906 = vmatprep.subr.bf16.mxu0 %v10648_v23  ;;  %7754 = vmatprep.subr.bf16.mxu1 %v10651_v24  ;;  %v10732_v23 = vld [vmem:[%s15147_s1 + $0xee4] ss:$16 sps:$4 sm:$0xff]   ;;  %v10735_v24 = vld [vmem:[%s15147_s1 + $0xeec] ss:$16 sps:$4 sm:$0xff]  }
 0x1a7   :  { %6907 = vmatpush1.bf16.msra.mxu0 %v10646_v26  ;;  %7755 = vmatpush1.bf16.msra.mxu1 %v10649_v25  ;;  %v10730_v26 = vld [vmem:[%s15147_s1 + $0xee0] ss:$16 sps:$4 sm:$0xff]   ;;  %v10733_v25 = vld [vmem:[%s15147_s1 + $0xee8] ss:$16 sps:$4 sm:$0xff]  }
 0x1a8   :  { %6908 = vmatprep.subr.bf16.mxu0 %v10654_v27  ;;  %7756 = vmatprep.subr.bf16.mxu1 %v10657_v28  ;;  %v10738_v27 = vld [vmem:[%s15147_s1 + $0xf04] ss:$16 sps:$4 sm:$0xff]   ;;  %v10741_v28 = vld [vmem:[%s15147_s1 + $0xf0c] ss:$16 sps:$4 sm:$0xff]  }
 0x1ab   :  { %6909 = vmatpush1.bf16.msra.mxu0 %v10652_v29  ;;  %7757 = vmatpush1.bf16.msra.mxu1 %v10655_v30  ;;  %v10736_v29 = vld [vmem:[%s15147_s1 + $0xf00] ss:$16 sps:$4 sm:$0xff]   ;;  %v10739_v30 = vld [vmem:[%s15147_s1 + $0xf08] ss:$16 sps:$4 sm:$0xff]  }
 0x1ac   :  { %6910 = vmatprep.subr.bf16.mxu0 %v10660_v31  ;;  %7758 = vmatprep.subr.bf16.mxu1 %v10663_v32  ;;  %v10744_v31 = vld [vmem:[%s15147_s1 + $0xf24] ss:$16 sps:$4 sm:$0xff]   ;;  %v10747_v32 = vld [vmem:[%s15147_s1 + $0xf2c] ss:$16 sps:$4 sm:$0xff]  }
 0x1af   :  { %6911 = vmatpush1.bf16.msra.mxu0 %v10658_v34  ;;  %7759 = vmatpush1.bf16.msra.mxu1 %v10661_v36  ;;  %v10742_v34 = vld [vmem:[%s15147_s1 + $0xf20] ss:$16 sps:$4 sm:$0xff]   ;;  %v10745_v36 = vld [vmem:[%s15147_s1 + $0xf28] ss:$16 sps:$4 sm:$0xff]  }
 0x1b0   :  { %6912 = vmatprep.subr.bf16.mxu0 %v10666_v33  ;;  %7760 = vmatprep.subr.bf16.mxu1 %v10669_v35  ;;  %v10750_v33 = vld [vmem:[%s15147_s1 + $0xf44] ss:$16 sps:$4 sm:$0xff]   ;;  %v10753_v35 = vld [vmem:[%s15147_s1 + $0xf4c] ss:$16 sps:$4 sm:$0xff]  }
 0x1b3   :  { %6913 = vmatpush1.bf16.msra.mxu0 %v10664_v37  ;;  %7761 = vmatpush1.bf16.msra.mxu1 %v10667_v38  ;;  %v10748_v37 = vld [vmem:[%s15147_s1 + $0xf40] ss:$16 sps:$4 sm:$0xff]   ;;  %v10751_v38 = vld [vmem:[%s15147_s1 + $0xf48] ss:$16 sps:$4 sm:$0xff]  }
 0x1b4   :  { %6914 = vmatprep.subr.bf16.mxu0 %v10672_v39  ;;  %7762 = vmatprep.subr.bf16.mxu1 %v10675_v40  ;;  %v10756_v39 = vld [vmem:[%s15147_s1 + $0xf64] ss:$16 sps:$4 sm:$0xff]   ;;  %v10759_v40 = vld [vmem:[%s15147_s1 + $0xf6c] ss:$16 sps:$4 sm:$0xff]  }
 0x1b7   :  { %6915 = vmatpush1.bf16.msra.mxu0 %v10670_v42  ;;  %7763 = vmatpush1.bf16.msra.mxu1 %v10673_v44  ;;  %v10754_v42 = vld [vmem:[%s15147_s1 + $0xf60] ss:$16 sps:$4 sm:$0xff]   ;;  %v10757_v44 = vld [vmem:[%s15147_s1 + $0xf68] ss:$16 sps:$4 sm:$0xff]  }
 0x1b8   :  { %6916 = vmatprep.subr.bf16.mxu0 %v10678_v41  ;;  %7764 = vmatprep.subr.bf16.mxu1 %v10681_v43  ;;  %v10762_v41 = vld [vmem:[%s15147_s1 + $0xf84] ss:$16 sps:$4 sm:$0xff]   ;;  %v10765_v43 = vld [vmem:[%s15147_s1 + $0xf8c] ss:$16 sps:$4 sm:$0xff]  }
 0x1bb   :  { %6917 = vmatpush1.bf16.msra.mxu0 %v10676_v45  ;;  %7765 = vmatpush1.bf16.msra.mxu1 %v10679_v46  ;;  %v10760_v45 = vld [vmem:[%s15147_s1 + $0xf80] ss:$16 sps:$4 sm:$0xff]   ;;  %v10763_v46 = vld [vmem:[%s15147_s1 + $0xf88] ss:$16 sps:$4 sm:$0xff]  }
 0x1bc   :  { %6918 = vmatprep.subr.bf16.mxu0 %v10684_v47  ;;  %7766 = vmatprep.subr.bf16.mxu1 %v10687_v48  ;;  %v10768_v47 = vld [vmem:[%s15147_s1 + $0xfa4] ss:$16 sps:$4 sm:$0xff]   ;;  %v10771_v48 = vld [vmem:[%s15147_s1 + $0xfac] ss:$16 sps:$4 sm:$0xff]  }
 0x1bf   :  { %6919 = vmatpush1.bf16.msra.mxu0 %v10682_v51  ;;  %7767 = vmatpush1.bf16.msra.mxu1 %v10685_v52  ;;  %v10766_v51 = vld [vmem:[%s15147_s1 + $0xfa0] ss:$16 sps:$4 sm:$0xff]   ;;  %v10769_v52 = vld [vmem:[%s15147_s1 + $0xfa8] ss:$16 sps:$4 sm:$0xff]  }
 0x1c0   :  { %6941 = vmatprep.subr.bf16.mxu0 %v10690_v49  ;;  %7789 = vmatprep.subr.bf16.mxu1 %v10693_v50  ;;  %v10774_v49 = vld [vmem:[%s15147_s1 + $0xfc4] ss:$16 sps:$4 sm:$0xff]   ;;  %v10777_v50 = vld [vmem:[%s15147_s1 + $0xfcc] ss:$16 sps:$4 sm:$0xff]  }
 0x1c2   :  { %6921 = vmatmul.mubr.bf16.vlgmr.msra.gmra.mrb[0].mxu0 %v8667_v55  ;;  %7769 = vmatmul.mubr.bf16.vlgmr.msra.gmra.mrb[0].mxu1 %v8667_v55  ;;  %v10780_v55 = vld [vmem:[%s15147_s1 + $0xfe4] ss:$16 sps:$4 sm:$0xff]  }
 0x1c3   :  { %6942 = vmatpush1.bf16.msra.mxu0 %v10688_v56  ;;  %7790 = vmatpush1.bf16.msra.mxu1 %v10691_v59  ;;  %v10783_v56 = vld [vmem:[%s15147_s1 + $0xfec] ss:$16 sps:$4 sm:$0xff]   ;;  %v10778_v59 = vld [vmem:[%s15147_s1 + $0xfe0] ss:$16 sps:$4 sm:$0xff]  }
 0x1c4   :  { %6943 = vmatprep.subr.bf16.mxu0 %v10696_v60  ;;  %7791 = vmatprep.subr.bf16.mxu1 %v10699_v57  ;;  %v10781_v60 = vld [vmem:[%s15147_s1 + $0xfe8] ss:$16 sps:$4 sm:$0xff]   ;;  %v10786_v57 = vld [vmem:[%s15147_s1 + $0x1004] ss:$16 sps:$4 sm:$0xff]  }
 0x1c5   :  { %6930 = vmatprep.mubr.bf16.mxu0 %v8700_v62  ;;  %7778 = vmatprep.mubr.bf16.mxu1 %v8700_v62  ;;  %v75_v62 = vld [vmem:[%s15148_s0 + $0x1b8] sm:$0xff] }
 0x1c7   :  { %6944 = vmatpush1.bf16.msra.mxu0 %v10694_v58  ;;  %7792 = vmatpush1.bf16.msra.mxu1 %v10697_v61  ;;  %v10789_v58 = vld [vmem:[%s15147_s1 + $0x100c] ss:$16 sps:$4 sm:$0xff]  }
 0x1c8   :  { %6945 = vmatprep.subr.bf16.mxu0 %v10702_v63  ;;  %7793 = vmatprep.subr.bf16.mxu1 %v10705_v0  ;;  %v59_v61 = vld [vmem:[%s15148_s0 + $0x138] sm:$0xff]  ;;  %v8669_v63 = vcombine.low %v13100_v1, %v13105_v2  ;;  %v10784_v0 = vld [vmem:[%s15147_s1 + $0x1000] ss:$16 sps:$4 sm:$0xff]  }
 0x1c9   :  { %v10795_v1 = vld [vmem:[%s15147_s1 + $0x102c] ss:$16 sps:$4 sm:$0xff]   ;;  %v10790_v2 = vld [vmem:[%s15147_s1 + $0x1020] ss:$16 sps:$4 sm:$0xff]  }
 0x1ca   :  { %6931 = vmatmul.mubr.bf16.gmra.mrb[4].mxu0 %v8699_v3  ;;  %7779 = vmatmul.mubr.bf16.gmra.mrb[4].mxu1 %v8699_v3  ;;  %v10787_v3 = vld [vmem:[%s15147_s1 + $0x1008] ss:$16 sps:$4 sm:$0xff]  }
 0x1cb   :  { %6946 = vmatpush1.bf16.msra.mxu0 %v10700_v4  ;;  %7794 = vmatpush1.bf16.msra.mxu1 %v10703_v5  ;;  %v10792_v4 = vld [vmem:[%s15147_s1 + $0x1024] ss:$16 sps:$4 sm:$0xff]   ;;  %v10793_v5 = vld [vmem:[%s15147_s1 + $0x1028] ss:$16 sps:$4 sm:$0xff]  }
 0x1cc   :  { %6947 = vmatprep.subr.bf16.mxu0 %v10708_v6  ;;  %7795 = vmatprep.subr.bf16.mxu1 %v10711_v7  ;;  %v8702_v6 = vcombine.high %v59_v61, %v75_v62  ;;  %v10798_v7 = vld [vmem:[%s15147_s1 + $0x1044] ss:$16 sps:$4 sm:$0xff]  }
 0x1cd   :  { %6973 = vmatprep.mubr.bf16.mxu0 %v8670_v8  ;;  %7821 = vmatprep.mubr.bf16.mxu1 %v8670_v8  ;;  %v10801_v8 = vld [vmem:[%s15147_s1 + $0x104c] ss:$16 sps:$4 sm:$0xff]  }
 0x1cf   :  { %6948 = vmatpush1.bf16.msra.mxu0 %v10706_v9  ;;  %7796 = vmatpush1.bf16.msra.mxu1 %v10709_v10  ;;  %v13312_v9 = vld [vmem:[%s15148_s0 + $0x40] sm:$0xff] }
 0x1d0   :  { %6949 = vmatprep.subr.bf16.mxu0 %v10714_v11  ;;  %7797 = vmatprep.subr.bf16.mxu1 %v10717_v12  ;;  %v13317_v10 = vld [vmem:[%s15148_s0 + $0xc0] sm:$0xff]  ;;  %v8701_v11 = vcombine.low %v59_v61, %v75_v62  ;;  %v10871_v62 = vld [vmem:[%s15147_s1 + $0x11c8] ss:$16 sps:$4 sm:$0xff]  }
 0x1d1   :  { %v10796_v12 = vld [vmem:[%s15147_s1 + $0x1040] ss:$16 sps:$4 sm:$0xff]  }
 0x1d2   :  { %v10868_v61 = vld [vmem:[%s15147_s1 + $0x11c0] ss:$16 sps:$4 sm:$0xff]  }
 0x1d3   :  { %6950 = vmatpush1.bf16.msra.mxu0 %v10712_v13  ;;  %7798 = vmatpush1.bf16.msra.mxu1 %v10715_v14  ;;  %v10799_v13 = vld [vmem:[%s15147_s1 + $0x1048] ss:$16 sps:$4 sm:$0xff]   ;;  %v10804_v14 = vld [vmem:[%s15147_s1 + $0x1064] ss:$16 sps:$4 sm:$0xff]  }
 0x1d4   :  { %6951 = vmatprep.subr.bf16.mxu0 %v10720_v15  ;;  %7799 = vmatprep.subr.bf16.mxu1 %v10723_v16  ;;  %v10807_v15 = vld [vmem:[%s15147_s1 + $0x106c] ss:$16 sps:$4 sm:$0xff]   ;;  %v8672_v16 = vcombine.high %v13312_v9, %v13317_v10 }
 0x1d7   :  { %6952 = vmatpush1.bf16.msra.mxu0 %v10718_v17  ;;  %7800 = vmatpush1.bf16.msra.mxu1 %v10721_v18  ;;  %v10802_v17 = vld [vmem:[%s15147_s1 + $0x1060] ss:$16 sps:$4 sm:$0xff]   ;;  %v10805_v18 = vld [vmem:[%s15147_s1 + $0x1068] ss:$16 sps:$4 sm:$0xff]  }
 0x1d8   :  { %6953 = vmatprep.subr.bf16.mxu0 %v10726_v19  ;;  %7801 = vmatprep.subr.bf16.mxu1 %v10729_v20  ;;  %v10810_v19 = vld [vmem:[%s15147_s1 + $0x1084] ss:$16 sps:$4 sm:$0xff]   ;;  %v10813_v20 = vld [vmem:[%s15147_s1 + $0x108c] ss:$16 sps:$4 sm:$0xff]  }
 0x1db   :  { %6954 = vmatpush1.bf16.msra.mxu0 %v10724_v21  ;;  %7802 = vmatpush1.bf16.msra.mxu1 %v10727_v22  ;;  %v10808_v21 = vld [vmem:[%s15147_s1 + $0x1080] ss:$16 sps:$4 sm:$0xff]   ;;  %v10811_v22 = vld [vmem:[%s15147_s1 + $0x1088] ss:$16 sps:$4 sm:$0xff]  }
 0x1dc   :  { %6955 = vmatprep.subr.bf16.mxu0 %v10732_v23  ;;  %7803 = vmatprep.subr.bf16.mxu1 %v10735_v24  ;;  %v10816_v23 = vld [vmem:[%s15147_s1 + $0x10a4] ss:$16 sps:$4 sm:$0xff]   ;;  %v10819_v24 = vld [vmem:[%s15147_s1 + $0x10ac] ss:$16 sps:$4 sm:$0xff]  }
 0x1df   :  { %6956 = vmatpush1.bf16.msra.mxu0 %v10730_v26  ;;  %7804 = vmatpush1.bf16.msra.mxu1 %v10733_v25  ;;  %v10814_v26 = vld [vmem:[%s15147_s1 + $0x10a0] ss:$16 sps:$4 sm:$0xff]   ;;  %v10817_v25 = vld [vmem:[%s15147_s1 + $0x10a8] ss:$16 sps:$4 sm:$0xff]  }
 0x1e0   :  { %6957 = vmatprep.subr.bf16.mxu0 %v10738_v27  ;;  %7805 = vmatprep.subr.bf16.mxu1 %v10741_v28  ;;  %v10822_v27 = vld [vmem:[%s15147_s1 + $0x10c4] ss:$16 sps:$4 sm:$0xff]   ;;  %v10825_v28 = vld [vmem:[%s15147_s1 + $0x10cc] ss:$16 sps:$4 sm:$0xff]  }
 0x1e3   :  { %6958 = vmatpush1.bf16.msra.mxu0 %v10736_v29  ;;  %7806 = vmatpush1.bf16.msra.mxu1 %v10739_v30  ;;  %v10820_v29 = vld [vmem:[%s15147_s1 + $0x10c0] ss:$16 sps:$4 sm:$0xff]   ;;  %v10823_v30 = vld [vmem:[%s15147_s1 + $0x10c8] ss:$16 sps:$4 sm:$0xff]  }
 0x1e4   :  { %6959 = vmatprep.subr.bf16.mxu0 %v10744_v31  ;;  %7807 = vmatprep.subr.bf16.mxu1 %v10747_v32  ;;  %v10828_v31 = vld [vmem:[%s15147_s1 + $0x10e4] ss:$16 sps:$4 sm:$0xff]   ;;  %v10831_v32 = vld [vmem:[%s15147_s1 + $0x10ec] ss:$16 sps:$4 sm:$0xff]  }
 0x1e7   :  { %6960 = vmatpush1.bf16.msra.mxu0 %v10742_v34  ;;  %7808 = vmatpush1.bf16.msra.mxu1 %v10745_v36  ;;  %v10826_v34 = vld [vmem:[%s15147_s1 + $0x10e0] ss:$16 sps:$4 sm:$0xff]   ;;  %v10829_v36 = vld [vmem:[%s15147_s1 + $0x10e8] ss:$16 sps:$4 sm:$0xff]  }
 0x1e8   :  { %6961 = vmatprep.subr.bf16.mxu0 %v10750_v33  ;;  %7809 = vmatprep.subr.bf16.mxu1 %v10753_v35  ;;  %v10834_v33 = vld [vmem:[%s15147_s1 + $0x1104] ss:$16 sps:$4 sm:$0xff]   ;;  %v10837_v35 = vld [vmem:[%s15147_s1 + $0x110c] ss:$16 sps:$4 sm:$0xff]  }
 0x1eb   :  { %6962 = vmatpush1.bf16.msra.mxu0 %v10748_v37  ;;  %7810 = vmatpush1.bf16.msra.mxu1 %v10751_v38  ;;  %v10832_v37 = vld [vmem:[%s15147_s1 + $0x1100] ss:$16 sps:$4 sm:$0xff]   ;;  %v10835_v38 = vld [vmem:[%s15147_s1 + $0x1108] ss:$16 sps:$4 sm:$0xff]  }
 0x1ec   :  { %6963 = vmatprep.subr.bf16.mxu0 %v10756_v39  ;;  %7811 = vmatprep.subr.bf16.mxu1 %v10759_v40  ;;  %v10840_v39 = vld [vmem:[%s15147_s1 + $0x1124] ss:$16 sps:$4 sm:$0xff]   ;;  %v10843_v40 = vld [vmem:[%s15147_s1 + $0x112c] ss:$16 sps:$4 sm:$0xff]  }
 0x1ef   :  { %6964 = vmatpush1.bf16.msra.mxu0 %v10754_v42  ;;  %7812 = vmatpush1.bf16.msra.mxu1 %v10757_v44  ;;  %v10838_v42 = vld [vmem:[%s15147_s1 + $0x1120] ss:$16 sps:$4 sm:$0xff]   ;;  %v10841_v44 = vld [vmem:[%s15147_s1 + $0x1128] ss:$16 sps:$4 sm:$0xff]  }
 0x1f0   :  { %6965 = vmatprep.subr.bf16.mxu0 %v10762_v41  ;;  %7813 = vmatprep.subr.bf16.mxu1 %v10765_v43  ;;  %v10846_v41 = vld [vmem:[%s15147_s1 + $0x1144] ss:$16 sps:$4 sm:$0xff]   ;;  %v10849_v43 = vld [vmem:[%s15147_s1 + $0x114c] ss:$16 sps:$4 sm:$0xff]  }
 0x1f3   :  { %6966 = vmatpush1.bf16.msra.mxu0 %v10760_v45  ;;  %7814 = vmatpush1.bf16.msra.mxu1 %v10763_v46  ;;  %v10844_v45 = vld [vmem:[%s15147_s1 + $0x1140] ss:$16 sps:$4 sm:$0xff]   ;;  %v10847_v46 = vld [vmem:[%s15147_s1 + $0x1148] ss:$16 sps:$4 sm:$0xff]  }
 0x1f4   :  { %6967 = vmatprep.subr.bf16.mxu0 %v10768_v47  ;;  %7815 = vmatprep.subr.bf16.mxu1 %v10771_v48  ;;  %v10852_v47 = vld [vmem:[%s15147_s1 + $0x1164] ss:$16 sps:$4 sm:$0xff]   ;;  %v10855_v48 = vld [vmem:[%s15147_s1 + $0x116c] ss:$16 sps:$4 sm:$0xff]  }
 0x1f7   :  { %6968 = vmatpush1.bf16.msra.mxu0 %v10766_v51  ;;  %7816 = vmatpush1.bf16.msra.mxu1 %v10769_v52  ;;  %v10850_v51 = vld [vmem:[%s15147_s1 + $0x1160] ss:$16 sps:$4 sm:$0xff]   ;;  %v10853_v52 = vld [vmem:[%s15147_s1 + $0x1168] ss:$16 sps:$4 sm:$0xff]  }
 0x1f8   :  { %6969 = vmatprep.subr.bf16.mxu0 %v10774_v49  ;;  %7817 = vmatprep.subr.bf16.mxu1 %v10777_v50  ;;  %v10858_v49 = vld [vmem:[%s15147_s1 + $0x1184] ss:$16 sps:$4 sm:$0xff]   ;;  %v10861_v50 = vld [vmem:[%s15147_s1 + $0x118c] ss:$16 sps:$4 sm:$0xff]  }
 0x1fb   :  { %6970 = vmatpush1.bf16.msra.mxu0 %v10772_v53  ;;  %7818 = vmatpush1.bf16.msra.mxu1 %v10775_v54  ;;  %v10856_v53 = vld [vmem:[%s15147_s1 + $0x1180] ss:$16 sps:$4 sm:$0xff]   ;;  %v10859_v54 = vld [vmem:[%s15147_s1 + $0x1188] ss:$16 sps:$4 sm:$0xff]  }
 0x1fc   :  { %6971 = vmatprep.subr.bf16.mxu0 %v10780_v55  ;;  %7819 = vmatprep.subr.bf16.mxu1 %v10783_v56  ;;  %v10864_v55 = vld [vmem:[%s15147_s1 + $0x11a4] ss:$16 sps:$4 sm:$0xff]   ;;  %v10867_v56 = vld [vmem:[%s15147_s1 + $0x11ac] ss:$16 sps:$4 sm:$0xff]  }
 0x1ff   :  { %6972 = vmatpush1.bf16.msra.mxu0 %v10778_v59  ;;  %7820 = vmatpush1.bf16.msra.mxu1 %v10781_v60  ;;  %v10862_v59 = vld [vmem:[%s15147_s1 + $0x11a0] ss:$16 sps:$4 sm:$0xff]   ;;  %v10865_v60 = vld [vmem:[%s15147_s1 + $0x11a8] ss:$16 sps:$4 sm:$0xff]  }
 0x200   :  { %6994 = vmatprep.subr.bf16.mxu0 %v10786_v57  ;;  %7842 = vmatprep.subr.bf16.mxu1 %v10789_v58  ;;  %v10870_v57 = vld [vmem:[%s15147_s1 + $0x11c4] ss:$16 sps:$4 sm:$0xff]   ;;  %v10873_v58 = vld [vmem:[%s15147_s1 + $0x11cc] ss:$16 sps:$4 sm:$0xff]  }
 0x202   :  { %6974 = vmatmul.mubr.bf16.vlgmr.msra.gmra.mrb[0].mxu0 %v8669_v63  ;;  %7822 = vmatmul.mubr.bf16.vlgmr.msra.gmra.mrb[0].mxu1 %v8669_v63  ;;  %v10876_v63 = vld [vmem:[%s15147_s1 + $0x11e4] ss:$16 sps:$4 sm:$0xff]  }
 0x203   :  { %6995 = vmatpush1.bf16.msra.mxu0 %v10784_v0  ;;  %7843 = vmatpush1.bf16.msra.mxu1 %v10787_v3  ;;  %v10879_v0 = vld [vmem:[%s15147_s1 + $0x11ec] ss:$16 sps:$4 sm:$0xff]   ;;  %v10874_v3 = vld [vmem:[%s15147_s1 + $0x11e0] ss:$16 sps:$4 sm:$0xff]  }
 0x204   :  { %6996 = vmatprep.subr.bf16.mxu0 %v10792_v4  ;;  %7844 = vmatprep.subr.bf16.mxu1 %v10795_v1  ;;  %v10877_v4 = vld [vmem:[%s15147_s1 + $0x11e8] ss:$16 sps:$4 sm:$0xff]   ;;  %v10882_v1 = vld [vmem:[%s15147_s1 + $0x1204] ss:$16 sps:$4 sm:$0xff]  }
 0x205   :  { %6983 = vmatprep.mubr.bf16.mxu0 %v8702_v6  ;;  %7831 = vmatprep.mubr.bf16.mxu1 %v8702_v6  ;;  %v76_v6 = vld [vmem:[%s15148_s0 + $0x1c0] sm:$0xff] }
 0x207   :  { %6997 = vmatpush1.bf16.msra.mxu0 %v10790_v2  ;;  %7845 = vmatpush1.bf16.msra.mxu1 %v10793_v5  ;;  %v10885_v2 = vld [vmem:[%s15147_s1 + $0x120c] ss:$16 sps:$4 sm:$0xff]   ;;  %v60_v5 = vld [vmem:[%s15148_s0 + $0x140] sm:$0xff] }
 0x208   :  { %6998 = vmatprep.subr.bf16.mxu0 %v10798_v7  ;;  %7846 = vmatprep.subr.bf16.mxu1 %v10801_v8  ;;  %v8671_v7 = vcombine.low %v13312_v9, %v13317_v10  ;;  %v10880_v8 = vld [vmem:[%s15147_s1 + $0x1200] ss:$16 sps:$4 sm:$0xff]   ;;  %v10891_v9 = vld [vmem:[%s15147_s1 + $0x122c] ss:$16 sps:$4 sm:$0xff]  }
 0x209   :  { %v10886_v10 = vld [vmem:[%s15147_s1 + $0x1220] ss:$16 sps:$4 sm:$0xff]  }
 0x20a   :  { %6984 = vmatmul.mubr.bf16.gmra.mrb[4].mxu0 %v8701_v11  ;;  %7832 = vmatmul.mubr.bf16.gmra.mrb[4].mxu1 %v8701_v11  ;;  %v10883_v11 = vld [vmem:[%s15147_s1 + $0x1208] ss:$16 sps:$4 sm:$0xff]  }
 0x20b   :  { %6999 = vmatpush1.bf16.msra.mxu0 %v10796_v12  ;;  %7847 = vmatpush1.bf16.msra.mxu1 %v10799_v13  ;;  %v10888_v12 = vld [vmem:[%s15147_s1 + $0x1224] ss:$16 sps:$4 sm:$0xff]   ;;  %v10889_v13 = vld [vmem:[%s15147_s1 + $0x1228] ss:$16 sps:$4 sm:$0xff]  }
 0x20c   :  { %7000 = vmatprep.subr.bf16.mxu0 %v10804_v14  ;;  %7848 = vmatprep.subr.bf16.mxu1 %v10807_v15  ;;  %v8704_v14 = vcombine.high %v60_v5, %v76_v6  ;;  %v10894_v15 = vld [vmem:[%s15147_s1 + $0x1244] ss:$16 sps:$4 sm:$0xff]  }
 0x20d   :  { %7026 = vmatprep.mubr.bf16.mxu0 %v8672_v16  ;;  %7874 = vmatprep.mubr.bf16.mxu1 %v8672_v16  ;;  %v10897_v16 = vld [vmem:[%s15147_s1 + $0x124c] ss:$16 sps:$4 sm:$0xff]  }
 0x20f   :  { %7001 = vmatpush1.bf16.msra.mxu0 %v10802_v17  ;;  %7849 = vmatpush1.bf16.msra.mxu1 %v10805_v18  ;;  %v13524_v17 = vld [vmem:[%s15148_s0 + $0x48] sm:$0xff] }
 0x210   :  { %7002 = vmatprep.subr.bf16.mxu0 %v10810_v19  ;;  %7850 = vmatprep.subr.bf16.mxu1 %v10813_v20  ;;  %v13529_v18 = vld [vmem:[%s15148_s0 + $0xc8] sm:$0xff]  ;;  %v8703_v19 = vcombine.low %v60_v5, %v76_v6  ;;  %v10892_v20 = vld [vmem:[%s15147_s1 + $0x1240] ss:$16 sps:$4 sm:$0xff]  }
 0x211   :  { %v10964_v5 = vld [vmem:[%s15147_s1 + $0x13c0] ss:$16 sps:$4 sm:$0xff]   ;;  %v10967_v6 = vld [vmem:[%s15147_s1 + $0x13c8] ss:$16 sps:$4 sm:$0xff]  }
 0x213   :  { %7003 = vmatpush1.bf16.msra.mxu0 %v10808_v21  ;;  %7851 = vmatpush1.bf16.msra.mxu1 %v10811_v22  ;;  %v10895_v21 = vld [vmem:[%s15147_s1 + $0x1248] ss:$16 sps:$4 sm:$0xff]   ;;  %v10900_v22 = vld [vmem:[%s15147_s1 + $0x1264] ss:$16 sps:$4 sm:$0xff]  }
 0x214   :  { %7004 = vmatprep.subr.bf16.mxu0 %v10816_v23  ;;  %7852 = vmatprep.subr.bf16.mxu1 %v10819_v24  ;;  %v10903_v23 = vld [vmem:[%s15147_s1 + $0x126c] ss:$16 sps:$4 sm:$0xff]   ;;  %v8674_v24 = vcombine.high %v13524_v17, %v13529_v18 }
 0x217   :  { %7005 = vmatpush1.bf16.msra.mxu0 %v10814_v26  ;;  %7853 = vmatpush1.bf16.msra.mxu1 %v10817_v25  ;;  %v10898_v26 = vld [vmem:[%s15147_s1 + $0x1260] ss:$16 sps:$4 sm:$0xff]   ;;  %v10901_v25 = vld [vmem:[%s15147_s1 + $0x1268] ss:$16 sps:$4 sm:$0xff]  }
 0x218   :  { %7006 = vmatprep.subr.bf16.mxu0 %v10822_v27  ;;  %7854 = vmatprep.subr.bf16.mxu1 %v10825_v28  ;;  %v10906_v27 = vld [vmem:[%s15147_s1 + $0x1284] ss:$16 sps:$4 sm:$0xff]   ;;  %v10909_v28 = vld [vmem:[%s15147_s1 + $0x128c] ss:$16 sps:$4 sm:$0xff]  }
 0x21b   :  { %7007 = vmatpush1.bf16.msra.mxu0 %v10820_v29  ;;  %7855 = vmatpush1.bf16.msra.mxu1 %v10823_v30  ;;  %v10904_v29 = vld [vmem:[%s15147_s1 + $0x1280] ss:$16 sps:$4 sm:$0xff]   ;;  %v10907_v30 = vld [vmem:[%s15147_s1 + $0x1288] ss:$16 sps:$4 sm:$0xff]  }
 0x21c   :  { %7008 = vmatprep.subr.bf16.mxu0 %v10828_v31  ;;  %7856 = vmatprep.subr.bf16.mxu1 %v10831_v32  ;;  %v10912_v31 = vld [vmem:[%s15147_s1 + $0x12a4] ss:$16 sps:$4 sm:$0xff]   ;;  %v10915_v32 = vld [vmem:[%s15147_s1 + $0x12ac] ss:$16 sps:$4 sm:$0xff]  }
 0x21f   :  { %7009 = vmatpush1.bf16.msra.mxu0 %v10826_v34  ;;  %7857 = vmatpush1.bf16.msra.mxu1 %v10829_v36  ;;  %v10910_v34 = vld [vmem:[%s15147_s1 + $0x12a0] ss:$16 sps:$4 sm:$0xff]   ;;  %v10913_v36 = vld [vmem:[%s15147_s1 + $0x12a8] ss:$16 sps:$4 sm:$0xff]  }
 0x220   :  { %7010 = vmatprep.subr.bf16.mxu0 %v10834_v33  ;;  %7858 = vmatprep.subr.bf16.mxu1 %v10837_v35  ;;  %v10918_v33 = vld [vmem:[%s15147_s1 + $0x12c4] ss:$16 sps:$4 sm:$0xff]   ;;  %v10921_v35 = vld [vmem:[%s15147_s1 + $0x12cc] ss:$16 sps:$4 sm:$0xff]  }
 0x223   :  { %7011 = vmatpush1.bf16.msra.mxu0 %v10832_v37  ;;  %7859 = vmatpush1.bf16.msra.mxu1 %v10835_v38  ;;  %v10916_v37 = vld [vmem:[%s15147_s1 + $0x12c0] ss:$16 sps:$4 sm:$0xff]   ;;  %v10919_v38 = vld [vmem:[%s15147_s1 + $0x12c8] ss:$16 sps:$4 sm:$0xff]  }
 0x224   :  { %7012 = vmatprep.subr.bf16.mxu0 %v10840_v39  ;;  %7860 = vmatprep.subr.bf16.mxu1 %v10843_v40  ;;  %v10924_v39 = vld [vmem:[%s15147_s1 + $0x12e4] ss:$16 sps:$4 sm:$0xff]   ;;  %v10927_v40 = vld [vmem:[%s15147_s1 + $0x12ec] ss:$16 sps:$4 sm:$0xff]  }
 0x227   :  { %7013 = vmatpush1.bf16.msra.mxu0 %v10838_v42  ;;  %7861 = vmatpush1.bf16.msra.mxu1 %v10841_v44  ;;  %v10922_v42 = vld [vmem:[%s15147_s1 + $0x12e0] ss:$16 sps:$4 sm:$0xff]   ;;  %v10925_v44 = vld [vmem:[%s15147_s1 + $0x12e8] ss:$16 sps:$4 sm:$0xff]  }
 0x228   :  { %7014 = vmatprep.subr.bf16.mxu0 %v10846_v41  ;;  %7862 = vmatprep.subr.bf16.mxu1 %v10849_v43  ;;  %v10930_v41 = vld [vmem:[%s15147_s1 + $0x1304] ss:$16 sps:$4 sm:$0xff]   ;;  %v10933_v43 = vld [vmem:[%s15147_s1 + $0x130c] ss:$16 sps:$4 sm:$0xff]  }
 0x22b   :  { %7015 = vmatpush1.bf16.msra.mxu0 %v10844_v45  ;;  %7863 = vmatpush1.bf16.msra.mxu1 %v10847_v46  ;;  %v10928_v45 = vld [vmem:[%s15147_s1 + $0x1300] ss:$16 sps:$4 sm:$0xff]   ;;  %v10931_v46 = vld [vmem:[%s15147_s1 + $0x1308] ss:$16 sps:$4 sm:$0xff]  }
 0x22c   :  { %7016 = vmatprep.subr.bf16.mxu0 %v10852_v47  ;;  %7864 = vmatprep.subr.bf16.mxu1 %v10855_v48  ;;  %v10936_v47 = vld [vmem:[%s15147_s1 + $0x1324] ss:$16 sps:$4 sm:$0xff]   ;;  %v10939_v48 = vld [vmem:[%s15147_s1 + $0x132c] ss:$16 sps:$4 sm:$0xff]  }
 0x22f   :  { %7017 = vmatpush1.bf16.msra.mxu0 %v10850_v51  ;;  %7865 = vmatpush1.bf16.msra.mxu1 %v10853_v52  ;;  %v10934_v51 = vld [vmem:[%s15147_s1 + $0x1320] ss:$16 sps:$4 sm:$0xff]   ;;  %v10937_v52 = vld [vmem:[%s15147_s1 + $0x1328] ss:$16 sps:$4 sm:$0xff]  }
 0x230   :  { %7018 = vmatprep.subr.bf16.mxu0 %v10858_v49  ;;  %7866 = vmatprep.subr.bf16.mxu1 %v10861_v50  ;;  %v10942_v49 = vld [vmem:[%s15147_s1 + $0x1344] ss:$16 sps:$4 sm:$0xff]   ;;  %v10945_v50 = vld [vmem:[%s15147_s1 + $0x134c] ss:$16 sps:$4 sm:$0xff]  }
 0x233   :  { %7019 = vmatpush1.bf16.msra.mxu0 %v10856_v53  ;;  %7867 = vmatpush1.bf16.msra.mxu1 %v10859_v54  ;;  %v10940_v53 = vld [vmem:[%s15147_s1 + $0x1340] ss:$16 sps:$4 sm:$0xff]   ;;  %v10943_v54 = vld [vmem:[%s15147_s1 + $0x1348] ss:$16 sps:$4 sm:$0xff]  }
 0x234   :  { %7020 = vmatprep.subr.bf16.mxu0 %v10864_v55  ;;  %7868 = vmatprep.subr.bf16.mxu1 %v10867_v56  ;;  %v10948_v55 = vld [vmem:[%s15147_s1 + $0x1364] ss:$16 sps:$4 sm:$0xff]   ;;  %v10951_v56 = vld [vmem:[%s15147_s1 + $0x136c] ss:$16 sps:$4 sm:$0xff]  }
 0x237   :  { %7021 = vmatpush1.bf16.msra.mxu0 %v10862_v59  ;;  %7869 = vmatpush1.bf16.msra.mxu1 %v10865_v60  ;;  %v10946_v59 = vld [vmem:[%s15147_s1 + $0x1360] ss:$16 sps:$4 sm:$0xff]   ;;  %v10949_v60 = vld [vmem:[%s15147_s1 + $0x1368] ss:$16 sps:$4 sm:$0xff]  }
 0x238   :  { %7022 = vmatprep.subr.bf16.mxu0 %v10870_v57  ;;  %7870 = vmatprep.subr.bf16.mxu1 %v10873_v58  ;;  %v10954_v57 = vld [vmem:[%s15147_s1 + $0x1384] ss:$16 sps:$4 sm:$0xff]   ;;  %v10957_v58 = vld [vmem:[%s15147_s1 + $0x138c] ss:$16 sps:$4 sm:$0xff]  }
 0x23b   :  { %7023 = vmatpush1.bf16.msra.mxu0 %v10868_v61  ;;  %7871 = vmatpush1.bf16.msra.mxu1 %v10871_v62  ;;  %v10952_v61 = vld [vmem:[%s15147_s1 + $0x1380] ss:$16 sps:$4 sm:$0xff]   ;;  %v10955_v62 = vld [vmem:[%s15147_s1 + $0x1388] ss:$16 sps:$4 sm:$0xff]  }
 0x23c   :  { %7024 = vmatprep.subr.bf16.mxu0 %v10876_v63  ;;  %7872 = vmatprep.subr.bf16.mxu1 %v10879_v0  ;;  %v10960_v63 = vld [vmem:[%s15147_s1 + $0x13a4] ss:$16 sps:$4 sm:$0xff]   ;;  %v10963_v0 = vld [vmem:[%s15147_s1 + $0x13ac] ss:$16 sps:$4 sm:$0xff]  }
 0x23f   :  { %7025 = vmatpush1.bf16.msra.mxu0 %v10874_v3  ;;  %7873 = vmatpush1.bf16.msra.mxu1 %v10877_v4  ;;  %v10958_v3 = vld [vmem:[%s15147_s1 + $0x13a0] ss:$16 sps:$4 sm:$0xff]   ;;  %v10961_v4 = vld [vmem:[%s15147_s1 + $0x13a8] ss:$16 sps:$4 sm:$0xff]  }
 0x240   :  { %7047 = vmatprep.subr.bf16.mxu0 %v10882_v1  ;;  %7895 = vmatprep.subr.bf16.mxu1 %v10885_v2  ;;  %v10966_v1 = vld [vmem:[%s15147_s1 + $0x13c4] ss:$16 sps:$4 sm:$0xff]   ;;  %v10969_v2 = vld [vmem:[%s15147_s1 + $0x13cc] ss:$16 sps:$4 sm:$0xff]  }
 0x242   :  { %7027 = vmatmul.mubr.bf16.vlgmr.msra.gmra.mrb[0].mxu0 %v8671_v7  ;;  %7875 = vmatmul.mubr.bf16.vlgmr.msra.gmra.mrb[0].mxu1 %v8671_v7  ;;  %v10972_v7 = vld [vmem:[%s15147_s1 + $0x13e4] ss:$16 sps:$4 sm:$0xff]  }
 0x243   :  { %7048 = vmatpush1.bf16.msra.mxu0 %v10880_v8  ;;  %7896 = vmatpush1.bf16.msra.mxu1 %v10883_v11  ;;  %v10975_v8 = vld [vmem:[%s15147_s1 + $0x13ec] ss:$16 sps:$4 sm:$0xff]   ;;  %v10970_v11 = vld [vmem:[%s15147_s1 + $0x13e0] ss:$16 sps:$4 sm:$0xff]  }
 0x244   :  { %7049 = vmatprep.subr.bf16.mxu0 %v10888_v12  ;;  %7897 = vmatprep.subr.bf16.mxu1 %v10891_v9  ;;  %v10973_v12 = vld [vmem:[%s15147_s1 + $0x13e8] ss:$16 sps:$4 sm:$0xff]   ;;  %v10978_v9 = vld [vmem:[%s15147_s1 + $0x1404] ss:$16 sps:$4 sm:$0xff]  }
 0x245   :  { %7036 = vmatprep.mubr.bf16.mxu0 %v8704_v14  ;;  %7884 = vmatprep.mubr.bf16.mxu1 %v8704_v14  ;;  %v61_v14 = vld [vmem:[%s15148_s0 + $0x148] sm:$0xff] }
 0x247   :  { %7050 = vmatpush1.bf16.msra.mxu0 %v10886_v10  ;;  %7898 = vmatpush1.bf16.msra.mxu1 %v10889_v13  ;;  %v10981_v10 = vld [vmem:[%s15147_s1 + $0x140c] ss:$16 sps:$4 sm:$0xff]   ;;  %v8673_v13 = vcombine.low %v13524_v17, %v13529_v18  ;;  %v10984_v17 = vld [vmem:[%s15147_s1 + $0x1424] ss:$16 sps:$4 sm:$0xff]  }
 0x248   :  { %7051 = vmatprep.subr.bf16.mxu0 %v10894_v15  ;;  %7899 = vmatprep.subr.bf16.mxu1 %v10897_v16  ;;  %v77_v15 = vld [vmem:[%s15148_s0 + $0x1c8] sm:$0xff]  ;;  %v10976_v16 = vld [vmem:[%s15147_s1 + $0x1400] ss:$16 sps:$4 sm:$0xff]  }
 0x249   :  { %v10987_v18 = vld [vmem:[%s15147_s1 + $0x142c] ss:$16 sps:$4 sm:$0xff]  }
 0x24a   :  { %7037 = vmatmul.mubr.bf16.gmra.mrb[4].mxu0 %v8703_v19  ;;  %7885 = vmatmul.mubr.bf16.gmra.mrb[4].mxu1 %v8703_v19  ;;  %v10979_v19 = vld [vmem:[%s15147_s1 + $0x1408] ss:$16 sps:$4 sm:$0xff]  }
 0x24b   :  { %7052 = vmatpush1.bf16.msra.mxu0 %v10892_v20  ;;  %7900 = vmatpush1.bf16.msra.mxu1 %v10895_v21  ;;  %v8706_v20 = vcombine.high %v61_v14, %v77_v15  ;;  %v10982_v21 = vld [vmem:[%s15147_s1 + $0x1420] ss:$16 sps:$4 sm:$0xff]  }
 0x24c   :  { %7053 = vmatprep.subr.bf16.mxu0 %v10900_v22  ;;  %7901 = vmatprep.subr.bf16.mxu1 %v10903_v23  ;;  %v10985_v22 = vld [vmem:[%s15147_s1 + $0x1428] ss:$16 sps:$4 sm:$0xff]   ;;  %v10990_v23 = vld [vmem:[%s15147_s1 + $0x1444] ss:$16 sps:$4 sm:$0xff]  }
 0x24d   :  { %7079 = vmatprep.mubr.bf16.mxu0 %v8674_v24  ;;  %7927 = vmatprep.mubr.bf16.mxu1 %v8674_v24  ;;  %v10993_v24 = vld [vmem:[%s15147_s1 + $0x144c] ss:$16 sps:$4 sm:$0xff]  }
 0x24f   :  { %7054 = vmatpush1.bf16.msra.mxu0 %v10898_v26  ;;  %7902 = vmatpush1.bf16.msra.mxu1 %v10901_v25  ;;  %v8705_v26 = vcombine.low %v61_v14, %v77_v15  ;;  %v13736_v25 = vld [vmem:[%s15148_s0 + $0x50] sm:$0xff]  ;;  %v11063_v14 = vld [vmem:[%s15147_s1 + $0x15c8] ss:$16 sps:$4 sm:$0xff]  }
 0x250   :  { %7055 = vmatprep.subr.bf16.mxu0 %v10906_v27  ;;  %7903 = vmatprep.subr.bf16.mxu1 %v10909_v28  ;;  %v13741_v27 = vld [vmem:[%s15148_s0 + $0xd0] sm:$0xff] }
 0x251   :  { %v10988_v28 = vld [vmem:[%s15147_s1 + $0x1440] ss:$16 sps:$4 sm:$0xff]   ;;  %v11068_v15 = vld [vmem:[%s15147_s1 + $0x15e4] ss:$16 sps:$4 sm:$0xff]  }
 0x253   :  { %7056 = vmatpush1.bf16.msra.mxu0 %v10904_v29  ;;  %7904 = vmatpush1.bf16.msra.mxu1 %v10907_v30  ;;  %v10991_v29 = vld [vmem:[%s15147_s1 + $0x1448] ss:$16 sps:$4 sm:$0xff]   ;;  %v10996_v30 = vld [vmem:[%s15147_s1 + $0x1464] ss:$16 sps:$4 sm:$0xff]  }
 0x254   :  { %7057 = vmatprep.subr.bf16.mxu0 %v10912_v31  ;;  %7905 = vmatprep.subr.bf16.mxu1 %v10915_v32  ;;  %v10999_v31 = vld [vmem:[%s15147_s1 + $0x146c] ss:$16 sps:$4 sm:$0xff]   ;;  %v8676_v32 = vcombine.high %v13736_v25, %v13741_v27 }
 0x257   :  { %7058 = vmatpush1.bf16.msra.mxu0 %v10910_v34  ;;  %7906 = vmatpush1.bf16.msra.mxu1 %v10913_v36  ;;  %v10994_v34 = vld [vmem:[%s15147_s1 + $0x1460] ss:$16 sps:$4 sm:$0xff]   ;;  %v10997_v36 = vld [vmem:[%s15147_s1 + $0x1468] ss:$16 sps:$4 sm:$0xff]  }
 0x258   :  { %7059 = vmatprep.subr.bf16.mxu0 %v10918_v33  ;;  %7907 = vmatprep.subr.bf16.mxu1 %v10921_v35  ;;  %v11002_v33 = vld [vmem:[%s15147_s1 + $0x1484] ss:$16 sps:$4 sm:$0xff]   ;;  %v11005_v35 = vld [vmem:[%s15147_s1 + $0x148c] ss:$16 sps:$4 sm:$0xff]  }
 0x25b   :  { %7060 = vmatpush1.bf16.msra.mxu0 %v10916_v37  ;;  %7908 = vmatpush1.bf16.msra.mxu1 %v10919_v38  ;;  %v11000_v37 = vld [vmem:[%s15147_s1 + $0x1480] ss:$16 sps:$4 sm:$0xff]   ;;  %v11003_v38 = vld [vmem:[%s15147_s1 + $0x1488] ss:$16 sps:$4 sm:$0xff]  }
 0x25c   :  { %7061 = vmatprep.subr.bf16.mxu0 %v10924_v39  ;;  %7909 = vmatprep.subr.bf16.mxu1 %v10927_v40  ;;  %v11008_v39 = vld [vmem:[%s15147_s1 + $0x14a4] ss:$16 sps:$4 sm:$0xff]   ;;  %v11011_v40 = vld [vmem:[%s15147_s1 + $0x14ac] ss:$16 sps:$4 sm:$0xff]  }
 0x25f   :  { %7062 = vmatpush1.bf16.msra.mxu0 %v10922_v42  ;;  %7910 = vmatpush1.bf16.msra.mxu1 %v10925_v44  ;;  %v11006_v42 = vld [vmem:[%s15147_s1 + $0x14a0] ss:$16 sps:$4 sm:$0xff]   ;;  %v11009_v44 = vld [vmem:[%s15147_s1 + $0x14a8] ss:$16 sps:$4 sm:$0xff]  }
 0x260   :  { %7063 = vmatprep.subr.bf16.mxu0 %v10930_v41  ;;  %7911 = vmatprep.subr.bf16.mxu1 %v10933_v43  ;;  %v11014_v41 = vld [vmem:[%s15147_s1 + $0x14c4] ss:$16 sps:$4 sm:$0xff]   ;;  %v11017_v43 = vld [vmem:[%s15147_s1 + $0x14cc] ss:$16 sps:$4 sm:$0xff]  }
 0x263   :  { %7064 = vmatpush1.bf16.msra.mxu0 %v10928_v45  ;;  %7912 = vmatpush1.bf16.msra.mxu1 %v10931_v46  ;;  %v11012_v45 = vld [vmem:[%s15147_s1 + $0x14c0] ss:$16 sps:$4 sm:$0xff]   ;;  %v11015_v46 = vld [vmem:[%s15147_s1 + $0x14c8] ss:$16 sps:$4 sm:$0xff]  }
 0x264   :  { %7065 = vmatprep.subr.bf16.mxu0 %v10936_v47  ;;  %7913 = vmatprep.subr.bf16.mxu1 %v10939_v48  ;;  %v11020_v47 = vld [vmem:[%s15147_s1 + $0x14e4] ss:$16 sps:$4 sm:$0xff]   ;;  %v11023_v48 = vld [vmem:[%s15147_s1 + $0x14ec] ss:$16 sps:$4 sm:$0xff]  }
 0x267   :  { %7066 = vmatpush1.bf16.msra.mxu0 %v10934_v51  ;;  %7914 = vmatpush1.bf16.msra.mxu1 %v10937_v52  ;;  %v11018_v51 = vld [vmem:[%s15147_s1 + $0x14e0] ss:$16 sps:$4 sm:$0xff]   ;;  %v11021_v52 = vld [vmem:[%s15147_s1 + $0x14e8] ss:$16 sps:$4 sm:$0xff]  }
 0x268   :  { %7067 = vmatprep.subr.bf16.mxu0 %v10942_v49  ;;  %7915 = vmatprep.subr.bf16.mxu1 %v10945_v50  ;;  %v11026_v49 = vld [vmem:[%s15147_s1 + $0x1504] ss:$16 sps:$4 sm:$0xff]   ;;  %v11029_v50 = vld [vmem:[%s15147_s1 + $0x150c] ss:$16 sps:$4 sm:$0xff]  }
 0x26b   :  { %7068 = vmatpush1.bf16.msra.mxu0 %v10940_v53  ;;  %7916 = vmatpush1.bf16.msra.mxu1 %v10943_v54  ;;  %v11024_v53 = vld [vmem:[%s15147_s1 + $0x1500] ss:$16 sps:$4 sm:$0xff]   ;;  %v11027_v54 = vld [vmem:[%s15147_s1 + $0x1508] ss:$16 sps:$4 sm:$0xff]  }
 0x26c   :  { %7069 = vmatprep.subr.bf16.mxu0 %v10948_v55  ;;  %7917 = vmatprep.subr.bf16.mxu1 %v10951_v56  ;;  %v11032_v55 = vld [vmem:[%s15147_s1 + $0x1524] ss:$16 sps:$4 sm:$0xff]   ;;  %v11035_v56 = vld [vmem:[%s15147_s1 + $0x152c] ss:$16 sps:$4 sm:$0xff]  }
 0x26f   :  { %7070 = vmatpush1.bf16.msra.mxu0 %v10946_v59  ;;  %7918 = vmatpush1.bf16.msra.mxu1 %v10949_v60  ;;  %v11030_v59 = vld [vmem:[%s15147_s1 + $0x1520] ss:$16 sps:$4 sm:$0xff]   ;;  %v11033_v60 = vld [vmem:[%s15147_s1 + $0x1528] ss:$16 sps:$4 sm:$0xff]  }
 0x270   :  { %7071 = vmatprep.subr.bf16.mxu0 %v10954_v57  ;;  %7919 = vmatprep.subr.bf16.mxu1 %v10957_v58  ;;  %v11038_v57 = vld [vmem:[%s15147_s1 + $0x1544] ss:$16 sps:$4 sm:$0xff]   ;;  %v11041_v58 = vld [vmem:[%s15147_s1 + $0x154c] ss:$16 sps:$4 sm:$0xff]  }
 0x273   :  { %7072 = vmatpush1.bf16.msra.mxu0 %v10952_v61  ;;  %7920 = vmatpush1.bf16.msra.mxu1 %v10955_v62  ;;  %v11036_v61 = vld [vmem:[%s15147_s1 + $0x1540] ss:$16 sps:$4 sm:$0xff]   ;;  %v11039_v62 = vld [vmem:[%s15147_s1 + $0x1548] ss:$16 sps:$4 sm:$0xff]  }
 0x274   :  { %7073 = vmatprep.subr.bf16.mxu0 %v10960_v63  ;;  %7921 = vmatprep.subr.bf16.mxu1 %v10963_v0  ;;  %v11044_v63 = vld [vmem:[%s15147_s1 + $0x1564] ss:$16 sps:$4 sm:$0xff]   ;;  %v11047_v0 = vld [vmem:[%s15147_s1 + $0x156c] ss:$16 sps:$4 sm:$0xff]  }
 0x277   :  { %7074 = vmatpush1.bf16.msra.mxu0 %v10958_v3  ;;  %7922 = vmatpush1.bf16.msra.mxu1 %v10961_v4  ;;  %v11042_v3 = vld [vmem:[%s15147_s1 + $0x1560] ss:$16 sps:$4 sm:$0xff]   ;;  %v11045_v4 = vld [vmem:[%s15147_s1 + $0x1568] ss:$16 sps:$4 sm:$0xff]  }
 0x278   :  { %7075 = vmatprep.subr.bf16.mxu0 %v10966_v1  ;;  %7923 = vmatprep.subr.bf16.mxu1 %v10969_v2  ;;  %v11050_v1 = vld [vmem:[%s15147_s1 + $0x1584] ss:$16 sps:$4 sm:$0xff]   ;;  %v11053_v2 = vld [vmem:[%s15147_s1 + $0x158c] ss:$16 sps:$4 sm:$0xff]  }
 0x27b   :  { %7076 = vmatpush1.bf16.msra.mxu0 %v10964_v5  ;;  %7924 = vmatpush1.bf16.msra.mxu1 %v10967_v6  ;;  %v11048_v5 = vld [vmem:[%s15147_s1 + $0x1580] ss:$16 sps:$4 sm:$0xff]   ;;  %v11051_v6 = vld [vmem:[%s15147_s1 + $0x1588] ss:$16 sps:$4 sm:$0xff]  }
 0x27c   :  { %7077 = vmatprep.subr.bf16.mxu0 %v10972_v7  ;;  %7925 = vmatprep.subr.bf16.mxu1 %v10975_v8  ;;  %v11056_v7 = vld [vmem:[%s15147_s1 + $0x15a4] ss:$16 sps:$4 sm:$0xff]   ;;  %v11059_v8 = vld [vmem:[%s15147_s1 + $0x15ac] ss:$16 sps:$4 sm:$0xff]  }
 0x27f   :  { %7078 = vmatpush1.bf16.msra.mxu0 %v10970_v11  ;;  %7926 = vmatpush1.bf16.msra.mxu1 %v10973_v12  ;;  %v11054_v11 = vld [vmem:[%s15147_s1 + $0x15a0] ss:$16 sps:$4 sm:$0xff]   ;;  %v11057_v12 = vld [vmem:[%s15147_s1 + $0x15a8] ss:$16 sps:$4 sm:$0xff]  }
 0x280   :  { %7100 = vmatprep.subr.bf16.mxu0 %v10978_v9  ;;  %7948 = vmatprep.subr.bf16.mxu1 %v10981_v10  ;;  %v11062_v9 = vld [vmem:[%s15147_s1 + $0x15c4] ss:$16 sps:$4 sm:$0xff]   ;;  %v11065_v10 = vld [vmem:[%s15147_s1 + $0x15cc] ss:$16 sps:$4 sm:$0xff]  }
 0x282   :  { %7080 = vmatmul.mubr.bf16.vlgmr.msra.gmra.mrb[0].mxu0 %v8673_v13  ;;  %7928 = vmatmul.mubr.bf16.vlgmr.msra.gmra.mrb[0].mxu1 %v8673_v13  ;;  %v11060_v13 = vld [vmem:[%s15147_s1 + $0x15c0] ss:$16 sps:$4 sm:$0xff]  }
 0x283   :  { %7101 = vmatpush1.bf16.msra.mxu0 %v10976_v16  ;;  %7949 = vmatpush1.bf16.msra.mxu1 %v10979_v19  ;;  %v11071_v16 = vld [vmem:[%s15147_s1 + $0x15ec] ss:$16 sps:$4 sm:$0xff]   ;;  %v11066_v19 = vld [vmem:[%s15147_s1 + $0x15e0] ss:$16 sps:$4 sm:$0xff]  }
 0x284   :  { %7102 = vmatprep.subr.bf16.mxu0 %v10984_v17  ;;  %7950 = vmatprep.subr.bf16.mxu1 %v10987_v18  ;;  %v11069_v17 = vld [vmem:[%s15147_s1 + $0x15e8] ss:$16 sps:$4 sm:$0xff]   ;;  %v11074_v18 = vld [vmem:[%s15147_s1 + $0x1604] ss:$16 sps:$4 sm:$0xff]  }
 0x285   :  { %7089 = vmatprep.mubr.bf16.mxu0 %v8706_v20  ;;  %7937 = vmatprep.mubr.bf16.mxu1 %v8706_v20  ;;  %v11077_v20 = vld [vmem:[%s15147_s1 + $0x160c] ss:$16 sps:$4 sm:$0xff]  }
 0x287   :  { %7103 = vmatpush1.bf16.msra.mxu0 %v10982_v21  ;;  %7951 = vmatpush1.bf16.msra.mxu1 %v10985_v22  ;;  %v8675_v21 = vcombine.low %v13736_v25, %v13741_v27  ;;  %v62_v22 = vld [vmem:[%s15148_s0 + $0x150] sm:$0xff]  ;;  %v11083_v27 = vld [vmem:[%s15147_s1 + $0x162c] ss:$16 sps:$4 sm:$0xff]  }
 0x288   :  { %7104 = vmatprep.subr.bf16.mxu0 %v10990_v23  ;;  %7952 = vmatprep.subr.bf16.mxu1 %v10993_v24  ;;  %v78_v23 = vld [vmem:[%s15148_s0 + $0x1d0] sm:$0xff] }
 0x289   :  { %v11072_v24 = vld [vmem:[%s15147_s1 + $0x1600] ss:$16 sps:$4 sm:$0xff]   ;;  %v11080_v25 = vld [vmem:[%s15147_s1 + $0x1624] ss:$16 sps:$4 sm:$0xff]  }
 0x28a   :  { %7090 = vmatmul.mubr.bf16.gmra.mrb[4].mxu0 %v8705_v26  ;;  %7938 = vmatmul.mubr.bf16.gmra.mrb[4].mxu1 %v8705_v26  ;;  %v11075_v26 = vld [vmem:[%s15147_s1 + $0x1608] ss:$16 sps:$4 sm:$0xff]  }
 0x28b   :  { %7105 = vmatpush1.bf16.msra.mxu0 %v10988_v28  ;;  %7953 = vmatpush1.bf16.msra.mxu1 %v10991_v29  ;;  %v8708_v28 = vcombine.high %v62_v22, %v78_v23  ;;  %v11078_v29 = vld [vmem:[%s15147_s1 + $0x1620] ss:$16 sps:$4 sm:$0xff]  }
 0x28c   :  { %7106 = vmatprep.subr.bf16.mxu0 %v10996_v30  ;;  %7954 = vmatprep.subr.bf16.mxu1 %v10999_v31  ;;  %v11081_v30 = vld [vmem:[%s15147_s1 + $0x1628] ss:$16 sps:$4 sm:$0xff]   ;;  %v11086_v31 = vld [vmem:[%s15147_s1 + $0x1644] ss:$16 sps:$4 sm:$0xff]  }
 0x28d   :  { %7132 = vmatprep.mubr.bf16.mxu0 %v8676_v32  ;;  %7980 = vmatprep.mubr.bf16.mxu1 %v8676_v32  ;;  %v11089_v32 = vld [vmem:[%s15147_s1 + $0x164c] ss:$16 sps:$4 sm:$0xff]  }
 0x28f   :  { %7107 = vmatpush1.bf16.msra.mxu0 %v10994_v34  ;;  %7955 = vmatpush1.bf16.msra.mxu1 %v10997_v36  ;;  %v8707_v34 = vcombine.low %v62_v22, %v78_v23  ;;  %v13948_v36 = vld [vmem:[%s15148_s0 + $0x58] sm:$0xff]  ;;  %v11164_v23 = vld [vmem:[%s15147_s1 + $0x17e4] ss:$16 sps:$4 sm:$0xff]  }
 0x290   :  { %7108 = vmatprep.subr.bf16.mxu0 %v11002_v33  ;;  %7956 = vmatprep.subr.bf16.mxu1 %v11005_v35  ;;  %v13953_v33 = vld [vmem:[%s15148_s0 + $0xd8] sm:$0xff]  ;;  %v11084_v35 = vld [vmem:[%s15147_s1 + $0x1640] ss:$16 sps:$4 sm:$0xff]  }
 0x291   :  { %v11159_v22 = vld [vmem:[%s15147_s1 + $0x17c8] ss:$16 sps:$4 sm:$0xff]  }
 0x293   :  { %7109 = vmatpush1.bf16.msra.mxu0 %v11000_v37  ;;  %7957 = vmatpush1.bf16.msra.mxu1 %v11003_v38  ;;  %v11087_v37 = vld [vmem:[%s15147_s1 + $0x1648] ss:$16 sps:$4 sm:$0xff]   ;;  %v11092_v38 = vld [vmem:[%s15147_s1 + $0x1664] ss:$16 sps:$4 sm:$0xff]  }
 0x294   :  { %7110 = vmatprep.subr.bf16.mxu0 %v11008_v39  ;;  %7958 = vmatprep.subr.bf16.mxu1 %v11011_v40  ;;  %v11095_v39 = vld [vmem:[%s15147_s1 + $0x166c] ss:$16 sps:$4 sm:$0xff]   ;;  %v8678_v40 = vcombine.high %v13948_v36, %v13953_v33 }
 0x297   :  { %7111 = vmatpush1.bf16.msra.mxu0 %v11006_v42  ;;  %7959 = vmatpush1.bf16.msra.mxu1 %v11009_v44  ;;  %v11090_v42 = vld [vmem:[%s15147_s1 + $0x1660] ss:$16 sps:$4 sm:$0xff]   ;;  %v11093_v44 = vld [vmem:[%s15147_s1 + $0x1668] ss:$16 sps:$4 sm:$0xff]  }
 0x298   :  { %7112 = vmatprep.subr.bf16.mxu0 %v11014_v41  ;;  %7960 = vmatprep.subr.bf16.mxu1 %v11017_v43  ;;  %v11098_v41 = vld [vmem:[%s15147_s1 + $0x1684] ss:$16 sps:$4 sm:$0xff]   ;;  %v11101_v43 = vld [vmem:[%s15147_s1 + $0x168c] ss:$16 sps:$4 sm:$0xff]  }
 0x29b   :  { %7113 = vmatpush1.bf16.msra.mxu0 %v11012_v45  ;;  %7961 = vmatpush1.bf16.msra.mxu1 %v11015_v46  ;;  %v11096_v45 = vld [vmem:[%s15147_s1 + $0x1680] ss:$16 sps:$4 sm:$0xff]   ;;  %v11099_v46 = vld [vmem:[%s15147_s1 + $0x1688] ss:$16 sps:$4 sm:$0xff]  }
 0x29c   :  { %7114 = vmatprep.subr.bf16.mxu0 %v11020_v47  ;;  %7962 = vmatprep.subr.bf16.mxu1 %v11023_v48  ;;  %v11104_v47 = vld [vmem:[%s15147_s1 + $0x16a4] ss:$16 sps:$4 sm:$0xff]   ;;  %v11107_v48 = vld [vmem:[%s15147_s1 + $0x16ac] ss:$16 sps:$4 sm:$0xff]  }
 0x29f   :  { %7115 = vmatpush1.bf16.msra.mxu0 %v11018_v51  ;;  %7963 = vmatpush1.bf16.msra.mxu1 %v11021_v52  ;;  %v11102_v51 = vld [vmem:[%s15147_s1 + $0x16a0] ss:$16 sps:$4 sm:$0xff]   ;;  %v11105_v52 = vld [vmem:[%s15147_s1 + $0x16a8] ss:$16 sps:$4 sm:$0xff]  }
 0x2a0   :  { %7116 = vmatprep.subr.bf16.mxu0 %v11026_v49  ;;  %7964 = vmatprep.subr.bf16.mxu1 %v11029_v50  ;;  %v11110_v49 = vld [vmem:[%s15147_s1 + $0x16c4] ss:$16 sps:$4 sm:$0xff]   ;;  %v11113_v50 = vld [vmem:[%s15147_s1 + $0x16cc] ss:$16 sps:$4 sm:$0xff]  }
 0x2a3   :  { %7117 = vmatpush1.bf16.msra.mxu0 %v11024_v53  ;;  %7965 = vmatpush1.bf16.msra.mxu1 %v11027_v54  ;;  %v11108_v53 = vld [vmem:[%s15147_s1 + $0x16c0] ss:$16 sps:$4 sm:$0xff]   ;;  %v11111_v54 = vld [vmem:[%s15147_s1 + $0x16c8] ss:$16 sps:$4 sm:$0xff]  }
 0x2a4   :  { %7118 = vmatprep.subr.bf16.mxu0 %v11032_v55  ;;  %7966 = vmatprep.subr.bf16.mxu1 %v11035_v56  ;;  %v11116_v55 = vld [vmem:[%s15147_s1 + $0x16e4] ss:$16 sps:$4 sm:$0xff]   ;;  %v11119_v56 = vld [vmem:[%s15147_s1 + $0x16ec] ss:$16 sps:$4 sm:$0xff]  }
 0x2a7   :  { %7119 = vmatpush1.bf16.msra.mxu0 %v11030_v59  ;;  %7967 = vmatpush1.bf16.msra.mxu1 %v11033_v60  ;;  %v11114_v59 = vld [vmem:[%s15147_s1 + $0x16e0] ss:$16 sps:$4 sm:$0xff]   ;;  %v11117_v60 = vld [vmem:[%s15147_s1 + $0x16e8] ss:$16 sps:$4 sm:$0xff]  }
 0x2a8   :  { %7120 = vmatprep.subr.bf16.mxu0 %v11038_v57  ;;  %7968 = vmatprep.subr.bf16.mxu1 %v11041_v58  ;;  %v11122_v57 = vld [vmem:[%s15147_s1 + $0x1704] ss:$16 sps:$4 sm:$0xff]   ;;  %v11125_v58 = vld [vmem:[%s15147_s1 + $0x170c] ss:$16 sps:$4 sm:$0xff]  }
 0x2ab   :  { %7121 = vmatpush1.bf16.msra.mxu0 %v11036_v61  ;;  %7969 = vmatpush1.bf16.msra.mxu1 %v11039_v62  ;;  %v11120_v61 = vld [vmem:[%s15147_s1 + $0x1700] ss:$16 sps:$4 sm:$0xff]   ;;  %v11123_v62 = vld [vmem:[%s15147_s1 + $0x1708] ss:$16 sps:$4 sm:$0xff]  }
 0x2ac   :  { %7122 = vmatprep.subr.bf16.mxu0 %v11044_v63  ;;  %7970 = vmatprep.subr.bf16.mxu1 %v11047_v0  ;;  %v11128_v63 = vld [vmem:[%s15147_s1 + $0x1724] ss:$16 sps:$4 sm:$0xff]   ;;  %v11131_v0 = vld [vmem:[%s15147_s1 + $0x172c] ss:$16 sps:$4 sm:$0xff]  }
 0x2af   :  { %7123 = vmatpush1.bf16.msra.mxu0 %v11042_v3  ;;  %7971 = vmatpush1.bf16.msra.mxu1 %v11045_v4  ;;  %v11126_v3 = vld [vmem:[%s15147_s1 + $0x1720] ss:$16 sps:$4 sm:$0xff]   ;;  %v11129_v4 = vld [vmem:[%s15147_s1 + $0x1728] ss:$16 sps:$4 sm:$0xff]  }
 0x2b0   :  { %7124 = vmatprep.subr.bf16.mxu0 %v11050_v1  ;;  %7972 = vmatprep.subr.bf16.mxu1 %v11053_v2  ;;  %v11134_v1 = vld [vmem:[%s15147_s1 + $0x1744] ss:$16 sps:$4 sm:$0xff]   ;;  %v11137_v2 = vld [vmem:[%s15147_s1 + $0x174c] ss:$16 sps:$4 sm:$0xff]  }
 0x2b3   :  { %7125 = vmatpush1.bf16.msra.mxu0 %v11048_v5  ;;  %7973 = vmatpush1.bf16.msra.mxu1 %v11051_v6  ;;  %v11132_v5 = vld [vmem:[%s15147_s1 + $0x1740] ss:$16 sps:$4 sm:$0xff]   ;;  %v11135_v6 = vld [vmem:[%s15147_s1 + $0x1748] ss:$16 sps:$4 sm:$0xff]  }
 0x2b4   :  { %7126 = vmatprep.subr.bf16.mxu0 %v11056_v7  ;;  %7974 = vmatprep.subr.bf16.mxu1 %v11059_v8  ;;  %v11140_v7 = vld [vmem:[%s15147_s1 + $0x1764] ss:$16 sps:$4 sm:$0xff]   ;;  %v11143_v8 = vld [vmem:[%s15147_s1 + $0x176c] ss:$16 sps:$4 sm:$0xff]  }
 0x2b7   :  { %7127 = vmatpush1.bf16.msra.mxu0 %v11054_v11  ;;  %7975 = vmatpush1.bf16.msra.mxu1 %v11057_v12  ;;  %v11138_v11 = vld [vmem:[%s15147_s1 + $0x1760] ss:$16 sps:$4 sm:$0xff]   ;;  %v11141_v12 = vld [vmem:[%s15147_s1 + $0x1768] ss:$16 sps:$4 sm:$0xff]  }
 0x2b8   :  { %7128 = vmatprep.subr.bf16.mxu0 %v11062_v9  ;;  %7976 = vmatprep.subr.bf16.mxu1 %v11065_v10  ;;  %v11146_v9 = vld [vmem:[%s15147_s1 + $0x1784] ss:$16 sps:$4 sm:$0xff]   ;;  %v11149_v10 = vld [vmem:[%s15147_s1 + $0x178c] ss:$16 sps:$4 sm:$0xff]  }
 0x2bb   :  { %7129 = vmatpush1.bf16.msra.mxu0 %v11060_v13  ;;  %7977 = vmatpush1.bf16.msra.mxu1 %v11063_v14  ;;  %v11144_v13 = vld [vmem:[%s15147_s1 + $0x1780] ss:$16 sps:$4 sm:$0xff]   ;;  %v11147_v14 = vld [vmem:[%s15147_s1 + $0x1788] ss:$16 sps:$4 sm:$0xff]  }
 0x2bc   :  { %7130 = vmatprep.subr.bf16.mxu0 %v11068_v15  ;;  %7978 = vmatprep.subr.bf16.mxu1 %v11071_v16  ;;  %v11152_v15 = vld [vmem:[%s15147_s1 + $0x17a4] ss:$16 sps:$4 sm:$0xff]   ;;  %v11155_v16 = vld [vmem:[%s15147_s1 + $0x17ac] ss:$16 sps:$4 sm:$0xff]  }
 0x2bf   :  { %7131 = vmatpush1.bf16.msra.mxu0 %v11066_v19  ;;  %7979 = vmatpush1.bf16.msra.mxu1 %v11069_v17  ;;  %v11150_v19 = vld [vmem:[%s15147_s1 + $0x17a0] ss:$16 sps:$4 sm:$0xff]   ;;  %v11153_v17 = vld [vmem:[%s15147_s1 + $0x17a8] ss:$16 sps:$4 sm:$0xff]  }
 0x2c0   :  { %7153 = vmatprep.subr.bf16.mxu0 %v11074_v18  ;;  %8001 = vmatprep.subr.bf16.mxu1 %v11077_v20  ;;  %v11158_v18 = vld [vmem:[%s15147_s1 + $0x17c4] ss:$16 sps:$4 sm:$0xff]   ;;  %v11161_v20 = vld [vmem:[%s15147_s1 + $0x17cc] ss:$16 sps:$4 sm:$0xff]  }
 0x2c2   :  { %7133 = vmatmul.mubr.bf16.vlgmr.msra.gmra.mrb[0].mxu0 %v8675_v21  ;;  %7981 = vmatmul.mubr.bf16.vlgmr.msra.gmra.mrb[0].mxu1 %v8675_v21  ;;  %v11156_v21 = vld [vmem:[%s15147_s1 + $0x17c0] ss:$16 sps:$4 sm:$0xff]  }
 0x2c3   :  { %7154 = vmatpush1.bf16.msra.mxu0 %v11072_v24  ;;  %8002 = vmatpush1.bf16.msra.mxu1 %v11075_v26  ;;  %v11167_v24 = vld [vmem:[%s15147_s1 + $0x17ec] ss:$16 sps:$4 sm:$0xff]   ;;  %v11162_v26 = vld [vmem:[%s15147_s1 + $0x17e0] ss:$16 sps:$4 sm:$0xff]  }
 0x2c4   :  { %7155 = vmatprep.subr.bf16.mxu0 %v11080_v25  ;;  %8003 = vmatprep.subr.bf16.mxu1 %v11083_v27  ;;  %v11165_v25 = vld [vmem:[%s15147_s1 + $0x17e8] ss:$16 sps:$4 sm:$0xff]   ;;  %v11170_v27 = vld [vmem:[%s15147_s1 + $0x1804] ss:$16 sps:$4 sm:$0xff]  }
 0x2c5   :  { %7142 = vmatprep.mubr.bf16.mxu0 %v8708_v28  ;;  %7990 = vmatprep.mubr.bf16.mxu1 %v8708_v28  ;;  %v11173_v28 = vld [vmem:[%s15147_s1 + $0x180c] ss:$16 sps:$4 sm:$0xff]  }
 0x2c7   :  { %7156 = vmatpush1.bf16.msra.mxu0 %v11078_v29  ;;  %8004 = vmatpush1.bf16.msra.mxu1 %v11081_v30  ;;  %v8677_v29 = vcombine.low %v13948_v36, %v13953_v33  ;;  %v63_v30 = vld [vmem:[%s15148_s0 + $0x158] sm:$0xff]  ;;  %v11176_v36 = vld [vmem:[%s15147_s1 + $0x1824] ss:$16 sps:$4 sm:$0xff]  }
 0x2c8   :  { %7157 = vmatprep.subr.bf16.mxu0 %v11086_v31  ;;  %8005 = vmatprep.subr.bf16.mxu1 %v11089_v32  ;;  %v79_v31 = vld [vmem:[%s15148_s0 + $0x1d8] sm:$0xff]  ;;  %v11168_v32 = vld [vmem:[%s15147_s1 + $0x1800] ss:$16 sps:$4 sm:$0xff]  }
 0x2c9   :  { %v11179_v33 = vld [vmem:[%s15147_s1 + $0x182c] ss:$16 sps:$4 sm:$0xff]  }
 0x2ca   :  { %7143 = vmatmul.mubr.bf16.gmra.mrb[4].mxu0 %v8707_v34  ;;  %7991 = vmatmul.mubr.bf16.gmra.mrb[4].mxu1 %v8707_v34  ;;  %v11171_v34 = vld [vmem:[%s15147_s1 + $0x1808] ss:$16 sps:$4 sm:$0xff]  }
 0x2cb   :  { %7158 = vmatpush1.bf16.msra.mxu0 %v11084_v35  ;;  %8006 = vmatpush1.bf16.msra.mxu1 %v11087_v37  ;;  %v8710_v35 = vcombine.high %v63_v30, %v79_v31  ;;  %v11174_v37 = vld [vmem:[%s15147_s1 + $0x1820] ss:$16 sps:$4 sm:$0xff]  }
 0x2cc   :  { %7159 = vmatprep.subr.bf16.mxu0 %v11092_v38  ;;  %8007 = vmatprep.subr.bf16.mxu1 %v11095_v39  ;;  %v11177_v38 = vld [vmem:[%s15147_s1 + $0x1828] ss:$16 sps:$4 sm:$0xff]   ;;  %v11182_v39 = vld [vmem:[%s15147_s1 + $0x1844] ss:$16 sps:$4 sm:$0xff]  }
 0x2cd   :  { %7185 = vmatprep.mubr.bf16.mxu0 %v8678_v40  ;;  %8033 = vmatprep.mubr.bf16.mxu1 %v8678_v40  ;;  %v11185_v40 = vld [vmem:[%s15147_s1 + $0x184c] ss:$16 sps:$4 sm:$0xff]  }
 0x2cf   :  { %7160 = vmatpush1.bf16.msra.mxu0 %v11090_v42  ;;  %8008 = vmatpush1.bf16.msra.mxu1 %v11093_v44  ;;  %v8709_v42 = vcombine.low %v63_v30, %v79_v31  ;;  %v14160_v44 = vld [vmem:[%s15148_s0 + $0x60] sm:$0xff]  ;;  %v11255_v30 = vld [vmem:[%s15147_s1 + $0x19c8] ss:$16 sps:$4 sm:$0xff]  }
 0x2d0   :  { %7161 = vmatprep.subr.bf16.mxu0 %v11098_v41  ;;  %8009 = vmatprep.subr.bf16.mxu1 %v11101_v43  ;;  %v14165_v41 = vld [vmem:[%s15148_s0 + $0xe0] sm:$0xff] }
 0x2d1   :  { %v11180_v43 = vld [vmem:[%s15147_s1 + $0x1840] ss:$16 sps:$4 sm:$0xff]   ;;  %v11260_v31 = vld [vmem:[%s15147_s1 + $0x19e4] ss:$16 sps:$4 sm:$0xff]  }
 0x2d3   :  { %7162 = vmatpush1.bf16.msra.mxu0 %v11096_v45  ;;  %8010 = vmatpush1.bf16.msra.mxu1 %v11099_v46  ;;  %v11183_v45 = vld [vmem:[%s15147_s1 + $0x1848] ss:$16 sps:$4 sm:$0xff]   ;;  %v11188_v46 = vld [vmem:[%s15147_s1 + $0x1864] ss:$16 sps:$4 sm:$0xff]  }
 0x2d4   :  { %7163 = vmatprep.subr.bf16.mxu0 %v11104_v47  ;;  %8011 = vmatprep.subr.bf16.mxu1 %v11107_v48  ;;  %v11191_v47 = vld [vmem:[%s15147_s1 + $0x186c] ss:$16 sps:$4 sm:$0xff]   ;;  %v8680_v48 = vcombine.high %v14160_v44, %v14165_v41 }
 0x2d7   :  { %7164 = vmatpush1.bf16.msra.mxu0 %v11102_v51  ;;  %8012 = vmatpush1.bf16.msra.mxu1 %v11105_v52  ;;  %v11186_v51 = vld [vmem:[%s15147_s1 + $0x1860] ss:$16 sps:$4 sm:$0xff]   ;;  %v11189_v52 = vld [vmem:[%s15147_s1 + $0x1868] ss:$16 sps:$4 sm:$0xff]  }
 0x2d8   :  { %7165 = vmatprep.subr.bf16.mxu0 %v11110_v49  ;;  %8013 = vmatprep.subr.bf16.mxu1 %v11113_v50  ;;  %v11194_v49 = vld [vmem:[%s15147_s1 + $0x1884] ss:$16 sps:$4 sm:$0xff]   ;;  %v11197_v50 = vld [vmem:[%s15147_s1 + $0x188c] ss:$16 sps:$4 sm:$0xff]  }
 0x2db   :  { %7166 = vmatpush1.bf16.msra.mxu0 %v11108_v53  ;;  %8014 = vmatpush1.bf16.msra.mxu1 %v11111_v54  ;;  %v11192_v53 = vld [vmem:[%s15147_s1 + $0x1880] ss:$16 sps:$4 sm:$0xff]   ;;  %v11195_v54 = vld [vmem:[%s15147_s1 + $0x1888] ss:$16 sps:$4 sm:$0xff]  }
 0x2dc   :  { %7167 = vmatprep.subr.bf16.mxu0 %v11116_v55  ;;  %8015 = vmatprep.subr.bf16.mxu1 %v11119_v56  ;;  %v11200_v55 = vld [vmem:[%s15147_s1 + $0x18a4] ss:$16 sps:$4 sm:$0xff]   ;;  %v11203_v56 = vld [vmem:[%s15147_s1 + $0x18ac] ss:$16 sps:$4 sm:$0xff]  }
 0x2df   :  { %7168 = vmatpush1.bf16.msra.mxu0 %v11114_v59  ;;  %8016 = vmatpush1.bf16.msra.mxu1 %v11117_v60  ;;  %v11198_v59 = vld [vmem:[%s15147_s1 + $0x18a0] ss:$16 sps:$4 sm:$0xff]   ;;  %v11201_v60 = vld [vmem:[%s15147_s1 + $0x18a8] ss:$16 sps:$4 sm:$0xff]  }
 0x2e0   :  { %7169 = vmatprep.subr.bf16.mxu0 %v11122_v57  ;;  %8017 = vmatprep.subr.bf16.mxu1 %v11125_v58  ;;  %v11206_v57 = vld [vmem:[%s15147_s1 + $0x18c4] ss:$16 sps:$4 sm:$0xff]   ;;  %v11209_v58 = vld [vmem:[%s15147_s1 + $0x18cc] ss:$16 sps:$4 sm:$0xff]  }
 0x2e3   :  { %7170 = vmatpush1.bf16.msra.mxu0 %v11120_v61  ;;  %8018 = vmatpush1.bf16.msra.mxu1 %v11123_v62  ;;  %v11204_v61 = vld [vmem:[%s15147_s1 + $0x18c0] ss:$16 sps:$4 sm:$0xff]   ;;  %v11207_v62 = vld [vmem:[%s15147_s1 + $0x18c8] ss:$16 sps:$4 sm:$0xff]  }
 0x2e4   :  { %7171 = vmatprep.subr.bf16.mxu0 %v11128_v63  ;;  %8019 = vmatprep.subr.bf16.mxu1 %v11131_v0  ;;  %v11212_v63 = vld [vmem:[%s15147_s1 + $0x18e4] ss:$16 sps:$4 sm:$0xff]   ;;  %v11215_v0 = vld [vmem:[%s15147_s1 + $0x18ec] ss:$16 sps:$4 sm:$0xff]  }
 0x2e7   :  { %7172 = vmatpush1.bf16.msra.mxu0 %v11126_v3  ;;  %8020 = vmatpush1.bf16.msra.mxu1 %v11129_v4  ;;  %v11210_v3 = vld [vmem:[%s15147_s1 + $0x18e0] ss:$16 sps:$4 sm:$0xff]   ;;  %v11213_v4 = vld [vmem:[%s15147_s1 + $0x18e8] ss:$16 sps:$4 sm:$0xff]  }
 0x2e8   :  { %7173 = vmatprep.subr.bf16.mxu0 %v11134_v1  ;;  %8021 = vmatprep.subr.bf16.mxu1 %v11137_v2  ;;  %v11218_v1 = vld [vmem:[%s15147_s1 + $0x1904] ss:$16 sps:$4 sm:$0xff]   ;;  %v11221_v2 = vld [vmem:[%s15147_s1 + $0x190c] ss:$16 sps:$4 sm:$0xff]  }
 0x2eb   :  { %7174 = vmatpush1.bf16.msra.mxu0 %v11132_v5  ;;  %8022 = vmatpush1.bf16.msra.mxu1 %v11135_v6  ;;  %v11216_v5 = vld [vmem:[%s15147_s1 + $0x1900] ss:$16 sps:$4 sm:$0xff]   ;;  %v11219_v6 = vld [vmem:[%s15147_s1 + $0x1908] ss:$16 sps:$4 sm:$0xff]  }
 0x2ec   :  { %7175 = vmatprep.subr.bf16.mxu0 %v11140_v7  ;;  %8023 = vmatprep.subr.bf16.mxu1 %v11143_v8  ;;  %v11224_v7 = vld [vmem:[%s15147_s1 + $0x1924] ss:$16 sps:$4 sm:$0xff]   ;;  %v11227_v8 = vld [vmem:[%s15147_s1 + $0x192c] ss:$16 sps:$4 sm:$0xff]  }
 0x2ef   :  { %7176 = vmatpush1.bf16.msra.mxu0 %v11138_v11  ;;  %8024 = vmatpush1.bf16.msra.mxu1 %v11141_v12  ;;  %v11222_v11 = vld [vmem:[%s15147_s1 + $0x1920] ss:$16 sps:$4 sm:$0xff]   ;;  %v11225_v12 = vld [vmem:[%s15147_s1 + $0x1928] ss:$16 sps:$4 sm:$0xff]  }
 0x2f0   :  { %7177 = vmatprep.subr.bf16.mxu0 %v11146_v9  ;;  %8025 = vmatprep.subr.bf16.mxu1 %v11149_v10  ;;  %v11230_v9 = vld [vmem:[%s15147_s1 + $0x1944] ss:$16 sps:$4 sm:$0xff]   ;;  %v11233_v10 = vld [vmem:[%s15147_s1 + $0x194c] ss:$16 sps:$4 sm:$0xff]  }
 0x2f3   :  { %7178 = vmatpush1.bf16.msra.mxu0 %v11144_v13  ;;  %8026 = vmatpush1.bf16.msra.mxu1 %v11147_v14  ;;  %v11228_v13 = vld [vmem:[%s15147_s1 + $0x1940] ss:$16 sps:$4 sm:$0xff]   ;;  %v11231_v14 = vld [vmem:[%s15147_s1 + $0x1948] ss:$16 sps:$4 sm:$0xff]  }
 0x2f4   :  { %7179 = vmatprep.subr.bf16.mxu0 %v11152_v15  ;;  %8027 = vmatprep.subr.bf16.mxu1 %v11155_v16  ;;  %v11236_v15 = vld [vmem:[%s15147_s1 + $0x1964] ss:$16 sps:$4 sm:$0xff]   ;;  %v11239_v16 = vld [vmem:[%s15147_s1 + $0x196c] ss:$16 sps:$4 sm:$0xff]  }
 0x2f7   :  { %7180 = vmatpush1.bf16.msra.mxu0 %v11150_v19  ;;  %8028 = vmatpush1.bf16.msra.mxu1 %v11153_v17  ;;  %v11234_v19 = vld [vmem:[%s15147_s1 + $0x1960] ss:$16 sps:$4 sm:$0xff]   ;;  %v11237_v17 = vld [vmem:[%s15147_s1 + $0x1968] ss:$16 sps:$4 sm:$0xff]  }
 0x2f8   :  { %7181 = vmatprep.subr.bf16.mxu0 %v11158_v18  ;;  %8029 = vmatprep.subr.bf16.mxu1 %v11161_v20  ;;  %v11242_v18 = vld [vmem:[%s15147_s1 + $0x1984] ss:$16 sps:$4 sm:$0xff]   ;;  %v11245_v20 = vld [vmem:[%s15147_s1 + $0x198c] ss:$16 sps:$4 sm:$0xff]  }
 0x2fb   :  { %7182 = vmatpush1.bf16.msra.mxu0 %v11156_v21  ;;  %8030 = vmatpush1.bf16.msra.mxu1 %v11159_v22  ;;  %v11240_v21 = vld [vmem:[%s15147_s1 + $0x1980] ss:$16 sps:$4 sm:$0xff]   ;;  %v11243_v22 = vld [vmem:[%s15147_s1 + $0x1988] ss:$16 sps:$4 sm:$0xff]  }
 0x2fc   :  { %7183 = vmatprep.subr.bf16.mxu0 %v11164_v23  ;;  %8031 = vmatprep.subr.bf16.mxu1 %v11167_v24  ;;  %v11248_v23 = vld [vmem:[%s15147_s1 + $0x19a4] ss:$16 sps:$4 sm:$0xff]   ;;  %v11251_v24 = vld [vmem:[%s15147_s1 + $0x19ac] ss:$16 sps:$4 sm:$0xff]  }
 0x2ff   :  { %7184 = vmatpush1.bf16.msra.mxu0 %v11162_v26  ;;  %8032 = vmatpush1.bf16.msra.mxu1 %v11165_v25  ;;  %v11246_v26 = vld [vmem:[%s15147_s1 + $0x19a0] ss:$16 sps:$4 sm:$0xff]   ;;  %v11249_v25 = vld [vmem:[%s15147_s1 + $0x19a8] ss:$16 sps:$4 sm:$0xff]  }
 0x300   :  { %7206 = vmatprep.subr.bf16.mxu0 %v11170_v27  ;;  %8054 = vmatprep.subr.bf16.mxu1 %v11173_v28  ;;  %v11254_v27 = vld [vmem:[%s15147_s1 + $0x19c4] ss:$16 sps:$4 sm:$0xff]   ;;  %v11257_v28 = vld [vmem:[%s15147_s1 + $0x19cc] ss:$16 sps:$4 sm:$0xff]  }
 0x302   :  { %7186 = vmatmul.mubr.bf16.vlgmr.msra.gmra.mrb[0].mxu0 %v8677_v29  ;;  %8034 = vmatmul.mubr.bf16.vlgmr.msra.gmra.mrb[0].mxu1 %v8677_v29  ;;  %v11252_v29 = vld [vmem:[%s15147_s1 + $0x19c0] ss:$16 sps:$4 sm:$0xff]  }
 0x303   :  { %7207 = vmatpush1.bf16.msra.mxu0 %v11168_v32  ;;  %8055 = vmatpush1.bf16.msra.mxu1 %v11171_v34  ;;  %v11263_v32 = vld [vmem:[%s15147_s1 + $0x19ec] ss:$16 sps:$4 sm:$0xff]   ;;  %v11258_v34 = vld [vmem:[%s15147_s1 + $0x19e0] ss:$16 sps:$4 sm:$0xff]  }
 0x304   :  { %7208 = vmatprep.subr.bf16.mxu0 %v11176_v36  ;;  %8056 = vmatprep.subr.bf16.mxu1 %v11179_v33  ;;  %v11261_v36 = vld [vmem:[%s15147_s1 + $0x19e8] ss:$16 sps:$4 sm:$0xff]   ;;  %v11266_v33 = vld [vmem:[%s15147_s1 + $0x1a04] ss:$16 sps:$4 sm:$0xff]  }
 0x305   :  { %7195 = vmatprep.mubr.bf16.mxu0 %v8710_v35  ;;  %8043 = vmatprep.mubr.bf16.mxu1 %v8710_v35  ;;  %v11269_v35 = vld [vmem:[%s15147_s1 + $0x1a0c] ss:$16 sps:$4 sm:$0xff]  }
 0x307   :  { %7209 = vmatpush1.bf16.msra.mxu0 %v11174_v37  ;;  %8057 = vmatpush1.bf16.msra.mxu1 %v11177_v38  ;;  %v8679_v37 = vcombine.low %v14160_v44, %v14165_v41  ;;  %v64_v38 = vld [vmem:[%s15148_s0 + $0x160] sm:$0xff]  ;;  %v11275_v41 = vld [vmem:[%s15147_s1 + $0x1a2c] ss:$16 sps:$4 sm:$0xff]  }
 0x308   :  { %7210 = vmatprep.subr.bf16.mxu0 %v11182_v39  ;;  %8058 = vmatprep.subr.bf16.mxu1 %v11185_v40  ;;  %v80_v39 = vld [vmem:[%s15148_s0 + $0x1e0] sm:$0xff] }
 0x309   :  { %v11264_v40 = vld [vmem:[%s15147_s1 + $0x1a00] ss:$16 sps:$4 sm:$0xff]   ;;  %v11272_v44 = vld [vmem:[%s15147_s1 + $0x1a24] ss:$16 sps:$4 sm:$0xff]  }
 0x30a   :  { %7196 = vmatmul.mubr.bf16.gmra.mrb[4].mxu0 %v8709_v42  ;;  %8044 = vmatmul.mubr.bf16.gmra.mrb[4].mxu1 %v8709_v42  ;;  %v11267_v42 = vld [vmem:[%s15147_s1 + $0x1a08] ss:$16 sps:$4 sm:$0xff]  }
 0x30b   :  { %7211 = vmatpush1.bf16.msra.mxu0 %v11180_v43  ;;  %8059 = vmatpush1.bf16.msra.mxu1 %v11183_v45  ;;  %v8712_v43 = vcombine.high %v64_v38, %v80_v39  ;;  %v11270_v45 = vld [vmem:[%s15147_s1 + $0x1a20] ss:$16 sps:$4 sm:$0xff]  }
 0x30c   :  { %7212 = vmatprep.subr.bf16.mxu0 %v11188_v46  ;;  %8060 = vmatprep.subr.bf16.mxu1 %v11191_v47  ;;  %v11273_v46 = vld [vmem:[%s15147_s1 + $0x1a28] ss:$16 sps:$4 sm:$0xff]   ;;  %v11278_v47 = vld [vmem:[%s15147_s1 + $0x1a44] ss:$16 sps:$4 sm:$0xff]  }
 0x30d   :  { %7238 = vmatprep.mubr.bf16.mxu0 %v8680_v48  ;;  %8086 = vmatprep.mubr.bf16.mxu1 %v8680_v48  ;;  %v11281_v48 = vld [vmem:[%s15147_s1 + $0x1a4c] ss:$16 sps:$4 sm:$0xff]  }
 0x30f   :  { %7213 = vmatpush1.bf16.msra.mxu0 %v11186_v51  ;;  %8061 = vmatpush1.bf16.msra.mxu1 %v11189_v52  ;;  %v8711_v51 = vcombine.low %v64_v38, %v80_v39  ;;  %v14372_v52 = vld [vmem:[%s15148_s0 + $0x68] sm:$0xff]  ;;  %v11356_v39 = vld [vmem:[%s15147_s1 + $0x1be4] ss:$16 sps:$4 sm:$0xff]  }
 0x310   :  { %7214 = vmatprep.subr.bf16.mxu0 %v11194_v49  ;;  %8062 = vmatprep.subr.bf16.mxu1 %v11197_v50  ;;  %v14377_v49 = vld [vmem:[%s15148_s0 + $0xe8] sm:$0xff]  ;;  %v11276_v50 = vld [vmem:[%s15147_s1 + $0x1a40] ss:$16 sps:$4 sm:$0xff]  }
 0x311   :  { %v11351_v38 = vld [vmem:[%s15147_s1 + $0x1bc8] ss:$16 sps:$4 sm:$0xff]  }
 0x313   :  { %7215 = vmatpush1.bf16.msra.mxu0 %v11192_v53  ;;  %8063 = vmatpush1.bf16.msra.mxu1 %v11195_v54  ;;  %v11279_v53 = vld [vmem:[%s15147_s1 + $0x1a48] ss:$16 sps:$4 sm:$0xff]   ;;  %v11284_v54 = vld [vmem:[%s15147_s1 + $0x1a64] ss:$16 sps:$4 sm:$0xff]  }
 0x314   :  { %7216 = vmatprep.subr.bf16.mxu0 %v11200_v55  ;;  %8064 = vmatprep.subr.bf16.mxu1 %v11203_v56  ;;  %v11287_v55 = vld [vmem:[%s15147_s1 + $0x1a6c] ss:$16 sps:$4 sm:$0xff]   ;;  %v8682_v56 = vcombine.high %v14372_v52, %v14377_v49 }
 0x317   :  { %7217 = vmatpush1.bf16.msra.mxu0 %v11198_v59  ;;  %8065 = vmatpush1.bf16.msra.mxu1 %v11201_v60  ;;  %v11282_v59 = vld [vmem:[%s15147_s1 + $0x1a60] ss:$16 sps:$4 sm:$0xff]   ;;  %v11285_v60 = vld [vmem:[%s15147_s1 + $0x1a68] ss:$16 sps:$4 sm:$0xff]  }
 0x318   :  { %7218 = vmatprep.subr.bf16.mxu0 %v11206_v57  ;;  %8066 = vmatprep.subr.bf16.mxu1 %v11209_v58  ;;  %v11290_v57 = vld [vmem:[%s15147_s1 + $0x1a84] ss:$16 sps:$4 sm:$0xff]   ;;  %v11293_v58 = vld [vmem:[%s15147_s1 + $0x1a8c] ss:$16 sps:$4 sm:$0xff]  }
 0x31b   :  { %7219 = vmatpush1.bf16.msra.mxu0 %v11204_v61  ;;  %8067 = vmatpush1.bf16.msra.mxu1 %v11207_v62  ;;  %v11288_v61 = vld [vmem:[%s15147_s1 + $0x1a80] ss:$16 sps:$4 sm:$0xff]   ;;  %v11291_v62 = vld [vmem:[%s15147_s1 + $0x1a88] ss:$16 sps:$4 sm:$0xff]  }
 0x31c   :  { %7220 = vmatprep.subr.bf16.mxu0 %v11212_v63  ;;  %8068 = vmatprep.subr.bf16.mxu1 %v11215_v0  ;;  %v11296_v63 = vld [vmem:[%s15147_s1 + $0x1aa4] ss:$16 sps:$4 sm:$0xff]   ;;  %v11299_v0 = vld [vmem:[%s15147_s1 + $0x1aac] ss:$16 sps:$4 sm:$0xff]  }
 0x31f   :  { %7221 = vmatpush1.bf16.msra.mxu0 %v11210_v3  ;;  %8069 = vmatpush1.bf16.msra.mxu1 %v11213_v4  ;;  %v11294_v3 = vld [vmem:[%s15147_s1 + $0x1aa0] ss:$16 sps:$4 sm:$0xff]   ;;  %v11297_v4 = vld [vmem:[%s15147_s1 + $0x1aa8] ss:$16 sps:$4 sm:$0xff]  }
 0x320   :  { %7222 = vmatprep.subr.bf16.mxu0 %v11218_v1  ;;  %8070 = vmatprep.subr.bf16.mxu1 %v11221_v2  ;;  %v11302_v1 = vld [vmem:[%s15147_s1 + $0x1ac4] ss:$16 sps:$4 sm:$0xff]   ;;  %v11305_v2 = vld [vmem:[%s15147_s1 + $0x1acc] ss:$16 sps:$4 sm:$0xff]  }
 0x323   :  { %7223 = vmatpush1.bf16.msra.mxu0 %v11216_v5  ;;  %8071 = vmatpush1.bf16.msra.mxu1 %v11219_v6  ;;  %v11300_v5 = vld [vmem:[%s15147_s1 + $0x1ac0] ss:$16 sps:$4 sm:$0xff]   ;;  %v11303_v6 = vld [vmem:[%s15147_s1 + $0x1ac8] ss:$16 sps:$4 sm:$0xff]  }
 0x324   :  { %7224 = vmatprep.subr.bf16.mxu0 %v11224_v7  ;;  %8072 = vmatprep.subr.bf16.mxu1 %v11227_v8  ;;  %v11308_v7 = vld [vmem:[%s15147_s1 + $0x1ae4] ss:$16 sps:$4 sm:$0xff]   ;;  %v11311_v8 = vld [vmem:[%s15147_s1 + $0x1aec] ss:$16 sps:$4 sm:$0xff]  }
 0x327   :  { %7225 = vmatpush1.bf16.msra.mxu0 %v11222_v11  ;;  %8073 = vmatpush1.bf16.msra.mxu1 %v11225_v12  ;;  %v11306_v11 = vld [vmem:[%s15147_s1 + $0x1ae0] ss:$16 sps:$4 sm:$0xff]   ;;  %v11309_v12 = vld [vmem:[%s15147_s1 + $0x1ae8] ss:$16 sps:$4 sm:$0xff]  }
 0x328   :  { %7226 = vmatprep.subr.bf16.mxu0 %v11230_v9  ;;  %8074 = vmatprep.subr.bf16.mxu1 %v11233_v10  ;;  %v11314_v9 = vld [vmem:[%s15147_s1 + $0x1b04] ss:$16 sps:$4 sm:$0xff]   ;;  %v11317_v10 = vld [vmem:[%s15147_s1 + $0x1b0c] ss:$16 sps:$4 sm:$0xff]  }
 0x32b   :  { %7227 = vmatpush1.bf16.msra.mxu0 %v11228_v13  ;;  %8075 = vmatpush1.bf16.msra.mxu1 %v11231_v14  ;;  %v11312_v13 = vld [vmem:[%s15147_s1 + $0x1b00] ss:$16 sps:$4 sm:$0xff]   ;;  %v11315_v14 = vld [vmem:[%s15147_s1 + $0x1b08] ss:$16 sps:$4 sm:$0xff]  }
 0x32c   :  { %7228 = vmatprep.subr.bf16.mxu0 %v11236_v15  ;;  %8076 = vmatprep.subr.bf16.mxu1 %v11239_v16  ;;  %v11320_v15 = vld [vmem:[%s15147_s1 + $0x1b24] ss:$16 sps:$4 sm:$0xff]   ;;  %v11323_v16 = vld [vmem:[%s15147_s1 + $0x1b2c] ss:$16 sps:$4 sm:$0xff]  }
 0x32f   :  { %7229 = vmatpush1.bf16.msra.mxu0 %v11234_v19  ;;  %8077 = vmatpush1.bf16.msra.mxu1 %v11237_v17  ;;  %v11318_v19 = vld [vmem:[%s15147_s1 + $0x1b20] ss:$16 sps:$4 sm:$0xff]   ;;  %v11321_v17 = vld [vmem:[%s15147_s1 + $0x1b28] ss:$16 sps:$4 sm:$0xff]  }
 0x330   :  { %7230 = vmatprep.subr.bf16.mxu0 %v11242_v18  ;;  %8078 = vmatprep.subr.bf16.mxu1 %v11245_v20  ;;  %v11326_v18 = vld [vmem:[%s15147_s1 + $0x1b44] ss:$16 sps:$4 sm:$0xff]   ;;  %v11329_v20 = vld [vmem:[%s15147_s1 + $0x1b4c] ss:$16 sps:$4 sm:$0xff]  }
 0x333   :  { %7231 = vmatpush1.bf16.msra.mxu0 %v11240_v21  ;;  %8079 = vmatpush1.bf16.msra.mxu1 %v11243_v22  ;;  %v11324_v21 = vld [vmem:[%s15147_s1 + $0x1b40] ss:$16 sps:$4 sm:$0xff]   ;;  %v11327_v22 = vld [vmem:[%s15147_s1 + $0x1b48] ss:$16 sps:$4 sm:$0xff]  }
 0x334   :  { %7232 = vmatprep.subr.bf16.mxu0 %v11248_v23  ;;  %8080 = vmatprep.subr.bf16.mxu1 %v11251_v24  ;;  %v11332_v23 = vld [vmem:[%s15147_s1 + $0x1b64] ss:$16 sps:$4 sm:$0xff]   ;;  %v11335_v24 = vld [vmem:[%s15147_s1 + $0x1b6c] ss:$16 sps:$4 sm:$0xff]  }
 0x337   :  { %7233 = vmatpush1.bf16.msra.mxu0 %v11246_v26  ;;  %8081 = vmatpush1.bf16.msra.mxu1 %v11249_v25  ;;  %v11330_v26 = vld [vmem:[%s15147_s1 + $0x1b60] ss:$16 sps:$4 sm:$0xff]   ;;  %v11333_v25 = vld [vmem:[%s15147_s1 + $0x1b68] ss:$16 sps:$4 sm:$0xff]  }
 0x338   :  { %7234 = vmatprep.subr.bf16.mxu0 %v11254_v27  ;;  %8082 = vmatprep.subr.bf16.mxu1 %v11257_v28  ;;  %v11338_v27 = vld [vmem:[%s15147_s1 + $0x1b84] ss:$16 sps:$4 sm:$0xff]   ;;  %v11341_v28 = vld [vmem:[%s15147_s1 + $0x1b8c] ss:$16 sps:$4 sm:$0xff]  }
 0x33b   :  { %7235 = vmatpush1.bf16.msra.mxu0 %v11252_v29  ;;  %8083 = vmatpush1.bf16.msra.mxu1 %v11255_v30  ;;  %v11336_v29 = vld [vmem:[%s15147_s1 + $0x1b80] ss:$16 sps:$4 sm:$0xff]   ;;  %v11339_v30 = vld [vmem:[%s15147_s1 + $0x1b88] ss:$16 sps:$4 sm:$0xff]  }
 0x33c   :  { %7236 = vmatprep.subr.bf16.mxu0 %v11260_v31  ;;  %8084 = vmatprep.subr.bf16.mxu1 %v11263_v32  ;;  %v11344_v31 = vld [vmem:[%s15147_s1 + $0x1ba4] ss:$16 sps:$4 sm:$0xff]   ;;  %v11347_v32 = vld [vmem:[%s15147_s1 + $0x1bac] ss:$16 sps:$4 sm:$0xff]  }
 0x33f   :  { %7237 = vmatpush1.bf16.msra.mxu0 %v11258_v34  ;;  %8085 = vmatpush1.bf16.msra.mxu1 %v11261_v36  ;;  %v11342_v34 = vld [vmem:[%s15147_s1 + $0x1ba0] ss:$16 sps:$4 sm:$0xff]   ;;  %v11345_v36 = vld [vmem:[%s15147_s1 + $0x1ba8] ss:$16 sps:$4 sm:$0xff]  }
 0x340   :  { %7259 = vmatprep.subr.bf16.mxu0 %v11266_v33  ;;  %8107 = vmatprep.subr.bf16.mxu1 %v11269_v35  ;;  %v11350_v33 = vld [vmem:[%s15147_s1 + $0x1bc4] ss:$16 sps:$4 sm:$0xff]   ;;  %v11353_v35 = vld [vmem:[%s15147_s1 + $0x1bcc] ss:$16 sps:$4 sm:$0xff]  }
 0x342   :  { %7239 = vmatmul.mubr.bf16.vlgmr.msra.gmra.mrb[0].mxu0 %v8679_v37  ;;  %8087 = vmatmul.mubr.bf16.vlgmr.msra.gmra.mrb[0].mxu1 %v8679_v37  ;;  %v11348_v37 = vld [vmem:[%s15147_s1 + $0x1bc0] ss:$16 sps:$4 sm:$0xff]  }
 0x343   :  { %7260 = vmatpush1.bf16.msra.mxu0 %v11264_v40  ;;  %8108 = vmatpush1.bf16.msra.mxu1 %v11267_v42  ;;  %v11359_v40 = vld [vmem:[%s15147_s1 + $0x1bec] ss:$16 sps:$4 sm:$0xff]   ;;  %v11354_v42 = vld [vmem:[%s15147_s1 + $0x1be0] ss:$16 sps:$4 sm:$0xff]  }
 0x344   :  { %7261 = vmatprep.subr.bf16.mxu0 %v11272_v44  ;;  %8109 = vmatprep.subr.bf16.mxu1 %v11275_v41  ;;  %v11357_v44 = vld [vmem:[%s15147_s1 + $0x1be8] ss:$16 sps:$4 sm:$0xff]   ;;  %v11362_v41 = vld [vmem:[%s15147_s1 + $0x1c04] ss:$16 sps:$4 sm:$0xff]  }
 0x345   :  { %7248 = vmatprep.mubr.bf16.mxu0 %v8712_v43  ;;  %8096 = vmatprep.mubr.bf16.mxu1 %v8712_v43  ;;  %v11365_v43 = vld [vmem:[%s15147_s1 + $0x1c0c] ss:$16 sps:$4 sm:$0xff]  }
 0x347   :  { %7262 = vmatpush1.bf16.msra.mxu0 %v11270_v45  ;;  %8110 = vmatpush1.bf16.msra.mxu1 %v11273_v46  ;;  %v8681_v45 = vcombine.low %v14372_v52, %v14377_v49  ;;  %v65_v46 = vld [vmem:[%s15148_s0 + $0x168] sm:$0xff]  ;;  %v11368_v52 = vld [vmem:[%s15147_s1 + $0x1c24] ss:$16 sps:$4 sm:$0xff]  }
 0x348   :  { %7263 = vmatprep.subr.bf16.mxu0 %v11278_v47  ;;  %8111 = vmatprep.subr.bf16.mxu1 %v11281_v48  ;;  %v81_v47 = vld [vmem:[%s15148_s0 + $0x1e8] sm:$0xff]  ;;  %v11360_v48 = vld [vmem:[%s15147_s1 + $0x1c00] ss:$16 sps:$4 sm:$0xff]  }
 0x349   :  { %v11371_v49 = vld [vmem:[%s15147_s1 + $0x1c2c] ss:$16 sps:$4 sm:$0xff]  }
 0x34a   :  { %7249 = vmatmul.mubr.bf16.gmra.mrb[4].mxu0 %v8711_v51  ;;  %8097 = vmatmul.mubr.bf16.gmra.mrb[4].mxu1 %v8711_v51  ;;  %v11363_v51 = vld [vmem:[%s15147_s1 + $0x1c08] ss:$16 sps:$4 sm:$0xff]  }
 0x34b   :  { %7264 = vmatpush1.bf16.msra.mxu0 %v11276_v50  ;;  %8112 = vmatpush1.bf16.msra.mxu1 %v11279_v53  ;;  %v8714_v50 = vcombine.high %v65_v46, %v81_v47  ;;  %v11366_v53 = vld [vmem:[%s15147_s1 + $0x1c20] ss:$16 sps:$4 sm:$0xff]  }
 0x34c   :  { %7265 = vmatprep.subr.bf16.mxu0 %v11284_v54  ;;  %8113 = vmatprep.subr.bf16.mxu1 %v11287_v55  ;;  %v11369_v54 = vld [vmem:[%s15147_s1 + $0x1c28] ss:$16 sps:$4 sm:$0xff]   ;;  %v11374_v55 = vld [vmem:[%s15147_s1 + $0x1c44] ss:$16 sps:$4 sm:$0xff]  }
 0x34d   :  { %7291 = vmatprep.mubr.bf16.mxu0 %v8682_v56  ;;  %8139 = vmatprep.mubr.bf16.mxu1 %v8682_v56  ;;  %v11377_v56 = vld [vmem:[%s15147_s1 + $0x1c4c] ss:$16 sps:$4 sm:$0xff]  }
 0x34f   :  { %7266 = vmatpush1.bf16.msra.mxu0 %v11282_v59  ;;  %8114 = vmatpush1.bf16.msra.mxu1 %v11285_v60  ;;  %v8713_v59 = vcombine.low %v65_v46, %v81_v47  ;;  %v14584_v60 = vld [vmem:[%s15148_s0 + $0x70] sm:$0xff]  ;;  %v11447_v46 = vld [vmem:[%s15147_s1 + $0x1dc8] ss:$16 sps:$4 sm:$0xff]  }
 0x350   :  { %7267 = vmatprep.subr.bf16.mxu0 %v11290_v57  ;;  %8115 = vmatprep.subr.bf16.mxu1 %v11293_v58  ;;  %v14589_v57 = vld [vmem:[%s15148_s0 + $0xf0] sm:$0xff] }
 0x351   :  { %v11372_v58 = vld [vmem:[%s15147_s1 + $0x1c40] ss:$16 sps:$4 sm:$0xff]   ;;  %v11452_v47 = vld [vmem:[%s15147_s1 + $0x1de4] ss:$16 sps:$4 sm:$0xff]  }
 0x353   :  { %7268 = vmatpush1.bf16.msra.mxu0 %v11288_v61  ;;  %8116 = vmatpush1.bf16.msra.mxu1 %v11291_v62  ;;  %v11375_v61 = vld [vmem:[%s15147_s1 + $0x1c48] ss:$16 sps:$4 sm:$0xff]   ;;  %v11380_v62 = vld [vmem:[%s15147_s1 + $0x1c64] ss:$16 sps:$4 sm:$0xff]  }
 0x354   :  { %7269 = vmatprep.subr.bf16.mxu0 %v11296_v63  ;;  %8117 = vmatprep.subr.bf16.mxu1 %v11299_v0  ;;  %v11383_v63 = vld [vmem:[%s15147_s1 + $0x1c6c] ss:$16 sps:$4 sm:$0xff]   ;;  %v8684_v0 = vcombine.high %v14584_v60, %v14589_v57 }
 0x357   :  { %7270 = vmatpush1.bf16.msra.mxu0 %v11294_v3  ;;  %8118 = vmatpush1.bf16.msra.mxu1 %v11297_v4  ;;  %v11378_v3 = vld [vmem:[%s15147_s1 + $0x1c60] ss:$16 sps:$4 sm:$0xff]   ;;  %v11381_v4 = vld [vmem:[%s15147_s1 + $0x1c68] ss:$16 sps:$4 sm:$0xff]  }
 0x358   :  { %7271 = vmatprep.subr.bf16.mxu0 %v11302_v1  ;;  %8119 = vmatprep.subr.bf16.mxu1 %v11305_v2  ;;  %v11386_v1 = vld [vmem:[%s15147_s1 + $0x1c84] ss:$16 sps:$4 sm:$0xff]   ;;  %v11389_v2 = vld [vmem:[%s15147_s1 + $0x1c8c] ss:$16 sps:$4 sm:$0xff]  }
 0x35b   :  { %7272 = vmatpush1.bf16.msra.mxu0 %v11300_v5  ;;  %8120 = vmatpush1.bf16.msra.mxu1 %v11303_v6  ;;  %v11384_v5 = vld [vmem:[%s15147_s1 + $0x1c80] ss:$16 sps:$4 sm:$0xff]   ;;  %v11387_v6 = vld [vmem:[%s15147_s1 + $0x1c88] ss:$16 sps:$4 sm:$0xff]  }
 0x35c   :  { %7273 = vmatprep.subr.bf16.mxu0 %v11308_v7  ;;  %8121 = vmatprep.subr.bf16.mxu1 %v11311_v8  ;;  %v11392_v7 = vld [vmem:[%s15147_s1 + $0x1ca4] ss:$16 sps:$4 sm:$0xff]   ;;  %v11395_v8 = vld [vmem:[%s15147_s1 + $0x1cac] ss:$16 sps:$4 sm:$0xff]  }
 0x35f   :  { %7274 = vmatpush1.bf16.msra.mxu0 %v11306_v11  ;;  %8122 = vmatpush1.bf16.msra.mxu1 %v11309_v12  ;;  %v11390_v11 = vld [vmem:[%s15147_s1 + $0x1ca0] ss:$16 sps:$4 sm:$0xff]   ;;  %v11393_v12 = vld [vmem:[%s15147_s1 + $0x1ca8] ss:$16 sps:$4 sm:$0xff]  }
 0x360   :  { %7275 = vmatprep.subr.bf16.mxu0 %v11314_v9  ;;  %8123 = vmatprep.subr.bf16.mxu1 %v11317_v10  ;;  %v11398_v9 = vld [vmem:[%s15147_s1 + $0x1cc4] ss:$16 sps:$4 sm:$0xff]   ;;  %v11401_v10 = vld [vmem:[%s15147_s1 + $0x1ccc] ss:$16 sps:$4 sm:$0xff]  }
 0x363   :  { %7276 = vmatpush1.bf16.msra.mxu0 %v11312_v13  ;;  %8124 = vmatpush1.bf16.msra.mxu1 %v11315_v14  ;;  %v11396_v13 = vld [vmem:[%s15147_s1 + $0x1cc0] ss:$16 sps:$4 sm:$0xff]   ;;  %v11399_v14 = vld [vmem:[%s15147_s1 + $0x1cc8] ss:$16 sps:$4 sm:$0xff]  }
 0x364   :  { %7277 = vmatprep.subr.bf16.mxu0 %v11320_v15  ;;  %8125 = vmatprep.subr.bf16.mxu1 %v11323_v16  ;;  %v11404_v15 = vld [vmem:[%s15147_s1 + $0x1ce4] ss:$16 sps:$4 sm:$0xff]   ;;  %v11407_v16 = vld [vmem:[%s15147_s1 + $0x1cec] ss:$16 sps:$4 sm:$0xff]  }
 0x367   :  { %7278 = vmatpush1.bf16.msra.mxu0 %v11318_v19  ;;  %8126 = vmatpush1.bf16.msra.mxu1 %v11321_v17  ;;  %v11402_v19 = vld [vmem:[%s15147_s1 + $0x1ce0] ss:$16 sps:$4 sm:$0xff]   ;;  %v11405_v17 = vld [vmem:[%s15147_s1 + $0x1ce8] ss:$16 sps:$4 sm:$0xff]  }
 0x368   :  { %7279 = vmatprep.subr.bf16.mxu0 %v11326_v18  ;;  %8127 = vmatprep.subr.bf16.mxu1 %v11329_v20  ;;  %v11410_v18 = vld [vmem:[%s15147_s1 + $0x1d04] ss:$16 sps:$4 sm:$0xff]   ;;  %v11413_v20 = vld [vmem:[%s15147_s1 + $0x1d0c] ss:$16 sps:$4 sm:$0xff]  }
 0x36b   :  { %7280 = vmatpush1.bf16.msra.mxu0 %v11324_v21  ;;  %8128 = vmatpush1.bf16.msra.mxu1 %v11327_v22  ;;  %v11408_v21 = vld [vmem:[%s15147_s1 + $0x1d00] ss:$16 sps:$4 sm:$0xff]   ;;  %v11411_v22 = vld [vmem:[%s15147_s1 + $0x1d08] ss:$16 sps:$4 sm:$0xff]  }
 0x36c   :  { %7281 = vmatprep.subr.bf16.mxu0 %v11332_v23  ;;  %8129 = vmatprep.subr.bf16.mxu1 %v11335_v24  ;;  %v11416_v23 = vld [vmem:[%s15147_s1 + $0x1d24] ss:$16 sps:$4 sm:$0xff]   ;;  %v11419_v24 = vld [vmem:[%s15147_s1 + $0x1d2c] ss:$16 sps:$4 sm:$0xff]  }
 0x36f   :  { %7282 = vmatpush1.bf16.msra.mxu0 %v11330_v26  ;;  %8130 = vmatpush1.bf16.msra.mxu1 %v11333_v25  ;;  %v11414_v26 = vld [vmem:[%s15147_s1 + $0x1d20] ss:$16 sps:$4 sm:$0xff]   ;;  %v11417_v25 = vld [vmem:[%s15147_s1 + $0x1d28] ss:$16 sps:$4 sm:$0xff]  }
 0x370   :  { %7283 = vmatprep.subr.bf16.mxu0 %v11338_v27  ;;  %8131 = vmatprep.subr.bf16.mxu1 %v11341_v28  ;;  %v11422_v27 = vld [vmem:[%s15147_s1 + $0x1d44] ss:$16 sps:$4 sm:$0xff]   ;;  %v11425_v28 = vld [vmem:[%s15147_s1 + $0x1d4c] ss:$16 sps:$4 sm:$0xff]  }
 0x373   :  { %7284 = vmatpush1.bf16.msra.mxu0 %v11336_v29  ;;  %8132 = vmatpush1.bf16.msra.mxu1 %v11339_v30  ;;  %v11420_v29 = vld [vmem:[%s15147_s1 + $0x1d40] ss:$16 sps:$4 sm:$0xff]   ;;  %v11423_v30 = vld [vmem:[%s15147_s1 + $0x1d48] ss:$16 sps:$4 sm:$0xff]  }
 0x374   :  { %7285 = vmatprep.subr.bf16.mxu0 %v11344_v31  ;;  %8133 = vmatprep.subr.bf16.mxu1 %v11347_v32  ;;  %v11428_v31 = vld [vmem:[%s15147_s1 + $0x1d64] ss:$16 sps:$4 sm:$0xff]   ;;  %v11431_v32 = vld [vmem:[%s15147_s1 + $0x1d6c] ss:$16 sps:$4 sm:$0xff]  }
 0x377   :  { %7286 = vmatpush1.bf16.msra.mxu0 %v11342_v34  ;;  %8134 = vmatpush1.bf16.msra.mxu1 %v11345_v36  ;;  %v11426_v34 = vld [vmem:[%s15147_s1 + $0x1d60] ss:$16 sps:$4 sm:$0xff]   ;;  %v11429_v36 = vld [vmem:[%s15147_s1 + $0x1d68] ss:$16 sps:$4 sm:$0xff]  }
 0x378   :  { %7287 = vmatprep.subr.bf16.mxu0 %v11350_v33  ;;  %8135 = vmatprep.subr.bf16.mxu1 %v11353_v35  ;;  %v11434_v33 = vld [vmem:[%s15147_s1 + $0x1d84] ss:$16 sps:$4 sm:$0xff]   ;;  %v11437_v35 = vld [vmem:[%s15147_s1 + $0x1d8c] ss:$16 sps:$4 sm:$0xff]  }
 0x37b   :  { %7288 = vmatpush1.bf16.msra.mxu0 %v11348_v37  ;;  %8136 = vmatpush1.bf16.msra.mxu1 %v11351_v38  ;;  %v11432_v37 = vld [vmem:[%s15147_s1 + $0x1d80] ss:$16 sps:$4 sm:$0xff]   ;;  %v11435_v38 = vld [vmem:[%s15147_s1 + $0x1d88] ss:$16 sps:$4 sm:$0xff]  }
 0x37c   :  { %7289 = vmatprep.subr.bf16.mxu0 %v11356_v39  ;;  %8137 = vmatprep.subr.bf16.mxu1 %v11359_v40  ;;  %v11440_v39 = vld [vmem:[%s15147_s1 + $0x1da4] ss:$16 sps:$4 sm:$0xff]   ;;  %v11443_v40 = vld [vmem:[%s15147_s1 + $0x1dac] ss:$16 sps:$4 sm:$0xff]  }
 0x37f   :  { %7290 = vmatpush1.bf16.msra.mxu0 %v11354_v42  ;;  %8138 = vmatpush1.bf16.msra.mxu1 %v11357_v44  ;;  %v11438_v42 = vld [vmem:[%s15147_s1 + $0x1da0] ss:$16 sps:$4 sm:$0xff]   ;;  %v11441_v44 = vld [vmem:[%s15147_s1 + $0x1da8] ss:$16 sps:$4 sm:$0xff]  }
 0x380   :  { %7312 = vmatprep.subr.bf16.mxu0 %v11362_v41  ;;  %8160 = vmatprep.subr.bf16.mxu1 %v11365_v43  ;;  %v11446_v41 = vld [vmem:[%s15147_s1 + $0x1dc4] ss:$16 sps:$4 sm:$0xff]   ;;  %v11449_v43 = vld [vmem:[%s15147_s1 + $0x1dcc] ss:$16 sps:$4 sm:$0xff]  }
 0x382   :  { %7292 = vmatmul.mubr.bf16.vlgmr.msra.gmra.mrb[0].mxu0 %v8681_v45  ;;  %8140 = vmatmul.mubr.bf16.vlgmr.msra.gmra.mrb[0].mxu1 %v8681_v45  ;;  %v11444_v45 = vld [vmem:[%s15147_s1 + $0x1dc0] ss:$16 sps:$4 sm:$0xff]  }
 0x383   :  { %7313 = vmatpush1.bf16.msra.mxu0 %v11360_v48  ;;  %8161 = vmatpush1.bf16.msra.mxu1 %v11363_v51  ;;  %v11455_v48 = vld [vmem:[%s15147_s1 + $0x1dec] ss:$16 sps:$4 sm:$0xff]   ;;  %v11450_v51 = vld [vmem:[%s15147_s1 + $0x1de0] ss:$16 sps:$4 sm:$0xff]  }
 0x384   :  { %7314 = vmatprep.subr.bf16.mxu0 %v11368_v52  ;;  %8162 = vmatprep.subr.bf16.mxu1 %v11371_v49  ;;  %v11453_v52 = vld [vmem:[%s15147_s1 + $0x1de8] ss:$16 sps:$4 sm:$0xff]   ;;  %v11458_v49 = vld [vmem:[%s15147_s1 + $0x1e04] ss:$16 sps:$4 sm:$0xff]  }
 0x385   :  { %7301 = vmatprep.mubr.bf16.mxu0 %v8714_v50  ;;  %8149 = vmatprep.mubr.bf16.mxu1 %v8714_v50  ;;  %v11461_v50 = vld [vmem:[%s15147_s1 + $0x1e0c] ss:$16 sps:$4 sm:$0xff]  }
 0x387   :  { %7315 = vmatpush1.bf16.msra.mxu0 %v11366_v53  ;;  %8163 = vmatpush1.bf16.msra.mxu1 %v11369_v54  ;;  %v8683_v53 = vcombine.low %v14584_v60, %v14589_v57  ;;  %v66_v54 = vld [vmem:[%s15148_s0 + $0x170] sm:$0xff]  ;;  %v11467_v57 = vld [vmem:[%s15147_s1 + $0x1e2c] ss:$16 sps:$4 sm:$0xff]  }
 0x388   :  { %7316 = vmatprep.subr.bf16.mxu0 %v11374_v55  ;;  %8164 = vmatprep.subr.bf16.mxu1 %v11377_v56  ;;  %v82_v55 = vld [vmem:[%s15148_s0 + $0x1f0] sm:$0xff] }
 0x389   :  { %v11456_v56 = vld [vmem:[%s15147_s1 + $0x1e00] ss:$16 sps:$4 sm:$0xff]   ;;  %v11464_v60 = vld [vmem:[%s15147_s1 + $0x1e24] ss:$16 sps:$4 sm:$0xff]  }
 0x38a   :  { %7302 = vmatmul.mubr.bf16.gmra.mrb[4].mxu0 %v8713_v59  ;;  %8150 = vmatmul.mubr.bf16.gmra.mrb[4].mxu1 %v8713_v59  ;;  %v11459_v59 = vld [vmem:[%s15147_s1 + $0x1e08] ss:$16 sps:$4 sm:$0xff]  }
 0x38b   :  { %7317 = vmatpush1.bf16.msra.mxu0 %v11372_v58  ;;  %8165 = vmatpush1.bf16.msra.mxu1 %v11375_v61  ;;  %v8716_v58 = vcombine.high %v66_v54, %v82_v55  ;;  %v11462_v61 = vld [vmem:[%s15147_s1 + $0x1e20] ss:$16 sps:$4 sm:$0xff]  }
 0x38c   :  { %7318 = vmatprep.subr.bf16.mxu0 %v11380_v62  ;;  %8166 = vmatprep.subr.bf16.mxu1 %v11383_v63  ;;  %v11465_v62 = vld [vmem:[%s15147_s1 + $0x1e28] ss:$16 sps:$4 sm:$0xff]   ;;  %v11470_v63 = vld [vmem:[%s15147_s1 + $0x1e44] ss:$16 sps:$4 sm:$0xff]  }
 0x38d   :  { %7344 = vmatprep.mubr.bf16.mxu0 %v8684_v0  ;;  %8192 = vmatprep.mubr.bf16.mxu1 %v8684_v0  ;;  %v11473_v0 = vld [vmem:[%s15147_s1 + $0x1e4c] ss:$16 sps:$4 sm:$0xff]  }
 0x38f   :  { %7319 = vmatpush1.bf16.msra.mxu0 %v11378_v3  ;;  %8167 = vmatpush1.bf16.msra.mxu1 %v11381_v4  ;;  %v8715_v3 = vcombine.low %v66_v54, %v82_v55  ;;  %v14796_v4 = vld [vmem:[%s15148_s0 + $0x78] sm:$0xff]  ;;  %v11548_v55 = vld [vmem:[%s15147_s1 + $0x1fe4] ss:$16 sps:$4 sm:$0xff]  }
 0x390   :  { %7320 = vmatprep.subr.bf16.mxu0 %v11386_v1  ;;  %8168 = vmatprep.subr.bf16.mxu1 %v11389_v2  ;;  %v14801_v1 = vld [vmem:[%s15148_s0 + $0xf8] sm:$0xff]  ;;  %v11468_v2 = vld [vmem:[%s15147_s1 + $0x1e40] ss:$16 sps:$4 sm:$0xff]  }
 0x391   :  { %v11543_v54 = vld [vmem:[%s15147_s1 + $0x1fc8] ss:$16 sps:$4 sm:$0xff]  }
 0x393   :  { %7321 = vmatpush1.bf16.msra.mxu0 %v11384_v5  ;;  %8169 = vmatpush1.bf16.msra.mxu1 %v11387_v6  ;;  %v11471_v5 = vld [vmem:[%s15147_s1 + $0x1e48] ss:$16 sps:$4 sm:$0xff]   ;;  %v11476_v6 = vld [vmem:[%s15147_s1 + $0x1e64] ss:$16 sps:$4 sm:$0xff]  }
 0x394   :  { %7322 = vmatprep.subr.bf16.mxu0 %v11392_v7  ;;  %8170 = vmatprep.subr.bf16.mxu1 %v11395_v8  ;;  %v11479_v7 = vld [vmem:[%s15147_s1 + $0x1e6c] ss:$16 sps:$4 sm:$0xff]   ;;  %v8686_v8 = vcombine.high %v14796_v4, %v14801_v1 }
 0x397   :  { %7323 = vmatpush1.bf16.msra.mxu0 %v11390_v11  ;;  %8171 = vmatpush1.bf16.msra.mxu1 %v11393_v12  ;;  %v11474_v11 = vld [vmem:[%s15147_s1 + $0x1e60] ss:$16 sps:$4 sm:$0xff]   ;;  %v11477_v12 = vld [vmem:[%s15147_s1 + $0x1e68] ss:$16 sps:$4 sm:$0xff]  }
 0x398   :  { %7324 = vmatprep.subr.bf16.mxu0 %v11398_v9  ;;  %8172 = vmatprep.subr.bf16.mxu1 %v11401_v10  ;;  %v11482_v9 = vld [vmem:[%s15147_s1 + $0x1e84] ss:$16 sps:$4 sm:$0xff]   ;;  %v11485_v10 = vld [vmem:[%s15147_s1 + $0x1e8c] ss:$16 sps:$4 sm:$0xff]  }
 0x39b   :  { %7325 = vmatpush1.bf16.msra.mxu0 %v11396_v13  ;;  %8173 = vmatpush1.bf16.msra.mxu1 %v11399_v14  ;;  %v11480_v13 = vld [vmem:[%s15147_s1 + $0x1e80] ss:$16 sps:$4 sm:$0xff]   ;;  %v11483_v14 = vld [vmem:[%s15147_s1 + $0x1e88] ss:$16 sps:$4 sm:$0xff]  }
 0x39c   :  { %7326 = vmatprep.subr.bf16.mxu0 %v11404_v15  ;;  %8174 = vmatprep.subr.bf16.mxu1 %v11407_v16  ;;  %v11488_v15 = vld [vmem:[%s15147_s1 + $0x1ea4] ss:$16 sps:$4 sm:$0xff]   ;;  %v11491_v16 = vld [vmem:[%s15147_s1 + $0x1eac] ss:$16 sps:$4 sm:$0xff]  }
 0x39f   :  { %7327 = vmatpush1.bf16.msra.mxu0 %v11402_v19  ;;  %8175 = vmatpush1.bf16.msra.mxu1 %v11405_v17  ;;  %v11486_v19 = vld [vmem:[%s15147_s1 + $0x1ea0] ss:$16 sps:$4 sm:$0xff]   ;;  %v11489_v17 = vld [vmem:[%s15147_s1 + $0x1ea8] ss:$16 sps:$4 sm:$0xff]  }
 0x3a0   :  { %7328 = vmatprep.subr.bf16.mxu0 %v11410_v18  ;;  %8176 = vmatprep.subr.bf16.mxu1 %v11413_v20  ;;  %v11494_v18 = vld [vmem:[%s15147_s1 + $0x1ec4] ss:$16 sps:$4 sm:$0xff]   ;;  %v11497_v20 = vld [vmem:[%s15147_s1 + $0x1ecc] ss:$16 sps:$4 sm:$0xff]  }
 0x3a3   :  { %7329 = vmatpush1.bf16.msra.mxu0 %v11408_v21  ;;  %8177 = vmatpush1.bf16.msra.mxu1 %v11411_v22  ;;  %v11492_v21 = vld [vmem:[%s15147_s1 + $0x1ec0] ss:$16 sps:$4 sm:$0xff]   ;;  %v11495_v22 = vld [vmem:[%s15147_s1 + $0x1ec8] ss:$16 sps:$4 sm:$0xff]  }
 0x3a4   :  { %7330 = vmatprep.subr.bf16.mxu0 %v11416_v23  ;;  %8178 = vmatprep.subr.bf16.mxu1 %v11419_v24  ;;  %v11500_v23 = vld [vmem:[%s15147_s1 + $0x1ee4] ss:$16 sps:$4 sm:$0xff]   ;;  %v11503_v24 = vld [vmem:[%s15147_s1 + $0x1eec] ss:$16 sps:$4 sm:$0xff]  }
 0x3a7   :  { %7331 = vmatpush1.bf16.msra.mxu0 %v11414_v26  ;;  %8179 = vmatpush1.bf16.msra.mxu1 %v11417_v25  ;;  %v11498_v26 = vld [vmem:[%s15147_s1 + $0x1ee0] ss:$16 sps:$4 sm:$0xff]   ;;  %v11501_v25 = vld [vmem:[%s15147_s1 + $0x1ee8] ss:$16 sps:$4 sm:$0xff]  }
 0x3a8   :  { %7332 = vmatprep.subr.bf16.mxu0 %v11422_v27  ;;  %8180 = vmatprep.subr.bf16.mxu1 %v11425_v28  ;;  %v11506_v27 = vld [vmem:[%s15147_s1 + $0x1f04] ss:$16 sps:$4 sm:$0xff]   ;;  %v11509_v28 = vld [vmem:[%s15147_s1 + $0x1f0c] ss:$16 sps:$4 sm:$0xff]  }
 0x3ab   :  { %7333 = vmatpush1.bf16.msra.mxu0 %v11420_v29  ;;  %8181 = vmatpush1.bf16.msra.mxu1 %v11423_v30  ;;  %v11504_v29 = vld [vmem:[%s15147_s1 + $0x1f00] ss:$16 sps:$4 sm:$0xff]   ;;  %v11507_v30 = vld [vmem:[%s15147_s1 + $0x1f08] ss:$16 sps:$4 sm:$0xff]  }
 0x3ac   :  { %7334 = vmatprep.subr.bf16.mxu0 %v11428_v31  ;;  %8182 = vmatprep.subr.bf16.mxu1 %v11431_v32  ;;  %v11512_v31 = vld [vmem:[%s15147_s1 + $0x1f24] ss:$16 sps:$4 sm:$0xff]   ;;  %v11515_v32 = vld [vmem:[%s15147_s1 + $0x1f2c] ss:$16 sps:$4 sm:$0xff]  }
 0x3af   :  { %7335 = vmatpush1.bf16.msra.mxu0 %v11426_v34  ;;  %8183 = vmatpush1.bf16.msra.mxu1 %v11429_v36  ;;  %v11510_v34 = vld [vmem:[%s15147_s1 + $0x1f20] ss:$16 sps:$4 sm:$0xff]   ;;  %v11513_v36 = vld [vmem:[%s15147_s1 + $0x1f28] ss:$16 sps:$4 sm:$0xff]  }
 0x3b0   :  { %7336 = vmatprep.subr.bf16.mxu0 %v11434_v33  ;;  %8184 = vmatprep.subr.bf16.mxu1 %v11437_v35  ;;  %v11518_v33 = vld [vmem:[%s15147_s1 + $0x1f44] ss:$16 sps:$4 sm:$0xff]   ;;  %v11521_v35 = vld [vmem:[%s15147_s1 + $0x1f4c] ss:$16 sps:$4 sm:$0xff]  }
 0x3b3   :  { %7337 = vmatpush1.bf16.msra.mxu0 %v11432_v37  ;;  %8185 = vmatpush1.bf16.msra.mxu1 %v11435_v38  ;;  %v11516_v37 = vld [vmem:[%s15147_s1 + $0x1f40] ss:$16 sps:$4 sm:$0xff]   ;;  %v11519_v38 = vld [vmem:[%s15147_s1 + $0x1f48] ss:$16 sps:$4 sm:$0xff]  }
 0x3b4   :  { %7338 = vmatprep.subr.bf16.mxu0 %v11440_v39  ;;  %8186 = vmatprep.subr.bf16.mxu1 %v11443_v40  ;;  %v11524_v39 = vld [vmem:[%s15147_s1 + $0x1f64] ss:$16 sps:$4 sm:$0xff]   ;;  %v11527_v40 = vld [vmem:[%s15147_s1 + $0x1f6c] ss:$16 sps:$4 sm:$0xff]  }
 0x3b7   :  { %7339 = vmatpush1.bf16.msra.mxu0 %v11438_v42  ;;  %8187 = vmatpush1.bf16.msra.mxu1 %v11441_v44  ;;  %v11522_v42 = vld [vmem:[%s15147_s1 + $0x1f60] ss:$16 sps:$4 sm:$0xff]   ;;  %v11525_v44 = vld [vmem:[%s15147_s1 + $0x1f68] ss:$16 sps:$4 sm:$0xff]  }
 0x3b8   :  { %7340 = vmatprep.subr.bf16.mxu0 %v11446_v41  ;;  %8188 = vmatprep.subr.bf16.mxu1 %v11449_v43  ;;  %v11530_v41 = vld [vmem:[%s15147_s1 + $0x1f84] ss:$16 sps:$4 sm:$0xff]   ;;  %v11533_v43 = vld [vmem:[%s15147_s1 + $0x1f8c] ss:$16 sps:$4 sm:$0xff]  }
 0x3bb   :  { %7341 = vmatpush1.bf16.msra.mxu0 %v11444_v45  ;;  %8189 = vmatpush1.bf16.msra.mxu1 %v11447_v46  ;;  %v11528_v45 = vld [vmem:[%s15147_s1 + $0x1f80] ss:$16 sps:$4 sm:$0xff]   ;;  %v11531_v46 = vld [vmem:[%s15147_s1 + $0x1f88] ss:$16 sps:$4 sm:$0xff]  }
 0x3bc   :  { %7342 = vmatprep.subr.bf16.mxu0 %v11452_v47  ;;  %8190 = vmatprep.subr.bf16.mxu1 %v11455_v48  ;;  %v11536_v47 = vld [vmem:[%s15147_s1 + $0x1fa4] ss:$16 sps:$4 sm:$0xff]   ;;  %v11539_v48 = vld [vmem:[%s15147_s1 + $0x1fac] ss:$16 sps:$4 sm:$0xff]  }
 0x3bf   :  { %7343 = vmatpush1.bf16.msra.mxu0 %v11450_v51  ;;  %8191 = vmatpush1.bf16.msra.mxu1 %v11453_v52  ;;  %v11534_v51 = vld [vmem:[%s15147_s1 + $0x1fa0] ss:$16 sps:$4 sm:$0xff]   ;;  %v11537_v52 = vld [vmem:[%s15147_s1 + $0x1fa8] ss:$16 sps:$4 sm:$0xff]  }
 0x3c0   :  { %7365 = vmatprep.subr.bf16.mxu0 %v11458_v49  ;;  %8213 = vmatprep.subr.bf16.mxu1 %v11461_v50  ;;  %v11542_v49 = vld [vmem:[%s15147_s1 + $0x1fc4] ss:$16 sps:$4 sm:$0xff]   ;;  %v11545_v50 = vld [vmem:[%s15147_s1 + $0x1fcc] ss:$16 sps:$4 sm:$0xff]  }
 0x3c2   :  { %7345 = vmatmul.mubr.bf16.vlgmr.msra.gmra.mrb[0].mxu0 %v8683_v53  ;;  %8193 = vmatmul.mubr.bf16.vlgmr.msra.gmra.mrb[0].mxu1 %v8683_v53  ;;  %v11540_v53 = vld [vmem:[%s15147_s1 + $0x1fc0] ss:$16 sps:$4 sm:$0xff]  }
 0x3c3   :  { %7366 = vmatpush1.bf16.msra.mxu0 %v11456_v56  ;;  %8214 = vmatpush1.bf16.msra.mxu1 %v11459_v59  ;;  %v11551_v56 = vld [vmem:[%s15147_s1 + $0x1fec] ss:$16 sps:$4 sm:$0xff]   ;;  %v11546_v59 = vld [vmem:[%s15147_s1 + $0x1fe0] ss:$16 sps:$4 sm:$0xff]  }
 0x3c4   :  { %7367 = vmatprep.subr.bf16.mxu0 %v11464_v60  ;;  %8215 = vmatprep.subr.bf16.mxu1 %v11467_v57  ;;  %v11549_v60 = vld [vmem:[%s15147_s1 + $0x1fe8] ss:$16 sps:$4 sm:$0xff]  }
 0x3c5   :  { %7354 = vmatprep.mubr.bf16.mxu0 %v8716_v58  ;;  %8202 = vmatprep.mubr.bf16.mxu1 %v8716_v58  ;;  %v67_v57 = vld [vmem:[%s15148_s0 + $0x178] sm:$0xff] }
 0x3c6   :  { %v83_v58 = vld [vmem:[%s15148_s0 + $0x1f8] sm:$0xff] }
 0x3c7   :  { %7368 = vmatpush1.bf16.msra.mxu0 %v11462_v61  ;;  %8216 = vmatpush1.bf16.msra.mxu1 %v11465_v62  ;;  %v8685_v61 = vcombine.low %v14796_v4, %v14801_v1  ;;  %v8718_v62 = vcombine.high %v67_v57, %v83_v58  ;;  %v1108_v4 = vld [vmem:[%s15149_s2] sm:$0xf] }
 0x3c8   :  { %7369 = vmatprep.subr.bf16.mxu0 %v11470_v63  ;;  %8217 = vmatprep.subr.bf16.mxu1 %v11473_v0  ;;  %v8717_v63 = vcombine.low %v67_v57, %v83_v58  ;;  %v1110_v0 = vlaneseq }
 0x3ca   :  { %7355 = vmatmul.mubr.bf16.gmra.mrb[4].mxu0 %v8715_v3  ;;  %8203 = vmatmul.mubr.bf16.gmra.mrb[4].mxu1 %v8715_v3  ;;  %v14975_v3 = vshrl.u32 %v1110_v0, 7 }
 0x3cb   :  { %7370 = vmatpush1.bf16.msra.mxu0 %v11468_v2  ;;  %8218 = vmatpush1.bf16.msra.mxu1 %v11471_v5 }
 0x3cc   :  { %7371 = vmatprep.subr.bf16.mxu0 %v11476_v6  ;;  %8219 = vmatprep.subr.bf16.mxu1 %v11479_v7  ;;  %v14978_v2 = vsub.s32 0, %v14975_v3  ;;  %v14981_v5 = vsub.s32 2, %v14975_v3  ;;  %v14987_v1 = vsub.s32 1, %v14975_v3  ;;  %v14990_v6 = vsub.s32 3, %v14975_v3 }
 0x3cd   :  { %7397 = vmatprep.mubr.bf16.mxu0 %v8686_v8  ;;  %8245 = vmatprep.mubr.bf16.mxu1 %v8686_v8 }
 0x3ce   :  { %v1113_v7 = vrot.slane %v1108_v4, %v14978_v2  ;;  %v1121_v8 = vrot.slane %v1108_v4, %v14981_v5 }
 0x3cf   :  { %7372 = vmatpush1.bf16.msra.mxu0 %v11474_v11  ;;  %8220 = vmatpush1.bf16.msra.mxu1 %v11477_v12  ;;  %v1117_v11 = vrot.slane %v1108_v4, %v14987_v1  ;;  %v1125_v12 = vrot.slane %v1108_v4, %v14990_v6 }
 0x3d0   :  { %7373 = vmatprep.subr.bf16.mxu0 %v11482_v9  ;;  %8221 = vmatprep.subr.bf16.mxu1 %v11485_v10 }
 0x3d3   :  { %7374 = vmatpush1.bf16.msra.mxu0 %v11480_v13  ;;  %8222 = vmatpush1.bf16.msra.mxu1 %v11483_v14 }
 0x3d4   :  { %7375 = vmatprep.subr.bf16.mxu0 %v11488_v15  ;;  %8223 = vmatprep.subr.bf16.mxu1 %v11491_v16 }
 0x3d7   :  { %7376 = vmatpush1.bf16.msra.mxu0 %v11486_v19  ;;  %8224 = vmatpush1.bf16.msra.mxu1 %v11489_v17 }
 0x3d8   :  { %7377 = vmatprep.subr.bf16.mxu0 %v11494_v18  ;;  %8225 = vmatprep.subr.bf16.mxu1 %v11497_v20 }
 0x3db   :  { %7378 = vmatpush1.bf16.msra.mxu0 %v11492_v21  ;;  %8226 = vmatpush1.bf16.msra.mxu1 %v11495_v22 }
 0x3dc   :  { %7379 = vmatprep.subr.bf16.mxu0 %v11500_v23  ;;  %8227 = vmatprep.subr.bf16.mxu1 %v11503_v24 }
 0x3df   :  { %7380 = vmatpush1.bf16.msra.mxu0 %v11498_v26  ;;  %8228 = vmatpush1.bf16.msra.mxu1 %v11501_v25 }
 0x3e0   :  { %7381 = vmatprep.subr.bf16.mxu0 %v11506_v27  ;;  %8229 = vmatprep.subr.bf16.mxu1 %v11509_v28 }
 0x3e3   :  { %7382 = vmatpush1.bf16.msra.mxu0 %v11504_v29  ;;  %8230 = vmatpush1.bf16.msra.mxu1 %v11507_v30 }
 0x3e4   :  { %7383 = vmatprep.subr.bf16.mxu0 %v11512_v31  ;;  %8231 = vmatprep.subr.bf16.mxu1 %v11515_v32 }
 0x3e7   :  { %7384 = vmatpush1.bf16.msra.mxu0 %v11510_v34  ;;  %8232 = vmatpush1.bf16.msra.mxu1 %v11513_v36 }
 0x3e8   :  { %7385 = vmatprep.subr.bf16.mxu0 %v11518_v33  ;;  %8233 = vmatprep.subr.bf16.mxu1 %v11521_v35 }
 0x3eb   :  { %7386 = vmatpush1.bf16.msra.mxu0 %v11516_v37  ;;  %8234 = vmatpush1.bf16.msra.mxu1 %v11519_v38 }
 0x3ec   :  { %7387 = vmatprep.subr.bf16.mxu0 %v11524_v39  ;;  %8235 = vmatprep.subr.bf16.mxu1 %v11527_v40 }
 0x3ef   :  { %7388 = vmatpush1.bf16.msra.mxu0 %v11522_v42  ;;  %8236 = vmatpush1.bf16.msra.mxu1 %v11525_v44 }
 0x3f0   :  { %7389 = vmatprep.subr.bf16.mxu0 %v11530_v41  ;;  %8237 = vmatprep.subr.bf16.mxu1 %v11533_v43 }
 0x3f3   :  { %7390 = vmatpush1.bf16.msra.mxu0 %v11528_v45  ;;  %8238 = vmatpush1.bf16.msra.mxu1 %v11531_v46 }
 0x3f4   :  { %7391 = vmatprep.subr.bf16.mxu0 %v11536_v47  ;;  %8239 = vmatprep.subr.bf16.mxu1 %v11539_v48 }
 0x3f7   :  { %7392 = vmatpush1.bf16.msra.mxu0 %v11534_v51  ;;  %8240 = vmatpush1.bf16.msra.mxu1 %v11537_v52 }
 0x3f8   :  { %7393 = vmatprep.subr.bf16.mxu0 %v11542_v49  ;;  %8241 = vmatprep.subr.bf16.mxu1 %v11545_v50 }
 0x3fb   :  { %7394 = vmatpush1.bf16.msra.mxu0 %v11540_v53  ;;  %8242 = vmatpush1.bf16.msra.mxu1 %v11543_v54 }
 0x3fc   :  { %7395 = vmatprep.subr.bf16.mxu0 %v11548_v55  ;;  %8243 = vmatprep.subr.bf16.mxu1 %v11551_v56 }
 0x3ff   :  { %7396 = vmatpush1.bf16.msra.mxu0 %v11546_v59  ;;  %8244 = vmatpush1.bf16.msra.mxu1 %v11549_v60 }
 0x402   :  { %7398 = vmatmul.mubr.bf16.vlgmr.msra.gmra.mrb[0].mxu0 %v8685_v61  ;;  %8246 = vmatmul.mubr.bf16.vlgmr.msra.gmra.mrb[0].mxu1 %v8685_v61 }
 0x403   :  { %7407 = vmatprep.mubr.bf16.mxu0 %v8718_v62  ;;  %8255 = vmatprep.mubr.bf16.mxu1 %v8718_v62 }
 0x40a   :  { %7408 = vmatmul.mubr.bf16.gmra.mrb[4].mxu0 %v8717_v63  ;;  %8256 = vmatmul.mubr.bf16.gmra.mrb[4].mxu1 %v8717_v63 }
 0x4d5   :  { %v7399_v9 = vpop.f32.mrb[0].mxu0  ;;  %v8247_v10 = vpop.f32.mrb[0].mxu1 }
 0x4d6   :  { %v14996_v13 = vadd.f32 %v7399_v9, %v1113_v7  ;;  %v14998_v14 = vadd.f32 %v8247_v10, %v1121_v8  ;;  %v7401_v15 = vpop.f32.mrb[1].mxu0  ;;  %v8249_v16 = vpop.f32.mrb[1].mxu1 }
 0x4d7   :  { %v15000_v19 = vadd.f32 %v7401_v15, %v1117_v11  ;;  %v15002_v17 = vadd.f32 %v8249_v16, %v1125_v12  ;;  %v7403_v18 = vpop.f32.mrb[2].mxu0  ;;  %v8251_v20 = vpop.f32.mrb[2].mxu1 }
 0x4d8   :  { %v8331_v21 = vmul.f32 %v14996_v13, %v14996_v13  ;;  %v8333_v22 = vmul.f32 %v14998_v14, %v14998_v14  ;;  %v15008_v23 = vadd.f32 %v7403_v18, %v1113_v7  ;;  %v15010_v24 = vadd.f32 %v8251_v20, %v1121_v8  ;;  %v7405_v26 = vpop.f32.mrb[3].mxu0  ;;  %v8253_v25 = vpop.f32.mrb[3].mxu1 }
 0x4d9   :  { %v8332_v27 = vmul.f32 %v15000_v19, %v15000_v19  ;;  %v8334_v28 = vmul.f32 %v15002_v17, %v15002_v17  ;;  %v15016_v29 = vadd.f32 %v7405_v26, %v1117_v11  ;;  %v15018_v30 = vadd.f32 %v8253_v25, %v1125_v12 }
 0x4da   :  { %v8291_v31 = vadd.f32 %v15008_v23, %v14996_v13  ;;  %v8335_v32 = vmul.f32 %v15008_v23, %v15008_v23  ;;  %v8309_v34 = vadd.f32 %v15010_v24, %v14998_v14  ;;  %v8337_v36 = vmul.f32 %v15010_v24, %v15010_v24 }
 0x4db   :  { %v8300_v33 = vadd.f32 %v15016_v29, %v15000_v19  ;;  %v8336_v35 = vmul.f32 %v15016_v29, %v15016_v29  ;;  %v8318_v37 = vadd.f32 %v15018_v30, %v15002_v17  ;;  %v8338_v38 = vmul.f32 %v15018_v30, %v15018_v30 }
 0x4dc   :  { %v8347_v39 = vadd.f32 %v8335_v32, %v8331_v21  ;;  %v8365_v40 = vadd.f32 %v8337_v36, %v8333_v22 }
 0x4dd   :  { %v8356_v42 = vadd.f32 %v8336_v35, %v8332_v27  ;;  %v8374_v44 = vadd.f32 %v8338_v38, %v8334_v28  ;;  %v7409_v41 = vpop.f32.mrb[4].mxu0  ;;  %v8257_v43 = vpop.f32.mrb[4].mxu1 }
 0x4de   :  { %v15036_v45 = vadd.f32 %v7409_v41, %v1113_v7  ;;  %v15038_v46 = vadd.f32 %v8257_v43, %v1121_v8  ;;  %v7411_v47 = vpop.f32.mrb[5].mxu0  ;;  %v8259_v48 = vpop.f32.mrb[5].mxu1 }
 0x4df   :  { %v15040_v51 = vadd.f32 %v7411_v47, %v1117_v11  ;;  %v15042_v52 = vadd.f32 %v8259_v48, %v1125_v12  ;;  %v7413_v49 = vpop.f32.mrb[6].mxu0  ;;  %v8261_v50 = vpop.f32.mrb[6].mxu1 }
 0x4e0   :  { %v8292_v53 = vadd.f32 %v15036_v45, %v8291_v31  ;;  %v8339_v54 = vmul.f32 %v15036_v45, %v15036_v45  ;;  %v8310_v55 = vadd.f32 %v15038_v46, %v8309_v34  ;;  %v8341_v56 = vmul.f32 %v15038_v46, %v15038_v46  ;;  %v7415_v59 = vpop.f32.mrb[7].mxu0  ;;  %v8263_v60 = vpop.f32.mrb[7].mxu1 }
 0x4e1   :  { %v8301_v57 = vadd.f32 %v15040_v51, %v8300_v33  ;;  %v8340_v58 = vmul.f32 %v15040_v51, %v15040_v51  ;;  %v8319_v61 = vadd.f32 %v15042_v52, %v8318_v37  ;;  %v8342_v62 = vmul.f32 %v15042_v52, %v15042_v52 }
 0x4e2   :  { %v8348_v63 = vadd.f32 %v8347_v39, %v8339_v54  ;;  %v8366_v0 = vadd.f32 %v8365_v40, %v8341_v56  ;;  %v15056_v4 = vadd.f32 %v7413_v49, %v1113_v7  ;;  %v15058_v9 = vadd.f32 %v8261_v50, %v1121_v8 }
 0x4e3   :  { %v8357_v10 = vadd.f32 %v8356_v42, %v8340_v58  ;;  %v8375_v15 = vadd.f32 %v8374_v44, %v8342_v62  ;;  %v15060_v16 = vadd.f32 %v7415_v59, %v1117_v11  ;;  %v15062_v18 = vadd.f32 %v8263_v60, %v1125_v12 }
 0x4e4   :  { %v8293_v20 = vadd.f32 %v15056_v4, %v8292_v53  ;;  %v8343_v21 = vmul.f32 %v15056_v4, %v15056_v4  ;;  %v8311_v22 = vadd.f32 %v15058_v9, %v8310_v55  ;;  %v8345_v26 = vmul.f32 %v15058_v9, %v15058_v9 }
 0x4e5   :  { %v8302_v7 = vadd.f32 %v15060_v16, %v8301_v57  ;;  %v8344_v8 = vmul.f32 %v15060_v16, %v15060_v16  ;;  %v8320_v11 = vadd.f32 %v15062_v18, %v8319_v61  ;;  %v8346_v12 = vmul.f32 %v15062_v18, %v15062_v18 }
 0x4e6   :  { %v8294_v25 = vrot.slane %v8293_v20, 4  ;;  %v8349_v27 = vadd.f32 %v8348_v63, %v8343_v21  ;;  %v8312_v28 = vrot.slane %v8311_v22, 4  ;;  %v8367_v31 = vadd.f32 %v8366_v0, %v8345_v26 }
 0x4e7   :  { %v8303_v32 = vrot.slane %v8302_v7, 4  ;;  %v8358_v34 = vadd.f32 %v8357_v10, %v8344_v8  ;;  %v8321_v36 = vrot.slane %v8320_v11, 4  ;;  %v8376_v33 = vadd.f32 %v8375_v15, %v8346_v12 }
 0x4e8   :  { %v8295_v35 = vadd.f32 %v8294_v25, %v8293_v20  ;;  %v8350_v37 = vrot.slane %v8349_v27, 4  ;;  %v8313_v38 = vadd.f32 %v8312_v28, %v8311_v22  ;;  %v8368_v39 = vrot.slane %v8367_v31, 4 }
 0x4e9   :  { %v8304_v40 = vadd.f32 %v8303_v32, %v8302_v7  ;;  %v8359_v42 = vrot.slane %v8358_v34, 4  ;;  %v8322_v44 = vadd.f32 %v8321_v36, %v8320_v11  ;;  %v8377_v41 = vrot.slane %v8376_v33, 4 }
 0x4ea   :  { %v8296_v43 = vrot.slane %v8295_v35, 2  ;;  %v8351_v47 = vadd.f32 %v8350_v37, %v8349_v27  ;;  %v8314_v48 = vrot.slane %v8313_v38, 2  ;;  %v8369_v49 = vadd.f32 %v8368_v39, %v8367_v31 }
 0x4eb   :  { %v8305_v50 = vrot.slane %v8304_v40, 2  ;;  %v8360_v53 = vadd.f32 %v8359_v42, %v8358_v34  ;;  %v8323_v54 = vrot.slane %v8322_v44, 2  ;;  %v8378_v55 = vadd.f32 %v8377_v41, %v8376_v33 }
 0x4ec   :  { %v8297_v56 = vadd.f32 %v8296_v43, %v8295_v35  ;;  %v8352_v59 = vrot.slane %v8351_v47, 2  ;;  %v8315_v60 = vadd.f32 %v8314_v48, %v8313_v38  ;;  %v8370_v57 = vrot.slane %v8369_v49, 2 }
 0x4ed   :  { %v8306_v58 = vadd.f32 %v8305_v50, %v8304_v40  ;;  %v8361_v61 = vrot.slane %v8360_v53, 2  ;;  %v8324_v62 = vadd.f32 %v8323_v54, %v8322_v44  ;;  %v8379_v63 = vrot.slane %v8378_v55, 2 }
 0x4ee   :  { %v8298_v0 = vrot.slane %v8297_v56, 1  ;;  %v8353_v10 = vadd.f32 %v8352_v59, %v8351_v47  ;;  %v8316_v15 = vrot.slane %v8315_v60, 1  ;;  %v8371_v20 = vadd.f32 %v8370_v57, %v8369_v49 }
 0x4ef   :  { %v8307_v21 = vrot.slane %v8306_v58, 1  ;;  %v8362_v22 = vadd.f32 %v8361_v61, %v8360_v53  ;;  %v8325_v26 = vrot.slane %v8324_v62, 1  ;;  %v8380_v7 = vadd.f32 %v8379_v63, %v8378_v55 }
 0x4f0   :  { %v8299_v8 = vadd.f32 %v8298_v0, %v8297_v56  ;;  %v8354_v11 = vrot.slane %v8353_v10, 1  ;;  %v8317_v12 = vadd.f32 %v8316_v15, %v8315_v60  ;;  %v8372_v25 = vrot.slane %v8371_v20, 1 }
 0x4f1   :  { %v8308_v27 = vadd.f32 %v8307_v21, %v8306_v58  ;;  %v8363_v28 = vrot.slane %v8362_v22, 1  ;;  %v8326_v31 = vadd.f32 %v8325_v26, %v8324_v62  ;;  %v8381_v32 = vrot.slane %v8380_v7, 1 }
 0x4f2   :  { %v8327_v34 = vmul.f32 0.03125, %v8299_v8  ;;  %v8355_v36 = vadd.f32 %v8354_v11, %v8353_v10  ;;  %v8329_v33 = vmul.f32 0.03125, %v8317_v12  ;;  %v8373_v35 = vadd.f32 %v8372_v25, %v8371_v20 }
 0x4f3   :  { %v8328_v37 = vmul.f32 0.03125, %v8308_v27  ;;  %v8364_v38 = vadd.f32 %v8363_v28, %v8362_v22  ;;  %v8330_v39 = vmul.f32 0.03125, %v8326_v31  ;;  %v8382_v40 = vadd.f32 %v8381_v32, %v8380_v7  ;;  %v8399_v31 = vld [vmem:[%s15150_s3] sm:$0xf] }
 0x4f4   :  { %v8383_v42 = vmul.f32 0.03125, %v8355_v36  ;;  %v8387_v44 = vmul.f32 %v8327_v34, %v8327_v34  ;;  %v8385_v41 = vmul.f32 0.03125, %v8373_v35  ;;  %v8389_v43 = vmul.f32 %v8329_v33, %v8329_v33 }
 0x4f5   :  { %v8384_v47 = vmul.f32 0.03125, %v8364_v38  ;;  %v8388_v48 = vmul.f32 %v8328_v37, %v8328_v37  ;;  %v8386_v49 = vmul.f32 0.03125, %v8382_v40  ;;  %v8390_v50 = vmul.f32 %v8330_v39, %v8330_v39 }
 0x4f6   :  { %v8391_v53 = vsub.f32 %v8383_v42, %v8387_v44  ;;  %v8393_v54 = vsub.f32 %v8385_v41, %v8389_v43  ;;  %v11560_v10 = vmov 1966171168  }
 0x4f7   :  { %v8392_v55 = vsub.f32 %v8384_v47, %v8388_v48  ;;  %v8394_v56 = vsub.f32 %v8386_v49, %v8390_v50  ;;  %v8415_v15 = vunpack.c.l.s4 %v11560_v10 }
 0x4f8   :  { %v8395_v59 = vmax.f32 %v8391_v53, 0.0  ;;  %v8397_v60 = vmax.f32 %v8393_v54, 0.0 }
 0x4f9   :  { %v8396_v57 = vmax.f32 %v8392_v55, 0.0  ;;  %v8398_v58 = vmax.f32 %v8394_v56, 0.0  ;;  %v8416_v20 = vunpack.c.0.s8 %v8415_v15 }
 0x4fa   :  { %v8400_v61 = vadd.f32 1e-05, %v8395_v59  ;;  %v8402_v62 = vadd.f32 1e-05, %v8397_v60 }
 0x4fb   :  { %v8401_v63 = vadd.f32 1e-05, %v8396_v57  ;;  %v8403_v0 = vadd.f32 1e-05, %v8398_v58  ;;  %v8419_v26 = vsub.s32 %v8416_v20, %v14975_v3 }
 0x4fc   :  { %11552 = vrsqrt.f32 %v8400_v61 }
 0x4fd   :  { %11554 = vrsqrt.f32 %v8402_v62 }
 0x4fe   :  { %11556 = vrsqrt.f32 %v8401_v63 }
 0x4ff   :  { %11558 = vrsqrt.f32 %v8403_v0 }
 0x506   :  { %v11553_v21 = vpop.eup %11552 }
 0x507   :  { %v11555_v22 = vpop.eup %11554 }
 0x508   :  { %v11557_v7 = vpop.eup %11556 }
 0x509   :  { %v11559_v8 = vpop.eup %11558  ;;  %v8412_v11 = vcombine.low %v11553_v21, %v11557_v7 }
 0x50a   :  { %v8413_v12 = vcombine.low %v11555_v22, %v11559_v8 }
 0x50b   :  { %v8420_v25 = vrot.slane %v8412_v11, %v8419_v26 }
 0x50c   :  { %v8427_v27 = vrot.slane %v8413_v12, %v8419_v26 }
 0x50e   :  { %v8428_v28 = vcombine.low %v8420_v25, %v8427_v27 }
 0x510   :  { %v8435_v32 = vrot.slane %v8428_v28, %v8419_v26 }
 0x512   :  { %v8437_v36 = vmul.f32 %v8435_v32, %v8399_v31 }
 0x514   :  { %v8443_v35 = vrot.slane %v8437_v36, %v14978_v2  ;;  %v8447_v38 = vrot.slane %v8437_v36, %v14987_v1  ;;  %v8451_v40 = vrot.slane %v8437_v36, %v14981_v5  ;;  %v8455_v3 = vrot.slane %v8437_v36, %v14990_v6 }
 0x516   :  { %v8460_v42 = vmul.f32 %v8443_v35, %v8327_v34  ;;  %v8461_v44 = vmul.f32 %v8447_v38, %v8328_v37  ;;  %v8462_v41 = vmul.f32 %v8451_v40, %v8329_v33  ;;  %v8463_v43 = vmul.f32 %v8455_v3, %v8330_v39 }
 0x517   :  { %v8494_v47 = vmul.f32 %v14996_v13, %v8443_v35  ;;  %v8495_v48 = vmul.f32 %v15000_v19, %v8447_v38  ;;  %v8496_v49 = vmul.f32 %v14998_v14, %v8451_v40  ;;  %v8497_v50 = vmul.f32 %v15002_v17, %v8455_v3 }
 0x518   :  { %v8468_v53 = vcombine.low %v8460_v42, %v8461_v44  ;;  %v8469_v54 = vcombine.low %v8462_v41, %v8463_v43  ;;  %v8498_v55 = vmul.f32 %v15008_v23, %v8443_v35  ;;  %v8499_v56 = vmul.f32 %v15016_v29, %v8447_v38 }
 0x519   :  { %v8500_v59 = vmul.f32 %v15010_v24, %v8451_v40  ;;  %v8501_v34 = vmul.f32 %v15018_v30, %v8455_v3  ;;  %v8502_v33 = vmul.f32 %v15036_v45, %v8443_v35  ;;  %v8503_v13 = vmul.f32 %v15040_v51, %v8447_v38  ;;  %v8438_v30 = vld [vmem:[%s15151_s4] sm:$0xf] }
 0x51a   :  { %v8476_v37 = vrot.slane %v8468_v53, %v8419_v26  ;;  %v8483_v19 = vrot.slane %v8469_v54, %v8419_v26  ;;  %v8504_v14 = vmul.f32 %v15038_v46, %v8451_v40  ;;  %v8505_v17 = vmul.f32 %v15042_v52, %v8455_v3 }
 0x51b   :  { %v8506_v39 = vmul.f32 %v15056_v4, %v8443_v35  ;;  %v8507_v23 = vmul.f32 %v15060_v16, %v8447_v38  ;;  %v8508_v29 = vmul.f32 %v15058_v9, %v8451_v40  ;;  %v8509_v24 = vmul.f32 %v15062_v18, %v8455_v3 }
 0x51c   :  { %v8484_v60 = vcombine.low %v8476_v37, %v8483_v19 }
 0x51e   :  { %v8491_v45 = vrot.slane %v8484_v60, %v8419_v26 }
 0x520   :  { %v8493_v51 = vsub.f32 %v8438_v30, %v8491_v45 }
 0x522   :  { %v8514_v57 = vrot.slane %v8493_v51, %v14978_v2  ;;  %v8518_v46 = vrot.slane %v8493_v51, %v14987_v1  ;;  %v8522_v52 = vrot.slane %v8493_v51, %v14981_v5  ;;  %v8526_v4 = vrot.slane %v8493_v51, %v14990_v6 }
 0x524   :  { %v8531_v16 = vadd.f32 %v8514_v57, %v8494_v47  ;;  %v8532_v58 = vadd.f32 %v8518_v46, %v8495_v48  ;;  %v8533_v9 = vadd.f32 %v8522_v52, %v8496_v49  ;;  %v8534_v61 = vadd.f32 %v8526_v4, %v8497_v50 }
 0x525   :  { %v8535_v18 = vadd.f32 %v8514_v57, %v8498_v55  ;;  %v8536_v62 = vadd.f32 %v8518_v46, %v8499_v56  ;;  %v8537_v63 = vadd.f32 %v8522_v52, %v8500_v59  ;;  %v8538_v0 = vadd.f32 %v8526_v4, %v8501_v34 }
 0x526   :  { %v8539_v10 = vadd.f32 %v8514_v57, %v8502_v33  ;;  %v8540_v15 = vadd.f32 %v8518_v46, %v8503_v13  ;;  %v8541_v20 = vadd.f32 %v8522_v52, %v8504_v14  ;;  %v8542_v21 = vadd.f32 %v8526_v4, %v8505_v17 }
 0x527   :  { %v8543_v22 = vadd.f32 %v8514_v57, %v8506_v39  ;;  %v8544_v2 = vadd.f32 %v8518_v46, %v8507_v23  ;;  %v8545_v26 = vadd.f32 %v8522_v52, %v8508_v29  ;;  %v8546_v1 = vadd.f32 %v8526_v4, %v8509_v24 }
 0x528   :  { %vm8547_vm0 = vcmp.ge.f32.partialorder %v8531_v16, 0.0  ;;  %vm8548_vm1 = vcmp.ge.f32.partialorder %v8532_v58, 0.0  ;;  %vm8549_vm2 = vcmp.ge.f32.partialorder %v8533_v9, 0.0  ;;  %vm8550_vm3 = vcmp.ge.f32.partialorder %v8534_v61, 0.0 }
 0x529   :  { %vm8551_vm4 = vcmp.ge.f32.partialorder %v8535_v18, 0.0  ;;  %vm8552_vm5 = vcmp.ge.f32.partialorder %v8536_v62, 0.0  ;;  %vm8553_vm6 = vcmp.ge.f32.partialorder %v8537_v63, 0.0  ;;  %vm8554_vm7 = vcmp.ge.f32.partialorder %v8538_v0, 0.0 }
 0x52a   :  { %vm8555_vm8 = vcmp.ge.f32.partialorder %v8539_v10, 0.0  ;;  %vm8556_vm9 = vcmp.ge.f32.partialorder %v8540_v15, 0.0  ;;  %vm8557_vm10 = vcmp.ge.f32.partialorder %v8541_v20, 0.0  ;;  %vm8558_vm11 = vcmp.ge.f32.partialorder %v8542_v21, 0.0 }
 0x52b   :  { %vm8559_vm12 = vcmp.ge.f32.partialorder %v8543_v22, 0.0  ;;  %vm8560_vm13 = vcmp.ge.f32.partialorder %v8544_v2, 0.0  ;;  %vm8561_vm14 = vcmp.ge.f32.partialorder %v8545_v26, 0.0  ;;  %vm8562_vm15 = vcmp.ge.f32.partialorder %v8546_v1, 0.0 }
 0x52c   :  { %v8563_v5 = vmul.f32 0.2, %v8531_v16  ;;  %v8564_v6 = vmul.f32 0.2, %v8532_v58  ;;  %v8565_v7 = vmul.f32 0.2, %v8533_v9 }
 0x52d   :  { %v8566_v8 = vmul.f32 0.2, %v8534_v61  ;;  %v8567_v11 = vmul.f32 0.2, %v8535_v18  ;;  %v8568_v12 = vmul.f32 0.2, %v8536_v62 }
 0x52e   :  { %v8569_v25 = vmul.f32 0.2, %v8537_v63  ;;  %v8570_v27 = vmul.f32 0.2, %v8538_v0  ;;  %v8571_v28 = vmul.f32 0.2, %v8539_v10  ;;  %v8579_v31 = vsel %vm8547_vm0, %v8531_v16, %v8563_v5 }
 0x52f   :  { %v8572_v32 = vmul.f32 0.2, %v8540_v15  ;;  %v8573_v36 = vmul.f32 0.2, %v8541_v20  ;;  %v8574_v35 = vmul.f32 0.2, %v8542_v21  ;;  %v8580_v38 = vsel %vm8548_vm1, %v8532_v58, %v8564_v6 }
 0x530   :  { %v8575_v40 = vmul.f32 0.2, %v8543_v22  ;;  %v8576_v3 = vmul.f32 0.2, %v8544_v2  ;;  %v8577_v42 = vmul.f32 0.2, %v8545_v26  ;;  %v8581_v44 = vsel %vm8549_vm2, %v8533_v9, %v8565_v7 }
 0x531   :  { %v8578_v41 = vmul.f32 0.2, %v8546_v1  ;;  %v8582_v43 = vsel %vm8550_vm3, %v8534_v61, %v8566_v8  ;;  %v8583_v47 = vsel %vm8551_vm4, %v8535_v18, %v8567_v11  ;;  %v8584_v48 = vsel %vm8552_vm5, %v8536_v62, %v8568_v12 }
 0x532   :  { %v8585_v49 = vsel %vm8553_vm6, %v8537_v63, %v8569_v25  ;;  %v8586_v50 = vsel %vm8554_vm7, %v8538_v0, %v8570_v27  ;;  %v8587_v53 = vsel %vm8555_vm8, %v8539_v10, %v8571_v28  ;;  %v8588_v54 = vsel %vm8556_vm9, %v8540_v15, %v8572_v32 }
 0x533   :  { %v8589_v55 = vsel %vm8557_vm10, %v8541_v20, %v8573_v36  ;;  %v8590_v56 = vsel %vm8558_vm11, %v8542_v21, %v8574_v35  ;;  %v8591_v59 = vsel %vm8559_vm12, %v8543_v22, %v8575_v40  ;;  %v8592_v34 = vsel %vm8560_vm13, %v8544_v2, %v8576_v3 }
 0x534   :  { %v8593_v33 = vsel %vm8561_vm14, %v8545_v26, %v8577_v42  ;;  %v8594_v13 = vsel %vm8562_vm15, %v8546_v1, %v8578_v41  ;;  %v9751_v37 = vpack.c.bf16 %v8580_v38, %v8579_v31  ;;  %v9752_v19 = vpack.c.bf16 %v8582_v43, %v8581_v44 }
 0x535   :  { %v9753_v14 = vpack.c.bf16 %v8584_v48, %v8583_v47  ;;  %v9754_v17 = vpack.c.bf16 %v8586_v50, %v8585_v49  ;;  %v9755_v39 = vpack.c.bf16 %v8588_v54, %v8587_v53  ;;  %v9756_v23 = vpack.c.bf16 %v8590_v56, %v8589_v55 }
 0x536   :  { %v9757_v29 = vpack.c.bf16 %v8592_v34, %v8591_v59  ;;  %v9758_v24 = vpack.c.bf16 %v8594_v13, %v8593_v33  ;;  %8643 = vst [vmem:[%s15152_s5] sm:$0xff] %v9751_v37  ;;  %8644 = vst [vmem:[%s15152_s5 + $0x8] sm:$0xff] %v9752_v19 }
 0x537   :  { %8645 = vst [vmem:[%s15152_s5 + $0x10] sm:$0xff] %v9753_v14  ;;  %8646 = vst [vmem:[%s15152_s5 + $0x18] sm:$0xff] %v9754_v17 }
 0x538   :  { %8647 = vst [vmem:[%s15152_s5 + $0x20] sm:$0xff] %v9755_v39  ;;  %8648 = vst [vmem:[%s15152_s5 + $0x28] sm:$0xff] %v9756_v23 }
 0x539   :  { %8649 = vst [vmem:[%s15152_s5 + $0x30] sm:$0xff] %v9757_v29  ;;  %8650 = vst [vmem:[%s15152_s5 + $0x38] sm:$0xff] %v9758_v24 }

// kernel: discriminator_forward.7
= control target key start
LH: loop header
LB: loop body
LE: loop exit
PB: predicated region body
PF: predicated region fallthrough
CT: control target
= control target key end

     0   :  { %s9436_s1 = inlined_call_operand.vmem [shape: bf16[8192,128], index: 1, kind: input, shape index: {}]   ;;  %s9437_s0 = inlined_call_operand.vmem [shape: bf16[16,8192], index: 0, kind: input, shape index: {}]   ;;  %s9438_s2 = inlined_call_operand.vmem [shape: f32[1,128], index: 2, kind: input, shape index: {}]   ;;  %s9439_s3 = inlined_call_operand.vmem [shape: f32[16,128], index: 3, kind: output, shape index: {}]  }
   0x1   :  { %v7111_v0 = vld [vmem:[%s9436_s1 + $0x40] sm:$0xff]   ;;  %v7115_v4 = vld [vmem:[%s9436_s1 + $0x48] sm:$0xff]   ;;  %v7119_v8 = vld [vmem:[%s9436_s1 + $0x50] sm:$0xff]  }
   0x2   :  { %v7112_v1 = vld [vmem:[%s9436_s1 + $0xc0] sm:$0xff]   ;;  %6407 = vmatprep.subr.bf16.mxu0 %v7111_v0  ;;  %v7116_v5 = vld [vmem:[%s9436_s1 + $0xc8] sm:$0xff]   ;;  %v7120_v9 = vld [vmem:[%s9436_s1 + $0xd0] sm:$0xff]  }
   0x3   :  { %v7113_v2 = vld [vmem:[%s9436_s1] sm:$0xff]   ;;  %6429 = vmatprep.subr.bf16.mxu1 %v7112_v1  ;;  %v7117_v6 = vld [vmem:[%s9436_s1 + $0x8] sm:$0xff]   ;;  %v7121_v10 = vld [vmem:[%s9436_s1 + $0x10] sm:$0xff]  }
   0x4   :  { %v7114_v3 = vld [vmem:[%s9436_s1 + $0x80] sm:$0xff]   ;;  %6408 = vmatpush3.bf16.msra.mxu0 %v7113_v2  ;;  %v7118_v7 = vld [vmem:[%s9436_s1 + $0x88] sm:$0xff]   ;;  %v7122_v11 = vld [vmem:[%s9436_s1 + $0x90] sm:$0xff]  }
   0x5   :  { %6430 = vmatpush3.bf16.msra.mxu1 %v7114_v3  ;;  %6409 = vmatprep.subr.bf16.mxu0 %v7115_v4  ;;  %v7123_v12 = vld [vmem:[%s9436_s1 + $0x58] sm:$0xff]   ;;  %v7127_v16 = vld [vmem:[%s9436_s1 + $0x60] sm:$0xff]   ;;  %v7131_v20 = vld [vmem:[%s9436_s1 + $0x68] sm:$0xff]  }
   0x6   :  { %6431 = vmatprep.subr.bf16.mxu1 %v7116_v5  ;;  %v7124_v13 = vld [vmem:[%s9436_s1 + $0xd8] sm:$0xff]   ;;  %v7128_v17 = vld [vmem:[%s9436_s1 + $0xe0] sm:$0xff]   ;;  %v7132_v21 = vld [vmem:[%s9436_s1 + $0xe8] sm:$0xff]  }
   0x7   :  { %v7125_v14 = vld [vmem:[%s9436_s1 + $0x18] sm:$0xff]   ;;  %v7129_v18 = vld [vmem:[%s9436_s1 + $0x20] sm:$0xff]   ;;  %v7133_v22 = vld [vmem:[%s9436_s1 + $0x28] sm:$0xff]  }
   0x8   :  { %6410 = vmatpush3.bf16.msra.mxu0 %v7117_v6  ;;  %v7126_v15 = vld [vmem:[%s9436_s1 + $0x98] sm:$0xff]   ;;  %v7130_v19 = vld [vmem:[%s9436_s1 + $0xa0] sm:$0xff]   ;;  %v7134_v23 = vld [vmem:[%s9436_s1 + $0xa8] sm:$0xff]  }
   0x9   :  { %6432 = vmatpush3.bf16.msra.mxu1 %v7118_v7  ;;  %6411 = vmatprep.subr.bf16.mxu0 %v7119_v8  ;;  %v7135_v24 = vld [vmem:[%s9436_s1 + $0x70] sm:$0xff]   ;;  %v7139_v28 = vld [vmem:[%s9436_s1 + $0x78] sm:$0xff]   ;;  %v15_v32 = vld [vmem:[%s9437_s0] sm:$0xff] }
   0xa   :  { %6433 = vmatprep.subr.bf16.mxu1 %v7120_v9  ;;  %v7136_v25 = vld [vmem:[%s9436_s1 + $0xf0] sm:$0xff]   ;;  %v7140_v29 = vld [vmem:[%s9436_s1 + $0xf8] sm:$0xff]   ;;  %v47_v33 = vld [vmem:[%s9437_s0 + $0x100] sm:$0xff] }
   0xb   :  { %v7137_v26 = vld [vmem:[%s9436_s1 + $0x30] sm:$0xff]   ;;  %v7141_v30 = vld [vmem:[%s9436_s1 + $0x38] sm:$0xff]   ;;  %v16_v34 = vld [vmem:[%s9437_s0 + $0x8] sm:$0xff]  ;;  %v5831_v35 = vcombine.low %v15_v32, %v47_v33  ;;  %v5832_v36 = vcombine.high %v15_v32, %v47_v33 }
   0xc   :  { %6412 = vmatpush3.bf16.msra.mxu0 %v7121_v10  ;;  %v7138_v27 = vld [vmem:[%s9436_s1 + $0xb0] sm:$0xff]   ;;  %v7142_v31 = vld [vmem:[%s9436_s1 + $0xb8] sm:$0xff]   ;;  %v48_v37 = vld [vmem:[%s9437_s0 + $0x108] sm:$0xff] }
   0xd   :  { %6434 = vmatpush3.bf16.msra.mxu1 %v7122_v11  ;;  %6413 = vmatprep.subr.bf16.mxu0 %v7123_v12  ;;  %v5833_v38 = vcombine.low %v16_v34, %v48_v37  ;;  %v5834_v39 = vcombine.high %v16_v34, %v48_v37  ;;  %v7143_v40 = vld [vmem:[%s9436_s1 + $0x140] sm:$0xff]   ;;  %v7147_v44 = vld [vmem:[%s9436_s1 + $0x148] sm:$0xff]   ;;  %v7151_v48 = vld [vmem:[%s9436_s1 + $0x150] sm:$0xff]  }
   0xe   :  { %6435 = vmatprep.subr.bf16.mxu1 %v7124_v13  ;;  %4534 = vmatprep.mubr.bf16.mxu0 %v5832_v36  ;;  %v7144_v41 = vld [vmem:[%s9436_s1 + $0x1c0] sm:$0xff]   ;;  %v7148_v45 = vld [vmem:[%s9436_s1 + $0x1c8] sm:$0xff]   ;;  %v7152_v49 = vld [vmem:[%s9436_s1 + $0x1d0] sm:$0xff]  }
   0xf   :  { %4575 = vmatprep.mubr.bf16.mxu1 %v5834_v39  ;;  %v7145_v42 = vld [vmem:[%s9436_s1 + $0x100] sm:$0xff]   ;;  %v7149_v46 = vld [vmem:[%s9436_s1 + $0x108] sm:$0xff]   ;;  %v7153_v50 = vld [vmem:[%s9436_s1 + $0x110] sm:$0xff]  }
  0x10   :  { %6414 = vmatpush3.bf16.msra.mxu0 %v7125_v14  ;;  %v7146_v43 = vld [vmem:[%s9436_s1 + $0x180] sm:$0xff]   ;;  %v7150_v47 = vld [vmem:[%s9436_s1 + $0x188] sm:$0xff]   ;;  %v7154_v51 = vld [vmem:[%s9436_s1 + $0x190] sm:$0xff]  }
  0x11   :  { %6436 = vmatpush3.bf16.msra.mxu1 %v7126_v15  ;;  %6415 = vmatprep.subr.bf16.mxu0 %v7127_v16  ;;  %v7155_v52 = vld [vmem:[%s9436_s1 + $0x158] sm:$0xff]   ;;  %v7159_v56 = vld [vmem:[%s9436_s1 + $0x160] sm:$0xff]   ;;  %v7163_v60 = vld [vmem:[%s9436_s1 + $0x168] sm:$0xff]  }
  0x12   :  { %6437 = vmatprep.subr.bf16.mxu1 %v7128_v17  ;;  %v7156_v53 = vld [vmem:[%s9436_s1 + $0x1d8] sm:$0xff]   ;;  %v7160_v57 = vld [vmem:[%s9436_s1 + $0x1e0] sm:$0xff]   ;;  %v7164_v61 = vld [vmem:[%s9436_s1 + $0x1e8] sm:$0xff]  }
  0x13   :  { %v7157_v54 = vld [vmem:[%s9436_s1 + $0x118] sm:$0xff]   ;;  %v7161_v58 = vld [vmem:[%s9436_s1 + $0x120] sm:$0xff]   ;;  %v7165_v62 = vld [vmem:[%s9436_s1 + $0x128] sm:$0xff]  }
  0x14   :  { %6416 = vmatpush3.bf16.msra.mxu0 %v7129_v18  ;;  %v7158_v55 = vld [vmem:[%s9436_s1 + $0x198] sm:$0xff]   ;;  %v7162_v59 = vld [vmem:[%s9436_s1 + $0x1a0] sm:$0xff]   ;;  %v7166_v63 = vld [vmem:[%s9436_s1 + $0x1a8] sm:$0xff]  }
  0x15   :  { %6438 = vmatpush3.bf16.msra.mxu1 %v7130_v19  ;;  %6417 = vmatprep.subr.bf16.mxu0 %v7131_v20  ;;  %v7167_v0 = vld [vmem:[%s9436_s1 + $0x170] sm:$0xff]   ;;  %v7171_v4 = vld [vmem:[%s9436_s1 + $0x178] sm:$0xff]   ;;  %v7175_v16 = vld [vmem:[%s9436_s1 + $0x240] sm:$0xff]  }
  0x16   :  { %6439 = vmatprep.subr.bf16.mxu1 %v7132_v21  ;;  %v7168_v1 = vld [vmem:[%s9436_s1 + $0x1f0] sm:$0xff]   ;;  %v7172_v5 = vld [vmem:[%s9436_s1 + $0x1f8] sm:$0xff]   ;;  %v7176_v17 = vld [vmem:[%s9436_s1 + $0x2c0] sm:$0xff]  }
  0x17   :  { %v7169_v2 = vld [vmem:[%s9436_s1 + $0x130] sm:$0xff]   ;;  %v7173_v6 = vld [vmem:[%s9436_s1 + $0x138] sm:$0xff]   ;;  %v7177_v18 = vld [vmem:[%s9436_s1 + $0x200] sm:$0xff]  }
  0x18   :  { %6418 = vmatpush3.bf16.msra.mxu0 %v7133_v22  ;;  %v7170_v3 = vld [vmem:[%s9436_s1 + $0x1b0] sm:$0xff]   ;;  %v7174_v7 = vld [vmem:[%s9436_s1 + $0x1b8] sm:$0xff]   ;;  %v7178_v19 = vld [vmem:[%s9436_s1 + $0x280] sm:$0xff]  }
  0x19   :  { %6440 = vmatpush3.bf16.msra.mxu1 %v7134_v23  ;;  %6419 = vmatprep.subr.bf16.mxu0 %v7135_v24  ;;  %v17_v8 = vld [vmem:[%s9437_s0 + $0x10] sm:$0xff]  ;;  %v18_v12 = vld [vmem:[%s9437_s0 + $0x18] sm:$0xff]  ;;  %v7179_v20 = vld [vmem:[%s9436_s1 + $0x248] sm:$0xff]  }
  0x1a   :  { %6441 = vmatprep.subr.bf16.mxu1 %v7136_v25  ;;  %v49_v9 = vld [vmem:[%s9437_s0 + $0x110] sm:$0xff]  ;;  %v50_v13 = vld [vmem:[%s9437_s0 + $0x118] sm:$0xff]  ;;  %v7180_v21 = vld [vmem:[%s9436_s1 + $0x2c8] sm:$0xff]  }
  0x1b   :  { %v5835_v10 = vcombine.low %v17_v8, %v49_v9  ;;  %v5836_v11 = vcombine.high %v17_v8, %v49_v9  ;;  %v5837_v14 = vcombine.low %v18_v12, %v50_v13  ;;  %v5838_v15 = vcombine.high %v18_v12, %v50_v13  ;;  %v7181_v22 = vld [vmem:[%s9436_s1 + $0x208] sm:$0xff]   ;;  %v7183_v24 = vld [vmem:[%s9436_s1 + $0x250] sm:$0xff]   ;;  %v7191_v32 = vld [vmem:[%s9436_s1 + $0x260] sm:$0xff]  }
  0x1c   :  { %6420 = vmatpush3.bf16.msra.mxu0 %v7137_v26  ;;  %v7182_v23 = vld [vmem:[%s9436_s1 + $0x288] sm:$0xff]   ;;  %v7184_v25 = vld [vmem:[%s9436_s1 + $0x2d0] sm:$0xff]   ;;  %v7192_v33 = vld [vmem:[%s9436_s1 + $0x2e0] sm:$0xff]  }
  0x1d   :  { %6442 = vmatpush3.bf16.msra.mxu1 %v7138_v27  ;;  %6421 = vmatprep.subr.bf16.mxu0 %v7139_v28  ;;  %v7185_v26 = vld [vmem:[%s9436_s1 + $0x210] sm:$0xff]   ;;  %v7187_v28 = vld [vmem:[%s9436_s1 + $0x258] sm:$0xff]   ;;  %v7193_v34 = vld [vmem:[%s9436_s1 + $0x220] sm:$0xff]  }
  0x1e   :  { %6443 = vmatprep.subr.bf16.mxu1 %v7140_v29  ;;  %v7186_v27 = vld [vmem:[%s9436_s1 + $0x290] sm:$0xff]   ;;  %v7188_v29 = vld [vmem:[%s9436_s1 + $0x2d8] sm:$0xff]   ;;  %v7195_v36 = vld [vmem:[%s9436_s1 + $0x268] sm:$0xff]  }
  0x1f   :  { %v7196_v37 = vld [vmem:[%s9436_s1 + $0x2e8] sm:$0xff]   ;;  %v7223_v8 = vld [vmem:[%s9436_s1 + $0x360] sm:$0xff]  }
  0x20   :  { %6422 = vmatpush3.bf16.msra.mxu0 %v7141_v30  ;;  %v7189_v30 = vld [vmem:[%s9436_s1 + $0x218] sm:$0xff]   ;;  %v7198_v39 = vld [vmem:[%s9436_s1 + $0x2a8] sm:$0xff]   ;;  %v7224_v9 = vld [vmem:[%s9436_s1 + $0x3e0] sm:$0xff]  }
  0x21   :  { %6444 = vmatpush3.bf16.msra.mxu1 %v7142_v31  ;;  %6451 = vmatprep.subr.bf16.mxu0 %v7143_v40  ;;  %v7190_v31 = vld [vmem:[%s9436_s1 + $0x298] sm:$0xff]   ;;  %v7199_v40 = vld [vmem:[%s9436_s1 + $0x270] sm:$0xff]   ;;  %v7227_v12 = vld [vmem:[%s9436_s1 + $0x368] sm:$0xff]  }
  0x22   :  { %6473 = vmatprep.subr.bf16.mxu1 %v7144_v41  ;;  %v7200_v41 = vld [vmem:[%s9436_s1 + $0x2f0] sm:$0xff]   ;;  %v7228_v13 = vld [vmem:[%s9436_s1 + $0x3e8] sm:$0xff]  }
  0x23   :  { %4535 = vmatmul.mubr.bf16.vlgmr.msra.gmra.mrb[0].mxu0 %v5831_v35  ;;  %v7194_v35 = vld [vmem:[%s9436_s1 + $0x2a0] sm:$0xff]  }
  0x24   :  { %4576 = vmatmul.mubr.bf16.vlgmr.msra.gmra.mrb[0].mxu1 %v5833_v38  ;;  %6452 = vmatpush3.bf16.msra.mxu0 %v7145_v42  ;;  %v7197_v38 = vld [vmem:[%s9436_s1 + $0x228] sm:$0xff]   ;;  %v7201_v42 = vld [vmem:[%s9436_s1 + $0x230] sm:$0xff]  }
  0x25   :  { %6474 = vmatpush3.bf16.msra.mxu1 %v7146_v43  ;;  %6453 = vmatprep.subr.bf16.mxu0 %v7147_v44  ;;  %v7202_v43 = vld [vmem:[%s9436_s1 + $0x2b0] sm:$0xff]   ;;  %v7203_v44 = vld [vmem:[%s9436_s1 + $0x278] sm:$0xff]  }
  0x26   :  { %6475 = vmatprep.subr.bf16.mxu1 %v7148_v45  ;;  %4616 = vmatprep.mubr.bf16.mxu0 %v5836_v11  ;;  %v7204_v45 = vld [vmem:[%s9436_s1 + $0x2f8] sm:$0xff]   ;;  %v7226_v11 = vld [vmem:[%s9436_s1 + $0x3a0] sm:$0xff]  }
  0x27   :  { %4657 = vmatprep.mubr.bf16.mxu1 %v5838_v15  ;;  %v7230_v15 = vld [vmem:[%s9436_s1 + $0x3a8] sm:$0xff]  }
  0x28   :  { %6454 = vmatpush3.bf16.msra.mxu0 %v7149_v46  ;;  %v7205_v46 = vld [vmem:[%s9436_s1 + $0x238] sm:$0xff]  }
  0x29   :  { %6476 = vmatpush3.bf16.msra.mxu1 %v7150_v47  ;;  %6455 = vmatprep.subr.bf16.mxu0 %v7151_v48  ;;  %v7206_v47 = vld [vmem:[%s9436_s1 + $0x2b8] sm:$0xff]   ;;  %v19_v48 = vld [vmem:[%s9437_s0 + $0x20] sm:$0xff] }
  0x2a   :  { %6477 = vmatprep.subr.bf16.mxu1 %v7152_v49  ;;  %v51_v49 = vld [vmem:[%s9437_s0 + $0x120] sm:$0xff] }
  0x2c   :  { %6456 = vmatpush3.bf16.msra.mxu0 %v7153_v50  ;;  %v20_v50 = vld [vmem:[%s9437_s0 + $0x28] sm:$0xff] }
  0x2d   :  { %6478 = vmatpush3.bf16.msra.mxu1 %v7154_v51  ;;  %6457 = vmatprep.subr.bf16.mxu0 %v7155_v52  ;;  %v52_v51 = vld [vmem:[%s9437_s0 + $0x128] sm:$0xff]  ;;  %v5839_v52 = vcombine.low %v19_v48, %v51_v49 }
  0x2e   :  { %6479 = vmatprep.subr.bf16.mxu1 %v7156_v53  ;;  %v5840_v53 = vcombine.high %v19_v48, %v51_v49  ;;  %v7255_v48 = vld [vmem:[%s9436_s1 + $0x460] sm:$0xff]  }
  0x2f   :  { %v7256_v49 = vld [vmem:[%s9436_s1 + $0x4e0] sm:$0xff]  }
  0x30   :  { %6458 = vmatpush3.bf16.msra.mxu0 %v7157_v54  ;;  %v5841_v54 = vcombine.low %v20_v50, %v52_v51 }
  0x31   :  { %6480 = vmatpush3.bf16.msra.mxu1 %v7158_v55  ;;  %6459 = vmatprep.subr.bf16.mxu0 %v7159_v56  ;;  %v5842_v55 = vcombine.high %v20_v50, %v52_v51  ;;  %v7207_v56 = vld [vmem:[%s9436_s1 + $0x340] sm:$0xff]  }
  0x32   :  { %6481 = vmatprep.subr.bf16.mxu1 %v7160_v57  ;;  %v7208_v57 = vld [vmem:[%s9436_s1 + $0x3c0] sm:$0xff]  }
  0x33   :  { %v7257_v50 = vld [vmem:[%s9436_s1 + $0x420] sm:$0xff]  }
  0x34   :  { %6460 = vmatpush3.bf16.msra.mxu0 %v7161_v58  ;;  %v7209_v58 = vld [vmem:[%s9436_s1 + $0x300] sm:$0xff]  }
  0x35   :  { %6482 = vmatpush3.bf16.msra.mxu1 %v7162_v59  ;;  %6461 = vmatprep.subr.bf16.mxu0 %v7163_v60  ;;  %v7210_v59 = vld [vmem:[%s9436_s1 + $0x380] sm:$0xff]   ;;  %v7211_v60 = vld [vmem:[%s9436_s1 + $0x348] sm:$0xff]  }
  0x36   :  { %6483 = vmatprep.subr.bf16.mxu1 %v7164_v61  ;;  %v7212_v61 = vld [vmem:[%s9436_s1 + $0x3c8] sm:$0xff]   ;;  %v7258_v51 = vld [vmem:[%s9436_s1 + $0x4a0] sm:$0xff]  }
  0x38   :  { %6462 = vmatpush3.bf16.msra.mxu0 %v7165_v62  ;;  %v7213_v62 = vld [vmem:[%s9436_s1 + $0x308] sm:$0xff]  }
  0x39   :  { %6484 = vmatpush3.bf16.msra.mxu1 %v7166_v63  ;;  %6463 = vmatprep.subr.bf16.mxu0 %v7167_v0  ;;  %v7214_v63 = vld [vmem:[%s9436_s1 + $0x388] sm:$0xff]   ;;  %v7215_v0 = vld [vmem:[%s9436_s1 + $0x350] sm:$0xff]  }
  0x3a   :  { %6485 = vmatprep.subr.bf16.mxu1 %v7168_v1  ;;  %v7216_v1 = vld [vmem:[%s9436_s1 + $0x3d0] sm:$0xff]  }
  0x3c   :  { %6464 = vmatpush3.bf16.msra.mxu0 %v7169_v2  ;;  %v7217_v2 = vld [vmem:[%s9436_s1 + $0x310] sm:$0xff]  }
  0x3d   :  { %6486 = vmatpush3.bf16.msra.mxu1 %v7170_v3  ;;  %6465 = vmatprep.subr.bf16.mxu0 %v7171_v4  ;;  %v7218_v3 = vld [vmem:[%s9436_s1 + $0x390] sm:$0xff]   ;;  %v7219_v4 = vld [vmem:[%s9436_s1 + $0x358] sm:$0xff]  }
  0x3e   :  { %6487 = vmatprep.subr.bf16.mxu1 %v7172_v5  ;;  %v7220_v5 = vld [vmem:[%s9436_s1 + $0x3d8] sm:$0xff]  }
  0x40   :  { %6466 = vmatpush3.bf16.msra.mxu0 %v7173_v6  ;;  %v7221_v6 = vld [vmem:[%s9436_s1 + $0x318] sm:$0xff]  }
  0x41   :  { %6488 = vmatpush3.bf16.msra.mxu1 %v7174_v7  ;;  %6495 = vmatprep.subr.bf16.mxu0 %v7175_v16  ;;  %v7222_v7 = vld [vmem:[%s9436_s1 + $0x398] sm:$0xff]   ;;  %v7231_v16 = vld [vmem:[%s9436_s1 + $0x370] sm:$0xff]  }
  0x42   :  { %6517 = vmatprep.subr.bf16.mxu1 %v7176_v17  ;;  %v7232_v17 = vld [vmem:[%s9436_s1 + $0x3f0] sm:$0xff]  }
  0x43   :  { %4617 = vmatmul.mubr.bf16.vlgmr.msra.gmra.mrb[4].mxu0 %v5835_v10  ;;  %v7225_v10 = vld [vmem:[%s9436_s1 + $0x320] sm:$0xff]  }
  0x44   :  { %4658 = vmatmul.mubr.bf16.vlgmr.msra.gmra.mrb[4].mxu1 %v5837_v14  ;;  %6496 = vmatpush3.bf16.msra.mxu0 %v7177_v18  ;;  %v7229_v14 = vld [vmem:[%s9436_s1 + $0x328] sm:$0xff]   ;;  %v7233_v18 = vld [vmem:[%s9436_s1 + $0x330] sm:$0xff]  }
  0x45   :  { %6518 = vmatpush3.bf16.msra.mxu1 %v7178_v19  ;;  %6497 = vmatprep.subr.bf16.mxu0 %v7179_v20  ;;  %v7234_v19 = vld [vmem:[%s9436_s1 + $0x3b0] sm:$0xff]   ;;  %v7235_v20 = vld [vmem:[%s9436_s1 + $0x378] sm:$0xff]  }
  0x46   :  { %6519 = vmatprep.subr.bf16.mxu1 %v7180_v21  ;;  %4698 = vmatprep.mubr.bf16.mxu0 %v5840_v53  ;;  %v7236_v21 = vld [vmem:[%s9436_s1 + $0x3f8] sm:$0xff]   ;;  %v7260_v53 = vld [vmem:[%s9436_s1 + $0x4e8] sm:$0xff]  }
  0x47   :  { %4739 = vmatprep.mubr.bf16.mxu1 %v5842_v55  ;;  %v7262_v55 = vld [vmem:[%s9436_s1 + $0x4a8] sm:$0xff]  }
  0x48   :  { %6498 = vmatpush3.bf16.msra.mxu0 %v7181_v22  ;;  %v7237_v22 = vld [vmem:[%s9436_s1 + $0x338] sm:$0xff]  }
  0x49   :  { %6520 = vmatpush3.bf16.msra.mxu1 %v7182_v23  ;;  %6499 = vmatprep.subr.bf16.mxu0 %v7183_v24  ;;  %v7238_v23 = vld [vmem:[%s9436_s1 + $0x3b8] sm:$0xff]   ;;  %v21_v24 = vld [vmem:[%s9437_s0 + $0x30] sm:$0xff] }
  0x4a   :  { %6521 = vmatprep.subr.bf16.mxu1 %v7184_v25  ;;  %v53_v25 = vld [vmem:[%s9437_s0 + $0x130] sm:$0xff] }
  0x4c   :  { %6500 = vmatpush3.bf16.msra.mxu0 %v7185_v26  ;;  %v22_v26 = vld [vmem:[%s9437_s0 + $0x38] sm:$0xff] }
  0x4d   :  { %6522 = vmatpush3.bf16.msra.mxu1 %v7186_v27  ;;  %6501 = vmatprep.subr.bf16.mxu0 %v7187_v28  ;;  %v5843_v27 = vcombine.low %v21_v24, %v53_v25  ;;  %v5844_v28 = vcombine.high %v21_v24, %v53_v25  ;;  %v7287_v24 = vld [vmem:[%s9436_s1 + $0x560] sm:$0xff]  }
  0x4e   :  { %6523 = vmatprep.subr.bf16.mxu1 %v7188_v29  ;;  %v54_v29 = vld [vmem:[%s9437_s0 + $0x138] sm:$0xff]  ;;  %v7288_v25 = vld [vmem:[%s9436_s1 + $0x5e0] sm:$0xff]  }
  0x50   :  { %6502 = vmatpush3.bf16.msra.mxu0 %v7189_v30  ;;  %v5845_v30 = vcombine.low %v22_v26, %v54_v29 }
  0x51   :  { %6524 = vmatpush3.bf16.msra.mxu1 %v7190_v31  ;;  %6503 = vmatprep.subr.bf16.mxu0 %v7191_v32  ;;  %v5846_v31 = vcombine.high %v22_v26, %v54_v29  ;;  %v7239_v32 = vld [vmem:[%s9436_s1 + $0x440] sm:$0xff]   ;;  %v7292_v29 = vld [vmem:[%s9436_s1 + $0x5e8] sm:$0xff]  }
  0x52   :  { %6525 = vmatprep.subr.bf16.mxu1 %v7192_v33  ;;  %v7240_v33 = vld [vmem:[%s9436_s1 + $0x4c0] sm:$0xff]  }
  0x53   :  { %v7289_v26 = vld [vmem:[%s9436_s1 + $0x520] sm:$0xff]  }
  0x54   :  { %6504 = vmatpush3.bf16.msra.mxu0 %v7193_v34  ;;  %v7241_v34 = vld [vmem:[%s9436_s1 + $0x400] sm:$0xff]  }
  0x55   :  { %6526 = vmatpush3.bf16.msra.mxu1 %v7194_v35  ;;  %6505 = vmatprep.subr.bf16.mxu0 %v7195_v36  ;;  %v7242_v35 = vld [vmem:[%s9436_s1 + $0x480] sm:$0xff]   ;;  %v7243_v36 = vld [vmem:[%s9436_s1 + $0x448] sm:$0xff]  }
  0x56   :  { %6527 = vmatprep.subr.bf16.mxu1 %v7196_v37  ;;  %v7244_v37 = vld [vmem:[%s9436_s1 + $0x4c8] sm:$0xff]  }
  0x58   :  { %6506 = vmatpush3.bf16.msra.mxu0 %v7197_v38  ;;  %v7245_v38 = vld [vmem:[%s9436_s1 + $0x408] sm:$0xff]  }
  0x59   :  { %6528 = vmatpush3.bf16.msra.mxu1 %v7198_v39  ;;  %6507 = vmatprep.subr.bf16.mxu0 %v7199_v40  ;;  %v7246_v39 = vld [vmem:[%s9436_s1 + $0x488] sm:$0xff]   ;;  %v7247_v40 = vld [vmem:[%s9436_s1 + $0x450] sm:$0xff]  }
  0x5a   :  { %6529 = vmatprep.subr.bf16.mxu1 %v7200_v41  ;;  %v7248_v41 = vld [vmem:[%s9436_s1 + $0x4d0] sm:$0xff]  }
  0x5c   :  { %6508 = vmatpush3.bf16.msra.mxu0 %v7201_v42  ;;  %v7249_v42 = vld [vmem:[%s9436_s1 + $0x410] sm:$0xff]  }
  0x5d   :  { %6530 = vmatpush3.bf16.msra.mxu1 %v7202_v43  ;;  %6509 = vmatprep.subr.bf16.mxu0 %v7203_v44  ;;  %v7250_v43 = vld [vmem:[%s9436_s1 + $0x490] sm:$0xff]   ;;  %v7251_v44 = vld [vmem:[%s9436_s1 + $0x458] sm:$0xff]  }
  0x5e   :  { %6531 = vmatprep.subr.bf16.mxu1 %v7204_v45  ;;  %v7252_v45 = vld [vmem:[%s9436_s1 + $0x4d8] sm:$0xff]  }
  0x60   :  { %6510 = vmatpush3.bf16.msra.mxu0 %v7205_v46  ;;  %v7253_v46 = vld [vmem:[%s9436_s1 + $0x418] sm:$0xff]  }
  0x61   :  { %6532 = vmatpush3.bf16.msra.mxu1 %v7206_v47  ;;  %6539 = vmatprep.subr.bf16.mxu0 %v7207_v56  ;;  %v7254_v47 = vld [vmem:[%s9436_s1 + $0x498] sm:$0xff]   ;;  %v7263_v56 = vld [vmem:[%s9436_s1 + $0x470] sm:$0xff]  }
  0x62   :  { %6561 = vmatprep.subr.bf16.mxu1 %v7208_v57  ;;  %v7264_v57 = vld [vmem:[%s9436_s1 + $0x4f0] sm:$0xff]  }
  0x63   :  { %4699 = vmatmul.mubr.bf16.vlgmr.msra.gmra.mrb[8].mxu0 %v5839_v52  ;;  %v7259_v52 = vld [vmem:[%s9436_s1 + $0x468] sm:$0xff]  }
  0x64   :  { %4740 = vmatmul.mubr.bf16.vlgmr.msra.gmra.mrb[8].mxu1 %v5841_v54  ;;  %6540 = vmatpush3.bf16.msra.mxu0 %v7209_v58  ;;  %v7261_v54 = vld [vmem:[%s9436_s1 + $0x428] sm:$0xff]   ;;  %v7265_v58 = vld [vmem:[%s9436_s1 + $0x430] sm:$0xff]  }
  0x65   :  { %6562 = vmatpush3.bf16.msra.mxu1 %v7210_v59  ;;  %6541 = vmatprep.subr.bf16.mxu0 %v7211_v60  ;;  %v7266_v59 = vld [vmem:[%s9436_s1 + $0x4b0] sm:$0xff]   ;;  %v7267_v60 = vld [vmem:[%s9436_s1 + $0x478] sm:$0xff]  }
  0x66   :  { %6563 = vmatprep.subr.bf16.mxu1 %v7212_v61  ;;  %4780 = vmatprep.mubr.bf16.mxu0 %v5844_v28  ;;  %v7268_v61 = vld [vmem:[%s9436_s1 + $0x4f8] sm:$0xff]   ;;  %v7291_v28 = vld [vmem:[%s9436_s1 + $0x568] sm:$0xff]  }
  0x67   :  { %4821 = vmatprep.mubr.bf16.mxu1 %v5846_v31  ;;  %v7294_v31 = vld [vmem:[%s9436_s1 + $0x5a8] sm:$0xff]  }
  0x68   :  { %6542 = vmatpush3.bf16.msra.mxu0 %v7213_v62  ;;  %v7269_v62 = vld [vmem:[%s9436_s1 + $0x438] sm:$0xff]  }
  0x69   :  { %6564 = vmatpush3.bf16.msra.mxu1 %v7214_v63  ;;  %6543 = vmatprep.subr.bf16.mxu0 %v7215_v0  ;;  %v7270_v63 = vld [vmem:[%s9436_s1 + $0x4b8] sm:$0xff]   ;;  %v23_v0 = vld [vmem:[%s9437_s0 + $0x40] sm:$0xff] }
  0x6a   :  { %6565 = vmatprep.subr.bf16.mxu1 %v7216_v1  ;;  %v55_v1 = vld [vmem:[%s9437_s0 + $0x140] sm:$0xff] }
  0x6c   :  { %6544 = vmatpush3.bf16.msra.mxu0 %v7217_v2  ;;  %v5847_v2 = vcombine.low %v23_v0, %v55_v1 }
  0x6d   :  { %6566 = vmatpush3.bf16.msra.mxu1 %v7218_v3  ;;  %6545 = vmatprep.subr.bf16.mxu0 %v7219_v4  ;;  %v5848_v3 = vcombine.high %v23_v0, %v55_v1  ;;  %v24_v4 = vld [vmem:[%s9437_s0 + $0x48] sm:$0xff]  ;;  %v7319_v0 = vld [vmem:[%s9436_s1 + $0x660] sm:$0xff]  }
  0x6e   :  { %6567 = vmatprep.subr.bf16.mxu1 %v7220_v5  ;;  %v56_v5 = vld [vmem:[%s9437_s0 + $0x148] sm:$0xff]  ;;  %v7320_v1 = vld [vmem:[%s9436_s1 + $0x6e0] sm:$0xff]  }
  0x70   :  { %6546 = vmatpush3.bf16.msra.mxu0 %v7221_v6  ;;  %v5849_v6 = vcombine.low %v24_v4, %v56_v5 }
  0x71   :  { %6568 = vmatpush3.bf16.msra.mxu1 %v7222_v7  ;;  %6547 = vmatprep.subr.bf16.mxu0 %v7223_v8  ;;  %v5850_v7 = vcombine.high %v24_v4, %v56_v5  ;;  %v7271_v8 = vld [vmem:[%s9436_s1 + $0x540] sm:$0xff]   ;;  %v7323_v4 = vld [vmem:[%s9436_s1 + $0x668] sm:$0xff]  }
  0x72   :  { %6569 = vmatprep.subr.bf16.mxu1 %v7224_v9  ;;  %v7272_v9 = vld [vmem:[%s9436_s1 + $0x5c0] sm:$0xff]   ;;  %v7324_v5 = vld [vmem:[%s9436_s1 + $0x6e8] sm:$0xff]  }
  0x74   :  { %6548 = vmatpush3.bf16.msra.mxu0 %v7225_v10  ;;  %v7273_v10 = vld [vmem:[%s9436_s1 + $0x500] sm:$0xff]  }
  0x75   :  { %6570 = vmatpush3.bf16.msra.mxu1 %v7226_v11  ;;  %6549 = vmatprep.subr.bf16.mxu0 %v7227_v12  ;;  %v7274_v11 = vld [vmem:[%s9436_s1 + $0x580] sm:$0xff]   ;;  %v7275_v12 = vld [vmem:[%s9436_s1 + $0x548] sm:$0xff]  }
  0x76   :  { %6571 = vmatprep.subr.bf16.mxu1 %v7228_v13  ;;  %v7276_v13 = vld [vmem:[%s9436_s1 + $0x5c8] sm:$0xff]  }
  0x78   :  { %6550 = vmatpush3.bf16.msra.mxu0 %v7229_v14  ;;  %v7277_v14 = vld [vmem:[%s9436_s1 + $0x508] sm:$0xff]  }
  0x79   :  { %6572 = vmatpush3.bf16.msra.mxu1 %v7230_v15  ;;  %6551 = vmatprep.subr.bf16.mxu0 %v7231_v16  ;;  %v7278_v15 = vld [vmem:[%s9436_s1 + $0x588] sm:$0xff]   ;;  %v7279_v16 = vld [vmem:[%s9436_s1 + $0x550] sm:$0xff]  }
  0x7a   :  { %6573 = vmatprep.subr.bf16.mxu1 %v7232_v17  ;;  %v7280_v17 = vld [vmem:[%s9436_s1 + $0x5d0] sm:$0xff]  }
  0x7c   :  { %6552 = vmatpush3.bf16.msra.mxu0 %v7233_v18  ;;  %v7281_v18 = vld [vmem:[%s9436_s1 + $0x510] sm:$0xff]  }
  0x7d   :  { %6574 = vmatpush3.bf16.msra.mxu1 %v7234_v19  ;;  %6553 = vmatprep.subr.bf16.mxu0 %v7235_v20  ;;  %v7282_v19 = vld [vmem:[%s9436_s1 + $0x590] sm:$0xff]   ;;  %v7283_v20 = vld [vmem:[%s9436_s1 + $0x558] sm:$0xff]  }
  0x7e   :  { %6575 = vmatprep.subr.bf16.mxu1 %v7236_v21  ;;  %v7284_v21 = vld [vmem:[%s9436_s1 + $0x5d8] sm:$0xff]  }
  0x80   :  { %6554 = vmatpush3.bf16.msra.mxu0 %v7237_v22  ;;  %v7285_v22 = vld [vmem:[%s9436_s1 + $0x518] sm:$0xff]  }
  0x81   :  { %6576 = vmatpush3.bf16.msra.mxu1 %v7238_v23  ;;  %6583 = vmatprep.subr.bf16.mxu0 %v7239_v32  ;;  %v7286_v23 = vld [vmem:[%s9436_s1 + $0x598] sm:$0xff]   ;;  %v7295_v32 = vld [vmem:[%s9436_s1 + $0x570] sm:$0xff]  }
  0x82   :  { %6605 = vmatprep.subr.bf16.mxu1 %v7240_v33  ;;  %v7296_v33 = vld [vmem:[%s9436_s1 + $0x5f0] sm:$0xff]  }
  0x83   :  { %4781 = vmatmul.mubr.bf16.vlgmr.msra.gmra.mrb[12].mxu0 %v5843_v27  ;;  %v7290_v27 = vld [vmem:[%s9436_s1 + $0x5a0] sm:$0xff]  }
  0x84   :  { %4822 = vmatmul.mubr.bf16.vlgmr.msra.gmra.mrb[12].mxu1 %v5845_v30  ;;  %6584 = vmatpush3.bf16.msra.mxu0 %v7241_v34  ;;  %v7293_v30 = vld [vmem:[%s9436_s1 + $0x528] sm:$0xff]   ;;  %v7297_v34 = vld [vmem:[%s9436_s1 + $0x530] sm:$0xff]  }
  0x85   :  { %6606 = vmatpush3.bf16.msra.mxu1 %v7242_v35  ;;  %6585 = vmatprep.subr.bf16.mxu0 %v7243_v36  ;;  %v7298_v35 = vld [vmem:[%s9436_s1 + $0x5b0] sm:$0xff]   ;;  %v7299_v36 = vld [vmem:[%s9436_s1 + $0x578] sm:$0xff]  }
  0x86   :  { %6607 = vmatprep.subr.bf16.mxu1 %v7244_v37  ;;  %4862 = vmatprep.mubr.bf16.mxu0 %v5848_v3  ;;  %v7300_v37 = vld [vmem:[%s9436_s1 + $0x5f8] sm:$0xff]   ;;  %v7322_v3 = vld [vmem:[%s9436_s1 + $0x6a0] sm:$0xff]  }
  0x87   :  { %4903 = vmatprep.mubr.bf16.mxu1 %v5850_v7  ;;  %v7326_v7 = vld [vmem:[%s9436_s1 + $0x6a8] sm:$0xff]  }
  0x88   :  { %6586 = vmatpush3.bf16.msra.mxu0 %v7245_v38  ;;  %v7301_v38 = vld [vmem:[%s9436_s1 + $0x538] sm:$0xff]  }
  0x89   :  { %6608 = vmatpush3.bf16.msra.mxu1 %v7246_v39  ;;  %6587 = vmatprep.subr.bf16.mxu0 %v7247_v40  ;;  %v7302_v39 = vld [vmem:[%s9436_s1 + $0x5b8] sm:$0xff]   ;;  %v25_v40 = vld [vmem:[%s9437_s0 + $0x50] sm:$0xff] }
  0x8a   :  { %6609 = vmatprep.subr.bf16.mxu1 %v7248_v41  ;;  %v57_v41 = vld [vmem:[%s9437_s0 + $0x150] sm:$0xff] }
  0x8c   :  { %6588 = vmatpush3.bf16.msra.mxu0 %v7249_v42  ;;  %v26_v42 = vld [vmem:[%s9437_s0 + $0x58] sm:$0xff] }
  0x8d   :  { %6610 = vmatpush3.bf16.msra.mxu1 %v7250_v43  ;;  %6589 = vmatprep.subr.bf16.mxu0 %v7251_v44  ;;  %v58_v43 = vld [vmem:[%s9437_s0 + $0x158] sm:$0xff]  ;;  %v5851_v44 = vcombine.low %v25_v40, %v57_v41 }
  0x8e   :  { %6611 = vmatprep.subr.bf16.mxu1 %v7252_v45  ;;  %v5852_v45 = vcombine.high %v25_v40, %v57_v41  ;;  %v7350_v41 = vld [vmem:[%s9436_s1 + $0x798] sm:$0xff]  }
  0x90   :  { %6590 = vmatpush3.bf16.msra.mxu0 %v7253_v46  ;;  %v5853_v46 = vcombine.low %v26_v42, %v58_v43 }
  0x91   :  { %6612 = vmatpush3.bf16.msra.mxu1 %v7254_v47  ;;  %6591 = vmatprep.subr.bf16.mxu0 %v7255_v48  ;;  %v5854_v47 = vcombine.high %v26_v42, %v58_v43  ;;  %v7303_v48 = vld [vmem:[%s9436_s1 + $0x640] sm:$0xff]  }
  0x92   :  { %6613 = vmatprep.subr.bf16.mxu1 %v7256_v49  ;;  %v7304_v49 = vld [vmem:[%s9436_s1 + $0x6c0] sm:$0xff]  }
  0x93   :  { %v7351_v43 = vld [vmem:[%s9436_s1 + $0x760] sm:$0xff]  }
  0x94   :  { %6592 = vmatpush3.bf16.msra.mxu0 %v7257_v50  ;;  %v7305_v50 = vld [vmem:[%s9436_s1 + $0x600] sm:$0xff]  }
  0x95   :  { %6614 = vmatpush3.bf16.msra.mxu1 %v7258_v51  ;;  %6593 = vmatprep.subr.bf16.mxu0 %v7259_v52  ;;  %v7306_v51 = vld [vmem:[%s9436_s1 + $0x680] sm:$0xff]   ;;  %v7307_v52 = vld [vmem:[%s9436_s1 + $0x648] sm:$0xff]  }
  0x96   :  { %6615 = vmatprep.subr.bf16.mxu1 %v7260_v53  ;;  %v7308_v53 = vld [vmem:[%s9436_s1 + $0x6c8] sm:$0xff]  }
  0x98   :  { %6594 = vmatpush3.bf16.msra.mxu0 %v7261_v54  ;;  %v7309_v54 = vld [vmem:[%s9436_s1 + $0x608] sm:$0xff]  }
  0x99   :  { %6616 = vmatpush3.bf16.msra.mxu1 %v7262_v55  ;;  %6595 = vmatprep.subr.bf16.mxu0 %v7263_v56  ;;  %v7310_v55 = vld [vmem:[%s9436_s1 + $0x688] sm:$0xff]   ;;  %v7311_v56 = vld [vmem:[%s9436_s1 + $0x650] sm:$0xff]  }
  0x9a   :  { %6617 = vmatprep.subr.bf16.mxu1 %v7264_v57  ;;  %v7312_v57 = vld [vmem:[%s9436_s1 + $0x6d0] sm:$0xff]  }
  0x9c   :  { %6596 = vmatpush3.bf16.msra.mxu0 %v7265_v58  ;;  %v7313_v58 = vld [vmem:[%s9436_s1 + $0x610] sm:$0xff]  }
  0x9d   :  { %6618 = vmatpush3.bf16.msra.mxu1 %v7266_v59  ;;  %6597 = vmatprep.subr.bf16.mxu0 %v7267_v60  ;;  %v7314_v59 = vld [vmem:[%s9436_s1 + $0x690] sm:$0xff]   ;;  %v7315_v60 = vld [vmem:[%s9436_s1 + $0x658] sm:$0xff]  }
  0x9e   :  { %6619 = vmatprep.subr.bf16.mxu1 %v7268_v61  ;;  %v7316_v61 = vld [vmem:[%s9436_s1 + $0x6d8] sm:$0xff]  }
  0xa0   :  { %6598 = vmatpush3.bf16.msra.mxu0 %v7269_v62  ;;  %v7317_v62 = vld [vmem:[%s9436_s1 + $0x618] sm:$0xff]  }
  0xa1   :  { %6620 = vmatpush3.bf16.msra.mxu1 %v7270_v63  ;;  %6627 = vmatprep.subr.bf16.mxu0 %v7271_v8  ;;  %v7318_v63 = vld [vmem:[%s9436_s1 + $0x698] sm:$0xff]   ;;  %v7327_v8 = vld [vmem:[%s9436_s1 + $0x670] sm:$0xff]  }
  0xa2   :  { %6649 = vmatprep.subr.bf16.mxu1 %v7272_v9  ;;  %v7328_v9 = vld [vmem:[%s9436_s1 + $0x6f0] sm:$0xff]  }
  0xa3   :  { %4863 = vmatmul.mubr.bf16.vlgmr.msra.gmra.mrb[16].mxu0 %v5847_v2  ;;  %v7321_v2 = vld [vmem:[%s9436_s1 + $0x620] sm:$0xff]  }
  0xa4   :  { %4904 = vmatmul.mubr.bf16.vlgmr.msra.gmra.mrb[16].mxu1 %v5849_v6  ;;  %6628 = vmatpush3.bf16.msra.mxu0 %v7273_v10  ;;  %v7325_v6 = vld [vmem:[%s9436_s1 + $0x628] sm:$0xff]   ;;  %v7329_v10 = vld [vmem:[%s9436_s1 + $0x630] sm:$0xff]  }
  0xa5   :  { %6650 = vmatpush3.bf16.msra.mxu1 %v7274_v11  ;;  %6629 = vmatprep.subr.bf16.mxu0 %v7275_v12  ;;  %v7330_v11 = vld [vmem:[%s9436_s1 + $0x6b0] sm:$0xff]   ;;  %v7331_v12 = vld [vmem:[%s9436_s1 + $0x678] sm:$0xff]  }
  0xa6   :  { %6651 = vmatprep.subr.bf16.mxu1 %v7276_v13  ;;  %4944 = vmatprep.mubr.bf16.mxu0 %v5852_v45  ;;  %v7332_v13 = vld [vmem:[%s9436_s1 + $0x6f8] sm:$0xff]  }
  0xa7   :  { %4985 = vmatprep.mubr.bf16.mxu1 %v5854_v47 }
  0xa8   :  { %6630 = vmatpush3.bf16.msra.mxu0 %v7277_v14  ;;  %v7333_v14 = vld [vmem:[%s9436_s1 + $0x638] sm:$0xff]  }
  0xa9   :  { %6652 = vmatpush3.bf16.msra.mxu1 %v7278_v15  ;;  %6631 = vmatprep.subr.bf16.mxu0 %v7279_v16  ;;  %v7334_v15 = vld [vmem:[%s9436_s1 + $0x6b8] sm:$0xff]   ;;  %v27_v16 = vld [vmem:[%s9437_s0 + $0x60] sm:$0xff] }
  0xaa   :  { %6653 = vmatprep.subr.bf16.mxu1 %v7280_v17  ;;  %v59_v17 = vld [vmem:[%s9437_s0 + $0x160] sm:$0xff] }
  0xac   :  { %6632 = vmatpush3.bf16.msra.mxu0 %v7281_v18  ;;  %v28_v18 = vld [vmem:[%s9437_s0 + $0x68] sm:$0xff] }
  0xad   :  { %6654 = vmatpush3.bf16.msra.mxu1 %v7282_v19  ;;  %6633 = vmatprep.subr.bf16.mxu0 %v7283_v20  ;;  %v5855_v19 = vcombine.low %v27_v16, %v59_v17  ;;  %v5856_v20 = vcombine.high %v27_v16, %v59_v17  ;;  %v7367_v17 = vld [vmem:[%s9436_s1 + $0x840] sm:$0xff]  }
  0xae   :  { %6655 = vmatprep.subr.bf16.mxu1 %v7284_v21  ;;  %v60_v21 = vld [vmem:[%s9437_s0 + $0x168] sm:$0xff] }
  0xb0   :  { %6634 = vmatpush3.bf16.msra.mxu0 %v7285_v22  ;;  %v5857_v22 = vcombine.low %v28_v18, %v60_v21 }
  0xb1   :  { %6656 = vmatpush3.bf16.msra.mxu1 %v7286_v23  ;;  %6635 = vmatprep.subr.bf16.mxu0 %v7287_v24  ;;  %v5858_v23 = vcombine.high %v28_v18, %v60_v21  ;;  %v7335_v24 = vld [vmem:[%s9436_s1 + $0x740] sm:$0xff]   ;;  %v7371_v21 = vld [vmem:[%s9436_s1 + $0x848] sm:$0xff]  }
  0xb2   :  { %6657 = vmatprep.subr.bf16.mxu1 %v7288_v25  ;;  %v7336_v25 = vld [vmem:[%s9436_s1 + $0x7c0] sm:$0xff]  }
  0xb3   :  { %v7368_v18 = vld [vmem:[%s9436_s1 + $0x8c0] sm:$0xff]  }
  0xb4   :  { %6636 = vmatpush3.bf16.msra.mxu0 %v7289_v26  ;;  %v7337_v26 = vld [vmem:[%s9436_s1 + $0x700] sm:$0xff]  }
  0xb5   :  { %6658 = vmatpush3.bf16.msra.mxu1 %v7290_v27  ;;  %6637 = vmatprep.subr.bf16.mxu0 %v7291_v28  ;;  %v7338_v27 = vld [vmem:[%s9436_s1 + $0x780] sm:$0xff]   ;;  %v7339_v28 = vld [vmem:[%s9436_s1 + $0x748] sm:$0xff]  }
  0xb6   :  { %6659 = vmatprep.subr.bf16.mxu1 %v7292_v29  ;;  %v7340_v29 = vld [vmem:[%s9436_s1 + $0x7c8] sm:$0xff]  }
  0xb8   :  { %6638 = vmatpush3.bf16.msra.mxu0 %v7293_v30  ;;  %v7341_v30 = vld [vmem:[%s9436_s1 + $0x708] sm:$0xff]  }
  0xb9   :  { %6660 = vmatpush3.bf16.msra.mxu1 %v7294_v31  ;;  %6639 = vmatprep.subr.bf16.mxu0 %v7295_v32  ;;  %v7342_v31 = vld [vmem:[%s9436_s1 + $0x788] sm:$0xff]   ;;  %v7343_v32 = vld [vmem:[%s9436_s1 + $0x750] sm:$0xff]  }
  0xba   :  { %6661 = vmatprep.subr.bf16.mxu1 %v7296_v33  ;;  %v7344_v33 = vld [vmem:[%s9436_s1 + $0x7d0] sm:$0xff]  }
  0xbc   :  { %6640 = vmatpush3.bf16.msra.mxu0 %v7297_v34  ;;  %v7345_v34 = vld [vmem:[%s9436_s1 + $0x710] sm:$0xff]  }
  0xbd   :  { %6662 = vmatpush3.bf16.msra.mxu1 %v7298_v35  ;;  %6641 = vmatprep.subr.bf16.mxu0 %v7299_v36  ;;  %v7346_v35 = vld [vmem:[%s9436_s1 + $0x790] sm:$0xff]   ;;  %v7347_v36 = vld [vmem:[%s9436_s1 + $0x758] sm:$0xff]  }
  0xbe   :  { %6663 = vmatprep.subr.bf16.mxu1 %v7300_v37  ;;  %v7348_v37 = vld [vmem:[%s9436_s1 + $0x7d8] sm:$0xff]  }
  0xc0   :  { %6642 = vmatpush3.bf16.msra.mxu0 %v7301_v38 }
  0xc1   :  { %6664 = vmatpush3.bf16.msra.mxu1 %v7302_v39  ;;  %6671 = vmatprep.subr.bf16.mxu0 %v7303_v48  ;;  %v7349_v39 = vld [vmem:[%s9436_s1 + $0x718] sm:$0xff]  }
  0xc2   :  { %6693 = vmatprep.subr.bf16.mxu1 %v7304_v49  ;;  %v7353_v49 = vld [vmem:[%s9436_s1 + $0x720] sm:$0xff]  }
  0xc3   :  { %4945 = vmatmul.mubr.bf16.vlgmr.msra.gmra.mrb[20].mxu0 %v5851_v44 }
  0xc4   :  { %4986 = vmatmul.mubr.bf16.vlgmr.msra.gmra.mrb[20].mxu1 %v5853_v46  ;;  %6672 = vmatpush3.bf16.msra.mxu0 %v7305_v50  ;;  %v7352_v46 = vld [vmem:[%s9436_s1 + $0x7e0] sm:$0xff]  }
  0xc5   :  { %6694 = vmatpush3.bf16.msra.mxu1 %v7306_v51  ;;  %6673 = vmatprep.subr.bf16.mxu0 %v7307_v52  ;;  %v7354_v51 = vld [vmem:[%s9436_s1 + $0x7a0] sm:$0xff]  }
  0xc6   :  { %6695 = vmatprep.subr.bf16.mxu1 %v7308_v53  ;;  %5026 = vmatprep.mubr.bf16.mxu0 %v5856_v20  ;;  %v5830_v52 = vld [vmem:[%s9438_s2] ss:$0 sm:$0xff] }
  0xc7   :  { %5067 = vmatprep.mubr.bf16.mxu1 %v5858_v23  ;;  %v7370_v20 = vld [vmem:[%s9436_s1 + $0x880] sm:$0xff]   ;;  %v7373_v23 = vld [vmem:[%s9436_s1 + $0x808] sm:$0xff]  }
  0xc8   :  { %6674 = vmatpush3.bf16.msra.mxu0 %v7309_v54 }
  0xc9   :  { %6696 = vmatpush3.bf16.msra.mxu1 %v7310_v55  ;;  %6675 = vmatprep.subr.bf16.mxu0 %v7311_v56  ;;  %v7355_v55 = vld [vmem:[%s9436_s1 + $0x768] sm:$0xff]  }
  0xca   :  { %6697 = vmatprep.subr.bf16.mxu1 %v7312_v57 }
  0xcc   :  { %6676 = vmatpush3.bf16.msra.mxu0 %v7313_v58  ;;  %v7356_v58 = vld [vmem:[%s9436_s1 + $0x7e8] sm:$0xff]  }
  0xcd   :  { %6698 = vmatpush3.bf16.msra.mxu1 %v7314_v59  ;;  %6677 = vmatprep.subr.bf16.mxu0 %v7315_v60 }
  0xce   :  { %6699 = vmatprep.subr.bf16.mxu1 %v7316_v61  ;;  %v7357_v61 = vld [vmem:[%s9436_s1 + $0x728] sm:$0xff]  }
  0xd0   :  { %6678 = vmatpush3.bf16.msra.mxu0 %v7317_v62 }
  0xd1   :  { %6700 = vmatpush3.bf16.msra.mxu1 %v7318_v63  ;;  %6679 = vmatprep.subr.bf16.mxu0 %v7319_v0  ;;  %v7358_v63 = vld [vmem:[%s9436_s1 + $0x7a8] sm:$0xff]  }
  0xd2   :  { %6701 = vmatprep.subr.bf16.mxu1 %v7320_v1  ;;  %v7359_v1 = vld [vmem:[%s9436_s1 + $0x770] sm:$0xff]  }
  0xd4   :  { %6680 = vmatpush3.bf16.msra.mxu0 %v7321_v2  ;;  %v7360_v2 = vld [vmem:[%s9436_s1 + $0x7f0] sm:$0xff]  }
  0xd5   :  { %6702 = vmatpush3.bf16.msra.mxu1 %v7322_v3  ;;  %6681 = vmatprep.subr.bf16.mxu0 %v7323_v4  ;;  %v7361_v3 = vld [vmem:[%s9436_s1 + $0x730] sm:$0xff]  }
  0xd6   :  { %6703 = vmatprep.subr.bf16.mxu1 %v7324_v5  ;;  %v7362_v4 = vld [vmem:[%s9436_s1 + $0x7b0] sm:$0xff]   ;;  %v7363_v5 = vld [vmem:[%s9436_s1 + $0x778] sm:$0xff]  }
  0xd8   :  { %6682 = vmatpush3.bf16.msra.mxu0 %v7325_v6  ;;  %v7364_v6 = vld [vmem:[%s9436_s1 + $0x7f8] sm:$0xff]  }
  0xd9   :  { %6704 = vmatpush3.bf16.msra.mxu1 %v7326_v7  ;;  %6683 = vmatprep.subr.bf16.mxu0 %v7327_v8  ;;  %v7365_v7 = vld [vmem:[%s9436_s1 + $0x738] sm:$0xff]  }
  0xda   :  { %6705 = vmatprep.subr.bf16.mxu1 %v7328_v9  ;;  %v7366_v8 = vld [vmem:[%s9436_s1 + $0x7b8] sm:$0xff]   ;;  %v29_v9 = vld [vmem:[%s9437_s0 + $0x70] sm:$0xff] }
  0xdc   :  { %6684 = vmatpush3.bf16.msra.mxu0 %v7329_v10  ;;  %v61_v10 = vld [vmem:[%s9437_s0 + $0x170] sm:$0xff] }
  0xdd   :  { %6706 = vmatpush3.bf16.msra.mxu1 %v7330_v11  ;;  %6685 = vmatprep.subr.bf16.mxu0 %v7331_v12  ;;  %v30_v11 = vld [vmem:[%s9437_s0 + $0x78] sm:$0xff] }
  0xde   :  { %6707 = vmatprep.subr.bf16.mxu1 %v7332_v13  ;;  %v62_v12 = vld [vmem:[%s9437_s0 + $0x178] sm:$0xff]  ;;  %v5859_v13 = vcombine.low %v29_v9, %v61_v10 }
  0xdf   :  { %v5862_v16 = vcombine.high %v30_v11, %v62_v12 }
  0xe0   :  { %6686 = vmatpush3.bf16.msra.mxu0 %v7333_v14  ;;  %v5860_v14 = vcombine.high %v29_v9, %v61_v10  ;;  %v7399_v9 = vld [vmem:[%s9436_s1 + $0x940] sm:$0xff]  }
  0xe1   :  { %6708 = vmatpush3.bf16.msra.mxu1 %v7334_v15  ;;  %6715 = vmatprep.subr.bf16.mxu0 %v7335_v24  ;;  %v5861_v15 = vcombine.low %v30_v11, %v62_v12  ;;  %v7374_v24 = vld [vmem:[%s9436_s1 + $0x888] sm:$0xff]   ;;  %v7400_v10 = vld [vmem:[%s9436_s1 + $0x9c0] sm:$0xff]  }
  0xe2   :  { %6737 = vmatprep.subr.bf16.mxu1 %v7336_v25  ;;  %v7375_v25 = vld [vmem:[%s9436_s1 + $0x850] sm:$0xff]   ;;  %v7401_v11 = vld [vmem:[%s9436_s1 + $0x900] sm:$0xff]  }
  0xe3   :  { %5027 = vmatmul.mubr.bf16.vlgmr.msra.gmra.mrb[24].mxu0 %v5855_v19  ;;  %v7369_v19 = vld [vmem:[%s9436_s1 + $0x800] sm:$0xff]  }
  0xe4   :  { %5068 = vmatmul.mubr.bf16.vlgmr.msra.gmra.mrb[24].mxu1 %v5857_v22  ;;  %6716 = vmatpush3.bf16.msra.mxu0 %v7337_v26  ;;  %v7372_v22 = vld [vmem:[%s9436_s1 + $0x8c8] sm:$0xff]   ;;  %v7376_v26 = vld [vmem:[%s9436_s1 + $0x8d0] sm:$0xff]   ;;  %v7402_v12 = vld [vmem:[%s9436_s1 + $0x980] sm:$0xff]  }
  0xe5   :  { %6738 = vmatpush3.bf16.msra.mxu1 %v7338_v27  ;;  %6717 = vmatprep.subr.bf16.mxu0 %v7339_v28  ;;  %v7377_v27 = vld [vmem:[%s9436_s1 + $0x810] sm:$0xff]  }
  0xe6   :  { %6739 = vmatprep.subr.bf16.mxu1 %v7340_v29  ;;  %5108 = vmatprep.mubr.bf16.mxu0 %v5860_v14  ;;  %v7378_v28 = vld [vmem:[%s9436_s1 + $0x890] sm:$0xff]   ;;  %v7379_v29 = vld [vmem:[%s9436_s1 + $0x858] sm:$0xff]   ;;  %v7404_v14 = vld [vmem:[%s9436_s1 + $0x9c8] sm:$0xff]  }
  0xe7   :  { %5149 = vmatprep.mubr.bf16.mxu1 %v5862_v16  ;;  %v7406_v16 = vld [vmem:[%s9436_s1 + $0x988] sm:$0xff]  }
  0xe8   :  { %6718 = vmatpush3.bf16.msra.mxu0 %v7341_v30  ;;  %v7380_v30 = vld [vmem:[%s9436_s1 + $0x8d8] sm:$0xff]  }
  0xe9   :  { %6740 = vmatpush3.bf16.msra.mxu1 %v7342_v31  ;;  %6719 = vmatprep.subr.bf16.mxu0 %v7343_v32  ;;  %v7381_v32 = vld [vmem:[%s9436_s1 + $0x818] sm:$0xff]  }
  0xea   :  { %6741 = vmatprep.subr.bf16.mxu1 %v7344_v33 }
  0xec   :  { %6720 = vmatpush3.bf16.msra.mxu0 %v7345_v34  ;;  %v7382_v34 = vld [vmem:[%s9436_s1 + $0x898] sm:$0xff]  }
  0xed   :  { %6742 = vmatpush3.bf16.msra.mxu1 %v7346_v35  ;;  %6721 = vmatprep.subr.bf16.mxu0 %v7347_v36  ;;  %v7383_v36 = vld [vmem:[%s9436_s1 + $0x860] sm:$0xff]  }
  0xee   :  { %6743 = vmatprep.subr.bf16.mxu1 %v7348_v37 }
  0xf0   :  { %6722 = vmatpush3.bf16.msra.mxu0 %v7349_v39  ;;  %v7384_v39 = vld [vmem:[%s9436_s1 + $0x8e0] sm:$0xff]  }
  0xf1   :  { %6744 = vmatpush3.bf16.msra.mxu1 %v7350_v41  ;;  %6723 = vmatprep.subr.bf16.mxu0 %v7351_v43 }
  0xf2   :  { %6745 = vmatprep.subr.bf16.mxu1 %v7352_v46 }
  0xf4   :  { %6724 = vmatpush3.bf16.msra.mxu0 %v7353_v49 }
  0xf5   :  { %6746 = vmatpush3.bf16.msra.mxu1 %v7354_v51  ;;  %6725 = vmatprep.subr.bf16.mxu0 %v7355_v55  ;;  %v7388_v51 = vld [vmem:[%s9436_s1 + $0x8e8] sm:$0xff]  }
  0xf6   :  { %v6423_v38 = vpop.f32.mrb[0].mxu0  ;;  %6747 = vmatprep.subr.bf16.mxu1 %v7356_v58  ;;  %v7390_v55 = vld [vmem:[%s9436_s1 + $0x8a8] sm:$0xff]   ;;  %v7392_v58 = vld [vmem:[%s9436_s1 + $0x8f0] sm:$0xff]  }
  0xf7   :  { %v6445_v40 = vpop.f32.mrb[0].mxu1  ;;  %v6424_v42 = vpop.f32.mrb[1].mxu0 }
  0xf8   :  { %v6425_v44 = vadd.f32 %v6424_v42, %v6423_v38  ;;  %v6446_v45 = vpop.f32.mrb[1].mxu1  ;;  %v6426_v48 = vpop.f32.mrb[2].mxu0  ;;  %6726 = vmatpush3.bf16.msra.mxu0 %v7357_v61  ;;  %v7385_v42 = vld [vmem:[%s9436_s1 + $0x820] sm:$0xff]   ;;  %v7395_v61 = vld [vmem:[%s9436_s1 + $0x878] sm:$0xff]  }
  0xf9   :  { %v6447_v47 = vadd.f32 %v6446_v45, %v6445_v40  ;;  %v6448_v50 = vpop.f32.mrb[2].mxu1  ;;  %v6427_v53 = vpop.f32.mrb[3].mxu0  ;;  %6748 = vmatpush3.bf16.msra.mxu1 %v7358_v63  ;;  %6727 = vmatprep.subr.bf16.mxu0 %v7359_v1  ;;  %v7386_v45 = vld [vmem:[%s9436_s1 + $0x8a0] sm:$0xff]   ;;  %v7397_v63 = vld [vmem:[%s9436_s1 + $0x838] sm:$0xff]  }
  0xfa   :  { %v4537_v54 = vadd.f32 %v6425_v44, %v5830_v52  ;;  %v6428_v56 = vadd.f32 %v6427_v53, %v6426_v48  ;;  %v6449_v57 = vpop.f32.mrb[3].mxu1  ;;  %6749 = vmatprep.subr.bf16.mxu1 %v7360_v2  ;;  %v7387_v48 = vld [vmem:[%s9436_s1 + $0x868] sm:$0xff]   ;;  %v31_v1 = vld [vmem:[%s9437_s0 + $0x80] sm:$0xff] }
  0xfb   :  { %v6450_v59 = vadd.f32 %v6449_v57, %v6448_v50  ;;  %v7389_v53 = vld [vmem:[%s9436_s1 + $0x828] sm:$0xff]   ;;  %v7391_v57 = vld [vmem:[%s9436_s1 + $0x870] sm:$0xff]   ;;  %v63_v2 = vld [vmem:[%s9437_s0 + $0x180] sm:$0xff] }
  0xfc   :  { %v8476_v60 = vadd.f32 %v6447_v47, %v4537_v54  ;;  %v4540_v62 = vadd.f32 %v6428_v56, %v5830_v52  ;;  %6728 = vmatpush3.bf16.msra.mxu0 %v7361_v3  ;;  %v32_v3 = vld [vmem:[%s9437_s0 + $0x88] sm:$0xff] }
  0xfd   :  { %6750 = vmatpush3.bf16.msra.mxu1 %v7362_v4  ;;  %6729 = vmatprep.subr.bf16.mxu0 %v7363_v5  ;;  %v5863_v4 = vcombine.low %v31_v1, %v63_v2  ;;  %v5864_v5 = vcombine.high %v31_v1, %v63_v2  ;;  %v7431_v1 = vld [vmem:[%s9436_s1 + $0xa40] sm:$0xff]  }
  0xfe   :  { %v8484_v0 = vadd.f32 %v6450_v59, %v4540_v62  ;;  %6751 = vmatprep.subr.bf16.mxu1 %v7364_v6  ;;  %v7393_v59 = vld [vmem:[%s9436_s1 + $0x830] sm:$0xff]   ;;  %v7396_v62 = vld [vmem:[%s9436_s1 + $0x8f8] sm:$0xff]   ;;  %v64_v6 = vld [vmem:[%s9437_s0 + $0x188] sm:$0xff] }
  0xff   :  { %v7432_v2 = vld [vmem:[%s9436_s1 + $0xac0] sm:$0xff]  }
 0x100   :  { %6730 = vmatpush3.bf16.msra.mxu0 %v7365_v7  ;;  %v5865_v7 = vcombine.low %v32_v3, %v64_v6 }
 0x101   :  { %6752 = vmatpush3.bf16.msra.mxu1 %v7366_v8  ;;  %6759 = vmatprep.subr.bf16.mxu0 %v7367_v17  ;;  %v5866_v8 = vcombine.high %v32_v3, %v64_v6  ;;  %v7407_v17 = vld [vmem:[%s9436_s1 + $0x950] sm:$0xff]   ;;  %v7433_v3 = vld [vmem:[%s9436_s1 + $0xa00] sm:$0xff]   ;;  %v7436_v6 = vld [vmem:[%s9436_s1 + $0xac8] sm:$0xff]  }
 0x102   :  { %6781 = vmatprep.subr.bf16.mxu1 %v7368_v18  ;;  %v7408_v18 = vld [vmem:[%s9436_s1 + $0x9d0] sm:$0xff]  }
 0x103   :  { %5109 = vmatmul.mubr.bf16.vlgmr.msra.gmra.mrb[28].mxu0 %v5859_v13  ;;  %v7403_v13 = vld [vmem:[%s9436_s1 + $0x948] sm:$0xff]  }
 0x104   :  { %5150 = vmatmul.mubr.bf16.vlgmr.msra.gmra.mrb[28].mxu1 %v5861_v15  ;;  %6760 = vmatpush3.bf16.msra.mxu0 %v7369_v19  ;;  %v7405_v15 = vld [vmem:[%s9436_s1 + $0x908] sm:$0xff]   ;;  %v7409_v19 = vld [vmem:[%s9436_s1 + $0x910] sm:$0xff]  }
 0x105   :  { %6782 = vmatpush3.bf16.msra.mxu1 %v7370_v20  ;;  %6761 = vmatprep.subr.bf16.mxu0 %v7371_v21  ;;  %v7410_v20 = vld [vmem:[%s9436_s1 + $0x990] sm:$0xff]   ;;  %v7411_v21 = vld [vmem:[%s9436_s1 + $0x958] sm:$0xff]  }
 0x106   :  { %6783 = vmatprep.subr.bf16.mxu1 %v7372_v22  ;;  %5190 = vmatprep.mubr.bf16.mxu0 %v5864_v5  ;;  %v7412_v22 = vld [vmem:[%s9436_s1 + $0x9d8] sm:$0xff]   ;;  %v7435_v5 = vld [vmem:[%s9436_s1 + $0xa48] sm:$0xff]  }
 0x107   :  { %5231 = vmatprep.mubr.bf16.mxu1 %v5866_v8  ;;  %v7438_v8 = vld [vmem:[%s9436_s1 + $0xa88] sm:$0xff]  }
 0x108   :  { %6762 = vmatpush3.bf16.msra.mxu0 %v7373_v23 }
 0x109   :  { %6784 = vmatpush3.bf16.msra.mxu1 %v7374_v24  ;;  %6763 = vmatprep.subr.bf16.mxu0 %v7375_v25  ;;  %v7413_v24 = vld [vmem:[%s9436_s1 + $0x918] sm:$0xff]  }
 0x10a   :  { %6785 = vmatprep.subr.bf16.mxu1 %v7376_v26  ;;  %v7414_v26 = vld [vmem:[%s9436_s1 + $0x998] sm:$0xff]  }
 0x10c   :  { %6764 = vmatpush3.bf16.msra.mxu0 %v7377_v27 }
 0x10d   :  { %6786 = vmatpush3.bf16.msra.mxu1 %v7378_v28  ;;  %6765 = vmatprep.subr.bf16.mxu0 %v7379_v29  ;;  %v7415_v28 = vld [vmem:[%s9436_s1 + $0x960] sm:$0xff]  }
 0x10e   :  { %6787 = vmatprep.subr.bf16.mxu1 %v7380_v30 }
 0x110   :  { %6766 = vmatpush3.bf16.msra.mxu0 %v7381_v32 }
 0x111   :  { %6788 = vmatpush3.bf16.msra.mxu1 %v7382_v34  ;;  %6767 = vmatprep.subr.bf16.mxu0 %v7383_v36  ;;  %v7417_v34 = vld [vmem:[%s9436_s1 + $0x920] sm:$0xff]  }
 0x112   :  { %6789 = vmatprep.subr.bf16.mxu1 %v7384_v39 }
 0x114   :  { %6768 = vmatpush3.bf16.msra.mxu0 %v7385_v42 }
 0x115   :  { %6790 = vmatpush3.bf16.msra.mxu1 %v7386_v45  ;;  %6769 = vmatprep.subr.bf16.mxu0 %v7387_v48  ;;  %v7421_v45 = vld [vmem:[%s9436_s1 + $0x928] sm:$0xff]  }
 0x116   :  { %v6467_v31 = vpop.f32.mrb[4].mxu0  ;;  %6791 = vmatprep.subr.bf16.mxu1 %v7388_v51  ;;  %v7425_v51 = vld [vmem:[%s9436_s1 + $0x930] sm:$0xff]  }
 0x117   :  { %v6489_v33 = vpop.f32.mrb[4].mxu1  ;;  %v6468_v35 = vpop.f32.mrb[5].mxu0 }
 0x118   :  { %v6469_v37 = vadd.f32 %v6468_v35, %v6467_v31  ;;  %v6490_v38 = vpop.f32.mrb[5].mxu1  ;;  %v6470_v41 = vpop.f32.mrb[6].mxu0  ;;  %6770 = vmatpush3.bf16.msra.mxu0 %v7389_v53  ;;  %v7416_v31 = vld [vmem:[%s9436_s1 + $0x9e0] sm:$0xff]   ;;  %v7427_v53 = vld [vmem:[%s9436_s1 + $0x978] sm:$0xff]  }
 0x119   :  { %v6491_v40 = vadd.f32 %v6490_v38, %v6489_v33  ;;  %v6492_v44 = vpop.f32.mrb[6].mxu1  ;;  %v6471_v46 = vpop.f32.mrb[7].mxu0  ;;  %6792 = vmatpush3.bf16.msra.mxu1 %v7390_v55  ;;  %6771 = vmatprep.subr.bf16.mxu0 %v7391_v57  ;;  %v7429_v55 = vld [vmem:[%s9436_s1 + $0x938] sm:$0xff]   ;;  %v33_v57 = vld [vmem:[%s9437_s0 + $0x90] sm:$0xff] }
 0x11a   :  { %v4619_v43 = vadd.f32 %v6469_v37, %v8476_v60  ;;  %v6472_v49 = vadd.f32 %v6471_v46, %v6470_v41  ;;  %v6493_v50 = vpop.f32.mrb[7].mxu1  ;;  %6793 = vmatprep.subr.bf16.mxu1 %v7392_v58  ;;  %v7394_v60 = vld [vmem:[%s9436_s1 + $0x8b0] sm:$0xff]   ;;  %v7418_v37 = vld [vmem:[%s9436_s1 + $0x9a0] sm:$0xff]  }
 0x11b   :  { %v6494_v52 = vadd.f32 %v6493_v50, %v6492_v44  ;;  %v7424_v50 = vld [vmem:[%s9436_s1 + $0x9f0] sm:$0xff]  }
 0x11c   :  { %v8583_v47 = vadd.f32 %v6491_v40, %v4619_v43  ;;  %v4622_v54 = vadd.f32 %v6472_v49, %v8484_v0  ;;  %6772 = vmatpush3.bf16.msra.mxu0 %v7393_v59  ;;  %v7398_v0 = vld [vmem:[%s9436_s1 + $0x8b8] sm:$0xff]   ;;  %v7419_v40 = vld [vmem:[%s9436_s1 + $0x968] sm:$0xff]   ;;  %v7423_v49 = vld [vmem:[%s9436_s1 + $0x970] sm:$0xff]  }
 0x11d   :  { %6794 = vmatpush3.bf16.msra.mxu1 %v7394_v60  ;;  %6773 = vmatprep.subr.bf16.mxu0 %v7395_v61  ;;  %v7420_v43 = vld [vmem:[%s9436_s1 + $0x9e8] sm:$0xff]   ;;  %v65_v58 = vld [vmem:[%s9437_s0 + $0x190] sm:$0xff]  ;;  %v34_v61 = vld [vmem:[%s9437_s0 + $0x98] sm:$0xff] }
 0x11e   :  { %v8598_v56 = vadd.f32 %v6494_v52, %v4622_v54  ;;  %6795 = vmatprep.subr.bf16.mxu1 %v7396_v62  ;;  %v7426_v52 = vld [vmem:[%s9436_s1 + $0x9b0] sm:$0xff]   ;;  %v7428_v54 = vld [vmem:[%s9436_s1 + $0x9f8] sm:$0xff]   ;;  %v5867_v59 = vcombine.low %v33_v57, %v65_v58  ;;  %v5868_v60 = vcombine.high %v33_v57, %v65_v58  ;;  %v7463_v57 = vld [vmem:[%s9436_s1 + $0xb40] sm:$0xff]  }
 0x11f   :  { %v66_v62 = vld [vmem:[%s9437_s0 + $0x198] sm:$0xff]  ;;  %v7464_v58 = vld [vmem:[%s9436_s1 + $0xbc0] sm:$0xff]  }
 0x120   :  { %6774 = vmatpush3.bf16.msra.mxu0 %v7397_v63  ;;  %v5869_v63 = vcombine.low %v34_v61, %v66_v62 }
 0x121   :  { %6796 = vmatpush3.bf16.msra.mxu1 %v7398_v0  ;;  %6803 = vmatprep.subr.bf16.mxu0 %v7399_v9  ;;  %v5870_v0 = vcombine.high %v34_v61, %v66_v62  ;;  %v7439_v9 = vld [vmem:[%s9436_s1 + $0xa50] sm:$0xff]   ;;  %v7467_v61 = vld [vmem:[%s9436_s1 + $0xb48] sm:$0xff]  }
 0x122   :  { %6825 = vmatprep.subr.bf16.mxu1 %v7400_v10  ;;  %v7440_v10 = vld [vmem:[%s9436_s1 + $0xad0] sm:$0xff]   ;;  %v7468_v62 = vld [vmem:[%s9436_s1 + $0xbc8] sm:$0xff]  }
 0x123   :  { %5191 = vmatmul.mubr.bf16.vlgmr.msra.gmra.mrb[32].mxu0 %v5863_v4  ;;  %v7434_v4 = vld [vmem:[%s9436_s1 + $0xa80] sm:$0xff]  }
 0x124   :  { %5232 = vmatmul.mubr.bf16.vlgmr.msra.gmra.mrb[32].mxu1 %v5865_v7  ;;  %6804 = vmatpush3.bf16.msra.mxu0 %v7401_v11  ;;  %v7437_v7 = vld [vmem:[%s9436_s1 + $0xa08] sm:$0xff]   ;;  %v7441_v11 = vld [vmem:[%s9436_s1 + $0xa10] sm:$0xff]  }
 0x125   :  { %6826 = vmatpush3.bf16.msra.mxu1 %v7402_v12  ;;  %6805 = vmatprep.subr.bf16.mxu0 %v7403_v13  ;;  %v7442_v12 = vld [vmem:[%s9436_s1 + $0xa90] sm:$0xff]   ;;  %v7443_v13 = vld [vmem:[%s9436_s1 + $0xa58] sm:$0xff]  }
 0x126   :  { %6827 = vmatprep.subr.bf16.mxu1 %v7404_v14  ;;  %5272 = vmatprep.mubr.bf16.mxu0 %v5868_v60  ;;  %v7444_v14 = vld [vmem:[%s9436_s1 + $0xad8] sm:$0xff]   ;;  %v7466_v60 = vld [vmem:[%s9436_s1 + $0xb80] sm:$0xff]  }
 0x127   :  { %5313 = vmatprep.mubr.bf16.mxu1 %v5870_v0  ;;  %v7470_v0 = vld [vmem:[%s9436_s1 + $0xb88] sm:$0xff]  }
 0x128   :  { %6806 = vmatpush3.bf16.msra.mxu0 %v7405_v15 }
 0x129   :  { %6828 = vmatpush3.bf16.msra.mxu1 %v7406_v16  ;;  %6807 = vmatprep.subr.bf16.mxu0 %v7407_v17  ;;  %v7445_v16 = vld [vmem:[%s9436_s1 + $0xa18] sm:$0xff]  }
 0x12a   :  { %6829 = vmatprep.subr.bf16.mxu1 %v7408_v18  ;;  %v7446_v18 = vld [vmem:[%s9436_s1 + $0xa98] sm:$0xff]  }
 0x12c   :  { %6808 = vmatpush3.bf16.msra.mxu0 %v7409_v19 }
 0x12d   :  { %6830 = vmatpush3.bf16.msra.mxu1 %v7410_v20  ;;  %6809 = vmatprep.subr.bf16.mxu0 %v7411_v21  ;;  %v7447_v20 = vld [vmem:[%s9436_s1 + $0xa60] sm:$0xff]  }
 0x12e   :  { %6831 = vmatprep.subr.bf16.mxu1 %v7412_v22 }
 0x130   :  { %6810 = vmatpush3.bf16.msra.mxu0 %v7413_v24 }
 0x131   :  { %6832 = vmatpush3.bf16.msra.mxu1 %v7414_v26  ;;  %6811 = vmatprep.subr.bf16.mxu0 %v7415_v28  ;;  %v7449_v26 = vld [vmem:[%s9436_s1 + $0xa20] sm:$0xff]  }
 0x132   :  { %6833 = vmatprep.subr.bf16.mxu1 %v7416_v31 }
 0x134   :  { %6812 = vmatpush3.bf16.msra.mxu0 %v7417_v34 }
 0x135   :  { %6834 = vmatpush3.bf16.msra.mxu1 %v7418_v37  ;;  %6813 = vmatprep.subr.bf16.mxu0 %v7419_v40  ;;  %v7453_v37 = vld [vmem:[%s9436_s1 + $0xa28] sm:$0xff]  }
 0x136   :  { %v6511_v23 = vpop.f32.mrb[8].mxu0  ;;  %6835 = vmatprep.subr.bf16.mxu1 %v7420_v43  ;;  %v7457_v43 = vld [vmem:[%s9436_s1 + $0xa30] sm:$0xff]  }
 0x137   :  { %v6533_v25 = vpop.f32.mrb[8].mxu1  ;;  %v6512_v27 = vpop.f32.mrb[9].mxu0 }
 0x138   :  { %v6513_v29 = vadd.f32 %v6512_v27, %v6511_v23  ;;  %v6534_v30 = vpop.f32.mrb[9].mxu1  ;;  %v6514_v33 = vpop.f32.mrb[10].mxu0  ;;  %6814 = vmatpush3.bf16.msra.mxu0 %v7421_v45  ;;  %v7448_v23 = vld [vmem:[%s9436_s1 + $0xae0] sm:$0xff]   ;;  %v7459_v45 = vld [vmem:[%s9436_s1 + $0xa78] sm:$0xff]  }
 0x139   :  { %v6535_v32 = vadd.f32 %v6534_v30, %v6533_v25  ;;  %v6536_v36 = vpop.f32.mrb[10].mxu1  ;;  %v6515_v38 = vpop.f32.mrb[11].mxu0  ;;  %6815 = vmatprep.subr.bf16.mxu0 %v7423_v49  ;;  %v35_v49 = vld [vmem:[%s9437_s0 + $0xa0] sm:$0xff] }
 0x13a   :  { %v4701_v35 = vadd.f32 %v6513_v29, %v8583_v47  ;;  %v6516_v41 = vadd.f32 %v6515_v38, %v6514_v33  ;;  %v6537_v42 = vpop.f32.mrb[11].mxu1  ;;  %v7422_v47 = vld [vmem:[%s9436_s1 + $0x9a8] sm:$0xff]   ;;  %v7450_v29 = vld [vmem:[%s9436_s1 + $0xaa0] sm:$0xff]  }
 0x13b   :  { %v6538_v44 = vadd.f32 %v6537_v42, %v6536_v36  ;;  %6836 = vmatpush3.bf16.msra.mxu1 %v7422_v47  ;;  %v7456_v42 = vld [vmem:[%s9436_s1 + $0xaf0] sm:$0xff]   ;;  %v7461_v47 = vld [vmem:[%s9436_s1 + $0xa38] sm:$0xff]  }
 0x13c   :  { %v8697_v39 = vadd.f32 %v6535_v32, %v4701_v35  ;;  %v4704_v46 = vadd.f32 %v6516_v41, %v8598_v56  ;;  %6837 = vmatprep.subr.bf16.mxu1 %v7424_v50  ;;  %6816 = vmatpush3.bf16.msra.mxu0 %v7425_v51  ;;  %v7430_v56 = vld [vmem:[%s9436_s1 + $0x9b8] sm:$0xff]   ;;  %v7451_v32 = vld [vmem:[%s9436_s1 + $0xa68] sm:$0xff]   ;;  %v7455_v41 = vld [vmem:[%s9436_s1 + $0xa70] sm:$0xff]  }
 0x13d   :  { %6817 = vmatprep.subr.bf16.mxu0 %v7427_v53  ;;  %v7452_v35 = vld [vmem:[%s9436_s1 + $0xae8] sm:$0xff]   ;;  %v67_v50 = vld [vmem:[%s9437_s0 + $0x1a0] sm:$0xff] }
 0x13e   :  { %v8712_v48 = vadd.f32 %v6538_v44, %v4704_v46  ;;  %v7458_v44 = vld [vmem:[%s9436_s1 + $0xab0] sm:$0xff]   ;;  %v7460_v46 = vld [vmem:[%s9436_s1 + $0xaf8] sm:$0xff]   ;;  %v36_v51 = vld [vmem:[%s9437_s0 + $0xa8] sm:$0xff]  ;;  %v5871_v53 = vcombine.low %v35_v49, %v67_v50 }
 0x13f   :  { %6838 = vmatpush3.bf16.msra.mxu1 %v7426_v52  ;;  %v68_v52 = vld [vmem:[%s9437_s0 + $0x1a8] sm:$0xff] }
 0x140   :  { %6839 = vmatprep.subr.bf16.mxu1 %v7428_v54  ;;  %6818 = vmatpush3.bf16.msra.mxu0 %v7429_v55  ;;  %v5872_v54 = vcombine.high %v35_v49, %v67_v50  ;;  %v5873_v55 = vcombine.low %v36_v51, %v68_v52  ;;  %v7495_v49 = vld [vmem:[%s9436_s1 + $0xc40] sm:$0xff]  }
 0x141   :  { %6847 = vmatprep.subr.bf16.mxu0 %v7431_v1  ;;  %v7471_v1 = vld [vmem:[%s9436_s1 + $0xb50] sm:$0xff]   ;;  %v7496_v50 = vld [vmem:[%s9436_s1 + $0xcc0] sm:$0xff]  }
 0x143   :  { %6840 = vmatpush3.bf16.msra.mxu1 %v7430_v56  ;;  %5273 = vmatmul.mubr.bf16.vlgmr.msra.gmra.mrb[36].mxu0 %v5867_v59  ;;  %v5874_v56 = vcombine.high %v36_v51, %v68_v52  ;;  %v7465_v59 = vld [vmem:[%s9436_s1 + $0xb00] sm:$0xff]  }
 0x144   :  { %6869 = vmatprep.subr.bf16.mxu1 %v7432_v2  ;;  %6848 = vmatpush3.bf16.msra.mxu0 %v7433_v3  ;;  %v7472_v2 = vld [vmem:[%s9436_s1 + $0xbd0] sm:$0xff]   ;;  %v7497_v51 = vld [vmem:[%s9436_s1 + $0xc00] sm:$0xff]  }
 0x145   :  { %6849 = vmatprep.subr.bf16.mxu0 %v7435_v5  ;;  %5354 = vmatprep.mubr.bf16.mxu0 %v5872_v54  ;;  %v7473_v3 = vld [vmem:[%s9436_s1 + $0xb10] sm:$0xff]   ;;  %v7475_v5 = vld [vmem:[%s9436_s1 + $0xb58] sm:$0xff]   ;;  %v7498_v52 = vld [vmem:[%s9436_s1 + $0xc80] sm:$0xff]  }
 0x146   :  { %5314 = vmatmul.mubr.bf16.vlgmr.msra.gmra.mrb[36].mxu1 %v5869_v63  ;;  %v7469_v63 = vld [vmem:[%s9436_s1 + $0xb08] sm:$0xff]  }
 0x147   :  { %6870 = vmatpush3.bf16.msra.mxu1 %v7434_v4  ;;  %5395 = vmatprep.mubr.bf16.mxu1 %v5874_v56  ;;  %v7474_v4 = vld [vmem:[%s9436_s1 + $0xb90] sm:$0xff]   ;;  %v7500_v54 = vld [vmem:[%s9436_s1 + $0xcc8] sm:$0xff]  }
 0x148   :  { %6871 = vmatprep.subr.bf16.mxu1 %v7436_v6  ;;  %6850 = vmatpush3.bf16.msra.mxu0 %v7437_v7  ;;  %v7476_v6 = vld [vmem:[%s9436_s1 + $0xbd8] sm:$0xff]   ;;  %v7502_v56 = vld [vmem:[%s9436_s1 + $0xc88] sm:$0xff]  }
 0x149   :  { %6851 = vmatprep.subr.bf16.mxu0 %v7439_v9 }
 0x14b   :  { %6872 = vmatpush3.bf16.msra.mxu1 %v7438_v8  ;;  %v7477_v8 = vld [vmem:[%s9436_s1 + $0xb18] sm:$0xff]  }
 0x14c   :  { %6873 = vmatprep.subr.bf16.mxu1 %v7440_v10  ;;  %6852 = vmatpush3.bf16.msra.mxu0 %v7441_v11  ;;  %v7478_v10 = vld [vmem:[%s9436_s1 + $0xb98] sm:$0xff]  }
 0x14d   :  { %6853 = vmatprep.subr.bf16.mxu0 %v7443_v13 }
 0x14f   :  { %6874 = vmatpush3.bf16.msra.mxu1 %v7442_v12  ;;  %v7479_v12 = vld [vmem:[%s9436_s1 + $0xb60] sm:$0xff]  }
 0x150   :  { %6875 = vmatprep.subr.bf16.mxu1 %v7444_v14  ;;  %6854 = vmatpush3.bf16.msra.mxu0 %v7445_v16 }
 0x151   :  { %6855 = vmatprep.subr.bf16.mxu0 %v7447_v20 }
 0x153   :  { %6876 = vmatpush3.bf16.msra.mxu1 %v7446_v18  ;;  %v7481_v18 = vld [vmem:[%s9436_s1 + $0xb20] sm:$0xff]  }
 0x154   :  { %6877 = vmatprep.subr.bf16.mxu1 %v7448_v23  ;;  %6856 = vmatpush3.bf16.msra.mxu0 %v7449_v26 }
 0x155   :  { %6857 = vmatprep.subr.bf16.mxu0 %v7451_v32 }
 0x156   :  { %v6555_v15 = vpop.f32.mrb[12].mxu0 }
 0x157   :  { %v6577_v17 = vpop.f32.mrb[12].mxu1  ;;  %v6556_v19 = vpop.f32.mrb[13].mxu0  ;;  %6878 = vmatpush3.bf16.msra.mxu1 %v7450_v29  ;;  %v7485_v29 = vld [vmem:[%s9436_s1 + $0xb28] sm:$0xff]  }
 0x158   :  { %v6557_v21 = vadd.f32 %v6556_v19, %v6555_v15  ;;  %v6578_v22 = vpop.f32.mrb[13].mxu1  ;;  %v6558_v25 = vpop.f32.mrb[14].mxu0  ;;  %6879 = vmatprep.subr.bf16.mxu1 %v7452_v35  ;;  %6858 = vmatpush3.bf16.msra.mxu0 %v7453_v37  ;;  %v7480_v15 = vld [vmem:[%s9436_s1 + $0xbe0] sm:$0xff]   ;;  %v7489_v35 = vld [vmem:[%s9436_s1 + $0xb30] sm:$0xff]   ;;  %v7491_v37 = vld [vmem:[%s9436_s1 + $0xb78] sm:$0xff]  }
 0x159   :  { %v6579_v24 = vadd.f32 %v6578_v22, %v6577_v17  ;;  %v6580_v28 = vpop.f32.mrb[14].mxu1  ;;  %v6559_v30 = vpop.f32.mrb[15].mxu0  ;;  %6859 = vmatprep.subr.bf16.mxu0 %v7455_v41  ;;  %v37_v41 = vld [vmem:[%s9437_s0 + $0xb0] sm:$0xff] }
 0x15a   :  { %v4783_v27 = vadd.f32 %v6557_v21, %v8697_v39  ;;  %v6560_v33 = vadd.f32 %v6559_v30, %v6558_v25  ;;  %v6581_v34 = vpop.f32.mrb[15].mxu1  ;;  %v7454_v39 = vld [vmem:[%s9436_s1 + $0xaa8] sm:$0xff]   ;;  %v7482_v21 = vld [vmem:[%s9436_s1 + $0xba0] sm:$0xff]  }
 0x15b   :  { %v6582_v36 = vadd.f32 %v6581_v34, %v6580_v28  ;;  %6880 = vmatpush3.bf16.msra.mxu1 %v7454_v39  ;;  %v7488_v34 = vld [vmem:[%s9436_s1 + $0xbf0] sm:$0xff]   ;;  %v7493_v39 = vld [vmem:[%s9436_s1 + $0xb38] sm:$0xff]  }
 0x15c   :  { %v8811_v31 = vadd.f32 %v6579_v24, %v4783_v27  ;;  %v4786_v38 = vadd.f32 %v6560_v33, %v8712_v48  ;;  %6881 = vmatprep.subr.bf16.mxu1 %v7456_v42  ;;  %6860 = vmatpush3.bf16.msra.mxu0 %v7457_v43  ;;  %v7462_v48 = vld [vmem:[%s9436_s1 + $0xab8] sm:$0xff]   ;;  %v7483_v24 = vld [vmem:[%s9436_s1 + $0xb68] sm:$0xff]   ;;  %v7487_v33 = vld [vmem:[%s9436_s1 + $0xb70] sm:$0xff]  }
 0x15d   :  { %6861 = vmatprep.subr.bf16.mxu0 %v7459_v45  ;;  %v7484_v27 = vld [vmem:[%s9436_s1 + $0xbe8] sm:$0xff]   ;;  %v69_v42 = vld [vmem:[%s9437_s0 + $0x1b0] sm:$0xff]  ;;  %v38_v43 = vld [vmem:[%s9437_s0 + $0xb8] sm:$0xff] }
 0x15e   :  { %v8826_v40 = vadd.f32 %v6582_v36, %v4786_v38  ;;  %v7490_v36 = vld [vmem:[%s9436_s1 + $0xbb0] sm:$0xff]   ;;  %v7492_v38 = vld [vmem:[%s9436_s1 + $0xbf8] sm:$0xff]   ;;  %v5876_v45 = vcombine.high %v37_v41, %v69_v42 }
 0x15f   :  { %6882 = vmatpush3.bf16.msra.mxu1 %v7458_v44  ;;  %v5875_v44 = vcombine.low %v37_v41, %v69_v42  ;;  %v7527_v41 = vld [vmem:[%s9436_s1 + $0xd40] sm:$0xff]  }
 0x160   :  { %6883 = vmatprep.subr.bf16.mxu1 %v7460_v46  ;;  %6862 = vmatpush3.bf16.msra.mxu0 %v7461_v47  ;;  %v70_v46 = vld [vmem:[%s9437_s0 + $0x1b8] sm:$0xff]  ;;  %v7528_v42 = vld [vmem:[%s9436_s1 + $0xdc0] sm:$0xff]  }
 0x161   :  { %6891 = vmatprep.subr.bf16.mxu0 %v7463_v57  ;;  %v5877_v47 = vcombine.low %v38_v43, %v70_v46  ;;  %v7503_v57 = vld [vmem:[%s9436_s1 + $0xc50] sm:$0xff]  }
 0x163   :  { %6884 = vmatpush3.bf16.msra.mxu1 %v7462_v48  ;;  %5355 = vmatmul.mubr.bf16.vlgmr.msra.gmra.mrb[40].mxu0 %v5871_v53  ;;  %v5878_v48 = vcombine.high %v38_v43, %v70_v46  ;;  %v7499_v53 = vld [vmem:[%s9436_s1 + $0xc48] sm:$0xff]   ;;  %v7529_v43 = vld [vmem:[%s9436_s1 + $0xd00] sm:$0xff]  }
 0x164   :  { %6913 = vmatprep.subr.bf16.mxu1 %v7464_v58  ;;  %6892 = vmatpush3.bf16.msra.mxu0 %v7465_v59  ;;  %v7504_v58 = vld [vmem:[%s9436_s1 + $0xcd0] sm:$0xff]   ;;  %v7532_v46 = vld [vmem:[%s9436_s1 + $0xdc8] sm:$0xff]  }
 0x165   :  { %6893 = vmatprep.subr.bf16.mxu0 %v7467_v61  ;;  %5436 = vmatprep.mubr.bf16.mxu0 %v5876_v45  ;;  %v7505_v59 = vld [vmem:[%s9436_s1 + $0xc10] sm:$0xff]   ;;  %v7507_v61 = vld [vmem:[%s9436_s1 + $0xc58] sm:$0xff]   ;;  %v7531_v45 = vld [vmem:[%s9436_s1 + $0xd48] sm:$0xff]  }
 0x166   :  { %5396 = vmatmul.mubr.bf16.vlgmr.msra.gmra.mrb[40].mxu1 %v5873_v55  ;;  %v7501_v55 = vld [vmem:[%s9436_s1 + $0xc08] sm:$0xff]  }
 0x167   :  { %6914 = vmatpush3.bf16.msra.mxu1 %v7466_v60  ;;  %5477 = vmatprep.mubr.bf16.mxu1 %v5878_v48  ;;  %v7506_v60 = vld [vmem:[%s9436_s1 + $0xc90] sm:$0xff]   ;;  %v7534_v48 = vld [vmem:[%s9436_s1 + $0xd88] sm:$0xff]  }
 0x168   :  { %6915 = vmatprep.subr.bf16.mxu1 %v7468_v62  ;;  %6894 = vmatpush3.bf16.msra.mxu0 %v7469_v63  ;;  %v7508_v62 = vld [vmem:[%s9436_s1 + $0xcd8] sm:$0xff]  }
 0x169   :  { %6895 = vmatprep.subr.bf16.mxu0 %v7471_v1 }
 0x16b   :  { %6916 = vmatpush3.bf16.msra.mxu1 %v7470_v0  ;;  %v7509_v0 = vld [vmem:[%s9436_s1 + $0xc18] sm:$0xff]  }
 0x16c   :  { %6917 = vmatprep.subr.bf16.mxu1 %v7472_v2  ;;  %6896 = vmatpush3.bf16.msra.mxu0 %v7473_v3  ;;  %v7510_v2 = vld [vmem:[%s9436_s1 + $0xc98] sm:$0xff]  }
 0x16d   :  { %6897 = vmatprep.subr.bf16.mxu0 %v7475_v5 }
 0x16f   :  { %6918 = vmatpush3.bf16.msra.mxu1 %v7474_v4  ;;  %v7511_v4 = vld [vmem:[%s9436_s1 + $0xc60] sm:$0xff]  }
 0x170   :  { %6919 = vmatprep.subr.bf16.mxu1 %v7476_v6  ;;  %6898 = vmatpush3.bf16.msra.mxu0 %v7477_v8 }
 0x171   :  { %6899 = vmatprep.subr.bf16.mxu0 %v7479_v12 }
 0x173   :  { %6920 = vmatpush3.bf16.msra.mxu1 %v7478_v10  ;;  %v7513_v10 = vld [vmem:[%s9436_s1 + $0xc20] sm:$0xff]  }
 0x174   :  { %6921 = vmatprep.subr.bf16.mxu1 %v7480_v15  ;;  %6900 = vmatpush3.bf16.msra.mxu0 %v7481_v18 }
 0x175   :  { %6901 = vmatprep.subr.bf16.mxu0 %v7483_v24 }
 0x176   :  { %v6599_v7 = vpop.f32.mrb[16].mxu0 }
 0x177   :  { %v6621_v9 = vpop.f32.mrb[16].mxu1  ;;  %v6600_v11 = vpop.f32.mrb[17].mxu0  ;;  %6922 = vmatpush3.bf16.msra.mxu1 %v7482_v21  ;;  %v7517_v21 = vld [vmem:[%s9436_s1 + $0xc28] sm:$0xff]  }
 0x178   :  { %v6601_v13 = vadd.f32 %v6600_v11, %v6599_v7  ;;  %v6622_v14 = vpop.f32.mrb[17].mxu1  ;;  %v6602_v17 = vpop.f32.mrb[18].mxu0  ;;  %6923 = vmatprep.subr.bf16.mxu1 %v7484_v27  ;;  %6902 = vmatpush3.bf16.msra.mxu0 %v7485_v29  ;;  %v7512_v7 = vld [vmem:[%s9436_s1 + $0xce0] sm:$0xff]   ;;  %v7521_v27 = vld [vmem:[%s9436_s1 + $0xc30] sm:$0xff]   ;;  %v7523_v29 = vld [vmem:[%s9436_s1 + $0xc78] sm:$0xff]  }
 0x179   :  { %v6623_v16 = vadd.f32 %v6622_v14, %v6621_v9  ;;  %v6624_v20 = vpop.f32.mrb[18].mxu1  ;;  %v6603_v22 = vpop.f32.mrb[19].mxu0  ;;  %6903 = vmatprep.subr.bf16.mxu0 %v7487_v33  ;;  %v39_v33 = vld [vmem:[%s9437_s0 + $0xc0] sm:$0xff] }
 0x17a   :  { %v4865_v19 = vadd.f32 %v6601_v13, %v8811_v31  ;;  %v6604_v25 = vadd.f32 %v6603_v22, %v6602_v17  ;;  %v6625_v26 = vpop.f32.mrb[19].mxu1  ;;  %v7486_v31 = vld [vmem:[%s9436_s1 + $0xba8] sm:$0xff]   ;;  %v7514_v13 = vld [vmem:[%s9436_s1 + $0xca0] sm:$0xff]  }
 0x17b   :  { %v6626_v28 = vadd.f32 %v6625_v26, %v6624_v20  ;;  %6924 = vmatpush3.bf16.msra.mxu1 %v7486_v31  ;;  %v7520_v26 = vld [vmem:[%s9436_s1 + $0xcf0] sm:$0xff]   ;;  %v7525_v31 = vld [vmem:[%s9436_s1 + $0xc38] sm:$0xff]  }
 0x17c   :  { %v8925_v23 = vadd.f32 %v6623_v16, %v4865_v19  ;;  %v4868_v30 = vadd.f32 %v6604_v25, %v8826_v40  ;;  %6925 = vmatprep.subr.bf16.mxu1 %v7488_v34  ;;  %6904 = vmatpush3.bf16.msra.mxu0 %v7489_v35  ;;  %v7494_v40 = vld [vmem:[%s9436_s1 + $0xbb8] sm:$0xff]   ;;  %v7515_v16 = vld [vmem:[%s9436_s1 + $0xc68] sm:$0xff]   ;;  %v7519_v25 = vld [vmem:[%s9436_s1 + $0xc70] sm:$0xff]  }
 0x17d   :  { %6905 = vmatprep.subr.bf16.mxu0 %v7491_v37  ;;  %v7516_v19 = vld [vmem:[%s9436_s1 + $0xce8] sm:$0xff]   ;;  %v71_v34 = vld [vmem:[%s9437_s0 + $0x1c0] sm:$0xff] }
 0x17e   :  { %v8940_v32 = vadd.f32 %v6626_v28, %v4868_v30  ;;  %v7522_v28 = vld [vmem:[%s9436_s1 + $0xcb0] sm:$0xff]   ;;  %v7524_v30 = vld [vmem:[%s9436_s1 + $0xcf8] sm:$0xff]   ;;  %v5879_v35 = vcombine.low %v39_v33, %v71_v34  ;;  %v40_v37 = vld [vmem:[%s9437_s0 + $0xc8] sm:$0xff] }
 0x17f   :  { %6926 = vmatpush3.bf16.msra.mxu1 %v7490_v36  ;;  %v5880_v36 = vcombine.high %v39_v33, %v71_v34  ;;  %v7559_v33 = vld [vmem:[%s9436_s1 + $0xe40] sm:$0xff]  }
 0x180   :  { %6927 = vmatprep.subr.bf16.mxu1 %v7492_v38  ;;  %6906 = vmatpush3.bf16.msra.mxu0 %v7493_v39  ;;  %v72_v38 = vld [vmem:[%s9437_s0 + $0x1c8] sm:$0xff]  ;;  %v7560_v34 = vld [vmem:[%s9436_s1 + $0xec0] sm:$0xff]  }
 0x181   :  { %6935 = vmatprep.subr.bf16.mxu0 %v7495_v49  ;;  %v5881_v39 = vcombine.low %v40_v37, %v72_v38  ;;  %v7535_v49 = vld [vmem:[%s9436_s1 + $0xd50] sm:$0xff]  }
 0x183   :  { %6928 = vmatpush3.bf16.msra.mxu1 %v7494_v40  ;;  %5437 = vmatmul.mubr.bf16.vlgmr.msra.gmra.mrb[44].mxu0 %v5875_v44  ;;  %v5882_v40 = vcombine.high %v40_v37, %v72_v38  ;;  %v7530_v44 = vld [vmem:[%s9436_s1 + $0xd80] sm:$0xff]   ;;  %v7563_v37 = vld [vmem:[%s9436_s1 + $0xe48] sm:$0xff]  }
 0x184   :  { %6957 = vmatprep.subr.bf16.mxu1 %v7496_v50  ;;  %6936 = vmatpush3.bf16.msra.mxu0 %v7497_v51  ;;  %v7536_v50 = vld [vmem:[%s9436_s1 + $0xdd0] sm:$0xff]   ;;  %v7564_v38 = vld [vmem:[%s9436_s1 + $0xec8] sm:$0xff]  }
 0x185   :  { %6937 = vmatprep.subr.bf16.mxu0 %v7499_v53  ;;  %5518 = vmatprep.mubr.bf16.mxu0 %v5880_v36  ;;  %v7537_v51 = vld [vmem:[%s9436_s1 + $0xd10] sm:$0xff]   ;;  %v7539_v53 = vld [vmem:[%s9436_s1 + $0xd58] sm:$0xff]   ;;  %v7562_v36 = vld [vmem:[%s9436_s1 + $0xe80] sm:$0xff]  }
 0x186   :  { %5478 = vmatmul.mubr.bf16.vlgmr.msra.gmra.mrb[44].mxu1 %v5877_v47  ;;  %v7533_v47 = vld [vmem:[%s9436_s1 + $0xd08] sm:$0xff]  }
 0x187   :  { %6958 = vmatpush3.bf16.msra.mxu1 %v7498_v52  ;;  %5559 = vmatprep.mubr.bf16.mxu1 %v5882_v40  ;;  %v7538_v52 = vld [vmem:[%s9436_s1 + $0xd90] sm:$0xff]   ;;  %v7566_v40 = vld [vmem:[%s9436_s1 + $0xe88] sm:$0xff]  }
 0x188   :  { %6959 = vmatprep.subr.bf16.mxu1 %v7500_v54  ;;  %6938 = vmatpush3.bf16.msra.mxu0 %v7501_v55  ;;  %v7540_v54 = vld [vmem:[%s9436_s1 + $0xdd8] sm:$0xff]  }
 0x189   :  { %6939 = vmatprep.subr.bf16.mxu0 %v7503_v57 }
 0x18b   :  { %6960 = vmatpush3.bf16.msra.mxu1 %v7502_v56  ;;  %v7541_v56 = vld [vmem:[%s9436_s1 + $0xd18] sm:$0xff]  }
 0x18c   :  { %6961 = vmatprep.subr.bf16.mxu1 %v7504_v58  ;;  %6940 = vmatpush3.bf16.msra.mxu0 %v7505_v59  ;;  %v7542_v58 = vld [vmem:[%s9436_s1 + $0xd98] sm:$0xff]  }
 0x18d   :  { %6941 = vmatprep.subr.bf16.mxu0 %v7507_v61 }
 0x18f   :  { %6962 = vmatpush3.bf16.msra.mxu1 %v7506_v60  ;;  %v7543_v60 = vld [vmem:[%s9436_s1 + $0xd60] sm:$0xff]  }
 0x190   :  { %6963 = vmatprep.subr.bf16.mxu1 %v7508_v62  ;;  %6942 = vmatpush3.bf16.msra.mxu0 %v7509_v0 }
 0x191   :  { %6943 = vmatprep.subr.bf16.mxu0 %v7511_v4 }
 0x193   :  { %6964 = vmatpush3.bf16.msra.mxu1 %v7510_v2  ;;  %v7545_v2 = vld [vmem:[%s9436_s1 + $0xd20] sm:$0xff]  }
 0x194   :  { %6965 = vmatprep.subr.bf16.mxu1 %v7512_v7  ;;  %6944 = vmatpush3.bf16.msra.mxu0 %v7513_v10 }
 0x195   :  { %6945 = vmatprep.subr.bf16.mxu0 %v7515_v16 }
 0x196   :  { %v6643_v63 = vpop.f32.mrb[20].mxu0 }
 0x197   :  { %v6665_v1 = vpop.f32.mrb[20].mxu1  ;;  %v6644_v3 = vpop.f32.mrb[21].mxu0  ;;  %6966 = vmatpush3.bf16.msra.mxu1 %v7514_v13  ;;  %v7549_v13 = vld [vmem:[%s9436_s1 + $0xd28] sm:$0xff]  }
 0x198   :  { %v6645_v5 = vadd.f32 %v6644_v3, %v6643_v63  ;;  %v6666_v6 = vpop.f32.mrb[21].mxu1  ;;  %v6646_v9 = vpop.f32.mrb[22].mxu0  ;;  %6967 = vmatprep.subr.bf16.mxu1 %v7516_v19  ;;  %6946 = vmatpush3.bf16.msra.mxu0 %v7517_v21  ;;  %v7544_v63 = vld [vmem:[%s9436_s1 + $0xde0] sm:$0xff]   ;;  %v7553_v19 = vld [vmem:[%s9436_s1 + $0xd30] sm:$0xff]   ;;  %v7555_v21 = vld [vmem:[%s9436_s1 + $0xd78] sm:$0xff]  }
 0x199   :  { %v6667_v8 = vadd.f32 %v6666_v6, %v6665_v1  ;;  %v6668_v12 = vpop.f32.mrb[22].mxu1  ;;  %v6647_v14 = vpop.f32.mrb[23].mxu0  ;;  %6947 = vmatprep.subr.bf16.mxu0 %v7519_v25  ;;  %v41_v25 = vld [vmem:[%s9437_s0 + $0xd0] sm:$0xff] }
 0x19a   :  { %v4947_v11 = vadd.f32 %v6645_v5, %v8925_v23  ;;  %v6648_v17 = vadd.f32 %v6647_v14, %v6646_v9  ;;  %v6669_v18 = vpop.f32.mrb[23].mxu1  ;;  %v7518_v23 = vld [vmem:[%s9436_s1 + $0xca8] sm:$0xff]   ;;  %v7546_v5 = vld [vmem:[%s9436_s1 + $0xda0] sm:$0xff]  }
 0x19b   :  { %v6670_v20 = vadd.f32 %v6669_v18, %v6668_v12  ;;  %6968 = vmatpush3.bf16.msra.mxu1 %v7518_v23  ;;  %v7552_v18 = vld [vmem:[%s9436_s1 + $0xdf0] sm:$0xff]   ;;  %v7557_v23 = vld [vmem:[%s9436_s1 + $0xd38] sm:$0xff]  }
 0x19c   :  { %v9039_v15 = vadd.f32 %v6667_v8, %v4947_v11  ;;  %v4950_v22 = vadd.f32 %v6648_v17, %v8940_v32  ;;  %6969 = vmatprep.subr.bf16.mxu1 %v7520_v26  ;;  %6948 = vmatpush3.bf16.msra.mxu0 %v7521_v27  ;;  %v7526_v32 = vld [vmem:[%s9436_s1 + $0xcb8] sm:$0xff]   ;;  %v7547_v8 = vld [vmem:[%s9436_s1 + $0xd68] sm:$0xff]   ;;  %v7551_v17 = vld [vmem:[%s9436_s1 + $0xd70] sm:$0xff]  }
 0x19d   :  { %6949 = vmatprep.subr.bf16.mxu0 %v7523_v29  ;;  %v7548_v11 = vld [vmem:[%s9436_s1 + $0xde8] sm:$0xff]   ;;  %v73_v26 = vld [vmem:[%s9437_s0 + $0x1d0] sm:$0xff]  ;;  %v42_v27 = vld [vmem:[%s9437_s0 + $0xd8] sm:$0xff] }
 0x19e   :  { %v9054_v24 = vadd.f32 %v6670_v20, %v4950_v22  ;;  %v7554_v20 = vld [vmem:[%s9436_s1 + $0xdb0] sm:$0xff]   ;;  %v7556_v22 = vld [vmem:[%s9436_s1 + $0xdf8] sm:$0xff]   ;;  %v5883_v29 = vcombine.low %v41_v25, %v73_v26 }
 0x19f   :  { %6970 = vmatpush3.bf16.msra.mxu1 %v7522_v28  ;;  %v74_v28 = vld [vmem:[%s9437_s0 + $0x1d8] sm:$0xff] }
 0x1a0   :  { %6971 = vmatprep.subr.bf16.mxu1 %v7524_v30  ;;  %6950 = vmatpush3.bf16.msra.mxu0 %v7525_v31  ;;  %v5884_v30 = vcombine.high %v41_v25, %v73_v26  ;;  %v5885_v31 = vcombine.low %v42_v27, %v74_v28  ;;  %v7591_v25 = vld [vmem:[%s9436_s1 + $0xf40] sm:$0xff]  }
 0x1a1   :  { %6979 = vmatprep.subr.bf16.mxu0 %v7527_v41  ;;  %v7567_v41 = vld [vmem:[%s9436_s1 + $0xe50] sm:$0xff]   ;;  %v7592_v26 = vld [vmem:[%s9436_s1 + $0xfc0] sm:$0xff]  }
 0x1a3   :  { %6972 = vmatpush3.bf16.msra.mxu1 %v7526_v32  ;;  %5519 = vmatmul.mubr.bf16.vlgmr.msra.gmra.mrb[48].mxu0 %v5879_v35  ;;  %v5886_v32 = vcombine.high %v42_v27, %v74_v28  ;;  %v7561_v35 = vld [vmem:[%s9436_s1 + $0xe00] sm:$0xff]  }
 0x1a4   :  { %7001 = vmatprep.subr.bf16.mxu1 %v7528_v42  ;;  %6980 = vmatpush3.bf16.msra.mxu0 %v7529_v43  ;;  %v7568_v42 = vld [vmem:[%s9436_s1 + $0xed0] sm:$0xff]   ;;  %v7593_v27 = vld [vmem:[%s9436_s1 + $0xf00] sm:$0xff]  }
 0x1a5   :  { %6981 = vmatprep.subr.bf16.mxu0 %v7531_v45  ;;  %5600 = vmatprep.mubr.bf16.mxu0 %v5884_v30  ;;  %v7569_v43 = vld [vmem:[%s9436_s1 + $0xe10] sm:$0xff]   ;;  %v7571_v45 = vld [vmem:[%s9436_s1 + $0xe58] sm:$0xff]   ;;  %v7594_v28 = vld [vmem:[%s9436_s1 + $0xf80] sm:$0xff]  }
 0x1a6   :  { %5560 = vmatmul.mubr.bf16.vlgmr.msra.gmra.mrb[48].mxu1 %v5881_v39  ;;  %v7565_v39 = vld [vmem:[%s9436_s1 + $0xe08] sm:$0xff]  }
 0x1a7   :  { %7002 = vmatpush3.bf16.msra.mxu1 %v7530_v44  ;;  %5641 = vmatprep.mubr.bf16.mxu1 %v5886_v32  ;;  %v7570_v44 = vld [vmem:[%s9436_s1 + $0xe90] sm:$0xff]   ;;  %v7596_v30 = vld [vmem:[%s9436_s1 + $0xfc8] sm:$0xff]  }
 0x1a8   :  { %7003 = vmatprep.subr.bf16.mxu1 %v7532_v46  ;;  %6982 = vmatpush3.bf16.msra.mxu0 %v7533_v47  ;;  %v7572_v46 = vld [vmem:[%s9436_s1 + $0xed8] sm:$0xff]   ;;  %v7598_v32 = vld [vmem:[%s9436_s1 + $0xf88] sm:$0xff]  }
 0x1a9   :  { %6983 = vmatprep.subr.bf16.mxu0 %v7535_v49  ;;  %v7573_v47 = vld [vmem:[%s9436_s1 + $0xe18] sm:$0xff]  }
 0x1aa   :  { %v7574_v49 = vld [vmem:[%s9436_s1 + $0xe98] sm:$0xff]  }
 0x1ab   :  { %7004 = vmatpush3.bf16.msra.mxu1 %v7534_v48 }
 0x1ac   :  { %7005 = vmatprep.subr.bf16.mxu1 %v7536_v50  ;;  %6984 = vmatpush3.bf16.msra.mxu0 %v7537_v51  ;;  %v7575_v51 = vld [vmem:[%s9436_s1 + $0xe60] sm:$0xff]  }
 0x1ad   :  { %6985 = vmatprep.subr.bf16.mxu0 %v7539_v53  ;;  %v7576_v53 = vld [vmem:[%s9436_s1 + $0xee0] sm:$0xff]  }
 0x1af   :  { %7006 = vmatpush3.bf16.msra.mxu1 %v7538_v52 }
 0x1b0   :  { %7007 = vmatprep.subr.bf16.mxu1 %v7540_v54  ;;  %6986 = vmatpush3.bf16.msra.mxu0 %v7541_v56  ;;  %v7577_v56 = vld [vmem:[%s9436_s1 + $0xe20] sm:$0xff]  }
 0x1b1   :  { %6987 = vmatprep.subr.bf16.mxu0 %v7543_v60 }
 0x1b3   :  { %7008 = vmatpush3.bf16.msra.mxu1 %v7542_v58 }
 0x1b4   :  { %7009 = vmatprep.subr.bf16.mxu1 %v7544_v63  ;;  %6988 = vmatpush3.bf16.msra.mxu0 %v7545_v2 }
 0x1b5   :  { %6989 = vmatprep.subr.bf16.mxu0 %v7547_v8  ;;  %v7583_v8 = vld [vmem:[%s9436_s1 + $0xe70] sm:$0xff]  }
 0x1b6   :  { %v6687_v55 = vpop.f32.mrb[24].mxu0 }
 0x1b7   :  { %v6709_v57 = vpop.f32.mrb[24].mxu1  ;;  %v6688_v59 = vpop.f32.mrb[25].mxu0  ;;  %7010 = vmatpush3.bf16.msra.mxu1 %v7546_v5 }
 0x1b8   :  { %v6689_v61 = vadd.f32 %v6688_v59, %v6687_v55  ;;  %v6710_v62 = vpop.f32.mrb[25].mxu1  ;;  %v6690_v1 = vpop.f32.mrb[26].mxu0  ;;  %7011 = vmatprep.subr.bf16.mxu1 %v7548_v11  ;;  %6990 = vmatpush3.bf16.msra.mxu0 %v7549_v13  ;;  %v7578_v59 = vld [vmem:[%s9436_s1 + $0xea0] sm:$0xff]   ;;  %v7585_v11 = vld [vmem:[%s9436_s1 + $0xe30] sm:$0xff]   ;;  %v7587_v13 = vld [vmem:[%s9436_s1 + $0xe78] sm:$0xff]  }
 0x1b9   :  { %v6711_v0 = vadd.f32 %v6710_v62, %v6709_v57  ;;  %v6712_v4 = vpop.f32.mrb[26].mxu1  ;;  %v6691_v6 = vpop.f32.mrb[27].mxu0  ;;  %6991 = vmatprep.subr.bf16.mxu0 %v7551_v17  ;;  %v7579_v62 = vld [vmem:[%s9436_s1 + $0xe68] sm:$0xff]   ;;  %v43_v17 = vld [vmem:[%s9437_s0 + $0xe0] sm:$0xff] }
 0x1ba   :  { %v5029_v3 = vadd.f32 %v6689_v61, %v9039_v15  ;;  %v6692_v9 = vadd.f32 %v6691_v6, %v6690_v1  ;;  %v6713_v10 = vpop.f32.mrb[27].mxu1  ;;  %v7550_v15 = vld [vmem:[%s9436_s1 + $0xda8] sm:$0xff]  }
 0x1bb   :  { %v6714_v12 = vadd.f32 %v6713_v10, %v6712_v4  ;;  %7012 = vmatpush3.bf16.msra.mxu1 %v7550_v15  ;;  %v7580_v1 = vld [vmem:[%s9436_s1 + $0xee8] sm:$0xff]   ;;  %v7584_v10 = vld [vmem:[%s9436_s1 + $0xef0] sm:$0xff]   ;;  %v7589_v15 = vld [vmem:[%s9436_s1 + $0xe38] sm:$0xff]  }
 0x1bc   :  { %v9153_v7 = vadd.f32 %v6711_v0, %v5029_v3  ;;  %v5032_v14 = vadd.f32 %v6692_v9, %v9054_v24  ;;  %7013 = vmatprep.subr.bf16.mxu1 %v7552_v18  ;;  %6992 = vmatpush3.bf16.msra.mxu0 %v7553_v19  ;;  %v7558_v24 = vld [vmem:[%s9436_s1 + $0xdb8] sm:$0xff]   ;;  %v7581_v4 = vld [vmem:[%s9436_s1 + $0xe28] sm:$0xff]   ;;  %v75_v18 = vld [vmem:[%s9437_s0 + $0x1e0] sm:$0xff] }
 0x1bd   :  { %6993 = vmatprep.subr.bf16.mxu0 %v7555_v21  ;;  %v7582_v6 = vld [vmem:[%s9436_s1 + $0xea8] sm:$0xff]   ;;  %v5888_v21 = vcombine.high %v43_v17, %v75_v18 }
 0x1be   :  { %v9168_v16 = vadd.f32 %v6714_v12, %v5032_v14  ;;  %v7586_v12 = vld [vmem:[%s9436_s1 + $0xeb0] sm:$0xff]   ;;  %v7588_v14 = vld [vmem:[%s9436_s1 + $0xef8] sm:$0xff]   ;;  %v44_v19 = vld [vmem:[%s9437_s0 + $0xe8] sm:$0xff] }
 0x1bf   :  { %7014 = vmatpush3.bf16.msra.mxu1 %v7554_v20  ;;  %v5887_v20 = vcombine.low %v43_v17, %v75_v18 }
 0x1c0   :  { %7015 = vmatprep.subr.bf16.mxu1 %v7556_v22  ;;  %6994 = vmatpush3.bf16.msra.mxu0 %v7557_v23  ;;  %v76_v22 = vld [vmem:[%s9437_s0 + $0x1e8] sm:$0xff] }
 0x1c1   :  { %7023 = vmatprep.subr.bf16.mxu0 %v7559_v33  ;;  %v5889_v23 = vcombine.low %v44_v19, %v76_v22  ;;  %v7599_v33 = vld [vmem:[%s9436_s1 + $0xf50] sm:$0xff]  }
 0x1c3   :  { %7016 = vmatpush3.bf16.msra.mxu1 %v7558_v24  ;;  %5601 = vmatmul.mubr.bf16.vlgmr.msra.gmra.mrb[52].mxu0 %v5883_v29  ;;  %v5890_v24 = vcombine.high %v44_v19, %v76_v22  ;;  %v7595_v29 = vld [vmem:[%s9436_s1 + $0xf48] sm:$0xff]  }
 0x1c4   :  { %7045 = vmatprep.subr.bf16.mxu1 %v7560_v34  ;;  %7024 = vmatpush3.bf16.msra.mxu0 %v7561_v35  ;;  %v7600_v34 = vld [vmem:[%s9436_s1 + $0xfd0] sm:$0xff]  }
 0x1c5   :  { %7025 = vmatprep.subr.bf16.mxu0 %v7563_v37  ;;  %5682 = vmatprep.mubr.bf16.mxu0 %v5888_v21  ;;  %v7601_v35 = vld [vmem:[%s9436_s1 + $0xf10] sm:$0xff]   ;;  %v7603_v37 = vld [vmem:[%s9436_s1 + $0xf58] sm:$0xff]  }
 0x1c6   :  { %5642 = vmatmul.mubr.bf16.vlgmr.msra.gmra.mrb[52].mxu1 %v5885_v31  ;;  %v7597_v31 = vld [vmem:[%s9436_s1 + $0xf08] sm:$0xff]  }
 0x1c7   :  { %7046 = vmatpush3.bf16.msra.mxu1 %v7562_v36  ;;  %5723 = vmatprep.mubr.bf16.mxu1 %v5890_v24  ;;  %v7602_v36 = vld [vmem:[%s9436_s1 + $0xf90] sm:$0xff]  }
 0x1c8   :  { %7047 = vmatprep.subr.bf16.mxu1 %v7564_v38  ;;  %7026 = vmatpush3.bf16.msra.mxu0 %v7565_v39  ;;  %v7604_v38 = vld [vmem:[%s9436_s1 + $0xfd8] sm:$0xff]  }
 0x1c9   :  { %7027 = vmatprep.subr.bf16.mxu0 %v7567_v41 }
 0x1cb   :  { %7048 = vmatpush3.bf16.msra.mxu1 %v7566_v40  ;;  %v7605_v40 = vld [vmem:[%s9436_s1 + $0xf18] sm:$0xff]  }
 0x1cc   :  { %7049 = vmatprep.subr.bf16.mxu1 %v7568_v42  ;;  %7028 = vmatpush3.bf16.msra.mxu0 %v7569_v43  ;;  %v7606_v42 = vld [vmem:[%s9436_s1 + $0xf98] sm:$0xff]  }
 0x1cd   :  { %7029 = vmatprep.subr.bf16.mxu0 %v7571_v45 }
 0x1cf   :  { %7050 = vmatpush3.bf16.msra.mxu1 %v7570_v44  ;;  %v7607_v44 = vld [vmem:[%s9436_s1 + $0xf60] sm:$0xff]  }
 0x1d0   :  { %7051 = vmatprep.subr.bf16.mxu1 %v7572_v46  ;;  %7030 = vmatpush3.bf16.msra.mxu0 %v7573_v47  ;;  %v7608_v47 = vld [vmem:[%s9436_s1 + $0xfe0] sm:$0xff]  }
 0x1d1   :  { %7031 = vmatprep.subr.bf16.mxu0 %v7575_v51 }
 0x1d3   :  { %7052 = vmatpush3.bf16.msra.mxu1 %v7574_v49 }
 0x1d4   :  { %7053 = vmatprep.subr.bf16.mxu1 %v7576_v53  ;;  %7032 = vmatpush3.bf16.msra.mxu0 %v7577_v56  ;;  %v7610_v53 = vld [vmem:[%s9436_s1 + $0xfa0] sm:$0xff]   ;;  %v7611_v56 = vld [vmem:[%s9436_s1 + $0xf68] sm:$0xff]  }
 0x1d5   :  { %7033 = vmatprep.subr.bf16.mxu0 %v7579_v62 }
 0x1d6   :  { %v6731_v48 = vpop.f32.mrb[28].mxu0 }
 0x1d7   :  { %v6753_v50 = vpop.f32.mrb[28].mxu1  ;;  %v6732_v52 = vpop.f32.mrb[29].mxu0  ;;  %7054 = vmatpush3.bf16.msra.mxu1 %v7578_v59  ;;  %v7612_v59 = vld [vmem:[%s9436_s1 + $0xfe8] sm:$0xff]  }
 0x1d8   :  { %v6733_v54 = vadd.f32 %v6732_v52, %v6731_v48  ;;  %v6754_v55 = vpop.f32.mrb[29].mxu1  ;;  %v6734_v58 = vpop.f32.mrb[30].mxu0  ;;  %7055 = vmatprep.subr.bf16.mxu1 %v7580_v1  ;;  %7034 = vmatpush3.bf16.msra.mxu0 %v7581_v4  ;;  %v7615_v1 = vld [vmem:[%s9436_s1 + $0xf70] sm:$0xff]  }
 0x1d9   :  { %v6755_v57 = vadd.f32 %v6754_v55, %v6753_v50  ;;  %v6756_v61 = vpop.f32.mrb[30].mxu1  ;;  %v6735_v63 = vpop.f32.mrb[31].mxu0  ;;  %7035 = vmatprep.subr.bf16.mxu0 %v7583_v8  ;;  %v7609_v50 = vld [vmem:[%s9436_s1 + $0xf20] sm:$0xff]   ;;  %v7618_v4 = vld [vmem:[%s9436_s1 + $0xfb0] sm:$0xff]   ;;  %v7622_v8 = vld [vmem:[%s9436_s1 + $0xfb8] sm:$0xff]  }
 0x1da   :  { %v5111_v60 = vadd.f32 %v6733_v54, %v9153_v7  ;;  %v6736_v2 = vadd.f32 %v6735_v63, %v6734_v58  ;;  %v6757_v3 = vpop.f32.mrb[31].mxu1  ;;  %v7614_v63 = vld [vmem:[%s9436_s1 + $0xfa8] sm:$0xff]  }
 0x1db   :  { %v6758_v5 = vadd.f32 %v6757_v3, %v6756_v61  ;;  %7056 = vmatpush3.bf16.msra.mxu1 %v7582_v6  ;;  %v7613_v61 = vld [vmem:[%s9436_s1 + $0xf28] sm:$0xff]   ;;  %v7617_v3 = vld [vmem:[%s9436_s1 + $0xf30] sm:$0xff]   ;;  %v7620_v6 = vld [vmem:[%s9436_s1 + $0xff8] sm:$0xff]  }
 0x1dc   :  { %v9270_v0 = vadd.f32 %v6755_v57, %v5111_v60  ;;  %v5114_v7 = vadd.f32 %v6736_v2, %v9168_v16  ;;  %7057 = vmatprep.subr.bf16.mxu1 %v7584_v10  ;;  %7036 = vmatpush3.bf16.msra.mxu0 %v7585_v11  ;;  %v7590_v16 = vld [vmem:[%s9436_s1 + $0xeb8] sm:$0xff]   ;;  %v7616_v2 = vld [vmem:[%s9436_s1 + $0xff0] sm:$0xff]  }
 0x1dd   :  { %7037 = vmatprep.subr.bf16.mxu0 %v7587_v13  ;;  %v77_v10 = vld [vmem:[%s9437_s0 + $0x1f0] sm:$0xff]  ;;  %v46_v13 = vld [vmem:[%s9437_s0 + $0xf8] sm:$0xff] }
 0x1de   :  { %v9285_v9 = vadd.f32 %v6758_v5, %v5114_v7  ;;  %v7619_v5 = vld [vmem:[%s9436_s1 + $0xf78] sm:$0xff]  }
 0x1df   :  { %7058 = vmatpush3.bf16.msra.mxu1 %v7586_v12  ;;  %v7621_v7 = vld [vmem:[%s9436_s1 + $0xf38] sm:$0xff]  }
 0x1e0   :  { %7059 = vmatprep.subr.bf16.mxu1 %v7588_v14  ;;  %7038 = vmatpush3.bf16.msra.mxu0 %v7589_v15  ;;  %v78_v14 = vld [vmem:[%s9437_s0 + $0x1f8] sm:$0xff] }
 0x1e1   :  { %7067 = vmatprep.subr.bf16.mxu0 %v7591_v25  ;;  %v5893_v15 = vcombine.low %v46_v13, %v78_v14 }
 0x1e3   :  { %7060 = vmatpush3.bf16.msra.mxu1 %v7590_v16  ;;  %5683 = vmatmul.mubr.bf16.vlgmr.msra.gmra.mrb[56].mxu0 %v5887_v20  ;;  %v5894_v16 = vcombine.high %v46_v13, %v78_v14 }
 0x1e4   :  { %7089 = vmatprep.subr.bf16.mxu1 %v7592_v26  ;;  %7068 = vmatpush3.bf16.msra.mxu0 %v7593_v27 }
 0x1e5   :  { %7069 = vmatprep.subr.bf16.mxu0 %v7595_v29 }
 0x1e6   :  { %5724 = vmatmul.mubr.bf16.vlgmr.msra.gmra.mrb[56].mxu1 %v5889_v23 }
 0x1e7   :  { %7090 = vmatpush3.bf16.msra.mxu1 %v7594_v28  ;;  %5805 = vmatprep.mubr.bf16.mxu1 %v5894_v16 }
 0x1e8   :  { %7091 = vmatprep.subr.bf16.mxu1 %v7596_v30  ;;  %7070 = vmatpush3.bf16.msra.mxu0 %v7597_v31 }
 0x1e9   :  { %7071 = vmatprep.subr.bf16.mxu0 %v7599_v33 }
 0x1eb   :  { %7092 = vmatpush3.bf16.msra.mxu1 %v7598_v32 }
 0x1ec   :  { %7093 = vmatprep.subr.bf16.mxu1 %v7600_v34  ;;  %7072 = vmatpush3.bf16.msra.mxu0 %v7601_v35 }
 0x1ed   :  { %7073 = vmatprep.subr.bf16.mxu0 %v7603_v37 }
 0x1ef   :  { %7094 = vmatpush3.bf16.msra.mxu1 %v7602_v36 }
 0x1f0   :  { %7095 = vmatprep.subr.bf16.mxu1 %v7604_v38  ;;  %7074 = vmatpush3.bf16.msra.mxu0 %v7605_v40 }
 0x1f1   :  { %7075 = vmatprep.subr.bf16.mxu0 %v7607_v44 }
 0x1f3   :  { %7096 = vmatpush3.bf16.msra.mxu1 %v7606_v42 }
 0x1f4   :  { %7097 = vmatprep.subr.bf16.mxu1 %v7608_v47  ;;  %7076 = vmatpush3.bf16.msra.mxu0 %v7609_v50 }
 0x1f5   :  { %7077 = vmatprep.subr.bf16.mxu0 %v7611_v56 }
 0x1f6   :  { %v6775_v39 = vpop.f32.mrb[32].mxu0 }
 0x1f7   :  { %v6797_v41 = vpop.f32.mrb[32].mxu1  ;;  %v6776_v43 = vpop.f32.mrb[33].mxu0  ;;  %7098 = vmatpush3.bf16.msra.mxu1 %v7610_v53 }
 0x1f8   :  { %v6777_v45 = vadd.f32 %v6776_v43, %v6775_v39  ;;  %v6798_v46 = vpop.f32.mrb[33].mxu1  ;;  %v6778_v49 = vpop.f32.mrb[34].mxu0  ;;  %7099 = vmatprep.subr.bf16.mxu1 %v7612_v59  ;;  %7078 = vmatpush3.bf16.msra.mxu0 %v7613_v61 }
 0x1f9   :  { %v6799_v48 = vadd.f32 %v6798_v46, %v6797_v41  ;;  %v6800_v52 = vpop.f32.mrb[34].mxu1  ;;  %v6779_v54 = vpop.f32.mrb[35].mxu0  ;;  %7079 = vmatprep.subr.bf16.mxu0 %v7615_v1 }
 0x1fa   :  { %v5193_v51 = vadd.f32 %v6777_v45, %v9270_v0  ;;  %v6780_v57 = vadd.f32 %v6779_v54, %v6778_v49  ;;  %v6801_v58 = vpop.f32.mrb[35].mxu1 }
 0x1fb   :  { %v6802_v60 = vadd.f32 %v6801_v58, %v6800_v52  ;;  %7100 = vmatpush3.bf16.msra.mxu1 %v7614_v63 }
 0x1fc   :  { %v5234_v55 = vadd.f32 %v6799_v48, %v5193_v51  ;;  %v5196_v62 = vadd.f32 %v6780_v57, %v9285_v9  ;;  %7101 = vmatprep.subr.bf16.mxu1 %v7616_v2  ;;  %7080 = vmatpush3.bf16.msra.mxu0 %v7617_v3  ;;  %v45_v9 = vld [vmem:[%s9437_s0 + $0xf0] sm:$0xff] }
 0x1fd   :  { %7081 = vmatprep.subr.bf16.mxu0 %v7619_v5  ;;  %v5891_v11 = vcombine.low %v45_v9, %v77_v10  ;;  %v5892_v12 = vcombine.high %v45_v9, %v77_v10 }
 0x1fe   :  { %v5237_v0 = vadd.f32 %v6802_v60, %v5196_v62 }
 0x1ff   :  { %7102 = vmatpush3.bf16.msra.mxu1 %v7618_v4  ;;  %5764 = vmatprep.mubr.bf16.mxu0 %v5892_v12 }
 0x200   :  { %7103 = vmatprep.subr.bf16.mxu1 %v7620_v6  ;;  %7082 = vmatpush3.bf16.msra.mxu0 %v7621_v7 }
 0x203   :  { %7104 = vmatpush3.bf16.msra.mxu1 %v7622_v8  ;;  %5765 = vmatmul.mubr.bf16.vlgmr.msra.gmra.mrb[60].mxu0 %v5891_v11 }
 0x206   :  { %5806 = vmatmul.mubr.bf16.vlgmr.msra.gmra.mrb[60].mxu1 %v5893_v15 }
 0x216   :  { %v6819_v17 = vpop.f32.mrb[36].mxu0 }
 0x217   :  { %v6820_v19 = vpop.f32.mrb[37].mxu0 }
 0x218   :  { %v6821_v20 = vadd.f32 %v6820_v19, %v6819_v17  ;;  %v6822_v22 = vpop.f32.mrb[38].mxu0 }
 0x219   :  { %v6841_v18 = vpop.f32.mrb[36].mxu1  ;;  %v6823_v25 = vpop.f32.mrb[39].mxu0 }
 0x21a   :  { %v6842_v21 = vpop.f32.mrb[37].mxu1  ;;  %v5275_v26 = vadd.f32 %v6821_v20, %v5234_v55  ;;  %v6824_v27 = vadd.f32 %v6823_v25, %v6822_v22 }
 0x21b   :  { %v6843_v23 = vadd.f32 %v6842_v21, %v6841_v18  ;;  %v6844_v24 = vpop.f32.mrb[38].mxu1 }
 0x21c   :  { %v6845_v28 = vpop.f32.mrb[39].mxu1  ;;  %v5278_v31 = vadd.f32 %v6824_v27, %v5237_v0 }
 0x21d   :  { %v6846_v29 = vadd.f32 %v6845_v28, %v6844_v24  ;;  %v5316_v30 = vadd.f32 %v6843_v23, %v5275_v26 }
 0x21f   :  { %v5319_v32 = vadd.f32 %v6846_v29, %v5278_v31 }
 0x236   :  { %v6863_v33 = vpop.f32.mrb[40].mxu0 }
 0x237   :  { %v6864_v35 = vpop.f32.mrb[41].mxu0 }
 0x238   :  { %v6865_v37 = vadd.f32 %v6864_v35, %v6863_v33  ;;  %v6866_v39 = vpop.f32.mrb[42].mxu0 }
 0x239   :  { %v6885_v34 = vpop.f32.mrb[40].mxu1  ;;  %v6867_v41 = vpop.f32.mrb[43].mxu0 }
 0x23a   :  { %v6886_v36 = vpop.f32.mrb[41].mxu1  ;;  %v5357_v43 = vadd.f32 %v6865_v37, %v5316_v30  ;;  %v6868_v44 = vadd.f32 %v6867_v41, %v6866_v39 }
 0x23b   :  { %v6887_v38 = vadd.f32 %v6886_v36, %v6885_v34  ;;  %v6888_v40 = vpop.f32.mrb[42].mxu1 }
 0x23c   :  { %v6889_v42 = vpop.f32.mrb[43].mxu1  ;;  %v5360_v47 = vadd.f32 %v6868_v44, %v5319_v32 }
 0x23d   :  { %v6890_v45 = vadd.f32 %v6889_v42, %v6888_v40  ;;  %v5398_v46 = vadd.f32 %v6887_v38, %v5357_v43 }
 0x23f   :  { %v5401_v48 = vadd.f32 %v6890_v45, %v5360_v47 }
 0x256   :  { %v6907_v49 = vpop.f32.mrb[44].mxu0 }
 0x257   :  { %v6908_v51 = vpop.f32.mrb[45].mxu0 }
 0x258   :  { %v6909_v52 = vadd.f32 %v6908_v51, %v6907_v49  ;;  %v6910_v54 = vpop.f32.mrb[46].mxu0 }
 0x259   :  { %v6929_v50 = vpop.f32.mrb[44].mxu1  ;;  %v6911_v57 = vpop.f32.mrb[47].mxu0 }
 0x25a   :  { %v6930_v53 = vpop.f32.mrb[45].mxu1  ;;  %v5439_v58 = vadd.f32 %v6909_v52, %v5398_v46  ;;  %v6912_v59 = vadd.f32 %v6911_v57, %v6910_v54 }
 0x25b   :  { %v6931_v55 = vadd.f32 %v6930_v53, %v6929_v50  ;;  %v6932_v56 = vpop.f32.mrb[46].mxu1 }
 0x25c   :  { %v6933_v60 = vpop.f32.mrb[47].mxu1  ;;  %v5442_v63 = vadd.f32 %v6912_v59, %v5401_v48 }
 0x25d   :  { %v6934_v61 = vadd.f32 %v6933_v60, %v6932_v56  ;;  %v5480_v62 = vadd.f32 %v6931_v55, %v5439_v58 }
 0x25f   :  { %v5483_v0 = vadd.f32 %v6934_v61, %v5442_v63 }
 0x276   :  { %v6951_v1 = vpop.f32.mrb[48].mxu0 }
 0x277   :  { %v6952_v3 = vpop.f32.mrb[49].mxu0 }
 0x278   :  { %v6953_v4 = vadd.f32 %v6952_v3, %v6951_v1  ;;  %v6954_v6 = vpop.f32.mrb[50].mxu0 }
 0x279   :  { %v6973_v2 = vpop.f32.mrb[48].mxu1  ;;  %v6955_v9 = vpop.f32.mrb[51].mxu0 }
 0x27a   :  { %v6974_v5 = vpop.f32.mrb[49].mxu1  ;;  %v5521_v10 = vadd.f32 %v6953_v4, %v5480_v62  ;;  %v6956_v11 = vadd.f32 %v6955_v9, %v6954_v6 }
 0x27b   :  { %v6975_v7 = vadd.f32 %v6974_v5, %v6973_v2  ;;  %v6976_v8 = vpop.f32.mrb[50].mxu1 }
 0x27c   :  { %v6977_v12 = vpop.f32.mrb[51].mxu1  ;;  %v5524_v15 = vadd.f32 %v6956_v11, %v5483_v0 }
 0x27d   :  { %v6978_v13 = vadd.f32 %v6977_v12, %v6976_v8  ;;  %v5562_v14 = vadd.f32 %v6975_v7, %v5521_v10 }
 0x27f   :  { %v5565_v16 = vadd.f32 %v6978_v13, %v5524_v15 }
 0x296   :  { %v6995_v17 = vpop.f32.mrb[52].mxu0 }
 0x297   :  { %v6996_v19 = vpop.f32.mrb[53].mxu0 }
 0x298   :  { %v6997_v21 = vadd.f32 %v6996_v19, %v6995_v17  ;;  %v6998_v23 = vpop.f32.mrb[54].mxu0 }
 0x299   :  { %v7017_v18 = vpop.f32.mrb[52].mxu1  ;;  %v6999_v25 = vpop.f32.mrb[55].mxu0 }
 0x29a   :  { %v7018_v20 = vpop.f32.mrb[53].mxu1  ;;  %v5603_v27 = vadd.f32 %v6997_v21, %v5562_v14  ;;  %v7000_v28 = vadd.f32 %v6999_v25, %v6998_v23 }
 0x29b   :  { %v7019_v22 = vadd.f32 %v7018_v20, %v7017_v18  ;;  %v7020_v24 = vpop.f32.mrb[54].mxu1 }
 0x29c   :  { %v7021_v26 = vpop.f32.mrb[55].mxu1  ;;  %v5606_v31 = vadd.f32 %v7000_v28, %v5565_v16 }
 0x29d   :  { %v7022_v29 = vadd.f32 %v7021_v26, %v7020_v24  ;;  %v5644_v30 = vadd.f32 %v7019_v22, %v5603_v27 }
 0x29f   :  { %v5647_v32 = vadd.f32 %v7022_v29, %v5606_v31 }
 0x2b6   :  { %v7039_v33 = vpop.f32.mrb[56].mxu0 }
 0x2b7   :  { %v7040_v35 = vpop.f32.mrb[57].mxu0 }
 0x2b8   :  { %v7041_v36 = vadd.f32 %v7040_v35, %v7039_v33  ;;  %v7042_v38 = vpop.f32.mrb[58].mxu0 }
 0x2b9   :  { %v7061_v34 = vpop.f32.mrb[56].mxu1  ;;  %v7043_v41 = vpop.f32.mrb[59].mxu0 }
 0x2ba   :  { %v7062_v37 = vpop.f32.mrb[57].mxu1  ;;  %v5685_v42 = vadd.f32 %v7041_v36, %v5644_v30  ;;  %v7044_v43 = vadd.f32 %v7043_v41, %v7042_v38 }
 0x2bb   :  { %v7063_v39 = vadd.f32 %v7062_v37, %v7061_v34  ;;  %v7064_v40 = vpop.f32.mrb[58].mxu1 }
 0x2bc   :  { %v7065_v44 = vpop.f32.mrb[59].mxu1  ;;  %v5688_v47 = vadd.f32 %v7044_v43, %v5647_v32 }
 0x2bd   :  { %v7066_v45 = vadd.f32 %v7065_v44, %v7064_v40  ;;  %v5726_v46 = vadd.f32 %v7063_v39, %v5685_v42 }
 0x2bf   :  { %v5729_v48 = vadd.f32 %v7066_v45, %v5688_v47 }
 0x2d6   :  { %v7083_v49 = vpop.f32.mrb[60].mxu0 }
 0x2d7   :  { %v7084_v51 = vpop.f32.mrb[61].mxu0 }
 0x2d8   :  { %v7085_v52 = vadd.f32 %v7084_v51, %v7083_v49  ;;  %v7086_v54 = vpop.f32.mrb[62].mxu0 }
 0x2d9   :  { %v7105_v50 = vpop.f32.mrb[60].mxu1  ;;  %v7087_v57 = vpop.f32.mrb[63].mxu0 }
 0x2da   :  { %v7106_v53 = vpop.f32.mrb[61].mxu1  ;;  %v5767_v58 = vadd.f32 %v7085_v52, %v5726_v46  ;;  %v7088_v59 = vadd.f32 %v7087_v57, %v7086_v54 }
 0x2db   :  { %v7107_v55 = vadd.f32 %v7106_v53, %v7105_v50  ;;  %v7108_v56 = vpop.f32.mrb[62].mxu1 }
 0x2dc   :  { %v7109_v60 = vpop.f32.mrb[63].mxu1  ;;  %v5770_v63 = vadd.f32 %v7088_v59, %v5729_v48 }
 0x2dd   :  { %v7110_v61 = vadd.f32 %v7109_v60, %v7108_v56  ;;  %v5808_v62 = vadd.f32 %v7107_v55, %v5767_v58 }
 0x2df   :  { %v5814_v0 = vsub.f32 0.0, %v5808_v62  ;;  %v5811_v1 = vadd.f32 %v7110_v61, %v5770_v63 }
 0x2e1   :  { %v5816_v2 = vmul.f32 1.442695, %v5814_v0  ;;  %v5815_v3 = vsub.f32 0.0, %v5811_v1 }
 0x2e3   :  { %7623 = vpow2.f32 %v5816_v2  ;;  %v5818_v4 = vmul.f32 1.442695, %v5815_v3 }
 0x2e5   :  { %7625 = vpow2.f32 %v5818_v4 }
 0x2ed   :  { %v7624_v5 = vpop.eup %7623 }
 0x2ee   :  { %v5820_v6 = vadd.f32 1.0, %v7624_v5 }
 0x2ef   :  { %v7626_v7 = vpop.eup %7625 }
 0x2f0   :  { %7627 = vrcp.f32 %v5820_v6  ;;  %v5821_v8 = vadd.f32 1.0, %v7626_v7 }
 0x2f2   :  { %7629 = vrcp.f32 %v5821_v8 }
 0x2fa   :  { %v7628_v9 = vpop.eup %7627 }
 0x2fb   :  { %5824 = vst [vmem:[%s9439_s3] sm:$0xff] %v7628_v9 }
 0x2fc   :  { %v7630_v10 = vpop.eup %7629 }
 0x2fd   :  { %5825 = vst [vmem:[%s9439_s3 + $0x8] sm:$0xff] %v7630_v10 }

</bundles_post_ra>
